<compile_context>
chip_gen: v7x
topology: tpu7x:2x2x1
jax: 0.10.0
libtpu: 0.0.40
codegen_flags: <defaults>
</compile_context>

<pallas_src>
import numpy as np
import jax
import jax.numpy as jnp
from jax.experimental import pallas as pl
from jax.experimental.pallas import tpu as pltpu

EPS_NORM = 1e-8     # gvp _norm_no_nan eps
EPS_LN = 1e-5       # nn.LayerNorm eps
_W_ALIGN = 16       # bf16 sublane tile = 16 rows -> every weight 16-row aligned


def _round_up(x, m):
    return ((x + m - 1) // m) * m


# ----------------------------------------------------------------------------
# In-kernel math helpers (vector channels stored stacked as [3R, C]).
# ----------------------------------------------------------------------------
def _bf(x):
    return x.astype(jnp.bfloat16)


def _mm(a, b):
    return jnp.dot(a, b, preferred_element_type=jnp.float32)


def _split3(x3):
    r = x3.shape[0] // 3
    return x3[:r], x3[r:2 * r], x3[2 * r:]


def _gvp(s, v3, wh, ws, b, wv, relu_s, sigmoid_v):
    """GVP with vi>0.  s: [R, si] f32, v3: [3R, vi] f32 (x;y;z row-stacked)."""
    vh = _mm(_bf(v3), wh)                                   # [3R, h] - 1 MXU push
    hx, hy, hz = _split3(vh)
    vn = jnp.sqrt(jnp.maximum(hx * hx + hy * hy + hz * hz, EPS_NORM))
    so = _mm(_bf(jnp.concatenate([s, vn], axis=-1)), ws) + b
    if relu_s:
        so = jnp.maximum(so, 0.0)
    if wv is None:
        return so, None
    vo3 = _mm(_bf(vh), wv)                                  # [3R, vo]
    if sigmoid_v:
        ox, oy, oz = _split3(vo3)
        gate = jax.nn.sigmoid(
            jnp.sqrt(jnp.maximum(ox * ox + oy * oy + oz * oz, EPS_NORM)))
        vo3 = vo3 * jnp.concatenate([gate, gate, gate], axis=0)
    return so, vo3


def _layer_norm(s, v3, g, b):
    mu = jnp.mean(s, axis=-1, keepdims=True)
    var = jnp.mean(jnp.square(s - mu), axis=-1, keepdims=True)
    so = (s - mu) * jax.lax.rsqrt(var + EPS_LN) * g + b
    vx, vy, vz = _split3(v3)
    vn2 = jnp.maximum(vx * vx + vy * vy + vz * vz, EPS_NORM)   # per-channel ||v||^2
    inv = jax.lax.rsqrt(jnp.mean(vn2, axis=-1, keepdims=True))  # 1/rms over channels
    return so, v3 * jnp.concatenate([inv, inv, inv], axis=0)


# ----------------------------------------------------------------------------
# The single fused kernel: whole MQAModel forward, everything VMEM-resident.
# ----------------------------------------------------------------------------
def _mqa_fused_kernel(s_ref, v_ref, es_ref, ev_ref, g2_ref, agg_ref,
                      invdeg_ref, pool_ref, w_ref, b_ref, o_ref,
                      *, num_layers, ns, nv, wl, bl):
    def W(name):                                      # bf16 weight slab slice
        off, r, c = wl[name]
        return w_ref[off:off + r, 0:c]

    def B(name):                                      # f32 bias-slab row
        row, c = bl[name]
        return b_ref[row:row + 1, 0:c]

    Np = s_ref.shape[0]
    Ep = es_ref.shape[0]

    s, V3 = s_ref[...], v_ref[...]
    es, EV3 = es_ref[...], ev_ref[...]
    G2, A = g2_ref[...], agg_ref[...]                 # bf16 gather / scatter mats
    invdeg, pool = invdeg_ref[...], pool_ref[...]

    # ---------------- W_v / W_e : LayerNorm -> GVP(act=(None, None)) ----------
    s, V3 = _layer_norm(s, V3, B("wv_ln_g"), B("wv_ln_b"))
    s, V3 = _gvp(s, V3, W("wv_wh"), W("wv_ws"), B("wv_b"), W("wv_wv"), False, False)
    es, EV3 = _layer_norm(es, EV3, B("we_ln_g"), B("we_ln_b"))
    es, EV3 = _gvp(es, EV3, W("we_wh"), W("we_ws"), B("we_b"), W("we_wv"), False, False)

    # TODO(synk): for graphs too large for a single VMEM-resident block, replace
    # the dense G2/A matrices with scalar-prefetched src/dst indices on an
    # edge-tiled grid (marked "parallel" for v7x's two TensorCores) and switch
    # this unrolled loop to lax.fori_loop over a layer-stacked slab.
    for l in range(num_layers):
        p = f"l{l}_"

        # ---- fused endpoint gather: one [2E,N] x [N, ns+3nv] matmul ----
        F = jnp.concatenate([s, V3[:Np], V3[Np:2 * Np], V3[2 * Np:]], axis=-1)
        Fji = _mm(G2, _bf(F))                                  # [2Ep, ns+3nv] f32
        Fj, Fi = Fji[:Ep], Fji[Ep:]
        s_j, s_i = Fj[:, :ns], Fi[:, :ns]
        Vj3 = jnp.concatenate([Fj[:, ns:ns + nv], Fj[:, ns + nv:ns + 2 * nv],
                               Fj[:, ns + 2 * nv:ns + 3 * nv]], axis=0)
        Vi3 = jnp.concatenate([Fi[:, ns:ns + nv], Fi[:, ns + nv:ns + 2 * nv],
                               Fi[:, ns + 2 * nv:ns + 3 * nv]], axis=0)

        # ---- message GVP0: un-split weights, single concatenated operands ----
        Vin3 = jnp.concatenate([Vj3, EV3, Vi3], axis=-1)        # [3Ep, 2nv+ve]
        vh = _mm(_bf(Vin3), W(p + "m0_wh"))                     # [3Ep, h0]
        hx, hy, hz = _split3(vh)
        vn = jnp.sqrt(jnp.maximum(hx * hx + hy * hy + hz * hz, EPS_NORM))
        Sin = jnp.concatenate([s_j, es, s_i, vn], axis=-1)      # [Ep, 2ns+se+h0]
        ms = jnp.maximum(_mm(_bf(Sin), W(p + "m0_ws")) + B(p + "m0_b"), 0.0)
        mv3 = _mm(_bf(vh), W(p + "m0_wv"))                      # [3Ep, nv]
        gx, gy, gz = _split3(mv3)
        gate = jax.nn.sigmoid(
            jnp.sqrt(jnp.maximum(gx * gx + gy * gy + gz * gz, EPS_NORM)))
        mv3 = mv3 * jnp.concatenate([gate, gate, gate], axis=0)

        # ---- message GVP1 / GVP2 ----
        ms, mv3 = _gvp(ms, mv3, W(p + "m1_wh"), W(p + "m1_ws"), B(p + "m1_b"),
                       W(p + "m1_wv"), True, True)
        ms, mv3 = _gvp(ms, mv3, W(p + "m2_wh"), W(p + "m2_ws"), B(p + "m2_b"),
                       W(p + "m2_wv"), False, False)

        # ---- mean aggregation: one 0/1 scatter matmul; 1/deg rescale in f32 ----
        M = jnp.concatenate([ms, mv3[:Ep], mv3[Ep:2 * Ep], mv3[2 * Ep:]], axis=-1)
        D = _mm(A, _bf(M)) * invdeg                              # [Np, ns+3nv]
        ds = D[:, :ns]
        dV3 = jnp.concatenate([D[:, ns:ns + nv], D[:, ns + nv:ns + 2 * nv],
                               D[:, ns + 2 * nv:ns + 3 * nv]], axis=0)

        # ---- residual + LayerNorm (norm0) ----
        s, V3 = _layer_norm(s + ds, V3 + dV3, B(p + "n0_g"), B(p + "n0_b"))

        # ---- feed-forward + residual + LayerNorm (norm1) ----
        fs, fV3 = _gvp(s, V3, W(p + "f0_wh"), W(p + "f0_ws"), B(p + "f0_b"),
                       W(p + "f0_wv"), True, True)
        fs, fV3 = _gvp(fs, fV3, W(p + "f1_wh"), W(p + "f1_ws"), B(p + "f1_b"),
                       W(p + "f1_wv"), False, False)
        s, V3 = _layer_norm(s + fs, V3 + fV3, B(p + "n1_g"), B(p + "n1_b"))

    # ---------------- W_out : LayerNorm -> GVP((ns, 0)), relu scalar act ------
    s, V3 = _layer_norm(s, V3, B("wo_ln_g"), B("wo_ln_b"))
    out_s, _ = _gvp(s, V3, W("wo_wh"), W("wo_ws"), B("wo_b"), None, True, False)

    # ---------------- mean over real nodes -> dense head (+0.5) ---------------
    pooled = _mm(pool, out_s)                                    # [1, ns] f32
    h = jnp.maximum(_mm(_bf(pooled), W("d_w1")) + B("d_b1"), 0.0)
    o_ref[...] = _mm(_bf(h), W("d_w2")) + B("d_b2") + 0.5


# ----------------------------------------------------------------------------
# Slab layout: static row offsets for every weight / bias (shared by packer
# and kernel).
# ----------------------------------------------------------------------------
def _make_layout(node_in_dim, node_h_dim, edge_in_dim, edge_h_dim, num_layers):
    ns, nv = node_h_dim
    se, ve = edge_h_dim
    sin, vin = node_in_dim
    sie, vie = edge_in_dim

    wl, bl = {}, {}
    wcur, bcur = [0], [0]

    def add_w(name, r, c):
        wl[name] = (wcur[0], r, c)
        wcur[0] += _round_up(r, _W_ALIGN)

    def add_b(name, c):
        bl[name] = (bcur[0], c)
        bcur[0] += 1

    def add_gvp(prefix, si, vi, so, vo):
        h = max(vi, vo)
        add_w(prefix + "wh", vi, h)
        add_w(prefix + "ws", si + h, so)
        add_b(prefix + "b", so)
        if vo > 0:
            add_w(prefix + "wv", h, vo)

    add_b("wv_ln_g", sin); add_b("wv_ln_b", sin)
    add_gvp("wv_", sin, vin, ns, nv)
    add_b("we_ln_g", sie); add_b("we_ln_b", sie)
    add_gvp("we_", sie, vie, se, ve)
    for l in range(num_layers):
        p = f"l{l}_"
        add_gvp(p + "m0_", 2 * ns + se, 2 * nv + ve, ns, nv)
        add_gvp(p + "m1_", ns, nv, ns, nv)
        add_gvp(p + "m2_", ns, nv, ns, nv)
        add_b(p + "n0_g", ns); add_b(p + "n0_b", ns)
        add_gvp(p + "f0_", ns, nv, 4 * ns, 2 * nv)
        add_gvp(p + "f1_", 4 * ns, 2 * nv, ns, nv)
        add_b(p + "n1_g", ns); add_b(p + "n1_b", ns)
    add_b("wo_ln_g", ns); add_b("wo_ln_b", ns)
    add_gvp("wo_", ns, nv, ns, 0)
    add_w("d_w1", ns, 2 * ns); add_b("d_b1", 2 * ns)
    add_w("d_w2", 2 * ns, 1); add_b("d_b2", 1)

    w_width = max(c for (_, _, c) in wl.values())
    b_width = max(c for (_, c) in bl.values())
    return wl, bl, wcur[0], w_width, _round_up(bcur[0], 8), b_width


# ----------------------------------------------------------------------------
# Parameter initialization (deterministic, PyTorch-Linear-style uniform bounds)
# ----------------------------------------------------------------------------
def _uniform(key, shape, fan_in):
    bound = 1.0 / (fan_in ** 0.5)
    return jax.random.uniform(key, shape, jnp.float32, -bound, bound)


def init_gvp(key, si, vi, so, vo):
    h = max(vi, vo)                               # gvp-pytorch: h_dim = max(vi, vo)
    k1, k2, k3, k4 = jax.random.split(key, 4)
    p = {"wh": _uniform(k1, (vi, h), vi),         # Linear(vi, h, bias=False)
         "ws": _uniform(k2, (si + h, so), si + h),  # Linear(si + h, so)
         "b": _uniform(k3, (so,), si + h)}
    if vo > 0:
        p["wv"] = _uniform(k4, (h, vo), h)        # Linear(h, vo, bias=False)
    return p


def init_ln(si):
    return {"g": jnp.ones((si,), jnp.float32), "b": jnp.zeros((si,), jnp.float32)}


def init_mqa_model(key, node_in_dim, node_h_dim, edge_in_dim, edge_h_dim,
                   num_layers=3):
    ns, nv = node_h_dim
    se, ve = edge_h_dim
    keys = iter(jax.random.split(key, 8 + 8 * num_layers))
    params = {
        "W_v_ln": init_ln(node_in_dim[0]),
        "W_v_gvp": init_gvp(next(keys), node_in_dim[0], node_in_dim[1], ns, nv),
        "W_e_ln": init_ln(edge_in_dim[0]),
        "W_e_gvp": init_gvp(next(keys), edge_in_dim[0], edge_in_dim[1], se, ve),
    }
    layers = []
    for _ in range(num_layers):
        layers.append({
            "msg": [init_gvp(next(keys), 2 * ns + se, 2 * nv + ve, ns, nv),
                    init_gvp(next(keys), ns, nv, ns, nv),
                    init_gvp(next(keys), ns, nv, ns, nv)],
            "norm0": init_ln(ns),
            "ff": [init_gvp(next(keys), ns, nv, 4 * ns, 2 * nv),
                   init_gvp(next(keys), 4 * ns, 2 * nv, ns, nv)],
            "norm1": init_ln(ns),
        })
    params["layers"] = layers
    params["W_out_ln"] = init_ln(ns)
    params["W_out_gvp"] = init_gvp(next(keys), ns, nv, ns, 0)
    k1, k2, k3, k4 = jax.random.split(next(keys), 4)
    params["dense"] = {"w1": _uniform(k1, (ns, 2 * ns), ns),
                       "b1": _uniform(k2, (2 * ns,), ns),
                       "w2": _uniform(k3, (2 * ns, 1), 2 * ns),
                       "b2": _uniform(k4, (1,), 2 * ns)}
    return params


# ----------------------------------------------------------------------------
# Graph-structure operands: built ONCE per graph (hoisted out of the forward).
# 0/1 entries are exact in bf16; the 1/deg mean normalization stays in f32.
# ----------------------------------------------------------------------------
def prepare_graph(edge_index, num_nodes):
    src, dst = np.asarray(edge_index[0]), np.asarray(edge_index[1])
    E = int(src.shape[0])
    Np, Ep = _round_up(num_nodes, 8), _round_up(E, 8)
    g_src = np.zeros((Ep, Np), np.float32)
    g_dst = np.zeros((Ep, Np), np.float32)
    g_src[np.arange(E), src] = 1.0
    g_dst[np.arange(E), dst] = 1.0
    deg = g_dst.sum(axis=0)
    invdeg = (1.0 / np.maximum(deg, 1.0))[:, None]     # PyG "mean": empty seg -> 0
    pool = np.zeros((1, Np), np.float32)
    pool[0, :num_nodes] = 1.0 / float(num_nodes)
    return (jnp.asarray(np.concatenate([g_src, g_dst], 0), jnp.bfloat16),  # [2Ep,Np]
            jnp.asarray(np.ascontiguousarray(g_dst.T), jnp.bfloat16),      # [Np,Ep]
            jnp.asarray(invdeg, jnp.float32),                              # [Np,1]
            jnp.asarray(pool, jnp.float32))                                # [1,Np]


# ----------------------------------------------------------------------------
# Factory: returns (jitted forward, parameter packer) for fixed model dims.
# ----------------------------------------------------------------------------
def make_mqa_forward(node_in_dim, node_h_dim, edge_in_dim, edge_h_dim,
                     num_layers=3):
    ns, nv = node_h_dim
    wl, bl, w_rows, w_width, b_rows, b_width = _make_layout(
        node_in_dim, node_h_dim, edge_in_dim, edge_h_dim, num_layers)

    def kernel(*refs):
        _mqa_fused_kernel(*refs, num_layers=num_layers, ns=ns, nv=nv, wl=wl, bl=bl)

    def pack_params(params):
        """All weights -> one bf16 slab, all 1-row params -> one f32 slab."""
        w = np.zeros((w_rows, w_width), np.float32)
        b = np.zeros((b_rows, b_width), np.float32)

        def put_w(name, arr):
            off, r, c = wl[name]
            a = np.asarray(arr, np.float32)
            assert a.shape == (r, c), (name, a.shape, (r, c))
            w[off:off + r, :c] = a

        def put_b(name, arr):
            row, c = bl[name]
            a = np.asarray(arr, np.float32).reshape(-1)
            assert a.shape == (c,), (name, a.shape, c)
            b[row, :c] = a

        def put_gvp(prefix, p):
            put_w(prefix + "wh", p["wh"]); put_w(prefix + "ws", p["ws"])
            put_b(prefix + "b", p["b"])
            if "wv" in p:
                put_w(prefix + "wv", p["wv"])

        put_b("wv_ln_g", params["W_v_ln"]["g"]); put_b("wv_ln_b", params["W_v_ln"]["b"])
        put_gvp("wv_", params["W_v_gvp"])
        put_b("we_ln_g", params["W_e_ln"]["g"]); put_b("we_ln_b", params["W_e_ln"]["b"])
        put_gvp("we_", params["W_e_gvp"])
        for l in range(num_layers):
            lp = params["layers"][l]
            p = f"l{l}_"
            for k in range(3):
                put_gvp(p + f"m{k}_", lp["msg"][k])
            put_b(p + "n0_g", lp["norm0"]["g"]); put_b(p + "n0_b", lp["norm0"]["b"])
            for k in range(2):
                put_gvp(p + f"f{k}_", lp["ff"][k])
            put_b(p + "n1_g", lp["norm1"]["g"]); put_b(p + "n1_b", lp["norm1"]["b"])
        put_b("wo_ln_g", params["W_out_ln"]["g"]); put_b("wo_ln_b", params["W_out_ln"]["b"])
        put_gvp("wo_", params["W_out_gvp"])
        d = params["dense"]
        put_w("d_w1", d["w1"]); put_b("d_b1", d["b1"])
        put_w("d_w2", d["w2"]); put_b("d_b2", d["b2"])
        return jnp.asarray(w, jnp.bfloat16), jnp.asarray(b, jnp.float32)

    @jax.jit
    def forward(w_slab, b_slab, h_V, h_E, graph):
        # TODO(synk): seq_in=True embedding path and scatter_mean batch pooling
        # (batch is not None) are not implemented; dropout is identity (eval).
        G2, A, invdeg, pool = graph
        Np, Ep = A.shape
        s_in, V_in = h_V
        es_in, EV_in = h_E
        N, E = s_in.shape[0], es_in.shape[0]
        s0 = jnp.pad(s_in.astype(jnp.float32), ((0, Np - N), (0, 0)))
        V0 = jnp.pad(V_in.astype(jnp.float32), ((0, Np - N), (0, 0), (0, 0)))
        es0 = jnp.pad(es_in.astype(jnp.float32), ((0, Ep - E), (0, 0)))
        EV0 = jnp.pad(EV_in.astype(jnp.float32), ((0, Ep - E), (0, 0), (0, 0)))
        # [rows, C, 3] -> row-stacked component layout [3*rows, C]
        V3 = jnp.concatenate([V0[..., 0], V0[..., 1], V0[..., 2]], axis=0)
        EV3 = jnp.concatenate([EV0[..., 0], EV0[..., 1], EV0[..., 2]], axis=0)

        args = (s0, V3, es0, EV3, G2, A, invdeg, pool, w_slab, b_slab)
        vmem = pl.BlockSpec(memory_space=pltpu.MemorySpace.VMEM)
        y = pl.pallas_call(
            kernel,
            out_shape=jax.ShapeDtypeStruct((1, 1), jnp.float32),
            in_specs=[vmem] * len(args),
            out_specs=vmem,
            compiler_params=pltpu.CompilerParams(
                vmem_limit_bytes=32 * 1024 * 1024),
        )(*args)
        return y[:, 0]                                            # shape [1]

    return forward, pack_params


# ----------------------------------------------------------------------------
if __name__ == "__main__":
    key = jax.random.PRNGKey(0)

    node_in_dim = (6, 3)     # original GVP features
    node_h_dim = (16, 4)     # small hidden dims
    edge_in_dim = (8, 1)
    edge_h_dim = (8, 2)
    num_layers = 3

    N = 8                    # nodes; each receives edges from offsets {1,2,3}
    offsets = np.array([1, 2, 3], dtype=np.int32)
    dst = np.repeat(np.arange(N, dtype=np.int32), len(offsets))
    src = ((dst + np.tile(offsets, N)) % N).astype(np.int32)
    edge_index = jnp.asarray(np.stack([src, dst], axis=0))       # [2, E]
    E = int(src.shape[0])

    k1, k2, k3, k4, kp = jax.random.split(key, 5)
    h_V = (jax.random.normal(k1, (N, node_in_dim[0]), jnp.float32),
           jax.random.normal(k2, (N, node_in_dim[1], 3), jnp.float32))
    h_E = (jax.random.normal(k3, (E, edge_in_dim[0]), jnp.float32),
           jax.random.normal(k4, (E, edge_in_dim[1], 3), jnp.float32))

    forward, pack_params = make_mqa_forward(node_in_dim, node_h_dim,
                                            edge_in_dim, edge_h_dim, num_layers)
    params = init_mqa_model(kp, node_in_dim, node_h_dim, edge_in_dim,
                            edge_h_dim, num_layers=num_layers)
    w_slab, b_slab = pack_params(params)          # packed once, reused every call
    graph = prepare_graph(edge_index, N)          # built once per graph

    out = forward(w_slab, b_slab, h_V, h_E, graph)
    out = jax.block_until_ready(out)
    assert out.shape == (1,)
    assert bool(jnp.all(jnp.isfinite(out)))
    print("KERNEL_OK")
</pallas_src>

<mosaic_0001>
module attributes {stable_mosaic.version = 11 : i64} {
  func.func @kernel(%arg0: memref<8x6xf32, #tpu.memory_space<vmem>>, %arg1: memref<24x3xf32, #tpu.memory_space<vmem>>, %arg2: memref<24x8xf32, #tpu.memory_space<vmem>>, %arg3: memref<72x1xf32, #tpu.memory_space<vmem>>, %arg4: memref<48x8xbf16, #tpu.memory_space<vmem>>, %arg5: memref<8x24xbf16, #tpu.memory_space<vmem>>, %arg6: memref<8x1xf32, #tpu.memory_space<vmem>>, %arg7: memref<1x8xf32, #tpu.memory_space<vmem>>, %arg8: memref<1392x64xbf16, #tpu.memory_space<vmem>>, %arg9: memref<40x64xf32, #tpu.memory_space<vmem>>, %arg10: memref<1x1xf32, #tpu.memory_space<vmem>>) attributes {dimension_semantics = [], scalar_prefetch = 0 : i64, scratch_operands = 0 : i64, tpu.core_type = #tpu.core_type<tc>} {
    %c0 = arith.constant 0 : index
    %c0_0 = arith.constant 0 : index
    %0 = vector.load %arg0[%c0, %c0_0] : memref<8x6xf32, #tpu.memory_space<vmem>>, vector<8x6xf32>
    %c0_1 = arith.constant 0 : index
    %c0_2 = arith.constant 0 : index
    %1 = vector.load %arg1[%c0_1, %c0_2] : memref<24x3xf32, #tpu.memory_space<vmem>>, vector<24x3xf32>
    %c0_3 = arith.constant 0 : index
    %c0_4 = arith.constant 0 : index
    %2 = vector.load %arg2[%c0_3, %c0_4] : memref<24x8xf32, #tpu.memory_space<vmem>>, vector<24x8xf32>
    %c0_5 = arith.constant 0 : index
    %c0_6 = arith.constant 0 : index
    %3 = vector.load %arg3[%c0_5, %c0_6] : memref<72x1xf32, #tpu.memory_space<vmem>>, vector<72x1xf32>
    %c0_7 = arith.constant 0 : index
    %c0_8 = arith.constant 0 : index
    %4 = vector.load %arg4[%c0_7, %c0_8] : memref<48x8xbf16, #tpu.memory_space<vmem>>, vector<48x8xbf16>
    %c0_9 = arith.constant 0 : index
    %c0_10 = arith.constant 0 : index
    %5 = vector.load %arg5[%c0_9, %c0_10] : memref<8x24xbf16, #tpu.memory_space<vmem>>, vector<8x24xbf16>
    %c0_11 = arith.constant 0 : index
    %c0_12 = arith.constant 0 : index
    %6 = vector.load %arg6[%c0_11, %c0_12] : memref<8x1xf32, #tpu.memory_space<vmem>>, vector<8x1xf32>
    %c0_13 = arith.constant 0 : index
    %c0_14 = arith.constant 0 : index
    %7 = vector.load %arg7[%c0_13, %c0_14] : memref<1x8xf32, #tpu.memory_space<vmem>>, vector<1x8xf32>
    %c0_15 = arith.constant 0 : index
    %c0_16 = arith.constant 0 : index
    %8 = vector.load %arg9[%c0_15, %c0_16] : memref<40x64xf32, #tpu.memory_space<vmem>>, vector<1x6xf32>
    %c1 = arith.constant 1 : index
    %c0_17 = arith.constant 0 : index
    %9 = vector.load %arg9[%c1, %c0_17] : memref<40x64xf32, #tpu.memory_space<vmem>>, vector<1x6xf32>
    %cst = arith.constant dense<0.000000e+00> : vector<8xf32>
    %10 = vector.multi_reduction <add>, %0, %cst [1] : vector<8x6xf32> to vector<8xf32>
    %11 = vector.shape_cast %10 : vector<8xf32> to vector<8x1xf32>
    %cst_18 = arith.constant 6.000000e+00 : f32
    %12 = vector.broadcast %cst_18 : f32 to vector<8x1xf32>
    %13 = arith.divf %11, %12 : vector<8x1xf32>
    %14 = vector.broadcast %13 : vector<8x1xf32> to vector<8x6xf32>
    %15 = arith.subf %0, %14 : vector<8x6xf32>
    %16 = arith.mulf %15, %15 : vector<8x6xf32>
    %cst_19 = arith.constant dense<0.000000e+00> : vector<8xf32>
    %17 = vector.multi_reduction <add>, %16, %cst_19 [1] : vector<8x6xf32> to vector<8xf32>
    %18 = vector.shape_cast %17 : vector<8xf32> to vector<8x1xf32>
    %cst_20 = arith.constant 6.000000e+00 : f32
    %19 = vector.broadcast %cst_20 : f32 to vector<8x1xf32>
    %20 = arith.divf %18, %19 : vector<8x1xf32>
    %21 = vector.broadcast %13 : vector<8x1xf32> to vector<8x6xf32>
    %22 = arith.subf %0, %21 : vector<8x6xf32>
    %cst_21 = arith.constant 9.99999974E-6 : f32
    %23 = vector.broadcast %cst_21 : f32 to vector<8x1xf32>
    %24 = arith.addf %20, %23 : vector<8x1xf32>
    %25 = math.rsqrt %24 : vector<8x1xf32>
    %26 = vector.broadcast %25 : vector<8x1xf32> to vector<8x6xf32>
    %27 = arith.mulf %22, %26 : vector<8x6xf32>
    %28 = vector.broadcast %8 : vector<1x6xf32> to vector<8x6xf32>
    %29 = arith.mulf %27, %28 : vector<8x6xf32>
    %30 = vector.broadcast %9 : vector<1x6xf32> to vector<8x6xf32>
    %31 = arith.addf %29, %30 : vector<8x6xf32>
    %32 = vector.extract_strided_slice %1 {offsets = [0, 0], sizes = [8, 3], strides = [1, 1]} : vector<24x3xf32> to vector<8x3xf32>
    %33 = vector.extract_strided_slice %1 {offsets = [8, 0], sizes = [8, 3], strides = [1, 1]} : vector<24x3xf32> to vector<8x3xf32>
    %34 = vector.extract_strided_slice %1 {offsets = [16, 0], sizes = [8, 3], strides = [1, 1]} : vector<24x3xf32> to vector<8x3xf32>
    %35 = arith.mulf %32, %32 : vector<8x3xf32>
    %36 = arith.mulf %33, %33 : vector<8x3xf32>
    %37 = arith.addf %35, %36 : vector<8x3xf32>
    %38 = arith.mulf %34, %34 : vector<8x3xf32>
    %39 = arith.addf %37, %38 : vector<8x3xf32>
    %cst_22 = arith.constant 9.99999993E-9 : f32
    %40 = vector.broadcast %cst_22 : f32 to vector<8x3xf32>
    %41 = arith.maximumf %39, %40 : vector<8x3xf32>
    %cst_23 = arith.constant dense<0.000000e+00> : vector<8xf32>
    %42 = vector.multi_reduction <add>, %41, %cst_23 [1] : vector<8x3xf32> to vector<8xf32>
    %43 = vector.shape_cast %42 : vector<8xf32> to vector<8x1xf32>
    %cst_24 = arith.constant 3.000000e+00 : f32
    %44 = vector.broadcast %cst_24 : f32 to vector<8x1xf32>
    %45 = arith.divf %43, %44 : vector<8x1xf32>
    %46 = math.rsqrt %45 : vector<8x1xf32>
    %47 = tpu.concatenate %46, %46, %46 in 0 : vector<8x1xf32>, vector<8x1xf32>, vector<8x1xf32> -> vector<24x1xf32>
    %48 = vector.broadcast %47 : vector<24x1xf32> to vector<24x3xf32>
    %49 = arith.mulf %1, %48 : vector<24x3xf32>
    %c0_25 = arith.constant 0 : index
    %c0_26 = arith.constant 0 : index
    %50 = vector.load %arg8[%c0_25, %c0_26] : memref<1392x64xbf16, #tpu.memory_space<vmem>>, vector<3x4xbf16>
    %c16 = arith.constant 16 : index
    %c0_27 = arith.constant 0 : index
    %51 = vector.load %arg8[%c16, %c0_27] : memref<1392x64xbf16, #tpu.memory_space<vmem>>, vector<10x16xbf16>
    %c2 = arith.constant 2 : index
    %c0_28 = arith.constant 0 : index
    %52 = vector.load %arg9[%c2, %c0_28] : memref<40x64xf32, #tpu.memory_space<vmem>>, vector<1x16xf32>
    %c32 = arith.constant 32 : index
    %c0_29 = arith.constant 0 : index
    %53 = vector.load %arg8[%c32, %c0_29] : memref<1392x64xbf16, #tpu.memory_space<vmem>>, vector<4x4xbf16>
    %54 = arith.truncf %49 : vector<24x3xf32> to vector<24x3xbf16>
    %cst_30 = arith.constant dense<0.000000e+00> : vector<24x4xf32>
    %55 = tpu.matmul %54, %50, %cst_30 {dimension_numbers = #tpu.dot_dimension_numbers<[1], [0], [0], [1], [0, 0, 1, 1], [], []>} : vector<24x3xbf16>, vector<3x4xbf16>, vector<24x4xf32> -> vector<24x4xf32>
    %56 = vector.extract_strided_slice %55 {offsets = [0, 0], sizes = [8, 4], strides = [1, 1]} : vector<24x4xf32> to vector<8x4xf32>
    %57 = vector.extract_strided_slice %55 {offsets = [8, 0], sizes = [8, 4], strides = [1, 1]} : vector<24x4xf32> to vector<8x4xf32>
    %58 = vector.extract_strided_slice %55 {offsets = [16, 0], sizes = [8, 4], strides = [1, 1]} : vector<24x4xf32> to vector<8x4xf32>
    %59 = arith.mulf %56, %56 : vector<8x4xf32>
    %60 = arith.mulf %57, %57 : vector<8x4xf32>
    %61 = arith.addf %59, %60 : vector<8x4xf32>
    %62 = arith.mulf %58, %58 : vector<8x4xf32>
    %63 = arith.addf %61, %62 : vector<8x4xf32>
    %cst_31 = arith.constant 9.99999993E-9 : f32
    %64 = vector.broadcast %cst_31 : f32 to vector<8x4xf32>
    %65 = arith.maximumf %63, %64 : vector<8x4xf32>
    %66 = math.sqrt %65 : vector<8x4xf32>
    %67 = tpu.concatenate %31, %66 in 1 : vector<8x6xf32>, vector<8x4xf32> -> vector<8x10xf32>
    %68 = arith.truncf %67 : vector<8x10xf32> to vector<8x10xbf16>
    %cst_32 = arith.constant dense<0.000000e+00> : vector<8x16xf32>
    %69 = tpu.matmul %68, %51, %cst_32 {dimension_numbers = #tpu.dot_dimension_numbers<[1], [0], [0], [1], [0, 0, 1, 1], [], []>} : vector<8x10xbf16>, vector<10x16xbf16>, vector<8x16xf32> -> vector<8x16xf32>
    %70 = vector.broadcast %52 : vector<1x16xf32> to vector<8x16xf32>
    %71 = arith.addf %69, %70 : vector<8x16xf32>
    %72 = arith.truncf %55 : vector<24x4xf32> to vector<24x4xbf16>
    %cst_33 = arith.constant dense<0.000000e+00> : vector<24x4xf32>
    %73 = tpu.matmul %72, %53, %cst_33 {dimension_numbers = #tpu.dot_dimension_numbers<[1], [0], [0], [1], [0, 0, 1, 1], [], []>} : vector<24x4xbf16>, vector<4x4xbf16>, vector<24x4xf32> -> vector<24x4xf32>
    %c3 = arith.constant 3 : index
    %c0_34 = arith.constant 0 : index
    %74 = vector.load %arg9[%c3, %c0_34] : memref<40x64xf32, #tpu.memory_space<vmem>>, vector<1x8xf32>
    %c4 = arith.constant 4 : index
    %c0_35 = arith.constant 0 : index
    %75 = vector.load %arg9[%c4, %c0_35] : memref<40x64xf32, #tpu.memory_space<vmem>>, vector<1x8xf32>
    %cst_36 = arith.constant dense<0.000000e+00> : vector<24xf32>
    %76 = vector.multi_reduction <add>, %2, %cst_36 [1] : vector<24x8xf32> to vector<24xf32>
    %77 = vector.shape_cast %76 : vector<24xf32> to vector<24x1xf32>
    %cst_37 = arith.constant 8.000000e+00 : f32
    %78 = vector.broadcast %cst_37 : f32 to vector<24x1xf32>
    %79 = arith.divf %77, %78 : vector<24x1xf32>
    %80 = vector.broadcast %79 : vector<24x1xf32> to vector<24x8xf32>
    %81 = arith.subf %2, %80 : vector<24x8xf32>
    %82 = arith.mulf %81, %81 : vector<24x8xf32>
    %cst_38 = arith.constant dense<0.000000e+00> : vector<24xf32>
    %83 = vector.multi_reduction <add>, %82, %cst_38 [1] : vector<24x8xf32> to vector<24xf32>
    %84 = vector.shape_cast %83 : vector<24xf32> to vector<24x1xf32>
    %cst_39 = arith.constant 8.000000e+00 : f32
    %85 = vector.broadcast %cst_39 : f32 to vector<24x1xf32>
    %86 = arith.divf %84, %85 : vector<24x1xf32>
    %87 = vector.broadcast %79 : vector<24x1xf32> to vector<24x8xf32>
    %88 = arith.subf %2, %87 : vector<24x8xf32>
    %cst_40 = arith.constant 9.99999974E-6 : f32
    %89 = vector.broadcast %cst_40 : f32 to vector<24x1xf32>
    %90 = arith.addf %86, %89 : vector<24x1xf32>
    %91 = math.rsqrt %90 : vector<24x1xf32>
    %92 = vector.broadcast %91 : vector<24x1xf32> to vector<24x8xf32>
    %93 = arith.mulf %88, %92 : vector<24x8xf32>
    %94 = vector.broadcast %74 : vector<1x8xf32> to vector<24x8xf32>
    %95 = arith.mulf %93, %94 : vector<24x8xf32>
    %96 = vector.broadcast %75 : vector<1x8xf32> to vector<24x8xf32>
    %97 = arith.addf %95, %96 : vector<24x8xf32>
    %98 = vector.extract_strided_slice %3 {offsets = [0, 0], sizes = [24, 1], strides = [1, 1]} : vector<72x1xf32> to vector<24x1xf32>
    %99 = vector.extract_strided_slice %3 {offsets = [24, 0], sizes = [24, 1], strides = [1, 1]} : vector<72x1xf32> to vector<24x1xf32>
    %100 = vector.extract_strided_slice %3 {offsets = [48, 0], sizes = [24, 1], strides = [1, 1]} : vector<72x1xf32> to vector<24x1xf32>
    %101 = arith.mulf %98, %98 : vector<24x1xf32>
    %102 = arith.mulf %99, %99 : vector<24x1xf32>
    %103 = arith.addf %101, %102 : vector<24x1xf32>
    %104 = arith.mulf %100, %100 : vector<24x1xf32>
    %105 = arith.addf %103, %104 : vector<24x1xf32>
    %cst_41 = arith.constant 9.99999993E-9 : f32
    %106 = vector.broadcast %cst_41 : f32 to vector<24x1xf32>
    %107 = arith.maximumf %105, %106 : vector<24x1xf32>
    %cst_42 = arith.constant dense<0.000000e+00> : vector<24xf32>
    %108 = vector.multi_reduction <add>, %107, %cst_42 [1] : vector<24x1xf32> to vector<24xf32>
    %109 = vector.shape_cast %108 : vector<24xf32> to vector<24x1xf32>
    %cst_43 = arith.constant 1.000000e+00 : f32
    %110 = vector.broadcast %cst_43 : f32 to vector<24x1xf32>
    %111 = arith.divf %109, %110 : vector<24x1xf32>
    %112 = math.rsqrt %111 : vector<24x1xf32>
    %113 = tpu.concatenate %112, %112, %112 in 0 : vector<24x1xf32>, vector<24x1xf32>, vector<24x1xf32> -> vector<72x1xf32>
    %114 = arith.mulf %3, %113 : vector<72x1xf32>
    %c48 = arith.constant 48 : index
    %c0_44 = arith.constant 0 : index
    %115 = vector.load %arg8[%c48, %c0_44] : memref<1392x64xbf16, #tpu.memory_space<vmem>>, vector<1x2xbf16>
    %c64 = arith.constant 64 : index
    %c0_45 = arith.constant 0 : index
    %116 = vector.load %arg8[%c64, %c0_45] : memref<1392x64xbf16, #tpu.memory_space<vmem>>, vector<10x8xbf16>
    %c5 = arith.constant 5 : index
    %c0_46 = arith.constant 0 : index
    %117 = vector.load %arg9[%c5, %c0_46] : memref<40x64xf32, #tpu.memory_space<vmem>>, vector<1x8xf32>
    %c80 = arith.constant 80 : index
    %c0_47 = arith.constant 0 : index
    %118 = vector.load %arg8[%c80, %c0_47] : memref<1392x64xbf16, #tpu.memory_space<vmem>>, vector<2x2xbf16>
    %119 = arith.truncf %114 : vector<72x1xf32> to vector<72x1xbf16>
    %cst_48 = arith.constant dense<0.000000e+00> : vector<72x2xf32>
    %120 = tpu.matmul %119, %115, %cst_48 {dimension_numbers = #tpu.dot_dimension_numbers<[1], [0], [0], [1], [0, 0, 1, 1], [], []>} : vector<72x1xbf16>, vector<1x2xbf16>, vector<72x2xf32> -> vector<72x2xf32>
    %121 = vector.extract_strided_slice %120 {offsets = [0, 0], sizes = [24, 2], strides = [1, 1]} : vector<72x2xf32> to vector<24x2xf32>
    %122 = vector.extract_strided_slice %120 {offsets = [24, 0], sizes = [24, 2], strides = [1, 1]} : vector<72x2xf32> to vector<24x2xf32>
    %123 = vector.extract_strided_slice %120 {offsets = [48, 0], sizes = [24, 2], strides = [1, 1]} : vector<72x2xf32> to vector<24x2xf32>
    %124 = arith.mulf %121, %121 : vector<24x2xf32>
    %125 = arith.mulf %122, %122 : vector<24x2xf32>
    %126 = arith.addf %124, %125 : vector<24x2xf32>
    %127 = arith.mulf %123, %123 : vector<24x2xf32>
    %128 = arith.addf %126, %127 : vector<24x2xf32>
    %cst_49 = arith.constant 9.99999993E-9 : f32
    %129 = vector.broadcast %cst_49 : f32 to vector<24x2xf32>
    %130 = arith.maximumf %128, %129 : vector<24x2xf32>
    %131 = math.sqrt %130 : vector<24x2xf32>
    %132 = tpu.concatenate %97, %131 in 1 : vector<24x8xf32>, vector<24x2xf32> -> vector<24x10xf32>
    %133 = arith.truncf %132 : vector<24x10xf32> to vector<24x10xbf16>
    %cst_50 = arith.constant dense<0.000000e+00> : vector<24x8xf32>
    %134 = tpu.matmul %133, %116, %cst_50 {dimension_numbers = #tpu.dot_dimension_numbers<[1], [0], [0], [1], [0, 0, 1, 1], [], []>} : vector<24x10xbf16>, vector<10x8xbf16>, vector<24x8xf32> -> vector<24x8xf32>
    %135 = vector.broadcast %117 : vector<1x8xf32> to vector<24x8xf32>
    %136 = arith.addf %134, %135 : vector<24x8xf32>
    %137 = arith.truncf %120 : vector<72x2xf32> to vector<72x2xbf16>
    %cst_51 = arith.constant dense<0.000000e+00> : vector<72x2xf32>
    %138 = tpu.matmul %137, %118, %cst_51 {dimension_numbers = #tpu.dot_dimension_numbers<[1], [0], [0], [1], [0, 0, 1, 1], [], []>} : vector<72x2xbf16>, vector<2x2xbf16>, vector<72x2xf32> -> vector<72x2xf32>
    %139 = vector.extract_strided_slice %73 {offsets = [0, 0], sizes = [8, 4], strides = [1, 1]} : vector<24x4xf32> to vector<8x4xf32>
    %140 = vector.extract_strided_slice %73 {offsets = [8, 0], sizes = [8, 4], strides = [1, 1]} : vector<24x4xf32> to vector<8x4xf32>
    %141 = vector.extract_strided_slice %73 {offsets = [16, 0], sizes = [8, 4], strides = [1, 1]} : vector<24x4xf32> to vector<8x4xf32>
    %142 = tpu.concatenate %71, %139, %140, %141 in 1 : vector<8x16xf32>, vector<8x4xf32>, vector<8x4xf32>, vector<8x4xf32> -> vector<8x28xf32>
    %143 = arith.truncf %142 : vector<8x28xf32> to vector<8x28xbf16>
    %cst_52 = arith.constant dense<0.000000e+00> : vector<48x28xf32>
    %144 = tpu.matmul %4, %143, %cst_52 {dimension_numbers = #tpu.dot_dimension_numbers<[1], [0], [0], [1], [0, 0, 1, 1], [], []>} : vector<48x8xbf16>, vector<8x28xbf16>, vector<48x28xf32> -> vector<48x28xf32>
    %145 = vector.extract_strided_slice %144 {offsets = [0, 0], sizes = [24, 28], strides = [1, 1]} : vector<48x28xf32> to vector<24x28xf32>
    %146 = vector.extract_strided_slice %144 {offsets = [24, 0], sizes = [24, 28], strides = [1, 1]} : vector<48x28xf32> to vector<24x28xf32>
    %147 = vector.extract_strided_slice %145 {offsets = [0, 0], sizes = [24, 16], strides = [1, 1]} : vector<24x28xf32> to vector<24x16xf32>
    %148 = vector.extract_strided_slice %146 {offsets = [0, 0], sizes = [24, 16], strides = [1, 1]} : vector<24x28xf32> to vector<24x16xf32>
    %149 = vector.extract_strided_slice %145 {offsets = [0, 16], sizes = [24, 4], strides = [1, 1]} : vector<24x28xf32> to vector<24x4xf32>
    %150 = vector.extract_strided_slice %145 {offsets = [0, 20], sizes = [24, 4], strides = [1, 1]} : vector<24x28xf32> to vector<24x4xf32>
    %151 = vector.extract_strided_slice %145 {offsets = [0, 24], sizes = [24, 4], strides = [1, 1]} : vector<24x28xf32> to vector<24x4xf32>
    %152 = tpu.concatenate %149, %150, %151 in 0 : vector<24x4xf32>, vector<24x4xf32>, vector<24x4xf32> -> vector<72x4xf32>
    %153 = vector.extract_strided_slice %146 {offsets = [0, 16], sizes = [24, 4], strides = [1, 1]} : vector<24x28xf32> to vector<24x4xf32>
    %154 = vector.extract_strided_slice %146 {offsets = [0, 20], sizes = [24, 4], strides = [1, 1]} : vector<24x28xf32> to vector<24x4xf32>
    %155 = vector.extract_strided_slice %146 {offsets = [0, 24], sizes = [24, 4], strides = [1, 1]} : vector<24x28xf32> to vector<24x4xf32>
    %156 = tpu.concatenate %153, %154, %155 in 0 : vector<24x4xf32>, vector<24x4xf32>, vector<24x4xf32> -> vector<72x4xf32>
    %157 = tpu.concatenate %152, %138, %156 in 1 : vector<72x4xf32>, vector<72x2xf32>, vector<72x4xf32> -> vector<72x10xf32>
    %158 = arith.truncf %157 : vector<72x10xf32> to vector<72x10xbf16>
    %c96 = arith.constant 96 : index
    %c0_53 = arith.constant 0 : index
    %159 = vector.load %arg8[%c96, %c0_53] : memref<1392x64xbf16, #tpu.memory_space<vmem>>, vector<10x10xbf16>
    %cst_54 = arith.constant dense<0.000000e+00> : vector<72x10xf32>
    %160 = tpu.matmul %158, %159, %cst_54 {dimension_numbers = #tpu.dot_dimension_numbers<[1], [0], [0], [1], [0, 0, 1, 1], [], []>} : vector<72x10xbf16>, vector<10x10xbf16>, vector<72x10xf32> -> vector<72x10xf32>
    %161 = vector.extract_strided_slice %160 {offsets = [0, 0], sizes = [24, 10], strides = [1, 1]} : vector<72x10xf32> to vector<24x10xf32>
    %162 = vector.extract_strided_slice %160 {offsets = [24, 0], sizes = [24, 10], strides = [1, 1]} : vector<72x10xf32> to vector<24x10xf32>
    %163 = vector.extract_strided_slice %160 {offsets = [48, 0], sizes = [24, 10], strides = [1, 1]} : vector<72x10xf32> to vector<24x10xf32>
    %164 = arith.mulf %161, %161 : vector<24x10xf32>
    %165 = arith.mulf %162, %162 : vector<24x10xf32>
    %166 = arith.addf %164, %165 : vector<24x10xf32>
    %167 = arith.mulf %163, %163 : vector<24x10xf32>
    %168 = arith.addf %166, %167 : vector<24x10xf32>
    %cst_55 = arith.constant 9.99999993E-9 : f32
    %169 = vector.broadcast %cst_55 : f32 to vector<24x10xf32>
    %170 = arith.maximumf %168, %169 : vector<24x10xf32>
    %171 = math.sqrt %170 : vector<24x10xf32>
    %172 = tpu.concatenate %147, %136, %148, %171 in 1 : vector<24x16xf32>, vector<24x8xf32>, vector<24x16xf32>, vector<24x10xf32> -> vector<24x50xf32>
    %173 = arith.truncf %172 : vector<24x50xf32> to vector<24x50xbf16>
    %c112 = arith.constant 112 : index
    %c0_56 = arith.constant 0 : index
    %174 = vector.load %arg8[%c112, %c0_56] : memref<1392x64xbf16, #tpu.memory_space<vmem>>, vector<50x16xbf16>
    %cst_57 = arith.constant dense<0.000000e+00> : vector<24x16xf32>
    %175 = tpu.matmul %173, %174, %cst_57 {dimension_numbers = #tpu.dot_dimension_numbers<[1], [0], [0], [1], [0, 0, 1, 1], [], []>} : vector<24x50xbf16>, vector<50x16xbf16>, vector<24x16xf32> -> vector<24x16xf32>
    %c6 = arith.constant 6 : index
    %c0_58 = arith.constant 0 : index
    %176 = vector.load %arg9[%c6, %c0_58] : memref<40x64xf32, #tpu.memory_space<vmem>>, vector<1x16xf32>
    %177 = vector.broadcast %176 : vector<1x16xf32> to vector<24x16xf32>
    %178 = arith.addf %175, %177 : vector<24x16xf32>
    %cst_59 = arith.constant 0.000000e+00 : f32
    %179 = vector.broadcast %cst_59 : f32 to vector<24x16xf32>
    %180 = arith.maximumf %178, %179 : vector<24x16xf32>
    %181 = arith.truncf %160 : vector<72x10xf32> to vector<72x10xbf16>
    %c176 = arith.constant 176 : index
    %c0_60 = arith.constant 0 : index
    %182 = vector.load %arg8[%c176, %c0_60] : memref<1392x64xbf16, #tpu.memory_space<vmem>>, vector<10x4xbf16>
    %cst_61 = arith.constant dense<0.000000e+00> : vector<72x4xf32>
    %183 = tpu.matmul %181, %182, %cst_61 {dimension_numbers = #tpu.dot_dimension_numbers<[1], [0], [0], [1], [0, 0, 1, 1], [], []>} : vector<72x10xbf16>, vector<10x4xbf16>, vector<72x4xf32> -> vector<72x4xf32>
    %184 = vector.extract_strided_slice %183 {offsets = [0, 0], sizes = [24, 4], strides = [1, 1]} : vector<72x4xf32> to vector<24x4xf32>
    %185 = vector.extract_strided_slice %183 {offsets = [24, 0], sizes = [24, 4], strides = [1, 1]} : vector<72x4xf32> to vector<24x4xf32>
    %186 = vector.extract_strided_slice %183 {offsets = [48, 0], sizes = [24, 4], strides = [1, 1]} : vector<72x4xf32> to vector<24x4xf32>
    %187 = arith.mulf %184, %184 : vector<24x4xf32>
    %188 = arith.mulf %185, %185 : vector<24x4xf32>
    %189 = arith.addf %187, %188 : vector<24x4xf32>
    %190 = arith.mulf %186, %186 : vector<24x4xf32>
    %191 = arith.addf %189, %190 : vector<24x4xf32>
    %cst_62 = arith.constant 9.99999993E-9 : f32
    %192 = vector.broadcast %cst_62 : f32 to vector<24x4xf32>
    %193 = arith.maximumf %191, %192 : vector<24x4xf32>
    %194 = math.sqrt %193 : vector<24x4xf32>
    %195 = arith.negf %194 : vector<24x4xf32>
    %196 = math.exp %195 : vector<24x4xf32>
    %cst_63 = arith.constant 1.000000e+00 : f32
    %197 = vector.broadcast %cst_63 : f32 to vector<24x4xf32>
    %198 = arith.addf %197, %196 : vector<24x4xf32>
    %199 = arith.divf %197, %198 : vector<24x4xf32>
    %200 = tpu.concatenate %199, %199, %199 in 0 : vector<24x4xf32>, vector<24x4xf32>, vector<24x4xf32> -> vector<72x4xf32>
    %201 = arith.mulf %183, %200 : vector<72x4xf32>
    %c192 = arith.constant 192 : index
    %c0_64 = arith.constant 0 : index
    %202 = vector.load %arg8[%c192, %c0_64] : memref<1392x64xbf16, #tpu.memory_space<vmem>>, vector<4x4xbf16>
    %c208 = arith.constant 208 : index
    %c0_65 = arith.constant 0 : index
    %203 = vector.load %arg8[%c208, %c0_65] : memref<1392x64xbf16, #tpu.memory_space<vmem>>, vector<20x16xbf16>
    %c7 = arith.constant 7 : index
    %c0_66 = arith.constant 0 : index
    %204 = vector.load %arg9[%c7, %c0_66] : memref<40x64xf32, #tpu.memory_space<vmem>>, vector<1x16xf32>
    %c240 = arith.constant 240 : index
    %c0_67 = arith.constant 0 : index
    %205 = vector.load %arg8[%c240, %c0_67] : memref<1392x64xbf16, #tpu.memory_space<vmem>>, vector<4x4xbf16>
    %206 = arith.truncf %201 : vector<72x4xf32> to vector<72x4xbf16>
    %cst_68 = arith.constant dense<0.000000e+00> : vector<72x4xf32>
    %207 = tpu.matmul %206, %202, %cst_68 {dimension_numbers = #tpu.dot_dimension_numbers<[1], [0], [0], [1], [0, 0, 1, 1], [], []>} : vector<72x4xbf16>, vector<4x4xbf16>, vector<72x4xf32> -> vector<72x4xf32>
    %208 = vector.extract_strided_slice %207 {offsets = [0, 0], sizes = [24, 4], strides = [1, 1]} : vector<72x4xf32> to vector<24x4xf32>
    %209 = vector.extract_strided_slice %207 {offsets = [24, 0], sizes = [24, 4], strides = [1, 1]} : vector<72x4xf32> to vector<24x4xf32>
    %210 = vector.extract_strided_slice %207 {offsets = [48, 0], sizes = [24, 4], strides = [1, 1]} : vector<72x4xf32> to vector<24x4xf32>
    %211 = arith.mulf %208, %208 : vector<24x4xf32>
    %212 = arith.mulf %209, %209 : vector<24x4xf32>
    %213 = arith.addf %211, %212 : vector<24x4xf32>
    %214 = arith.mulf %210, %210 : vector<24x4xf32>
    %215 = arith.addf %213, %214 : vector<24x4xf32>
    %cst_69 = arith.constant 9.99999993E-9 : f32
    %216 = vector.broadcast %cst_69 : f32 to vector<24x4xf32>
    %217 = arith.maximumf %215, %216 : vector<24x4xf32>
    %218 = math.sqrt %217 : vector<24x4xf32>
    %219 = tpu.concatenate %180, %218 in 1 : vector<24x16xf32>, vector<24x4xf32> -> vector<24x20xf32>
    %220 = arith.truncf %219 : vector<24x20xf32> to vector<24x20xbf16>
    %cst_70 = arith.constant dense<0.000000e+00> : vector<24x16xf32>
    %221 = tpu.matmul %220, %203, %cst_70 {dimension_numbers = #tpu.dot_dimension_numbers<[1], [0], [0], [1], [0, 0, 1, 1], [], []>} : vector<24x20xbf16>, vector<20x16xbf16>, vector<24x16xf32> -> vector<24x16xf32>
    %222 = vector.broadcast %204 : vector<1x16xf32> to vector<24x16xf32>
    %223 = arith.addf %221, %222 : vector<24x16xf32>
    %cst_71 = arith.constant 0.000000e+00 : f32
    %224 = vector.broadcast %cst_71 : f32 to vector<24x16xf32>
    %225 = arith.maximumf %223, %224 : vector<24x16xf32>
    %226 = arith.truncf %207 : vector<72x4xf32> to vector<72x4xbf16>
    %cst_72 = arith.constant dense<0.000000e+00> : vector<72x4xf32>
    %227 = tpu.matmul %226, %205, %cst_72 {dimension_numbers = #tpu.dot_dimension_numbers<[1], [0], [0], [1], [0, 0, 1, 1], [], []>} : vector<72x4xbf16>, vector<4x4xbf16>, vector<72x4xf32> -> vector<72x4xf32>
    %228 = vector.extract_strided_slice %227 {offsets = [0, 0], sizes = [24, 4], strides = [1, 1]} : vector<72x4xf32> to vector<24x4xf32>
    %229 = vector.extract_strided_slice %227 {offsets = [24, 0], sizes = [24, 4], strides = [1, 1]} : vector<72x4xf32> to vector<24x4xf32>
    %230 = vector.extract_strided_slice %227 {offsets = [48, 0], sizes = [24, 4], strides = [1, 1]} : vector<72x4xf32> to vector<24x4xf32>
    %231 = arith.mulf %228, %228 : vector<24x4xf32>
    %232 = arith.mulf %229, %229 : vector<24x4xf32>
    %233 = arith.addf %231, %232 : vector<24x4xf32>
    %234 = arith.mulf %230, %230 : vector<24x4xf32>
    %235 = arith.addf %233, %234 : vector<24x4xf32>
    %cst_73 = arith.constant 9.99999993E-9 : f32
    %236 = vector.broadcast %cst_73 : f32 to vector<24x4xf32>
    %237 = arith.maximumf %235, %236 : vector<24x4xf32>
    %238 = math.sqrt %237 : vector<24x4xf32>
    %239 = arith.negf %238 : vector<24x4xf32>
    %240 = math.exp %239 : vector<24x4xf32>
    %cst_74 = arith.constant 1.000000e+00 : f32
    %241 = vector.broadcast %cst_74 : f32 to vector<24x4xf32>
    %242 = arith.addf %241, %240 : vector<24x4xf32>
    %243 = arith.divf %241, %242 : vector<24x4xf32>
    %244 = tpu.concatenate %243, %243, %243 in 0 : vector<24x4xf32>, vector<24x4xf32>, vector<24x4xf32> -> vector<72x4xf32>
    %245 = arith.mulf %227, %244 : vector<72x4xf32>
    %c256 = arith.constant 256 : index
    %c0_75 = arith.constant 0 : index
    %246 = vector.load %arg8[%c256, %c0_75] : memref<1392x64xbf16, #tpu.memory_space<vmem>>, vector<4x4xbf16>
    %c272 = arith.constant 272 : index
    %c0_76 = arith.constant 0 : index
    %247 = vector.load %arg8[%c272, %c0_76] : memref<1392x64xbf16, #tpu.memory_space<vmem>>, vector<20x16xbf16>
    %c8 = arith.constant 8 : index
    %c0_77 = arith.constant 0 : index
    %248 = vector.load %arg9[%c8, %c0_77] : memref<40x64xf32, #tpu.memory_space<vmem>>, vector<1x16xf32>
    %c304 = arith.constant 304 : index
    %c0_78 = arith.constant 0 : index
    %249 = vector.load %arg8[%c304, %c0_78] : memref<1392x64xbf16, #tpu.memory_space<vmem>>, vector<4x4xbf16>
    %250 = arith.truncf %245 : vector<72x4xf32> to vector<72x4xbf16>
    %cst_79 = arith.constant dense<0.000000e+00> : vector<72x4xf32>
    %251 = tpu.matmul %250, %246, %cst_79 {dimension_numbers = #tpu.dot_dimension_numbers<[1], [0], [0], [1], [0, 0, 1, 1], [], []>} : vector<72x4xbf16>, vector<4x4xbf16>, vector<72x4xf32> -> vector<72x4xf32>
    %252 = vector.extract_strided_slice %251 {offsets = [0, 0], sizes = [24, 4], strides = [1, 1]} : vector<72x4xf32> to vector<24x4xf32>
    %253 = vector.extract_strided_slice %251 {offsets = [24, 0], sizes = [24, 4], strides = [1, 1]} : vector<72x4xf32> to vector<24x4xf32>
    %254 = vector.extract_strided_slice %251 {offsets = [48, 0], sizes = [24, 4], strides = [1, 1]} : vector<72x4xf32> to vector<24x4xf32>
    %255 = arith.mulf %252, %252 : vector<24x4xf32>
    %256 = arith.mulf %253, %253 : vector<24x4xf32>
    %257 = arith.addf %255, %256 : vector<24x4xf32>
    %258 = arith.mulf %254, %254 : vector<24x4xf32>
    %259 = arith.addf %257, %258 : vector<24x4xf32>
    %cst_80 = arith.constant 9.99999993E-9 : f32
    %260 = vector.broadcast %cst_80 : f32 to vector<24x4xf32>
    %261 = arith.maximumf %259, %260 : vector<24x4xf32>
    %262 = math.sqrt %261 : vector<24x4xf32>
    %263 = tpu.concatenate %225, %262 in 1 : vector<24x16xf32>, vector<24x4xf32> -> vector<24x20xf32>
    %264 = arith.truncf %263 : vector<24x20xf32> to vector<24x20xbf16>
    %cst_81 = arith.constant dense<0.000000e+00> : vector<24x16xf32>
    %265 = tpu.matmul %264, %247, %cst_81 {dimension_numbers = #tpu.dot_dimension_numbers<[1], [0], [0], [1], [0, 0, 1, 1], [], []>} : vector<24x20xbf16>, vector<20x16xbf16>, vector<24x16xf32> -> vector<24x16xf32>
    %266 = vector.broadcast %248 : vector<1x16xf32> to vector<24x16xf32>
    %267 = arith.addf %265, %266 : vector<24x16xf32>
    %268 = arith.truncf %251 : vector<72x4xf32> to vector<72x4xbf16>
    %cst_82 = arith.constant dense<0.000000e+00> : vector<72x4xf32>
    %269 = tpu.matmul %268, %249, %cst_82 {dimension_numbers = #tpu.dot_dimension_numbers<[1], [0], [0], [1], [0, 0, 1, 1], [], []>} : vector<72x4xbf16>, vector<4x4xbf16>, vector<72x4xf32> -> vector<72x4xf32>
    %270 = vector.extract_strided_slice %269 {offsets = [0, 0], sizes = [24, 4], strides = [1, 1]} : vector<72x4xf32> to vector<24x4xf32>
    %271 = vector.extract_strided_slice %269 {offsets = [24, 0], sizes = [24, 4], strides = [1, 1]} : vector<72x4xf32> to vector<24x4xf32>
    %272 = vector.extract_strided_slice %269 {offsets = [48, 0], sizes = [24, 4], strides = [1, 1]} : vector<72x4xf32> to vector<24x4xf32>
    %273 = tpu.concatenate %267, %270, %271, %272 in 1 : vector<24x16xf32>, vector<24x4xf32>, vector<24x4xf32>, vector<24x4xf32> -> vector<24x28xf32>
    %274 = arith.truncf %273 : vector<24x28xf32> to vector<24x28xbf16>
    %cst_83 = arith.constant dense<0.000000e+00> : vector<8x28xf32>
    %275 = tpu.matmul %5, %274, %cst_83 {dimension_numbers = #tpu.dot_dimension_numbers<[1], [0], [0], [1], [0, 0, 1, 1], [], []>} : vector<8x24xbf16>, vector<24x28xbf16>, vector<8x28xf32> -> vector<8x28xf32>
    %276 = vector.broadcast %6 : vector<8x1xf32> to vector<8x28xf32>
    %277 = arith.mulf %275, %276 : vector<8x28xf32>
    %278 = vector.extract_strided_slice %277 {offsets = [0, 0], sizes = [8, 16], strides = [1, 1]} : vector<8x28xf32> to vector<8x16xf32>
    %279 = vector.extract_strided_slice %277 {offsets = [0, 16], sizes = [8, 4], strides = [1, 1]} : vector<8x28xf32> to vector<8x4xf32>
    %280 = vector.extract_strided_slice %277 {offsets = [0, 20], sizes = [8, 4], strides = [1, 1]} : vector<8x28xf32> to vector<8x4xf32>
    %281 = vector.extract_strided_slice %277 {offsets = [0, 24], sizes = [8, 4], strides = [1, 1]} : vector<8x28xf32> to vector<8x4xf32>
    %282 = tpu.concatenate %279, %280, %281 in 0 : vector<8x4xf32>, vector<8x4xf32>, vector<8x4xf32> -> vector<24x4xf32>
    %283 = arith.addf %71, %278 : vector<8x16xf32>
    %284 = arith.addf %73, %282 : vector<24x4xf32>
    %c9 = arith.constant 9 : index
    %c0_84 = arith.constant 0 : index
    %285 = vector.load %arg9[%c9, %c0_84] : memref<40x64xf32, #tpu.memory_space<vmem>>, vector<1x16xf32>
    %c10 = arith.constant 10 : index
    %c0_85 = arith.constant 0 : index
    %286 = vector.load %arg9[%c10, %c0_85] : memref<40x64xf32, #tpu.memory_space<vmem>>, vector<1x16xf32>
    %cst_86 = arith.constant dense<0.000000e+00> : vector<8xf32>
    %287 = vector.multi_reduction <add>, %283, %cst_86 [1] : vector<8x16xf32> to vector<8xf32>
    %288 = vector.shape_cast %287 : vector<8xf32> to vector<8x1xf32>
    %cst_87 = arith.constant 1.600000e+01 : f32
    %289 = vector.broadcast %cst_87 : f32 to vector<8x1xf32>
    %290 = arith.divf %288, %289 : vector<8x1xf32>
    %291 = vector.broadcast %290 : vector<8x1xf32> to vector<8x16xf32>
    %292 = arith.subf %283, %291 : vector<8x16xf32>
    %293 = arith.mulf %292, %292 : vector<8x16xf32>
    %cst_88 = arith.constant dense<0.000000e+00> : vector<8xf32>
    %294 = vector.multi_reduction <add>, %293, %cst_88 [1] : vector<8x16xf32> to vector<8xf32>
    %295 = vector.shape_cast %294 : vector<8xf32> to vector<8x1xf32>
    %cst_89 = arith.constant 1.600000e+01 : f32
    %296 = vector.broadcast %cst_89 : f32 to vector<8x1xf32>
    %297 = arith.divf %295, %296 : vector<8x1xf32>
    %298 = vector.broadcast %290 : vector<8x1xf32> to vector<8x16xf32>
    %299 = arith.subf %283, %298 : vector<8x16xf32>
    %cst_90 = arith.constant 9.99999974E-6 : f32
    %300 = vector.broadcast %cst_90 : f32 to vector<8x1xf32>
    %301 = arith.addf %297, %300 : vector<8x1xf32>
    %302 = math.rsqrt %301 : vector<8x1xf32>
    %303 = vector.broadcast %302 : vector<8x1xf32> to vector<8x16xf32>
    %304 = arith.mulf %299, %303 : vector<8x16xf32>
    %305 = vector.broadcast %285 : vector<1x16xf32> to vector<8x16xf32>
    %306 = arith.mulf %304, %305 : vector<8x16xf32>
    %307 = vector.broadcast %286 : vector<1x16xf32> to vector<8x16xf32>
    %308 = arith.addf %306, %307 : vector<8x16xf32>
    %309 = vector.extract_strided_slice %284 {offsets = [0, 0], sizes = [8, 4], strides = [1, 1]} : vector<24x4xf32> to vector<8x4xf32>
    %310 = vector.extract_strided_slice %284 {offsets = [8, 0], sizes = [8, 4], strides = [1, 1]} : vector<24x4xf32> to vector<8x4xf32>
    %311 = vector.extract_strided_slice %284 {offsets = [16, 0], sizes = [8, 4], strides = [1, 1]} : vector<24x4xf32> to vector<8x4xf32>
    %312 = arith.mulf %309, %309 : vector<8x4xf32>
    %313 = arith.mulf %310, %310 : vector<8x4xf32>
    %314 = arith.addf %312, %313 : vector<8x4xf32>
    %315 = arith.mulf %311, %311 : vector<8x4xf32>
    %316 = arith.addf %314, %315 : vector<8x4xf32>
    %cst_91 = arith.constant 9.99999993E-9 : f32
    %317 = vector.broadcast %cst_91 : f32 to vector<8x4xf32>
    %318 = arith.maximumf %316, %317 : vector<8x4xf32>
    %cst_92 = arith.constant dense<0.000000e+00> : vector<8xf32>
    %319 = vector.multi_reduction <add>, %318, %cst_92 [1] : vector<8x4xf32> to vector<8xf32>
    %320 = vector.shape_cast %319 : vector<8xf32> to vector<8x1xf32>
    %cst_93 = arith.constant 4.000000e+00 : f32
    %321 = vector.broadcast %cst_93 : f32 to vector<8x1xf32>
    %322 = arith.divf %320, %321 : vector<8x1xf32>
    %323 = math.rsqrt %322 : vector<8x1xf32>
    %324 = tpu.concatenate %323, %323, %323 in 0 : vector<8x1xf32>, vector<8x1xf32>, vector<8x1xf32> -> vector<24x1xf32>
    %325 = vector.broadcast %324 : vector<24x1xf32> to vector<24x4xf32>
    %326 = arith.mulf %284, %325 : vector<24x4xf32>
    %c320 = arith.constant 320 : index
    %c0_94 = arith.constant 0 : index
    %327 = vector.load %arg8[%c320, %c0_94] : memref<1392x64xbf16, #tpu.memory_space<vmem>>, vector<4x8xbf16>
    %c336 = arith.constant 336 : index
    %c0_95 = arith.constant 0 : index
    %328 = vector.load %arg8[%c336, %c0_95] : memref<1392x64xbf16, #tpu.memory_space<vmem>>, vector<24x64xbf16>
    %c11 = arith.constant 11 : index
    %c0_96 = arith.constant 0 : index
    %329 = vector.load %arg9[%c11, %c0_96] : memref<40x64xf32, #tpu.memory_space<vmem>>, vector<1x64xf32>
    %c368 = arith.constant 368 : index
    %c0_97 = arith.constant 0 : index
    %330 = vector.load %arg8[%c368, %c0_97] : memref<1392x64xbf16, #tpu.memory_space<vmem>>, vector<8x8xbf16>
    %331 = arith.truncf %326 : vector<24x4xf32> to vector<24x4xbf16>
    %cst_98 = arith.constant dense<0.000000e+00> : vector<24x8xf32>
    %332 = tpu.matmul %331, %327, %cst_98 {dimension_numbers = #tpu.dot_dimension_numbers<[1], [0], [0], [1], [0, 0, 1, 1], [], []>} : vector<24x4xbf16>, vector<4x8xbf16>, vector<24x8xf32> -> vector<24x8xf32>
    %333 = vector.extract_strided_slice %332 {offsets = [0, 0], sizes = [8, 8], strides = [1, 1]} : vector<24x8xf32> to vector<8x8xf32>
    %334 = vector.extract_strided_slice %332 {offsets = [8, 0], sizes = [8, 8], strides = [1, 1]} : vector<24x8xf32> to vector<8x8xf32>
    %335 = vector.extract_strided_slice %332 {offsets = [16, 0], sizes = [8, 8], strides = [1, 1]} : vector<24x8xf32> to vector<8x8xf32>
    %336 = arith.mulf %333, %333 : vector<8x8xf32>
    %337 = arith.mulf %334, %334 : vector<8x8xf32>
    %338 = arith.addf %336, %337 : vector<8x8xf32>
    %339 = arith.mulf %335, %335 : vector<8x8xf32>
    %340 = arith.addf %338, %339 : vector<8x8xf32>
    %cst_99 = arith.constant 9.99999993E-9 : f32
    %341 = vector.broadcast %cst_99 : f32 to vector<8x8xf32>
    %342 = arith.maximumf %340, %341 : vector<8x8xf32>
    %343 = math.sqrt %342 : vector<8x8xf32>
    %344 = tpu.concatenate %308, %343 in 1 : vector<8x16xf32>, vector<8x8xf32> -> vector<8x24xf32>
    %345 = arith.truncf %344 : vector<8x24xf32> to vector<8x24xbf16>
    %cst_100 = arith.constant dense<0.000000e+00> : vector<8x64xf32>
    %346 = tpu.matmul %345, %328, %cst_100 {dimension_numbers = #tpu.dot_dimension_numbers<[1], [0], [0], [1], [0, 0, 1, 1], [], []>} : vector<8x24xbf16>, vector<24x64xbf16>, vector<8x64xf32> -> vector<8x64xf32>
    %347 = vector.broadcast %329 : vector<1x64xf32> to vector<8x64xf32>
    %348 = arith.addf %346, %347 : vector<8x64xf32>
    %cst_101 = arith.constant 0.000000e+00 : f32
    %349 = vector.broadcast %cst_101 : f32 to vector<8x64xf32>
    %350 = arith.maximumf %348, %349 : vector<8x64xf32>
    %351 = arith.truncf %332 : vector<24x8xf32> to vector<24x8xbf16>
    %cst_102 = arith.constant dense<0.000000e+00> : vector<24x8xf32>
    %352 = tpu.matmul %351, %330, %cst_102 {dimension_numbers = #tpu.dot_dimension_numbers<[1], [0], [0], [1], [0, 0, 1, 1], [], []>} : vector<24x8xbf16>, vector<8x8xbf16>, vector<24x8xf32> -> vector<24x8xf32>
    %353 = vector.extract_strided_slice %352 {offsets = [0, 0], sizes = [8, 8], strides = [1, 1]} : vector<24x8xf32> to vector<8x8xf32>
    %354 = vector.extract_strided_slice %352 {offsets = [8, 0], sizes = [8, 8], strides = [1, 1]} : vector<24x8xf32> to vector<8x8xf32>
    %355 = vector.extract_strided_slice %352 {offsets = [16, 0], sizes = [8, 8], strides = [1, 1]} : vector<24x8xf32> to vector<8x8xf32>
    %356 = arith.mulf %353, %353 : vector<8x8xf32>
    %357 = arith.mulf %354, %354 : vector<8x8xf32>
    %358 = arith.addf %356, %357 : vector<8x8xf32>
    %359 = arith.mulf %355, %355 : vector<8x8xf32>
    %360 = arith.addf %358, %359 : vector<8x8xf32>
    %cst_103 = arith.constant 9.99999993E-9 : f32
    %361 = vector.broadcast %cst_103 : f32 to vector<8x8xf32>
    %362 = arith.maximumf %360, %361 : vector<8x8xf32>
    %363 = math.sqrt %362 : vector<8x8xf32>
    %364 = arith.negf %363 : vector<8x8xf32>
    %365 = math.exp %364 : vector<8x8xf32>
    %cst_104 = arith.constant 1.000000e+00 : f32
    %366 = vector.broadcast %cst_104 : f32 to vector<8x8xf32>
    %367 = arith.addf %366, %365 : vector<8x8xf32>
    %368 = arith.divf %366, %367 : vector<8x8xf32>
    %369 = tpu.concatenate %368, %368, %368 in 0 : vector<8x8xf32>, vector<8x8xf32>, vector<8x8xf32> -> vector<24x8xf32>
    %370 = arith.mulf %352, %369 : vector<24x8xf32>
    %c384 = arith.constant 384 : index
    %c0_105 = arith.constant 0 : index
    %371 = vector.load %arg8[%c384, %c0_105] : memref<1392x64xbf16, #tpu.memory_space<vmem>>, vector<8x8xbf16>
    %c400 = arith.constant 400 : index
    %c0_106 = arith.constant 0 : index
    %372 = vector.load %arg8[%c400, %c0_106] : memref<1392x64xbf16, #tpu.memory_space<vmem>>, vector<72x16xbf16>
    %c12 = arith.constant 12 : index
    %c0_107 = arith.constant 0 : index
    %373 = vector.load %arg9[%c12, %c0_107] : memref<40x64xf32, #tpu.memory_space<vmem>>, vector<1x16xf32>
    %c480 = arith.constant 480 : index
    %c0_108 = arith.constant 0 : index
    %374 = vector.load %arg8[%c480, %c0_108] : memref<1392x64xbf16, #tpu.memory_space<vmem>>, vector<8x4xbf16>
    %375 = arith.truncf %370 : vector<24x8xf32> to vector<24x8xbf16>
    %cst_109 = arith.constant dense<0.000000e+00> : vector<24x8xf32>
    %376 = tpu.matmul %375, %371, %cst_109 {dimension_numbers = #tpu.dot_dimension_numbers<[1], [0], [0], [1], [0, 0, 1, 1], [], []>} : vector<24x8xbf16>, vector<8x8xbf16>, vector<24x8xf32> -> vector<24x8xf32>
    %377 = vector.extract_strided_slice %376 {offsets = [0, 0], sizes = [8, 8], strides = [1, 1]} : vector<24x8xf32> to vector<8x8xf32>
    %378 = vector.extract_strided_slice %376 {offsets = [8, 0], sizes = [8, 8], strides = [1, 1]} : vector<24x8xf32> to vector<8x8xf32>
    %379 = vector.extract_strided_slice %376 {offsets = [16, 0], sizes = [8, 8], strides = [1, 1]} : vector<24x8xf32> to vector<8x8xf32>
    %380 = arith.mulf %377, %377 : vector<8x8xf32>
    %381 = arith.mulf %378, %378 : vector<8x8xf32>
    %382 = arith.addf %380, %381 : vector<8x8xf32>
    %383 = arith.mulf %379, %379 : vector<8x8xf32>
    %384 = arith.addf %382, %383 : vector<8x8xf32>
    %cst_110 = arith.constant 9.99999993E-9 : f32
    %385 = vector.broadcast %cst_110 : f32 to vector<8x8xf32>
    %386 = arith.maximumf %384, %385 : vector<8x8xf32>
    %387 = math.sqrt %386 : vector<8x8xf32>
    %388 = tpu.concatenate %350, %387 in 1 : vector<8x64xf32>, vector<8x8xf32> -> vector<8x72xf32>
    %389 = arith.truncf %388 : vector<8x72xf32> to vector<8x72xbf16>
    %cst_111 = arith.constant dense<0.000000e+00> : vector<8x16xf32>
    %390 = tpu.matmul %389, %372, %cst_111 {dimension_numbers = #tpu.dot_dimension_numbers<[1], [0], [0], [1], [0, 0, 1, 1], [], []>} : vector<8x72xbf16>, vector<72x16xbf16>, vector<8x16xf32> -> vector<8x16xf32>
    %391 = vector.broadcast %373 : vector<1x16xf32> to vector<8x16xf32>
    %392 = arith.addf %390, %391 : vector<8x16xf32>
    %393 = arith.truncf %376 : vector<24x8xf32> to vector<24x8xbf16>
    %cst_112 = arith.constant dense<0.000000e+00> : vector<24x4xf32>
    %394 = tpu.matmul %393, %374, %cst_112 {dimension_numbers = #tpu.dot_dimension_numbers<[1], [0], [0], [1], [0, 0, 1, 1], [], []>} : vector<24x8xbf16>, vector<8x4xbf16>, vector<24x4xf32> -> vector<24x4xf32>
    %395 = arith.addf %308, %392 : vector<8x16xf32>
    %396 = arith.addf %326, %394 : vector<24x4xf32>
    %c13 = arith.constant 13 : index
    %c0_113 = arith.constant 0 : index
    %397 = vector.load %arg9[%c13, %c0_113] : memref<40x64xf32, #tpu.memory_space<vmem>>, vector<1x16xf32>
    %c14 = arith.constant 14 : index
    %c0_114 = arith.constant 0 : index
    %398 = vector.load %arg9[%c14, %c0_114] : memref<40x64xf32, #tpu.memory_space<vmem>>, vector<1x16xf32>
    %cst_115 = arith.constant dense<0.000000e+00> : vector<8xf32>
    %399 = vector.multi_reduction <add>, %395, %cst_115 [1] : vector<8x16xf32> to vector<8xf32>
    %400 = vector.shape_cast %399 : vector<8xf32> to vector<8x1xf32>
    %cst_116 = arith.constant 1.600000e+01 : f32
    %401 = vector.broadcast %cst_116 : f32 to vector<8x1xf32>
    %402 = arith.divf %400, %401 : vector<8x1xf32>
    %403 = vector.broadcast %402 : vector<8x1xf32> to vector<8x16xf32>
    %404 = arith.subf %395, %403 : vector<8x16xf32>
    %405 = arith.mulf %404, %404 : vector<8x16xf32>
    %cst_117 = arith.constant dense<0.000000e+00> : vector<8xf32>
    %406 = vector.multi_reduction <add>, %405, %cst_117 [1] : vector<8x16xf32> to vector<8xf32>
    %407 = vector.shape_cast %406 : vector<8xf32> to vector<8x1xf32>
    %cst_118 = arith.constant 1.600000e+01 : f32
    %408 = vector.broadcast %cst_118 : f32 to vector<8x1xf32>
    %409 = arith.divf %407, %408 : vector<8x1xf32>
    %410 = vector.broadcast %402 : vector<8x1xf32> to vector<8x16xf32>
    %411 = arith.subf %395, %410 : vector<8x16xf32>
    %cst_119 = arith.constant 9.99999974E-6 : f32
    %412 = vector.broadcast %cst_119 : f32 to vector<8x1xf32>
    %413 = arith.addf %409, %412 : vector<8x1xf32>
    %414 = math.rsqrt %413 : vector<8x1xf32>
    %415 = vector.broadcast %414 : vector<8x1xf32> to vector<8x16xf32>
    %416 = arith.mulf %411, %415 : vector<8x16xf32>
    %417 = vector.broadcast %397 : vector<1x16xf32> to vector<8x16xf32>
    %418 = arith.mulf %416, %417 : vector<8x16xf32>
    %419 = vector.broadcast %398 : vector<1x16xf32> to vector<8x16xf32>
    %420 = arith.addf %418, %419 : vector<8x16xf32>
    %421 = vector.extract_strided_slice %396 {offsets = [0, 0], sizes = [8, 4], strides = [1, 1]} : vector<24x4xf32> to vector<8x4xf32>
    %422 = vector.extract_strided_slice %396 {offsets = [8, 0], sizes = [8, 4], strides = [1, 1]} : vector<24x4xf32> to vector<8x4xf32>
    %423 = vector.extract_strided_slice %396 {offsets = [16, 0], sizes = [8, 4], strides = [1, 1]} : vector<24x4xf32> to vector<8x4xf32>
    %424 = arith.mulf %421, %421 : vector<8x4xf32>
    %425 = arith.mulf %422, %422 : vector<8x4xf32>
    %426 = arith.addf %424, %425 : vector<8x4xf32>
    %427 = arith.mulf %423, %423 : vector<8x4xf32>
    %428 = arith.addf %426, %427 : vector<8x4xf32>
    %cst_120 = arith.constant 9.99999993E-9 : f32
    %429 = vector.broadcast %cst_120 : f32 to vector<8x4xf32>
    %430 = arith.maximumf %428, %429 : vector<8x4xf32>
    %cst_121 = arith.constant dense<0.000000e+00> : vector<8xf32>
    %431 = vector.multi_reduction <add>, %430, %cst_121 [1] : vector<8x4xf32> to vector<8xf32>
    %432 = vector.shape_cast %431 : vector<8xf32> to vector<8x1xf32>
    %cst_122 = arith.constant 4.000000e+00 : f32
    %433 = vector.broadcast %cst_122 : f32 to vector<8x1xf32>
    %434 = arith.divf %432, %433 : vector<8x1xf32>
    %435 = math.rsqrt %434 : vector<8x1xf32>
    %436 = tpu.concatenate %435, %435, %435 in 0 : vector<8x1xf32>, vector<8x1xf32>, vector<8x1xf32> -> vector<24x1xf32>
    %437 = vector.broadcast %436 : vector<24x1xf32> to vector<24x4xf32>
    %438 = arith.mulf %396, %437 : vector<24x4xf32>
    %439 = vector.extract_strided_slice %438 {offsets = [0, 0], sizes = [8, 4], strides = [1, 1]} : vector<24x4xf32> to vector<8x4xf32>
    %440 = vector.extract_strided_slice %438 {offsets = [8, 0], sizes = [8, 4], strides = [1, 1]} : vector<24x4xf32> to vector<8x4xf32>
    %441 = vector.extract_strided_slice %438 {offsets = [16, 0], sizes = [8, 4], strides = [1, 1]} : vector<24x4xf32> to vector<8x4xf32>
    %442 = tpu.concatenate %420, %439, %440, %441 in 1 : vector<8x16xf32>, vector<8x4xf32>, vector<8x4xf32>, vector<8x4xf32> -> vector<8x28xf32>
    %443 = arith.truncf %442 : vector<8x28xf32> to vector<8x28xbf16>
    %cst_123 = arith.constant dense<0.000000e+00> : vector<48x28xf32>
    %444 = tpu.matmul %4, %443, %cst_123 {dimension_numbers = #tpu.dot_dimension_numbers<[1], [0], [0], [1], [0, 0, 1, 1], [], []>} : vector<48x8xbf16>, vector<8x28xbf16>, vector<48x28xf32> -> vector<48x28xf32>
    %445 = vector.extract_strided_slice %444 {offsets = [0, 0], sizes = [24, 28], strides = [1, 1]} : vector<48x28xf32> to vector<24x28xf32>
    %446 = vector.extract_strided_slice %444 {offsets = [24, 0], sizes = [24, 28], strides = [1, 1]} : vector<48x28xf32> to vector<24x28xf32>
    %447 = vector.extract_strided_slice %445 {offsets = [0, 0], sizes = [24, 16], strides = [1, 1]} : vector<24x28xf32> to vector<24x16xf32>
    %448 = vector.extract_strided_slice %446 {offsets = [0, 0], sizes = [24, 16], strides = [1, 1]} : vector<24x28xf32> to vector<24x16xf32>
    %449 = vector.extract_strided_slice %445 {offsets = [0, 16], sizes = [24, 4], strides = [1, 1]} : vector<24x28xf32> to vector<24x4xf32>
    %450 = vector.extract_strided_slice %445 {offsets = [0, 20], sizes = [24, 4], strides = [1, 1]} : vector<24x28xf32> to vector<24x4xf32>
    %451 = vector.extract_strided_slice %445 {offsets = [0, 24], sizes = [24, 4], strides = [1, 1]} : vector<24x28xf32> to vector<24x4xf32>
    %452 = tpu.concatenate %449, %450, %451 in 0 : vector<24x4xf32>, vector<24x4xf32>, vector<24x4xf32> -> vector<72x4xf32>
    %453 = vector.extract_strided_slice %446 {offsets = [0, 16], sizes = [24, 4], strides = [1, 1]} : vector<24x28xf32> to vector<24x4xf32>
    %454 = vector.extract_strided_slice %446 {offsets = [0, 20], sizes = [24, 4], strides = [1, 1]} : vector<24x28xf32> to vector<24x4xf32>
    %455 = vector.extract_strided_slice %446 {offsets = [0, 24], sizes = [24, 4], strides = [1, 1]} : vector<24x28xf32> to vector<24x4xf32>
    %456 = tpu.concatenate %453, %454, %455 in 0 : vector<24x4xf32>, vector<24x4xf32>, vector<24x4xf32> -> vector<72x4xf32>
    %457 = tpu.concatenate %452, %138, %456 in 1 : vector<72x4xf32>, vector<72x2xf32>, vector<72x4xf32> -> vector<72x10xf32>
    %458 = arith.truncf %457 : vector<72x10xf32> to vector<72x10xbf16>
    %c496 = arith.constant 496 : index
    %c0_124 = arith.constant 0 : index
    %459 = vector.load %arg8[%c496, %c0_124] : memref<1392x64xbf16, #tpu.memory_space<vmem>>, vector<10x10xbf16>
    %cst_125 = arith.constant dense<0.000000e+00> : vector<72x10xf32>
    %460 = tpu.matmul %458, %459, %cst_125 {dimension_numbers = #tpu.dot_dimension_numbers<[1], [0], [0], [1], [0, 0, 1, 1], [], []>} : vector<72x10xbf16>, vector<10x10xbf16>, vector<72x10xf32> -> vector<72x10xf32>
    %461 = vector.extract_strided_slice %460 {offsets = [0, 0], sizes = [24, 10], strides = [1, 1]} : vector<72x10xf32> to vector<24x10xf32>
    %462 = vector.extract_strided_slice %460 {offsets = [24, 0], sizes = [24, 10], strides = [1, 1]} : vector<72x10xf32> to vector<24x10xf32>
    %463 = vector.extract_strided_slice %460 {offsets = [48, 0], sizes = [24, 10], strides = [1, 1]} : vector<72x10xf32> to vector<24x10xf32>
    %464 = arith.mulf %461, %461 : vector<24x10xf32>
    %465 = arith.mulf %462, %462 : vector<24x10xf32>
    %466 = arith.addf %464, %465 : vector<24x10xf32>
    %467 = arith.mulf %463, %463 : vector<24x10xf32>
    %468 = arith.addf %466, %467 : vector<24x10xf32>
    %cst_126 = arith.constant 9.99999993E-9 : f32
    %469 = vector.broadcast %cst_126 : f32 to vector<24x10xf32>
    %470 = arith.maximumf %468, %469 : vector<24x10xf32>
    %471 = math.sqrt %470 : vector<24x10xf32>
    %472 = tpu.concatenate %447, %136, %448, %471 in 1 : vector<24x16xf32>, vector<24x8xf32>, vector<24x16xf32>, vector<24x10xf32> -> vector<24x50xf32>
    %473 = arith.truncf %472 : vector<24x50xf32> to vector<24x50xbf16>
    %c512 = arith.constant 512 : index
    %c0_127 = arith.constant 0 : index
    %474 = vector.load %arg8[%c512, %c0_127] : memref<1392x64xbf16, #tpu.memory_space<vmem>>, vector<50x16xbf16>
    %cst_128 = arith.constant dense<0.000000e+00> : vector<24x16xf32>
    %475 = tpu.matmul %473, %474, %cst_128 {dimension_numbers = #tpu.dot_dimension_numbers<[1], [0], [0], [1], [0, 0, 1, 1], [], []>} : vector<24x50xbf16>, vector<50x16xbf16>, vector<24x16xf32> -> vector<24x16xf32>
    %c15 = arith.constant 15 : index
    %c0_129 = arith.constant 0 : index
    %476 = vector.load %arg9[%c15, %c0_129] : memref<40x64xf32, #tpu.memory_space<vmem>>, vector<1x16xf32>
    %477 = vector.broadcast %476 : vector<1x16xf32> to vector<24x16xf32>
    %478 = arith.addf %475, %477 : vector<24x16xf32>
    %cst_130 = arith.constant 0.000000e+00 : f32
    %479 = vector.broadcast %cst_130 : f32 to vector<24x16xf32>
    %480 = arith.maximumf %478, %479 : vector<24x16xf32>
    %481 = arith.truncf %460 : vector<72x10xf32> to vector<72x10xbf16>
    %c576 = arith.constant 576 : index
    %c0_131 = arith.constant 0 : index
    %482 = vector.load %arg8[%c576, %c0_131] : memref<1392x64xbf16, #tpu.memory_space<vmem>>, vector<10x4xbf16>
    %cst_132 = arith.constant dense<0.000000e+00> : vector<72x4xf32>
    %483 = tpu.matmul %481, %482, %cst_132 {dimension_numbers = #tpu.dot_dimension_numbers<[1], [0], [0], [1], [0, 0, 1, 1], [], []>} : vector<72x10xbf16>, vector<10x4xbf16>, vector<72x4xf32> -> vector<72x4xf32>
    %484 = vector.extract_strided_slice %483 {offsets = [0, 0], sizes = [24, 4], strides = [1, 1]} : vector<72x4xf32> to vector<24x4xf32>
    %485 = vector.extract_strided_slice %483 {offsets = [24, 0], sizes = [24, 4], strides = [1, 1]} : vector<72x4xf32> to vector<24x4xf32>
    %486 = vector.extract_strided_slice %483 {offsets = [48, 0], sizes = [24, 4], strides = [1, 1]} : vector<72x4xf32> to vector<24x4xf32>
    %487 = arith.mulf %484, %484 : vector<24x4xf32>
    %488 = arith.mulf %485, %485 : vector<24x4xf32>
    %489 = arith.addf %487, %488 : vector<24x4xf32>
    %490 = arith.mulf %486, %486 : vector<24x4xf32>
    %491 = arith.addf %489, %490 : vector<24x4xf32>
    %cst_133 = arith.constant 9.99999993E-9 : f32
    %492 = vector.broadcast %cst_133 : f32 to vector<24x4xf32>
    %493 = arith.maximumf %491, %492 : vector<24x4xf32>
    %494 = math.sqrt %493 : vector<24x4xf32>
    %495 = arith.negf %494 : vector<24x4xf32>
    %496 = math.exp %495 : vector<24x4xf32>
    %cst_134 = arith.constant 1.000000e+00 : f32
    %497 = vector.broadcast %cst_134 : f32 to vector<24x4xf32>
    %498 = arith.addf %497, %496 : vector<24x4xf32>
    %499 = arith.divf %497, %498 : vector<24x4xf32>
    %500 = tpu.concatenate %499, %499, %499 in 0 : vector<24x4xf32>, vector<24x4xf32>, vector<24x4xf32> -> vector<72x4xf32>
    %501 = arith.mulf %483, %500 : vector<72x4xf32>
    %c592 = arith.constant 592 : index
    %c0_135 = arith.constant 0 : index
    %502 = vector.load %arg8[%c592, %c0_135] : memref<1392x64xbf16, #tpu.memory_space<vmem>>, vector<4x4xbf16>
    %c608 = arith.constant 608 : index
    %c0_136 = arith.constant 0 : index
    %503 = vector.load %arg8[%c608, %c0_136] : memref<1392x64xbf16, #tpu.memory_space<vmem>>, vector<20x16xbf16>
    %c16_137 = arith.constant 16 : index
    %c0_138 = arith.constant 0 : index
    %504 = vector.load %arg9[%c16_137, %c0_138] : memref<40x64xf32, #tpu.memory_space<vmem>>, vector<1x16xf32>
    %c640 = arith.constant 640 : index
    %c0_139 = arith.constant 0 : index
    %505 = vector.load %arg8[%c640, %c0_139] : memref<1392x64xbf16, #tpu.memory_space<vmem>>, vector<4x4xbf16>
    %506 = arith.truncf %501 : vector<72x4xf32> to vector<72x4xbf16>
    %cst_140 = arith.constant dense<0.000000e+00> : vector<72x4xf32>
    %507 = tpu.matmul %506, %502, %cst_140 {dimension_numbers = #tpu.dot_dimension_numbers<[1], [0], [0], [1], [0, 0, 1, 1], [], []>} : vector<72x4xbf16>, vector<4x4xbf16>, vector<72x4xf32> -> vector<72x4xf32>
    %508 = vector.extract_strided_slice %507 {offsets = [0, 0], sizes = [24, 4], strides = [1, 1]} : vector<72x4xf32> to vector<24x4xf32>
    %509 = vector.extract_strided_slice %507 {offsets = [24, 0], sizes = [24, 4], strides = [1, 1]} : vector<72x4xf32> to vector<24x4xf32>
    %510 = vector.extract_strided_slice %507 {offsets = [48, 0], sizes = [24, 4], strides = [1, 1]} : vector<72x4xf32> to vector<24x4xf32>
    %511 = arith.mulf %508, %508 : vector<24x4xf32>
    %512 = arith.mulf %509, %509 : vector<24x4xf32>
    %513 = arith.addf %511, %512 : vector<24x4xf32>
    %514 = arith.mulf %510, %510 : vector<24x4xf32>
    %515 = arith.addf %513, %514 : vector<24x4xf32>
    %cst_141 = arith.constant 9.99999993E-9 : f32
    %516 = vector.broadcast %cst_141 : f32 to vector<24x4xf32>
    %517 = arith.maximumf %515, %516 : vector<24x4xf32>
    %518 = math.sqrt %517 : vector<24x4xf32>
    %519 = tpu.concatenate %480, %518 in 1 : vector<24x16xf32>, vector<24x4xf32> -> vector<24x20xf32>
    %520 = arith.truncf %519 : vector<24x20xf32> to vector<24x20xbf16>
    %cst_142 = arith.constant dense<0.000000e+00> : vector<24x16xf32>
    %521 = tpu.matmul %520, %503, %cst_142 {dimension_numbers = #tpu.dot_dimension_numbers<[1], [0], [0], [1], [0, 0, 1, 1], [], []>} : vector<24x20xbf16>, vector<20x16xbf16>, vector<24x16xf32> -> vector<24x16xf32>
    %522 = vector.broadcast %504 : vector<1x16xf32> to vector<24x16xf32>
    %523 = arith.addf %521, %522 : vector<24x16xf32>
    %cst_143 = arith.constant 0.000000e+00 : f32
    %524 = vector.broadcast %cst_143 : f32 to vector<24x16xf32>
    %525 = arith.maximumf %523, %524 : vector<24x16xf32>
    %526 = arith.truncf %507 : vector<72x4xf32> to vector<72x4xbf16>
    %cst_144 = arith.constant dense<0.000000e+00> : vector<72x4xf32>
    %527 = tpu.matmul %526, %505, %cst_144 {dimension_numbers = #tpu.dot_dimension_numbers<[1], [0], [0], [1], [0, 0, 1, 1], [], []>} : vector<72x4xbf16>, vector<4x4xbf16>, vector<72x4xf32> -> vector<72x4xf32>
    %528 = vector.extract_strided_slice %527 {offsets = [0, 0], sizes = [24, 4], strides = [1, 1]} : vector<72x4xf32> to vector<24x4xf32>
    %529 = vector.extract_strided_slice %527 {offsets = [24, 0], sizes = [24, 4], strides = [1, 1]} : vector<72x4xf32> to vector<24x4xf32>
    %530 = vector.extract_strided_slice %527 {offsets = [48, 0], sizes = [24, 4], strides = [1, 1]} : vector<72x4xf32> to vector<24x4xf32>
    %531 = arith.mulf %528, %528 : vector<24x4xf32>
    %532 = arith.mulf %529, %529 : vector<24x4xf32>
    %533 = arith.addf %531, %532 : vector<24x4xf32>
    %534 = arith.mulf %530, %530 : vector<24x4xf32>
    %535 = arith.addf %533, %534 : vector<24x4xf32>
    %cst_145 = arith.constant 9.99999993E-9 : f32
    %536 = vector.broadcast %cst_145 : f32 to vector<24x4xf32>
    %537 = arith.maximumf %535, %536 : vector<24x4xf32>
    %538 = math.sqrt %537 : vector<24x4xf32>
    %539 = arith.negf %538 : vector<24x4xf32>
    %540 = math.exp %539 : vector<24x4xf32>
    %cst_146 = arith.constant 1.000000e+00 : f32
    %541 = vector.broadcast %cst_146 : f32 to vector<24x4xf32>
    %542 = arith.addf %541, %540 : vector<24x4xf32>
    %543 = arith.divf %541, %542 : vector<24x4xf32>
    %544 = tpu.concatenate %543, %543, %543 in 0 : vector<24x4xf32>, vector<24x4xf32>, vector<24x4xf32> -> vector<72x4xf32>
    %545 = arith.mulf %527, %544 : vector<72x4xf32>
    %c656 = arith.constant 656 : index
    %c0_147 = arith.constant 0 : index
    %546 = vector.load %arg8[%c656, %c0_147] : memref<1392x64xbf16, #tpu.memory_space<vmem>>, vector<4x4xbf16>
    %c672 = arith.constant 672 : index
    %c0_148 = arith.constant 0 : index
    %547 = vector.load %arg8[%c672, %c0_148] : memref<1392x64xbf16, #tpu.memory_space<vmem>>, vector<20x16xbf16>
    %c17 = arith.constant 17 : index
    %c0_149 = arith.constant 0 : index
    %548 = vector.load %arg9[%c17, %c0_149] : memref<40x64xf32, #tpu.memory_space<vmem>>, vector<1x16xf32>
    %c704 = arith.constant 704 : index
    %c0_150 = arith.constant 0 : index
    %549 = vector.load %arg8[%c704, %c0_150] : memref<1392x64xbf16, #tpu.memory_space<vmem>>, vector<4x4xbf16>
    %550 = arith.truncf %545 : vector<72x4xf32> to vector<72x4xbf16>
    %cst_151 = arith.constant dense<0.000000e+00> : vector<72x4xf32>
    %551 = tpu.matmul %550, %546, %cst_151 {dimension_numbers = #tpu.dot_dimension_numbers<[1], [0], [0], [1], [0, 0, 1, 1], [], []>} : vector<72x4xbf16>, vector<4x4xbf16>, vector<72x4xf32> -> vector<72x4xf32>
    %552 = vector.extract_strided_slice %551 {offsets = [0, 0], sizes = [24, 4], strides = [1, 1]} : vector<72x4xf32> to vector<24x4xf32>
    %553 = vector.extract_strided_slice %551 {offsets = [24, 0], sizes = [24, 4], strides = [1, 1]} : vector<72x4xf32> to vector<24x4xf32>
    %554 = vector.extract_strided_slice %551 {offsets = [48, 0], sizes = [24, 4], strides = [1, 1]} : vector<72x4xf32> to vector<24x4xf32>
    %555 = arith.mulf %552, %552 : vector<24x4xf32>
    %556 = arith.mulf %553, %553 : vector<24x4xf32>
    %557 = arith.addf %555, %556 : vector<24x4xf32>
    %558 = arith.mulf %554, %554 : vector<24x4xf32>
    %559 = arith.addf %557, %558 : vector<24x4xf32>
    %cst_152 = arith.constant 9.99999993E-9 : f32
    %560 = vector.broadcast %cst_152 : f32 to vector<24x4xf32>
    %561 = arith.maximumf %559, %560 : vector<24x4xf32>
    %562 = math.sqrt %561 : vector<24x4xf32>
    %563 = tpu.concatenate %525, %562 in 1 : vector<24x16xf32>, vector<24x4xf32> -> vector<24x20xf32>
    %564 = arith.truncf %563 : vector<24x20xf32> to vector<24x20xbf16>
    %cst_153 = arith.constant dense<0.000000e+00> : vector<24x16xf32>
    %565 = tpu.matmul %564, %547, %cst_153 {dimension_numbers = #tpu.dot_dimension_numbers<[1], [0], [0], [1], [0, 0, 1, 1], [], []>} : vector<24x20xbf16>, vector<20x16xbf16>, vector<24x16xf32> -> vector<24x16xf32>
    %566 = vector.broadcast %548 : vector<1x16xf32> to vector<24x16xf32>
    %567 = arith.addf %565, %566 : vector<24x16xf32>
    %568 = arith.truncf %551 : vector<72x4xf32> to vector<72x4xbf16>
    %cst_154 = arith.constant dense<0.000000e+00> : vector<72x4xf32>
    %569 = tpu.matmul %568, %549, %cst_154 {dimension_numbers = #tpu.dot_dimension_numbers<[1], [0], [0], [1], [0, 0, 1, 1], [], []>} : vector<72x4xbf16>, vector<4x4xbf16>, vector<72x4xf32> -> vector<72x4xf32>
    %570 = vector.extract_strided_slice %569 {offsets = [0, 0], sizes = [24, 4], strides = [1, 1]} : vector<72x4xf32> to vector<24x4xf32>
    %571 = vector.extract_strided_slice %569 {offsets = [24, 0], sizes = [24, 4], strides = [1, 1]} : vector<72x4xf32> to vector<24x4xf32>
    %572 = vector.extract_strided_slice %569 {offsets = [48, 0], sizes = [24, 4], strides = [1, 1]} : vector<72x4xf32> to vector<24x4xf32>
    %573 = tpu.concatenate %567, %570, %571, %572 in 1 : vector<24x16xf32>, vector<24x4xf32>, vector<24x4xf32>, vector<24x4xf32> -> vector<24x28xf32>
    %574 = arith.truncf %573 : vector<24x28xf32> to vector<24x28xbf16>
    %cst_155 = arith.constant dense<0.000000e+00> : vector<8x28xf32>
    %575 = tpu.matmul %5, %574, %cst_155 {dimension_numbers = #tpu.dot_dimension_numbers<[1], [0], [0], [1], [0, 0, 1, 1], [], []>} : vector<8x24xbf16>, vector<24x28xbf16>, vector<8x28xf32> -> vector<8x28xf32>
    %576 = vector.broadcast %6 : vector<8x1xf32> to vector<8x28xf32>
    %577 = arith.mulf %575, %576 : vector<8x28xf32>
    %578 = vector.extract_strided_slice %577 {offsets = [0, 0], sizes = [8, 16], strides = [1, 1]} : vector<8x28xf32> to vector<8x16xf32>
    %579 = vector.extract_strided_slice %577 {offsets = [0, 16], sizes = [8, 4], strides = [1, 1]} : vector<8x28xf32> to vector<8x4xf32>
    %580 = vector.extract_strided_slice %577 {offsets = [0, 20], sizes = [8, 4], strides = [1, 1]} : vector<8x28xf32> to vector<8x4xf32>
    %581 = vector.extract_strided_slice %577 {offsets = [0, 24], sizes = [8, 4], strides = [1, 1]} : vector<8x28xf32> to vector<8x4xf32>
    %582 = tpu.concatenate %579, %580, %581 in 0 : vector<8x4xf32>, vector<8x4xf32>, vector<8x4xf32> -> vector<24x4xf32>
    %583 = arith.addf %420, %578 : vector<8x16xf32>
    %584 = arith.addf %438, %582 : vector<24x4xf32>
    %c18 = arith.constant 18 : index
    %c0_156 = arith.constant 0 : index
    %585 = vector.load %arg9[%c18, %c0_156] : memref<40x64xf32, #tpu.memory_space<vmem>>, vector<1x16xf32>
    %c19 = arith.constant 19 : index
    %c0_157 = arith.constant 0 : index
    %586 = vector.load %arg9[%c19, %c0_157] : memref<40x64xf32, #tpu.memory_space<vmem>>, vector<1x16xf32>
    %cst_158 = arith.constant dense<0.000000e+00> : vector<8xf32>
    %587 = vector.multi_reduction <add>, %583, %cst_158 [1] : vector<8x16xf32> to vector<8xf32>
    %588 = vector.shape_cast %587 : vector<8xf32> to vector<8x1xf32>
    %cst_159 = arith.constant 1.600000e+01 : f32
    %589 = vector.broadcast %cst_159 : f32 to vector<8x1xf32>
    %590 = arith.divf %588, %589 : vector<8x1xf32>
    %591 = vector.broadcast %590 : vector<8x1xf32> to vector<8x16xf32>
    %592 = arith.subf %583, %591 : vector<8x16xf32>
    %593 = arith.mulf %592, %592 : vector<8x16xf32>
    %cst_160 = arith.constant dense<0.000000e+00> : vector<8xf32>
    %594 = vector.multi_reduction <add>, %593, %cst_160 [1] : vector<8x16xf32> to vector<8xf32>
    %595 = vector.shape_cast %594 : vector<8xf32> to vector<8x1xf32>
    %cst_161 = arith.constant 1.600000e+01 : f32
    %596 = vector.broadcast %cst_161 : f32 to vector<8x1xf32>
    %597 = arith.divf %595, %596 : vector<8x1xf32>
    %598 = vector.broadcast %590 : vector<8x1xf32> to vector<8x16xf32>
    %599 = arith.subf %583, %598 : vector<8x16xf32>
    %cst_162 = arith.constant 9.99999974E-6 : f32
    %600 = vector.broadcast %cst_162 : f32 to vector<8x1xf32>
    %601 = arith.addf %597, %600 : vector<8x1xf32>
    %602 = math.rsqrt %601 : vector<8x1xf32>
    %603 = vector.broadcast %602 : vector<8x1xf32> to vector<8x16xf32>
    %604 = arith.mulf %599, %603 : vector<8x16xf32>
    %605 = vector.broadcast %585 : vector<1x16xf32> to vector<8x16xf32>
    %606 = arith.mulf %604, %605 : vector<8x16xf32>
    %607 = vector.broadcast %586 : vector<1x16xf32> to vector<8x16xf32>
    %608 = arith.addf %606, %607 : vector<8x16xf32>
    %609 = vector.extract_strided_slice %584 {offsets = [0, 0], sizes = [8, 4], strides = [1, 1]} : vector<24x4xf32> to vector<8x4xf32>
    %610 = vector.extract_strided_slice %584 {offsets = [8, 0], sizes = [8, 4], strides = [1, 1]} : vector<24x4xf32> to vector<8x4xf32>
    %611 = vector.extract_strided_slice %584 {offsets = [16, 0], sizes = [8, 4], strides = [1, 1]} : vector<24x4xf32> to vector<8x4xf32>
    %612 = arith.mulf %609, %609 : vector<8x4xf32>
    %613 = arith.mulf %610, %610 : vector<8x4xf32>
    %614 = arith.addf %612, %613 : vector<8x4xf32>
    %615 = arith.mulf %611, %611 : vector<8x4xf32>
    %616 = arith.addf %614, %615 : vector<8x4xf32>
    %cst_163 = arith.constant 9.99999993E-9 : f32
    %617 = vector.broadcast %cst_163 : f32 to vector<8x4xf32>
    %618 = arith.maximumf %616, %617 : vector<8x4xf32>
    %cst_164 = arith.constant dense<0.000000e+00> : vector<8xf32>
    %619 = vector.multi_reduction <add>, %618, %cst_164 [1] : vector<8x4xf32> to vector<8xf32>
    %620 = vector.shape_cast %619 : vector<8xf32> to vector<8x1xf32>
    %cst_165 = arith.constant 4.000000e+00 : f32
    %621 = vector.broadcast %cst_165 : f32 to vector<8x1xf32>
    %622 = arith.divf %620, %621 : vector<8x1xf32>
    %623 = math.rsqrt %622 : vector<8x1xf32>
    %624 = tpu.concatenate %623, %623, %623 in 0 : vector<8x1xf32>, vector<8x1xf32>, vector<8x1xf32> -> vector<24x1xf32>
    %625 = vector.broadcast %624 : vector<24x1xf32> to vector<24x4xf32>
    %626 = arith.mulf %584, %625 : vector<24x4xf32>
    %c720 = arith.constant 720 : index
    %c0_166 = arith.constant 0 : index
    %627 = vector.load %arg8[%c720, %c0_166] : memref<1392x64xbf16, #tpu.memory_space<vmem>>, vector<4x8xbf16>
    %c736 = arith.constant 736 : index
    %c0_167 = arith.constant 0 : index
    %628 = vector.load %arg8[%c736, %c0_167] : memref<1392x64xbf16, #tpu.memory_space<vmem>>, vector<24x64xbf16>
    %c20 = arith.constant 20 : index
    %c0_168 = arith.constant 0 : index
    %629 = vector.load %arg9[%c20, %c0_168] : memref<40x64xf32, #tpu.memory_space<vmem>>, vector<1x64xf32>
    %c768 = arith.constant 768 : index
    %c0_169 = arith.constant 0 : index
    %630 = vector.load %arg8[%c768, %c0_169] : memref<1392x64xbf16, #tpu.memory_space<vmem>>, vector<8x8xbf16>
    %631 = arith.truncf %626 : vector<24x4xf32> to vector<24x4xbf16>
    %cst_170 = arith.constant dense<0.000000e+00> : vector<24x8xf32>
    %632 = tpu.matmul %631, %627, %cst_170 {dimension_numbers = #tpu.dot_dimension_numbers<[1], [0], [0], [1], [0, 0, 1, 1], [], []>} : vector<24x4xbf16>, vector<4x8xbf16>, vector<24x8xf32> -> vector<24x8xf32>
    %633 = vector.extract_strided_slice %632 {offsets = [0, 0], sizes = [8, 8], strides = [1, 1]} : vector<24x8xf32> to vector<8x8xf32>
    %634 = vector.extract_strided_slice %632 {offsets = [8, 0], sizes = [8, 8], strides = [1, 1]} : vector<24x8xf32> to vector<8x8xf32>
    %635 = vector.extract_strided_slice %632 {offsets = [16, 0], sizes = [8, 8], strides = [1, 1]} : vector<24x8xf32> to vector<8x8xf32>
    %636 = arith.mulf %633, %633 : vector<8x8xf32>
    %637 = arith.mulf %634, %634 : vector<8x8xf32>
    %638 = arith.addf %636, %637 : vector<8x8xf32>
    %639 = arith.mulf %635, %635 : vector<8x8xf32>
    %640 = arith.addf %638, %639 : vector<8x8xf32>
    %cst_171 = arith.constant 9.99999993E-9 : f32
    %641 = vector.broadcast %cst_171 : f32 to vector<8x8xf32>
    %642 = arith.maximumf %640, %641 : vector<8x8xf32>
    %643 = math.sqrt %642 : vector<8x8xf32>
    %644 = tpu.concatenate %608, %643 in 1 : vector<8x16xf32>, vector<8x8xf32> -> vector<8x24xf32>
    %645 = arith.truncf %644 : vector<8x24xf32> to vector<8x24xbf16>
    %cst_172 = arith.constant dense<0.000000e+00> : vector<8x64xf32>
    %646 = tpu.matmul %645, %628, %cst_172 {dimension_numbers = #tpu.dot_dimension_numbers<[1], [0], [0], [1], [0, 0, 1, 1], [], []>} : vector<8x24xbf16>, vector<24x64xbf16>, vector<8x64xf32> -> vector<8x64xf32>
    %647 = vector.broadcast %629 : vector<1x64xf32> to vector<8x64xf32>
    %648 = arith.addf %646, %647 : vector<8x64xf32>
    %cst_173 = arith.constant 0.000000e+00 : f32
    %649 = vector.broadcast %cst_173 : f32 to vector<8x64xf32>
    %650 = arith.maximumf %648, %649 : vector<8x64xf32>
    %651 = arith.truncf %632 : vector<24x8xf32> to vector<24x8xbf16>
    %cst_174 = arith.constant dense<0.000000e+00> : vector<24x8xf32>
    %652 = tpu.matmul %651, %630, %cst_174 {dimension_numbers = #tpu.dot_dimension_numbers<[1], [0], [0], [1], [0, 0, 1, 1], [], []>} : vector<24x8xbf16>, vector<8x8xbf16>, vector<24x8xf32> -> vector<24x8xf32>
    %653 = vector.extract_strided_slice %652 {offsets = [0, 0], sizes = [8, 8], strides = [1, 1]} : vector<24x8xf32> to vector<8x8xf32>
    %654 = vector.extract_strided_slice %652 {offsets = [8, 0], sizes = [8, 8], strides = [1, 1]} : vector<24x8xf32> to vector<8x8xf32>
    %655 = vector.extract_strided_slice %652 {offsets = [16, 0], sizes = [8, 8], strides = [1, 1]} : vector<24x8xf32> to vector<8x8xf32>
    %656 = arith.mulf %653, %653 : vector<8x8xf32>
    %657 = arith.mulf %654, %654 : vector<8x8xf32>
    %658 = arith.addf %656, %657 : vector<8x8xf32>
    %659 = arith.mulf %655, %655 : vector<8x8xf32>
    %660 = arith.addf %658, %659 : vector<8x8xf32>
    %cst_175 = arith.constant 9.99999993E-9 : f32
    %661 = vector.broadcast %cst_175 : f32 to vector<8x8xf32>
    %662 = arith.maximumf %660, %661 : vector<8x8xf32>
    %663 = math.sqrt %662 : vector<8x8xf32>
    %664 = arith.negf %663 : vector<8x8xf32>
    %665 = math.exp %664 : vector<8x8xf32>
    %cst_176 = arith.constant 1.000000e+00 : f32
    %666 = vector.broadcast %cst_176 : f32 to vector<8x8xf32>
    %667 = arith.addf %666, %665 : vector<8x8xf32>
    %668 = arith.divf %666, %667 : vector<8x8xf32>
    %669 = tpu.concatenate %668, %668, %668 in 0 : vector<8x8xf32>, vector<8x8xf32>, vector<8x8xf32> -> vector<24x8xf32>
    %670 = arith.mulf %652, %669 : vector<24x8xf32>
    %c784 = arith.constant 784 : index
    %c0_177 = arith.constant 0 : index
    %671 = vector.load %arg8[%c784, %c0_177] : memref<1392x64xbf16, #tpu.memory_space<vmem>>, vector<8x8xbf16>
    %c800 = arith.constant 800 : index
    %c0_178 = arith.constant 0 : index
    %672 = vector.load %arg8[%c800, %c0_178] : memref<1392x64xbf16, #tpu.memory_space<vmem>>, vector<72x16xbf16>
    %c21 = arith.constant 21 : index
    %c0_179 = arith.constant 0 : index
    %673 = vector.load %arg9[%c21, %c0_179] : memref<40x64xf32, #tpu.memory_space<vmem>>, vector<1x16xf32>
    %c880 = arith.constant 880 : index
    %c0_180 = arith.constant 0 : index
    %674 = vector.load %arg8[%c880, %c0_180] : memref<1392x64xbf16, #tpu.memory_space<vmem>>, vector<8x4xbf16>
    %675 = arith.truncf %670 : vector<24x8xf32> to vector<24x8xbf16>
    %cst_181 = arith.constant dense<0.000000e+00> : vector<24x8xf32>
    %676 = tpu.matmul %675, %671, %cst_181 {dimension_numbers = #tpu.dot_dimension_numbers<[1], [0], [0], [1], [0, 0, 1, 1], [], []>} : vector<24x8xbf16>, vector<8x8xbf16>, vector<24x8xf32> -> vector<24x8xf32>
    %677 = vector.extract_strided_slice %676 {offsets = [0, 0], sizes = [8, 8], strides = [1, 1]} : vector<24x8xf32> to vector<8x8xf32>
    %678 = vector.extract_strided_slice %676 {offsets = [8, 0], sizes = [8, 8], strides = [1, 1]} : vector<24x8xf32> to vector<8x8xf32>
    %679 = vector.extract_strided_slice %676 {offsets = [16, 0], sizes = [8, 8], strides = [1, 1]} : vector<24x8xf32> to vector<8x8xf32>
    %680 = arith.mulf %677, %677 : vector<8x8xf32>
    %681 = arith.mulf %678, %678 : vector<8x8xf32>
    %682 = arith.addf %680, %681 : vector<8x8xf32>
    %683 = arith.mulf %679, %679 : vector<8x8xf32>
    %684 = arith.addf %682, %683 : vector<8x8xf32>
    %cst_182 = arith.constant 9.99999993E-9 : f32
    %685 = vector.broadcast %cst_182 : f32 to vector<8x8xf32>
    %686 = arith.maximumf %684, %685 : vector<8x8xf32>
    %687 = math.sqrt %686 : vector<8x8xf32>
    %688 = tpu.concatenate %650, %687 in 1 : vector<8x64xf32>, vector<8x8xf32> -> vector<8x72xf32>
    %689 = arith.truncf %688 : vector<8x72xf32> to vector<8x72xbf16>
    %cst_183 = arith.constant dense<0.000000e+00> : vector<8x16xf32>
    %690 = tpu.matmul %689, %672, %cst_183 {dimension_numbers = #tpu.dot_dimension_numbers<[1], [0], [0], [1], [0, 0, 1, 1], [], []>} : vector<8x72xbf16>, vector<72x16xbf16>, vector<8x16xf32> -> vector<8x16xf32>
    %691 = vector.broadcast %673 : vector<1x16xf32> to vector<8x16xf32>
    %692 = arith.addf %690, %691 : vector<8x16xf32>
    %693 = arith.truncf %676 : vector<24x8xf32> to vector<24x8xbf16>
    %cst_184 = arith.constant dense<0.000000e+00> : vector<24x4xf32>
    %694 = tpu.matmul %693, %674, %cst_184 {dimension_numbers = #tpu.dot_dimension_numbers<[1], [0], [0], [1], [0, 0, 1, 1], [], []>} : vector<24x8xbf16>, vector<8x4xbf16>, vector<24x4xf32> -> vector<24x4xf32>
    %695 = arith.addf %608, %692 : vector<8x16xf32>
    %696 = arith.addf %626, %694 : vector<24x4xf32>
    %c22 = arith.constant 22 : index
    %c0_185 = arith.constant 0 : index
    %697 = vector.load %arg9[%c22, %c0_185] : memref<40x64xf32, #tpu.memory_space<vmem>>, vector<1x16xf32>
    %c23 = arith.constant 23 : index
    %c0_186 = arith.constant 0 : index
    %698 = vector.load %arg9[%c23, %c0_186] : memref<40x64xf32, #tpu.memory_space<vmem>>, vector<1x16xf32>
    %cst_187 = arith.constant dense<0.000000e+00> : vector<8xf32>
    %699 = vector.multi_reduction <add>, %695, %cst_187 [1] : vector<8x16xf32> to vector<8xf32>
    %700 = vector.shape_cast %699 : vector<8xf32> to vector<8x1xf32>
    %cst_188 = arith.constant 1.600000e+01 : f32
    %701 = vector.broadcast %cst_188 : f32 to vector<8x1xf32>
    %702 = arith.divf %700, %701 : vector<8x1xf32>
    %703 = vector.broadcast %702 : vector<8x1xf32> to vector<8x16xf32>
    %704 = arith.subf %695, %703 : vector<8x16xf32>
    %705 = arith.mulf %704, %704 : vector<8x16xf32>
    %cst_189 = arith.constant dense<0.000000e+00> : vector<8xf32>
    %706 = vector.multi_reduction <add>, %705, %cst_189 [1] : vector<8x16xf32> to vector<8xf32>
    %707 = vector.shape_cast %706 : vector<8xf32> to vector<8x1xf32>
    %cst_190 = arith.constant 1.600000e+01 : f32
    %708 = vector.broadcast %cst_190 : f32 to vector<8x1xf32>
    %709 = arith.divf %707, %708 : vector<8x1xf32>
    %710 = vector.broadcast %702 : vector<8x1xf32> to vector<8x16xf32>
    %711 = arith.subf %695, %710 : vector<8x16xf32>
    %cst_191 = arith.constant 9.99999974E-6 : f32
    %712 = vector.broadcast %cst_191 : f32 to vector<8x1xf32>
    %713 = arith.addf %709, %712 : vector<8x1xf32>
    %714 = math.rsqrt %713 : vector<8x1xf32>
    %715 = vector.broadcast %714 : vector<8x1xf32> to vector<8x16xf32>
    %716 = arith.mulf %711, %715 : vector<8x16xf32>
    %717 = vector.broadcast %697 : vector<1x16xf32> to vector<8x16xf32>
    %718 = arith.mulf %716, %717 : vector<8x16xf32>
    %719 = vector.broadcast %698 : vector<1x16xf32> to vector<8x16xf32>
    %720 = arith.addf %718, %719 : vector<8x16xf32>
    %721 = vector.extract_strided_slice %696 {offsets = [0, 0], sizes = [8, 4], strides = [1, 1]} : vector<24x4xf32> to vector<8x4xf32>
    %722 = vector.extract_strided_slice %696 {offsets = [8, 0], sizes = [8, 4], strides = [1, 1]} : vector<24x4xf32> to vector<8x4xf32>
    %723 = vector.extract_strided_slice %696 {offsets = [16, 0], sizes = [8, 4], strides = [1, 1]} : vector<24x4xf32> to vector<8x4xf32>
    %724 = arith.mulf %721, %721 : vector<8x4xf32>
    %725 = arith.mulf %722, %722 : vector<8x4xf32>
    %726 = arith.addf %724, %725 : vector<8x4xf32>
    %727 = arith.mulf %723, %723 : vector<8x4xf32>
    %728 = arith.addf %726, %727 : vector<8x4xf32>
    %cst_192 = arith.constant 9.99999993E-9 : f32
    %729 = vector.broadcast %cst_192 : f32 to vector<8x4xf32>
    %730 = arith.maximumf %728, %729 : vector<8x4xf32>
    %cst_193 = arith.constant dense<0.000000e+00> : vector<8xf32>
    %731 = vector.multi_reduction <add>, %730, %cst_193 [1] : vector<8x4xf32> to vector<8xf32>
    %732 = vector.shape_cast %731 : vector<8xf32> to vector<8x1xf32>
    %cst_194 = arith.constant 4.000000e+00 : f32
    %733 = vector.broadcast %cst_194 : f32 to vector<8x1xf32>
    %734 = arith.divf %732, %733 : vector<8x1xf32>
    %735 = math.rsqrt %734 : vector<8x1xf32>
    %736 = tpu.concatenate %735, %735, %735 in 0 : vector<8x1xf32>, vector<8x1xf32>, vector<8x1xf32> -> vector<24x1xf32>
    %737 = vector.broadcast %736 : vector<24x1xf32> to vector<24x4xf32>
    %738 = arith.mulf %696, %737 : vector<24x4xf32>
    %739 = vector.extract_strided_slice %738 {offsets = [0, 0], sizes = [8, 4], strides = [1, 1]} : vector<24x4xf32> to vector<8x4xf32>
    %740 = vector.extract_strided_slice %738 {offsets = [8, 0], sizes = [8, 4], strides = [1, 1]} : vector<24x4xf32> to vector<8x4xf32>
    %741 = vector.extract_strided_slice %738 {offsets = [16, 0], sizes = [8, 4], strides = [1, 1]} : vector<24x4xf32> to vector<8x4xf32>
    %742 = tpu.concatenate %720, %739, %740, %741 in 1 : vector<8x16xf32>, vector<8x4xf32>, vector<8x4xf32>, vector<8x4xf32> -> vector<8x28xf32>
    %743 = arith.truncf %742 : vector<8x28xf32> to vector<8x28xbf16>
    %cst_195 = arith.constant dense<0.000000e+00> : vector<48x28xf32>
    %744 = tpu.matmul %4, %743, %cst_195 {dimension_numbers = #tpu.dot_dimension_numbers<[1], [0], [0], [1], [0, 0, 1, 1], [], []>} : vector<48x8xbf16>, vector<8x28xbf16>, vector<48x28xf32> -> vector<48x28xf32>
    %745 = vector.extract_strided_slice %744 {offsets = [0, 0], sizes = [24, 28], strides = [1, 1]} : vector<48x28xf32> to vector<24x28xf32>
    %746 = vector.extract_strided_slice %744 {offsets = [24, 0], sizes = [24, 28], strides = [1, 1]} : vector<48x28xf32> to vector<24x28xf32>
    %747 = vector.extract_strided_slice %745 {offsets = [0, 0], sizes = [24, 16], strides = [1, 1]} : vector<24x28xf32> to vector<24x16xf32>
    %748 = vector.extract_strided_slice %746 {offsets = [0, 0], sizes = [24, 16], strides = [1, 1]} : vector<24x28xf32> to vector<24x16xf32>
    %749 = vector.extract_strided_slice %745 {offsets = [0, 16], sizes = [24, 4], strides = [1, 1]} : vector<24x28xf32> to vector<24x4xf32>
    %750 = vector.extract_strided_slice %745 {offsets = [0, 20], sizes = [24, 4], strides = [1, 1]} : vector<24x28xf32> to vector<24x4xf32>
    %751 = vector.extract_strided_slice %745 {offsets = [0, 24], sizes = [24, 4], strides = [1, 1]} : vector<24x28xf32> to vector<24x4xf32>
    %752 = tpu.concatenate %749, %750, %751 in 0 : vector<24x4xf32>, vector<24x4xf32>, vector<24x4xf32> -> vector<72x4xf32>
    %753 = vector.extract_strided_slice %746 {offsets = [0, 16], sizes = [24, 4], strides = [1, 1]} : vector<24x28xf32> to vector<24x4xf32>
    %754 = vector.extract_strided_slice %746 {offsets = [0, 20], sizes = [24, 4], strides = [1, 1]} : vector<24x28xf32> to vector<24x4xf32>
    %755 = vector.extract_strided_slice %746 {offsets = [0, 24], sizes = [24, 4], strides = [1, 1]} : vector<24x28xf32> to vector<24x4xf32>
    %756 = tpu.concatenate %753, %754, %755 in 0 : vector<24x4xf32>, vector<24x4xf32>, vector<24x4xf32> -> vector<72x4xf32>
    %757 = tpu.concatenate %752, %138, %756 in 1 : vector<72x4xf32>, vector<72x2xf32>, vector<72x4xf32> -> vector<72x10xf32>
    %758 = arith.truncf %757 : vector<72x10xf32> to vector<72x10xbf16>
    %c896 = arith.constant 896 : index
    %c0_196 = arith.constant 0 : index
    %759 = vector.load %arg8[%c896, %c0_196] : memref<1392x64xbf16, #tpu.memory_space<vmem>>, vector<10x10xbf16>
    %cst_197 = arith.constant dense<0.000000e+00> : vector<72x10xf32>
    %760 = tpu.matmul %758, %759, %cst_197 {dimension_numbers = #tpu.dot_dimension_numbers<[1], [0], [0], [1], [0, 0, 1, 1], [], []>} : vector<72x10xbf16>, vector<10x10xbf16>, vector<72x10xf32> -> vector<72x10xf32>
    %761 = vector.extract_strided_slice %760 {offsets = [0, 0], sizes = [24, 10], strides = [1, 1]} : vector<72x10xf32> to vector<24x10xf32>
    %762 = vector.extract_strided_slice %760 {offsets = [24, 0], sizes = [24, 10], strides = [1, 1]} : vector<72x10xf32> to vector<24x10xf32>
    %763 = vector.extract_strided_slice %760 {offsets = [48, 0], sizes = [24, 10], strides = [1, 1]} : vector<72x10xf32> to vector<24x10xf32>
    %764 = arith.mulf %761, %761 : vector<24x10xf32>
    %765 = arith.mulf %762, %762 : vector<24x10xf32>
    %766 = arith.addf %764, %765 : vector<24x10xf32>
    %767 = arith.mulf %763, %763 : vector<24x10xf32>
    %768 = arith.addf %766, %767 : vector<24x10xf32>
    %cst_198 = arith.constant 9.99999993E-9 : f32
    %769 = vector.broadcast %cst_198 : f32 to vector<24x10xf32>
    %770 = arith.maximumf %768, %769 : vector<24x10xf32>
    %771 = math.sqrt %770 : vector<24x10xf32>
    %772 = tpu.concatenate %747, %136, %748, %771 in 1 : vector<24x16xf32>, vector<24x8xf32>, vector<24x16xf32>, vector<24x10xf32> -> vector<24x50xf32>
    %773 = arith.truncf %772 : vector<24x50xf32> to vector<24x50xbf16>
    %c912 = arith.constant 912 : index
    %c0_199 = arith.constant 0 : index
    %774 = vector.load %arg8[%c912, %c0_199] : memref<1392x64xbf16, #tpu.memory_space<vmem>>, vector<50x16xbf16>
    %cst_200 = arith.constant dense<0.000000e+00> : vector<24x16xf32>
    %775 = tpu.matmul %773, %774, %cst_200 {dimension_numbers = #tpu.dot_dimension_numbers<[1], [0], [0], [1], [0, 0, 1, 1], [], []>} : vector<24x50xbf16>, vector<50x16xbf16>, vector<24x16xf32> -> vector<24x16xf32>
    %c24 = arith.constant 24 : index
    %c0_201 = arith.constant 0 : index
    %776 = vector.load %arg9[%c24, %c0_201] : memref<40x64xf32, #tpu.memory_space<vmem>>, vector<1x16xf32>
    %777 = vector.broadcast %776 : vector<1x16xf32> to vector<24x16xf32>
    %778 = arith.addf %775, %777 : vector<24x16xf32>
    %cst_202 = arith.constant 0.000000e+00 : f32
    %779 = vector.broadcast %cst_202 : f32 to vector<24x16xf32>
    %780 = arith.maximumf %778, %779 : vector<24x16xf32>
    %781 = arith.truncf %760 : vector<72x10xf32> to vector<72x10xbf16>
    %c976 = arith.constant 976 : index
    %c0_203 = arith.constant 0 : index
    %782 = vector.load %arg8[%c976, %c0_203] : memref<1392x64xbf16, #tpu.memory_space<vmem>>, vector<10x4xbf16>
    %cst_204 = arith.constant dense<0.000000e+00> : vector<72x4xf32>
    %783 = tpu.matmul %781, %782, %cst_204 {dimension_numbers = #tpu.dot_dimension_numbers<[1], [0], [0], [1], [0, 0, 1, 1], [], []>} : vector<72x10xbf16>, vector<10x4xbf16>, vector<72x4xf32> -> vector<72x4xf32>
    %784 = vector.extract_strided_slice %783 {offsets = [0, 0], sizes = [24, 4], strides = [1, 1]} : vector<72x4xf32> to vector<24x4xf32>
    %785 = vector.extract_strided_slice %783 {offsets = [24, 0], sizes = [24, 4], strides = [1, 1]} : vector<72x4xf32> to vector<24x4xf32>
    %786 = vector.extract_strided_slice %783 {offsets = [48, 0], sizes = [24, 4], strides = [1, 1]} : vector<72x4xf32> to vector<24x4xf32>
    %787 = arith.mulf %784, %784 : vector<24x4xf32>
    %788 = arith.mulf %785, %785 : vector<24x4xf32>
    %789 = arith.addf %787, %788 : vector<24x4xf32>
    %790 = arith.mulf %786, %786 : vector<24x4xf32>
    %791 = arith.addf %789, %790 : vector<24x4xf32>
    %cst_205 = arith.constant 9.99999993E-9 : f32
    %792 = vector.broadcast %cst_205 : f32 to vector<24x4xf32>
    %793 = arith.maximumf %791, %792 : vector<24x4xf32>
    %794 = math.sqrt %793 : vector<24x4xf32>
    %795 = arith.negf %794 : vector<24x4xf32>
    %796 = math.exp %795 : vector<24x4xf32>
    %cst_206 = arith.constant 1.000000e+00 : f32
    %797 = vector.broadcast %cst_206 : f32 to vector<24x4xf32>
    %798 = arith.addf %797, %796 : vector<24x4xf32>
    %799 = arith.divf %797, %798 : vector<24x4xf32>
    %800 = tpu.concatenate %799, %799, %799 in 0 : vector<24x4xf32>, vector<24x4xf32>, vector<24x4xf32> -> vector<72x4xf32>
    %801 = arith.mulf %783, %800 : vector<72x4xf32>
    %c992 = arith.constant 992 : index
    %c0_207 = arith.constant 0 : index
    %802 = vector.load %arg8[%c992, %c0_207] : memref<1392x64xbf16, #tpu.memory_space<vmem>>, vector<4x4xbf16>
    %c1008 = arith.constant 1008 : index
    %c0_208 = arith.constant 0 : index
    %803 = vector.load %arg8[%c1008, %c0_208] : memref<1392x64xbf16, #tpu.memory_space<vmem>>, vector<20x16xbf16>
    %c25 = arith.constant 25 : index
    %c0_209 = arith.constant 0 : index
    %804 = vector.load %arg9[%c25, %c0_209] : memref<40x64xf32, #tpu.memory_space<vmem>>, vector<1x16xf32>
    %c1040 = arith.constant 1040 : index
    %c0_210 = arith.constant 0 : index
    %805 = vector.load %arg8[%c1040, %c0_210] : memref<1392x64xbf16, #tpu.memory_space<vmem>>, vector<4x4xbf16>
    %806 = arith.truncf %801 : vector<72x4xf32> to vector<72x4xbf16>
    %cst_211 = arith.constant dense<0.000000e+00> : vector<72x4xf32>
    %807 = tpu.matmul %806, %802, %cst_211 {dimension_numbers = #tpu.dot_dimension_numbers<[1], [0], [0], [1], [0, 0, 1, 1], [], []>} : vector<72x4xbf16>, vector<4x4xbf16>, vector<72x4xf32> -> vector<72x4xf32>
    %808 = vector.extract_strided_slice %807 {offsets = [0, 0], sizes = [24, 4], strides = [1, 1]} : vector<72x4xf32> to vector<24x4xf32>
    %809 = vector.extract_strided_slice %807 {offsets = [24, 0], sizes = [24, 4], strides = [1, 1]} : vector<72x4xf32> to vector<24x4xf32>
    %810 = vector.extract_strided_slice %807 {offsets = [48, 0], sizes = [24, 4], strides = [1, 1]} : vector<72x4xf32> to vector<24x4xf32>
    %811 = arith.mulf %808, %808 : vector<24x4xf32>
    %812 = arith.mulf %809, %809 : vector<24x4xf32>
    %813 = arith.addf %811, %812 : vector<24x4xf32>
    %814 = arith.mulf %810, %810 : vector<24x4xf32>
    %815 = arith.addf %813, %814 : vector<24x4xf32>
    %cst_212 = arith.constant 9.99999993E-9 : f32
    %816 = vector.broadcast %cst_212 : f32 to vector<24x4xf32>
    %817 = arith.maximumf %815, %816 : vector<24x4xf32>
    %818 = math.sqrt %817 : vector<24x4xf32>
    %819 = tpu.concatenate %780, %818 in 1 : vector<24x16xf32>, vector<24x4xf32> -> vector<24x20xf32>
    %820 = arith.truncf %819 : vector<24x20xf32> to vector<24x20xbf16>
    %cst_213 = arith.constant dense<0.000000e+00> : vector<24x16xf32>
    %821 = tpu.matmul %820, %803, %cst_213 {dimension_numbers = #tpu.dot_dimension_numbers<[1], [0], [0], [1], [0, 0, 1, 1], [], []>} : vector<24x20xbf16>, vector<20x16xbf16>, vector<24x16xf32> -> vector<24x16xf32>
    %822 = vector.broadcast %804 : vector<1x16xf32> to vector<24x16xf32>
    %823 = arith.addf %821, %822 : vector<24x16xf32>
    %cst_214 = arith.constant 0.000000e+00 : f32
    %824 = vector.broadcast %cst_214 : f32 to vector<24x16xf32>
    %825 = arith.maximumf %823, %824 : vector<24x16xf32>
    %826 = arith.truncf %807 : vector<72x4xf32> to vector<72x4xbf16>
    %cst_215 = arith.constant dense<0.000000e+00> : vector<72x4xf32>
    %827 = tpu.matmul %826, %805, %cst_215 {dimension_numbers = #tpu.dot_dimension_numbers<[1], [0], [0], [1], [0, 0, 1, 1], [], []>} : vector<72x4xbf16>, vector<4x4xbf16>, vector<72x4xf32> -> vector<72x4xf32>
    %828 = vector.extract_strided_slice %827 {offsets = [0, 0], sizes = [24, 4], strides = [1, 1]} : vector<72x4xf32> to vector<24x4xf32>
    %829 = vector.extract_strided_slice %827 {offsets = [24, 0], sizes = [24, 4], strides = [1, 1]} : vector<72x4xf32> to vector<24x4xf32>
    %830 = vector.extract_strided_slice %827 {offsets = [48, 0], sizes = [24, 4], strides = [1, 1]} : vector<72x4xf32> to vector<24x4xf32>
    %831 = arith.mulf %828, %828 : vector<24x4xf32>
    %832 = arith.mulf %829, %829 : vector<24x4xf32>
    %833 = arith.addf %831, %832 : vector<24x4xf32>
    %834 = arith.mulf %830, %830 : vector<24x4xf32>
    %835 = arith.addf %833, %834 : vector<24x4xf32>
    %cst_216 = arith.constant 9.99999993E-9 : f32
    %836 = vector.broadcast %cst_216 : f32 to vector<24x4xf32>
    %837 = arith.maximumf %835, %836 : vector<24x4xf32>
    %838 = math.sqrt %837 : vector<24x4xf32>
    %839 = arith.negf %838 : vector<24x4xf32>
    %840 = math.exp %839 : vector<24x4xf32>
    %cst_217 = arith.constant 1.000000e+00 : f32
    %841 = vector.broadcast %cst_217 : f32 to vector<24x4xf32>
    %842 = arith.addf %841, %840 : vector<24x4xf32>
    %843 = arith.divf %841, %842 : vector<24x4xf32>
    %844 = tpu.concatenate %843, %843, %843 in 0 : vector<24x4xf32>, vector<24x4xf32>, vector<24x4xf32> -> vector<72x4xf32>
    %845 = arith.mulf %827, %844 : vector<72x4xf32>
    %c1056 = arith.constant 1056 : index
    %c0_218 = arith.constant 0 : index
    %846 = vector.load %arg8[%c1056, %c0_218] : memref<1392x64xbf16, #tpu.memory_space<vmem>>, vector<4x4xbf16>
    %c1072 = arith.constant 1072 : index
    %c0_219 = arith.constant 0 : index
    %847 = vector.load %arg8[%c1072, %c0_219] : memref<1392x64xbf16, #tpu.memory_space<vmem>>, vector<20x16xbf16>
    %c26 = arith.constant 26 : index
    %c0_220 = arith.constant 0 : index
    %848 = vector.load %arg9[%c26, %c0_220] : memref<40x64xf32, #tpu.memory_space<vmem>>, vector<1x16xf32>
    %c1104 = arith.constant 1104 : index
    %c0_221 = arith.constant 0 : index
    %849 = vector.load %arg8[%c1104, %c0_221] : memref<1392x64xbf16, #tpu.memory_space<vmem>>, vector<4x4xbf16>
    %850 = arith.truncf %845 : vector<72x4xf32> to vector<72x4xbf16>
    %cst_222 = arith.constant dense<0.000000e+00> : vector<72x4xf32>
    %851 = tpu.matmul %850, %846, %cst_222 {dimension_numbers = #tpu.dot_dimension_numbers<[1], [0], [0], [1], [0, 0, 1, 1], [], []>} : vector<72x4xbf16>, vector<4x4xbf16>, vector<72x4xf32> -> vector<72x4xf32>
    %852 = vector.extract_strided_slice %851 {offsets = [0, 0], sizes = [24, 4], strides = [1, 1]} : vector<72x4xf32> to vector<24x4xf32>
    %853 = vector.extract_strided_slice %851 {offsets = [24, 0], sizes = [24, 4], strides = [1, 1]} : vector<72x4xf32> to vector<24x4xf32>
    %854 = vector.extract_strided_slice %851 {offsets = [48, 0], sizes = [24, 4], strides = [1, 1]} : vector<72x4xf32> to vector<24x4xf32>
    %855 = arith.mulf %852, %852 : vector<24x4xf32>
    %856 = arith.mulf %853, %853 : vector<24x4xf32>
    %857 = arith.addf %855, %856 : vector<24x4xf32>
    %858 = arith.mulf %854, %854 : vector<24x4xf32>
    %859 = arith.addf %857, %858 : vector<24x4xf32>
    %cst_223 = arith.constant 9.99999993E-9 : f32
    %860 = vector.broadcast %cst_223 : f32 to vector<24x4xf32>
    %861 = arith.maximumf %859, %860 : vector<24x4xf32>
    %862 = math.sqrt %861 : vector<24x4xf32>
    %863 = tpu.concatenate %825, %862 in 1 : vector<24x16xf32>, vector<24x4xf32> -> vector<24x20xf32>
    %864 = arith.truncf %863 : vector<24x20xf32> to vector<24x20xbf16>
    %cst_224 = arith.constant dense<0.000000e+00> : vector<24x16xf32>
    %865 = tpu.matmul %864, %847, %cst_224 {dimension_numbers = #tpu.dot_dimension_numbers<[1], [0], [0], [1], [0, 0, 1, 1], [], []>} : vector<24x20xbf16>, vector<20x16xbf16>, vector<24x16xf32> -> vector<24x16xf32>
    %866 = vector.broadcast %848 : vector<1x16xf32> to vector<24x16xf32>
    %867 = arith.addf %865, %866 : vector<24x16xf32>
    %868 = arith.truncf %851 : vector<72x4xf32> to vector<72x4xbf16>
    %cst_225 = arith.constant dense<0.000000e+00> : vector<72x4xf32>
    %869 = tpu.matmul %868, %849, %cst_225 {dimension_numbers = #tpu.dot_dimension_numbers<[1], [0], [0], [1], [0, 0, 1, 1], [], []>} : vector<72x4xbf16>, vector<4x4xbf16>, vector<72x4xf32> -> vector<72x4xf32>
    %870 = vector.extract_strided_slice %869 {offsets = [0, 0], sizes = [24, 4], strides = [1, 1]} : vector<72x4xf32> to vector<24x4xf32>
    %871 = vector.extract_strided_slice %869 {offsets = [24, 0], sizes = [24, 4], strides = [1, 1]} : vector<72x4xf32> to vector<24x4xf32>
    %872 = vector.extract_strided_slice %869 {offsets = [48, 0], sizes = [24, 4], strides = [1, 1]} : vector<72x4xf32> to vector<24x4xf32>
    %873 = tpu.concatenate %867, %870, %871, %872 in 1 : vector<24x16xf32>, vector<24x4xf32>, vector<24x4xf32>, vector<24x4xf32> -> vector<24x28xf32>
    %874 = arith.truncf %873 : vector<24x28xf32> to vector<24x28xbf16>
    %cst_226 = arith.constant dense<0.000000e+00> : vector<8x28xf32>
    %875 = tpu.matmul %5, %874, %cst_226 {dimension_numbers = #tpu.dot_dimension_numbers<[1], [0], [0], [1], [0, 0, 1, 1], [], []>} : vector<8x24xbf16>, vector<24x28xbf16>, vector<8x28xf32> -> vector<8x28xf32>
    %876 = vector.broadcast %6 : vector<8x1xf32> to vector<8x28xf32>
    %877 = arith.mulf %875, %876 : vector<8x28xf32>
    %878 = vector.extract_strided_slice %877 {offsets = [0, 0], sizes = [8, 16], strides = [1, 1]} : vector<8x28xf32> to vector<8x16xf32>
    %879 = vector.extract_strided_slice %877 {offsets = [0, 16], sizes = [8, 4], strides = [1, 1]} : vector<8x28xf32> to vector<8x4xf32>
    %880 = vector.extract_strided_slice %877 {offsets = [0, 20], sizes = [8, 4], strides = [1, 1]} : vector<8x28xf32> to vector<8x4xf32>
    %881 = vector.extract_strided_slice %877 {offsets = [0, 24], sizes = [8, 4], strides = [1, 1]} : vector<8x28xf32> to vector<8x4xf32>
    %882 = tpu.concatenate %879, %880, %881 in 0 : vector<8x4xf32>, vector<8x4xf32>, vector<8x4xf32> -> vector<24x4xf32>
    %883 = arith.addf %720, %878 : vector<8x16xf32>
    %884 = arith.addf %738, %882 : vector<24x4xf32>
    %c27 = arith.constant 27 : index
    %c0_227 = arith.constant 0 : index
    %885 = vector.load %arg9[%c27, %c0_227] : memref<40x64xf32, #tpu.memory_space<vmem>>, vector<1x16xf32>
    %c28 = arith.constant 28 : index
    %c0_228 = arith.constant 0 : index
    %886 = vector.load %arg9[%c28, %c0_228] : memref<40x64xf32, #tpu.memory_space<vmem>>, vector<1x16xf32>
    %cst_229 = arith.constant dense<0.000000e+00> : vector<8xf32>
    %887 = vector.multi_reduction <add>, %883, %cst_229 [1] : vector<8x16xf32> to vector<8xf32>
    %888 = vector.shape_cast %887 : vector<8xf32> to vector<8x1xf32>
    %cst_230 = arith.constant 1.600000e+01 : f32
    %889 = vector.broadcast %cst_230 : f32 to vector<8x1xf32>
    %890 = arith.divf %888, %889 : vector<8x1xf32>
    %891 = vector.broadcast %890 : vector<8x1xf32> to vector<8x16xf32>
    %892 = arith.subf %883, %891 : vector<8x16xf32>
    %893 = arith.mulf %892, %892 : vector<8x16xf32>
    %cst_231 = arith.constant dense<0.000000e+00> : vector<8xf32>
    %894 = vector.multi_reduction <add>, %893, %cst_231 [1] : vector<8x16xf32> to vector<8xf32>
    %895 = vector.shape_cast %894 : vector<8xf32> to vector<8x1xf32>
    %cst_232 = arith.constant 1.600000e+01 : f32
    %896 = vector.broadcast %cst_232 : f32 to vector<8x1xf32>
    %897 = arith.divf %895, %896 : vector<8x1xf32>
    %898 = vector.broadcast %890 : vector<8x1xf32> to vector<8x16xf32>
    %899 = arith.subf %883, %898 : vector<8x16xf32>
    %cst_233 = arith.constant 9.99999974E-6 : f32
    %900 = vector.broadcast %cst_233 : f32 to vector<8x1xf32>
    %901 = arith.addf %897, %900 : vector<8x1xf32>
    %902 = math.rsqrt %901 : vector<8x1xf32>
    %903 = vector.broadcast %902 : vector<8x1xf32> to vector<8x16xf32>
    %904 = arith.mulf %899, %903 : vector<8x16xf32>
    %905 = vector.broadcast %885 : vector<1x16xf32> to vector<8x16xf32>
    %906 = arith.mulf %904, %905 : vector<8x16xf32>
    %907 = vector.broadcast %886 : vector<1x16xf32> to vector<8x16xf32>
    %908 = arith.addf %906, %907 : vector<8x16xf32>
    %909 = vector.extract_strided_slice %884 {offsets = [0, 0], sizes = [8, 4], strides = [1, 1]} : vector<24x4xf32> to vector<8x4xf32>
    %910 = vector.extract_strided_slice %884 {offsets = [8, 0], sizes = [8, 4], strides = [1, 1]} : vector<24x4xf32> to vector<8x4xf32>
    %911 = vector.extract_strided_slice %884 {offsets = [16, 0], sizes = [8, 4], strides = [1, 1]} : vector<24x4xf32> to vector<8x4xf32>
    %912 = arith.mulf %909, %909 : vector<8x4xf32>
    %913 = arith.mulf %910, %910 : vector<8x4xf32>
    %914 = arith.addf %912, %913 : vector<8x4xf32>
    %915 = arith.mulf %911, %911 : vector<8x4xf32>
    %916 = arith.addf %914, %915 : vector<8x4xf32>
    %cst_234 = arith.constant 9.99999993E-9 : f32
    %917 = vector.broadcast %cst_234 : f32 to vector<8x4xf32>
    %918 = arith.maximumf %916, %917 : vector<8x4xf32>
    %cst_235 = arith.constant dense<0.000000e+00> : vector<8xf32>
    %919 = vector.multi_reduction <add>, %918, %cst_235 [1] : vector<8x4xf32> to vector<8xf32>
    %920 = vector.shape_cast %919 : vector<8xf32> to vector<8x1xf32>
    %cst_236 = arith.constant 4.000000e+00 : f32
    %921 = vector.broadcast %cst_236 : f32 to vector<8x1xf32>
    %922 = arith.divf %920, %921 : vector<8x1xf32>
    %923 = math.rsqrt %922 : vector<8x1xf32>
    %924 = tpu.concatenate %923, %923, %923 in 0 : vector<8x1xf32>, vector<8x1xf32>, vector<8x1xf32> -> vector<24x1xf32>
    %925 = vector.broadcast %924 : vector<24x1xf32> to vector<24x4xf32>
    %926 = arith.mulf %884, %925 : vector<24x4xf32>
    %c1120 = arith.constant 1120 : index
    %c0_237 = arith.constant 0 : index
    %927 = vector.load %arg8[%c1120, %c0_237] : memref<1392x64xbf16, #tpu.memory_space<vmem>>, vector<4x8xbf16>
    %c1136 = arith.constant 1136 : index
    %c0_238 = arith.constant 0 : index
    %928 = vector.load %arg8[%c1136, %c0_238] : memref<1392x64xbf16, #tpu.memory_space<vmem>>, vector<24x64xbf16>
    %c29 = arith.constant 29 : index
    %c0_239 = arith.constant 0 : index
    %929 = vector.load %arg9[%c29, %c0_239] : memref<40x64xf32, #tpu.memory_space<vmem>>, vector<1x64xf32>
    %c1168 = arith.constant 1168 : index
    %c0_240 = arith.constant 0 : index
    %930 = vector.load %arg8[%c1168, %c0_240] : memref<1392x64xbf16, #tpu.memory_space<vmem>>, vector<8x8xbf16>
    %931 = arith.truncf %926 : vector<24x4xf32> to vector<24x4xbf16>
    %cst_241 = arith.constant dense<0.000000e+00> : vector<24x8xf32>
    %932 = tpu.matmul %931, %927, %cst_241 {dimension_numbers = #tpu.dot_dimension_numbers<[1], [0], [0], [1], [0, 0, 1, 1], [], []>} : vector<24x4xbf16>, vector<4x8xbf16>, vector<24x8xf32> -> vector<24x8xf32>
    %933 = vector.extract_strided_slice %932 {offsets = [0, 0], sizes = [8, 8], strides = [1, 1]} : vector<24x8xf32> to vector<8x8xf32>
    %934 = vector.extract_strided_slice %932 {offsets = [8, 0], sizes = [8, 8], strides = [1, 1]} : vector<24x8xf32> to vector<8x8xf32>
    %935 = vector.extract_strided_slice %932 {offsets = [16, 0], sizes = [8, 8], strides = [1, 1]} : vector<24x8xf32> to vector<8x8xf32>
    %936 = arith.mulf %933, %933 : vector<8x8xf32>
    %937 = arith.mulf %934, %934 : vector<8x8xf32>
    %938 = arith.addf %936, %937 : vector<8x8xf32>
    %939 = arith.mulf %935, %935 : vector<8x8xf32>
    %940 = arith.addf %938, %939 : vector<8x8xf32>
    %cst_242 = arith.constant 9.99999993E-9 : f32
    %941 = vector.broadcast %cst_242 : f32 to vector<8x8xf32>
    %942 = arith.maximumf %940, %941 : vector<8x8xf32>
    %943 = math.sqrt %942 : vector<8x8xf32>
    %944 = tpu.concatenate %908, %943 in 1 : vector<8x16xf32>, vector<8x8xf32> -> vector<8x24xf32>
    %945 = arith.truncf %944 : vector<8x24xf32> to vector<8x24xbf16>
    %cst_243 = arith.constant dense<0.000000e+00> : vector<8x64xf32>
    %946 = tpu.matmul %945, %928, %cst_243 {dimension_numbers = #tpu.dot_dimension_numbers<[1], [0], [0], [1], [0, 0, 1, 1], [], []>} : vector<8x24xbf16>, vector<24x64xbf16>, vector<8x64xf32> -> vector<8x64xf32>
    %947 = vector.broadcast %929 : vector<1x64xf32> to vector<8x64xf32>
    %948 = arith.addf %946, %947 : vector<8x64xf32>
    %cst_244 = arith.constant 0.000000e+00 : f32
    %949 = vector.broadcast %cst_244 : f32 to vector<8x64xf32>
    %950 = arith.maximumf %948, %949 : vector<8x64xf32>
    %951 = arith.truncf %932 : vector<24x8xf32> to vector<24x8xbf16>
    %cst_245 = arith.constant dense<0.000000e+00> : vector<24x8xf32>
    %952 = tpu.matmul %951, %930, %cst_245 {dimension_numbers = #tpu.dot_dimension_numbers<[1], [0], [0], [1], [0, 0, 1, 1], [], []>} : vector<24x8xbf16>, vector<8x8xbf16>, vector<24x8xf32> -> vector<24x8xf32>
    %953 = vector.extract_strided_slice %952 {offsets = [0, 0], sizes = [8, 8], strides = [1, 1]} : vector<24x8xf32> to vector<8x8xf32>
    %954 = vector.extract_strided_slice %952 {offsets = [8, 0], sizes = [8, 8], strides = [1, 1]} : vector<24x8xf32> to vector<8x8xf32>
    %955 = vector.extract_strided_slice %952 {offsets = [16, 0], sizes = [8, 8], strides = [1, 1]} : vector<24x8xf32> to vector<8x8xf32>
    %956 = arith.mulf %953, %953 : vector<8x8xf32>
    %957 = arith.mulf %954, %954 : vector<8x8xf32>
    %958 = arith.addf %956, %957 : vector<8x8xf32>
    %959 = arith.mulf %955, %955 : vector<8x8xf32>
    %960 = arith.addf %958, %959 : vector<8x8xf32>
    %cst_246 = arith.constant 9.99999993E-9 : f32
    %961 = vector.broadcast %cst_246 : f32 to vector<8x8xf32>
    %962 = arith.maximumf %960, %961 : vector<8x8xf32>
    %963 = math.sqrt %962 : vector<8x8xf32>
    %964 = arith.negf %963 : vector<8x8xf32>
    %965 = math.exp %964 : vector<8x8xf32>
    %cst_247 = arith.constant 1.000000e+00 : f32
    %966 = vector.broadcast %cst_247 : f32 to vector<8x8xf32>
    %967 = arith.addf %966, %965 : vector<8x8xf32>
    %968 = arith.divf %966, %967 : vector<8x8xf32>
    %969 = tpu.concatenate %968, %968, %968 in 0 : vector<8x8xf32>, vector<8x8xf32>, vector<8x8xf32> -> vector<24x8xf32>
    %970 = arith.mulf %952, %969 : vector<24x8xf32>
    %c1184 = arith.constant 1184 : index
    %c0_248 = arith.constant 0 : index
    %971 = vector.load %arg8[%c1184, %c0_248] : memref<1392x64xbf16, #tpu.memory_space<vmem>>, vector<8x8xbf16>
    %c1200 = arith.constant 1200 : index
    %c0_249 = arith.constant 0 : index
    %972 = vector.load %arg8[%c1200, %c0_249] : memref<1392x64xbf16, #tpu.memory_space<vmem>>, vector<72x16xbf16>
    %c30 = arith.constant 30 : index
    %c0_250 = arith.constant 0 : index
    %973 = vector.load %arg9[%c30, %c0_250] : memref<40x64xf32, #tpu.memory_space<vmem>>, vector<1x16xf32>
    %c1280 = arith.constant 1280 : index
    %c0_251 = arith.constant 0 : index
    %974 = vector.load %arg8[%c1280, %c0_251] : memref<1392x64xbf16, #tpu.memory_space<vmem>>, vector<8x4xbf16>
    %975 = arith.truncf %970 : vector<24x8xf32> to vector<24x8xbf16>
    %cst_252 = arith.constant dense<0.000000e+00> : vector<24x8xf32>
    %976 = tpu.matmul %975, %971, %cst_252 {dimension_numbers = #tpu.dot_dimension_numbers<[1], [0], [0], [1], [0, 0, 1, 1], [], []>} : vector<24x8xbf16>, vector<8x8xbf16>, vector<24x8xf32> -> vector<24x8xf32>
    %977 = vector.extract_strided_slice %976 {offsets = [0, 0], sizes = [8, 8], strides = [1, 1]} : vector<24x8xf32> to vector<8x8xf32>
    %978 = vector.extract_strided_slice %976 {offsets = [8, 0], sizes = [8, 8], strides = [1, 1]} : vector<24x8xf32> to vector<8x8xf32>
    %979 = vector.extract_strided_slice %976 {offsets = [16, 0], sizes = [8, 8], strides = [1, 1]} : vector<24x8xf32> to vector<8x8xf32>
    %980 = arith.mulf %977, %977 : vector<8x8xf32>
    %981 = arith.mulf %978, %978 : vector<8x8xf32>
    %982 = arith.addf %980, %981 : vector<8x8xf32>
    %983 = arith.mulf %979, %979 : vector<8x8xf32>
    %984 = arith.addf %982, %983 : vector<8x8xf32>
    %cst_253 = arith.constant 9.99999993E-9 : f32
    %985 = vector.broadcast %cst_253 : f32 to vector<8x8xf32>
    %986 = arith.maximumf %984, %985 : vector<8x8xf32>
    %987 = math.sqrt %986 : vector<8x8xf32>
    %988 = tpu.concatenate %950, %987 in 1 : vector<8x64xf32>, vector<8x8xf32> -> vector<8x72xf32>
    %989 = arith.truncf %988 : vector<8x72xf32> to vector<8x72xbf16>
    %cst_254 = arith.constant dense<0.000000e+00> : vector<8x16xf32>
    %990 = tpu.matmul %989, %972, %cst_254 {dimension_numbers = #tpu.dot_dimension_numbers<[1], [0], [0], [1], [0, 0, 1, 1], [], []>} : vector<8x72xbf16>, vector<72x16xbf16>, vector<8x16xf32> -> vector<8x16xf32>
    %991 = vector.broadcast %973 : vector<1x16xf32> to vector<8x16xf32>
    %992 = arith.addf %990, %991 : vector<8x16xf32>
    %993 = arith.truncf %976 : vector<24x8xf32> to vector<24x8xbf16>
    %cst_255 = arith.constant dense<0.000000e+00> : vector<24x4xf32>
    %994 = tpu.matmul %993, %974, %cst_255 {dimension_numbers = #tpu.dot_dimension_numbers<[1], [0], [0], [1], [0, 0, 1, 1], [], []>} : vector<24x8xbf16>, vector<8x4xbf16>, vector<24x4xf32> -> vector<24x4xf32>
    %995 = arith.addf %908, %992 : vector<8x16xf32>
    %996 = arith.addf %926, %994 : vector<24x4xf32>
    %c31 = arith.constant 31 : index
    %c0_256 = arith.constant 0 : index
    %997 = vector.load %arg9[%c31, %c0_256] : memref<40x64xf32, #tpu.memory_space<vmem>>, vector<1x16xf32>
    %c32_257 = arith.constant 32 : index
    %c0_258 = arith.constant 0 : index
    %998 = vector.load %arg9[%c32_257, %c0_258] : memref<40x64xf32, #tpu.memory_space<vmem>>, vector<1x16xf32>
    %cst_259 = arith.constant dense<0.000000e+00> : vector<8xf32>
    %999 = vector.multi_reduction <add>, %995, %cst_259 [1] : vector<8x16xf32> to vector<8xf32>
    %1000 = vector.shape_cast %999 : vector<8xf32> to vector<8x1xf32>
    %cst_260 = arith.constant 1.600000e+01 : f32
    %1001 = vector.broadcast %cst_260 : f32 to vector<8x1xf32>
    %1002 = arith.divf %1000, %1001 : vector<8x1xf32>
    %1003 = vector.broadcast %1002 : vector<8x1xf32> to vector<8x16xf32>
    %1004 = arith.subf %995, %1003 : vector<8x16xf32>
    %1005 = arith.mulf %1004, %1004 : vector<8x16xf32>
    %cst_261 = arith.constant dense<0.000000e+00> : vector<8xf32>
    %1006 = vector.multi_reduction <add>, %1005, %cst_261 [1] : vector<8x16xf32> to vector<8xf32>
    %1007 = vector.shape_cast %1006 : vector<8xf32> to vector<8x1xf32>
    %cst_262 = arith.constant 1.600000e+01 : f32
    %1008 = vector.broadcast %cst_262 : f32 to vector<8x1xf32>
    %1009 = arith.divf %1007, %1008 : vector<8x1xf32>
    %1010 = vector.broadcast %1002 : vector<8x1xf32> to vector<8x16xf32>
    %1011 = arith.subf %995, %1010 : vector<8x16xf32>
    %cst_263 = arith.constant 9.99999974E-6 : f32
    %1012 = vector.broadcast %cst_263 : f32 to vector<8x1xf32>
    %1013 = arith.addf %1009, %1012 : vector<8x1xf32>
    %1014 = math.rsqrt %1013 : vector<8x1xf32>
    %1015 = vector.broadcast %1014 : vector<8x1xf32> to vector<8x16xf32>
    %1016 = arith.mulf %1011, %1015 : vector<8x16xf32>
    %1017 = vector.broadcast %997 : vector<1x16xf32> to vector<8x16xf32>
    %1018 = arith.mulf %1016, %1017 : vector<8x16xf32>
    %1019 = vector.broadcast %998 : vector<1x16xf32> to vector<8x16xf32>
    %1020 = arith.addf %1018, %1019 : vector<8x16xf32>
    %1021 = vector.extract_strided_slice %996 {offsets = [0, 0], sizes = [8, 4], strides = [1, 1]} : vector<24x4xf32> to vector<8x4xf32>
    %1022 = vector.extract_strided_slice %996 {offsets = [8, 0], sizes = [8, 4], strides = [1, 1]} : vector<24x4xf32> to vector<8x4xf32>
    %1023 = vector.extract_strided_slice %996 {offsets = [16, 0], sizes = [8, 4], strides = [1, 1]} : vector<24x4xf32> to vector<8x4xf32>
    %1024 = arith.mulf %1021, %1021 : vector<8x4xf32>
    %1025 = arith.mulf %1022, %1022 : vector<8x4xf32>
    %1026 = arith.addf %1024, %1025 : vector<8x4xf32>
    %1027 = arith.mulf %1023, %1023 : vector<8x4xf32>
    %1028 = arith.addf %1026, %1027 : vector<8x4xf32>
    %cst_264 = arith.constant 9.99999993E-9 : f32
    %1029 = vector.broadcast %cst_264 : f32 to vector<8x4xf32>
    %1030 = arith.maximumf %1028, %1029 : vector<8x4xf32>
    %cst_265 = arith.constant dense<0.000000e+00> : vector<8xf32>
    %1031 = vector.multi_reduction <add>, %1030, %cst_265 [1] : vector<8x4xf32> to vector<8xf32>
    %1032 = vector.shape_cast %1031 : vector<8xf32> to vector<8x1xf32>
    %cst_266 = arith.constant 4.000000e+00 : f32
    %1033 = vector.broadcast %cst_266 : f32 to vector<8x1xf32>
    %1034 = arith.divf %1032, %1033 : vector<8x1xf32>
    %1035 = math.rsqrt %1034 : vector<8x1xf32>
    %1036 = tpu.concatenate %1035, %1035, %1035 in 0 : vector<8x1xf32>, vector<8x1xf32>, vector<8x1xf32> -> vector<24x1xf32>
    %1037 = vector.broadcast %1036 : vector<24x1xf32> to vector<24x4xf32>
    %1038 = arith.mulf %996, %1037 : vector<24x4xf32>
    %c33 = arith.constant 33 : index
    %c0_267 = arith.constant 0 : index
    %1039 = vector.load %arg9[%c33, %c0_267] : memref<40x64xf32, #tpu.memory_space<vmem>>, vector<1x16xf32>
    %c34 = arith.constant 34 : index
    %c0_268 = arith.constant 0 : index
    %1040 = vector.load %arg9[%c34, %c0_268] : memref<40x64xf32, #tpu.memory_space<vmem>>, vector<1x16xf32>
    %cst_269 = arith.constant dense<0.000000e+00> : vector<8xf32>
    %1041 = vector.multi_reduction <add>, %1020, %cst_269 [1] : vector<8x16xf32> to vector<8xf32>
    %1042 = vector.shape_cast %1041 : vector<8xf32> to vector<8x1xf32>
    %cst_270 = arith.constant 1.600000e+01 : f32
    %1043 = vector.broadcast %cst_270 : f32 to vector<8x1xf32>
    %1044 = arith.divf %1042, %1043 : vector<8x1xf32>
    %1045 = vector.broadcast %1044 : vector<8x1xf32> to vector<8x16xf32>
    %1046 = arith.subf %1020, %1045 : vector<8x16xf32>
    %1047 = arith.mulf %1046, %1046 : vector<8x16xf32>
    %cst_271 = arith.constant dense<0.000000e+00> : vector<8xf32>
    %1048 = vector.multi_reduction <add>, %1047, %cst_271 [1] : vector<8x16xf32> to vector<8xf32>
    %1049 = vector.shape_cast %1048 : vector<8xf32> to vector<8x1xf32>
    %cst_272 = arith.constant 1.600000e+01 : f32
    %1050 = vector.broadcast %cst_272 : f32 to vector<8x1xf32>
    %1051 = arith.divf %1049, %1050 : vector<8x1xf32>
    %1052 = vector.broadcast %1044 : vector<8x1xf32> to vector<8x16xf32>
    %1053 = arith.subf %1020, %1052 : vector<8x16xf32>
    %cst_273 = arith.constant 9.99999974E-6 : f32
    %1054 = vector.broadcast %cst_273 : f32 to vector<8x1xf32>
    %1055 = arith.addf %1051, %1054 : vector<8x1xf32>
    %1056 = math.rsqrt %1055 : vector<8x1xf32>
    %1057 = vector.broadcast %1056 : vector<8x1xf32> to vector<8x16xf32>
    %1058 = arith.mulf %1053, %1057 : vector<8x16xf32>
    %1059 = vector.broadcast %1039 : vector<1x16xf32> to vector<8x16xf32>
    %1060 = arith.mulf %1058, %1059 : vector<8x16xf32>
    %1061 = vector.broadcast %1040 : vector<1x16xf32> to vector<8x16xf32>
    %1062 = arith.addf %1060, %1061 : vector<8x16xf32>
    %1063 = vector.extract_strided_slice %1038 {offsets = [0, 0], sizes = [8, 4], strides = [1, 1]} : vector<24x4xf32> to vector<8x4xf32>
    %1064 = vector.extract_strided_slice %1038 {offsets = [8, 0], sizes = [8, 4], strides = [1, 1]} : vector<24x4xf32> to vector<8x4xf32>
    %1065 = vector.extract_strided_slice %1038 {offsets = [16, 0], sizes = [8, 4], strides = [1, 1]} : vector<24x4xf32> to vector<8x4xf32>
    %1066 = arith.mulf %1063, %1063 : vector<8x4xf32>
    %1067 = arith.mulf %1064, %1064 : vector<8x4xf32>
    %1068 = arith.addf %1066, %1067 : vector<8x4xf32>
    %1069 = arith.mulf %1065, %1065 : vector<8x4xf32>
    %1070 = arith.addf %1068, %1069 : vector<8x4xf32>
    %cst_274 = arith.constant 9.99999993E-9 : f32
    %1071 = vector.broadcast %cst_274 : f32 to vector<8x4xf32>
    %1072 = arith.maximumf %1070, %1071 : vector<8x4xf32>
    %cst_275 = arith.constant dense<0.000000e+00> : vector<8xf32>
    %1073 = vector.multi_reduction <add>, %1072, %cst_275 [1] : vector<8x4xf32> to vector<8xf32>
    %1074 = vector.shape_cast %1073 : vector<8xf32> to vector<8x1xf32>
    %cst_276 = arith.constant 4.000000e+00 : f32
    %1075 = vector.broadcast %cst_276 : f32 to vector<8x1xf32>
    %1076 = arith.divf %1074, %1075 : vector<8x1xf32>
    %1077 = math.rsqrt %1076 : vector<8x1xf32>
    %1078 = tpu.concatenate %1077, %1077, %1077 in 0 : vector<8x1xf32>, vector<8x1xf32>, vector<8x1xf32> -> vector<24x1xf32>
    %1079 = vector.broadcast %1078 : vector<24x1xf32> to vector<24x4xf32>
    %1080 = arith.mulf %1038, %1079 : vector<24x4xf32>
    %c1296 = arith.constant 1296 : index
    %c0_277 = arith.constant 0 : index
    %1081 = vector.load %arg8[%c1296, %c0_277] : memref<1392x64xbf16, #tpu.memory_space<vmem>>, vector<4x4xbf16>
    %c1312 = arith.constant 1312 : index
    %c0_278 = arith.constant 0 : index
    %1082 = vector.load %arg8[%c1312, %c0_278] : memref<1392x64xbf16, #tpu.memory_space<vmem>>, vector<20x16xbf16>
    %c35 = arith.constant 35 : index
    %c0_279 = arith.constant 0 : index
    %1083 = vector.load %arg9[%c35, %c0_279] : memref<40x64xf32, #tpu.memory_space<vmem>>, vector<1x16xf32>
    %1084 = arith.truncf %1080 : vector<24x4xf32> to vector<24x4xbf16>
    %cst_280 = arith.constant dense<0.000000e+00> : vector<24x4xf32>
    %1085 = tpu.matmul %1084, %1081, %cst_280 {dimension_numbers = #tpu.dot_dimension_numbers<[1], [0], [0], [1], [0, 0, 1, 1], [], []>} : vector<24x4xbf16>, vector<4x4xbf16>, vector<24x4xf32> -> vector<24x4xf32>
    %1086 = vector.extract_strided_slice %1085 {offsets = [0, 0], sizes = [8, 4], strides = [1, 1]} : vector<24x4xf32> to vector<8x4xf32>
    %1087 = vector.extract_strided_slice %1085 {offsets = [8, 0], sizes = [8, 4], strides = [1, 1]} : vector<24x4xf32> to vector<8x4xf32>
    %1088 = vector.extract_strided_slice %1085 {offsets = [16, 0], sizes = [8, 4], strides = [1, 1]} : vector<24x4xf32> to vector<8x4xf32>
    %1089 = arith.mulf %1086, %1086 : vector<8x4xf32>
    %1090 = arith.mulf %1087, %1087 : vector<8x4xf32>
    %1091 = arith.addf %1089, %1090 : vector<8x4xf32>
    %1092 = arith.mulf %1088, %1088 : vector<8x4xf32>
    %1093 = arith.addf %1091, %1092 : vector<8x4xf32>
    %cst_281 = arith.constant 9.99999993E-9 : f32
    %1094 = vector.broadcast %cst_281 : f32 to vector<8x4xf32>
    %1095 = arith.maximumf %1093, %1094 : vector<8x4xf32>
    %1096 = math.sqrt %1095 : vector<8x4xf32>
    %1097 = tpu.concatenate %1062, %1096 in 1 : vector<8x16xf32>, vector<8x4xf32> -> vector<8x20xf32>
    %1098 = arith.truncf %1097 : vector<8x20xf32> to vector<8x20xbf16>
    %cst_282 = arith.constant dense<0.000000e+00> : vector<8x16xf32>
    %1099 = tpu.matmul %1098, %1082, %cst_282 {dimension_numbers = #tpu.dot_dimension_numbers<[1], [0], [0], [1], [0, 0, 1, 1], [], []>} : vector<8x20xbf16>, vector<20x16xbf16>, vector<8x16xf32> -> vector<8x16xf32>
    %1100 = vector.broadcast %1083 : vector<1x16xf32> to vector<8x16xf32>
    %1101 = arith.addf %1099, %1100 : vector<8x16xf32>
    %cst_283 = arith.constant 0.000000e+00 : f32
    %1102 = vector.broadcast %cst_283 : f32 to vector<8x16xf32>
    %1103 = arith.maximumf %1101, %1102 : vector<8x16xf32>
    %cst_284 = arith.constant dense<0.000000e+00> : vector<1x16xf32>
    %1104 = tpu.matmul %7, %1103, %cst_284 {dimension_numbers = #tpu.dot_dimension_numbers<[1], [0], [0], [1], [0, 0, 1, 1], [], []>} : vector<1x8xf32>, vector<8x16xf32>, vector<1x16xf32> -> vector<1x16xf32>
    %1105 = arith.truncf %1104 : vector<1x16xf32> to vector<1x16xbf16>
    %c1344 = arith.constant 1344 : index
    %c0_285 = arith.constant 0 : index
    %1106 = vector.load %arg8[%c1344, %c0_285] : memref<1392x64xbf16, #tpu.memory_space<vmem>>, vector<16x32xbf16>
    %cst_286 = arith.constant dense<0.000000e+00> : vector<1x32xf32>
    %1107 = tpu.matmul %1105, %1106, %cst_286 {dimension_numbers = #tpu.dot_dimension_numbers<[1], [0], [0], [1], [0, 0, 1, 1], [], []>} : vector<1x16xbf16>, vector<16x32xbf16>, vector<1x32xf32> -> vector<1x32xf32>
    %c36 = arith.constant 36 : index
    %c0_287 = arith.constant 0 : index
    %1108 = vector.load %arg9[%c36, %c0_287] : memref<40x64xf32, #tpu.memory_space<vmem>>, vector<1x32xf32>
    %1109 = arith.addf %1107, %1108 : vector<1x32xf32>
    %cst_288 = arith.constant 0.000000e+00 : f32
    %1110 = vector.broadcast %cst_288 : f32 to vector<1x32xf32>
    %1111 = arith.maximumf %1109, %1110 : vector<1x32xf32>
    %1112 = arith.truncf %1111 : vector<1x32xf32> to vector<1x32xbf16>
    %c1360 = arith.constant 1360 : index
    %c0_289 = arith.constant 0 : index
    %1113 = vector.load %arg8[%c1360, %c0_289] : memref<1392x64xbf16, #tpu.memory_space<vmem>>, vector<32x1xbf16>
    %cst_290 = arith.constant dense<0.000000e+00> : vector<1x1xf32>
    %1114 = tpu.matmul %1112, %1113, %cst_290 {dimension_numbers = #tpu.dot_dimension_numbers<[1], [0], [0], [1], [0, 0, 1, 1], [], []>} : vector<1x32xbf16>, vector<32x1xbf16>, vector<1x1xf32> -> vector<1x1xf32>
    %c37 = arith.constant 37 : index
    %c0_291 = arith.constant 0 : index
    %1115 = vector.load %arg9[%c37, %c0_291] : memref<40x64xf32, #tpu.memory_space<vmem>>, vector<1x1xf32>
    %1116 = arith.addf %1114, %1115 : vector<1x1xf32>
    %cst_292 = arith.constant 5.000000e-01 : f32
    %1117 = vector.broadcast %cst_292 : f32 to vector<1x1xf32>
    %1118 = arith.addf %1116, %1117 : vector<1x1xf32>
    %c0_293 = arith.constant 0 : index
    %c0_294 = arith.constant 0 : index
    %1119 = vector.load %arg10[%c0_293, %c0_294] : memref<1x1xf32, #tpu.memory_space<vmem>>, vector<1x1xf32>
    tpu.vector_store %arg10[%c0_293, %c0_294], %1118 {strides = array<i32>} : memref<1x1xf32, #tpu.memory_space<vmem>>, vector<1x1xf32>,
    return
  }
}

</mosaic_0001>

<bundles_post_ra>
// kernel: forward.1
= control target key start
LH: loop header
LB: loop body
LE: loop exit
PB: predicated region body
PF: predicated region fallthrough
CT: control target
= control target key end

     0   :  { %vm95_vm0 = vcmask 23552   ;;  %v9212_v10 = vmov 0   ;;  %vm11600_vm1 = vcmask 48128   ;;  %s11584_s0 = inlined_call_operand.vmem [shape: f32[8,6], index: 0, kind: input, shape index: {}]   ;;  %s11585_s1 = inlined_call_operand.vmem [shape: f32[24,3], index: 1, kind: input, shape index: {}]   ;;  %s11586_s2 = inlined_call_operand.vmem [shape: f32[24,8], index: 2, kind: input, shape index: {}]   ;;  %s11587_s3 = inlined_call_operand.vmem [shape: f32[72,1], index: 3, kind: input, shape index: {}]   ;;  %s11588_s4 = inlined_call_operand.vmem [shape: bf16[48,8], index: 4, kind: input, shape index: {}]   ;;  %s11589_s5 = inlined_call_operand.vmem [shape: bf16[8,24], index: 5, kind: input, shape index: {}]   ;;  %s11590_s6 = inlined_call_operand.vmem [shape: f32[8,1], index: 6, kind: input, shape index: {}]   ;;  %s11591_s7 = inlined_call_operand.vmem [shape: f32[1,8], index: 7, kind: input, shape index: {}]   ;;  %s11592_s8 = inlined_call_operand.vmem [shape: bf16[1392,64], index: 8, kind: input, shape index: {}]   ;;  %s11593_s9 = inlined_call_operand.vmem [shape: f32[40,64], index: 9, kind: input, shape index: {}]   ;;  %s11594_s10 = inlined_call_operand.hbm [shape: f32[1,1], index: 10, kind: output, shape index: {}]  }
   0x1   :  { %v38_v0 = vld [vmem:[%s11585_s1] sm:$0xff]  ;;  %v39_v1 = vld [vmem:[%s11585_s1 + $0x8] sm:$0xff]  ;;  %v40_v2 = vld [vmem:[%s11585_s1 + $0x10] sm:$0xff]  ;;  %8526 = vset.pattern.permute.xlu0 %v9212_v10  ;;  %8662 = vset.pattern.permute.xlu1 %v9212_v10 }
   0x2   :  { %v89_v3 = vmul.f32 %v38_v0, %v38_v0  ;;  %v90_v4 = vmul.f32 %v39_v1, %v39_v1  ;;  %v92_v5 = vmul.f32 %v40_v2, %v40_v2  ;;  %v37_v11 = vld [vmem:[%s11584_s0] sm:$0xff] }
   0x3   :  { %v65_v12 = vsel %vm11600_vm1, %v37_v11, 0.0 }
   0x4   :  { %v91_v6 = vadd.f32 %v90_v4, %v89_v3 }
   0x6   :  { %v93_v7 = vadd.f32 %v92_v5, %v91_v6 }
   0x8   :  { %v94_v8 = vmax.f32 %v93_v7, 1e-08 }
   0xa   :  { %v96_v9 = vsel %vm95_vm0, %v94_v8, 0.0 }
   0xb   :  { %97 = vadd.xlane.f32.xlu0 %v96_v9 }
   0xc   :  { %15 = vsyncpa [#allocation3], 0  ;;  %66 = vadd.xlane.f32.xlu1 %v65_v12  ;;  %vm11599_vm2 = vcmask 1040384   ;;  %vm124_vm3 = vcmask 1041408   ;;  %v9213_v15 = vmov 65535   ;;  %v9320_v34 = vld [vmem:[%s11586_s2 + $0x8] sm:$0xff] }
   0xd   :  { %v125_v16 = vsel %vm11599_vm2, 4294967295, %v9213_v15  ;;  %v110_v17 = vld [vmem:[%s11592_s8] sm:$0x3]  ;;  %v114_v32 = vld [vmem:[%s11592_s8 + $0x10] sm:$0x3]  ;;  %vm316_vm4 = vcmask 64512  }
   0xe   :  { %v126_v18 = vsel %vm124_vm3, %v125_v16, 0  ;;  %v264_v33 = vsel %vm124_vm3, %v114_v32, 0  ;;  %v320_v35 = vsel %vm316_vm4, %v9320_v34, 0.0  ;;  %v9214_v36 = vmov 0.0   ;;  %v8873_v49 = vld [vmem:[%s11592_s8 + $0x8] sm:$0x1f]  }
   0xf   :  { %v128_v20 = vand.u32 %v126_v18, %v110_v17  ;;  %7706 = vmatprep.subr.bf16.mxu1 %v9214_v36  ;;  %vm256_vm5 = vcmask 31744   ;;  %vm210_vm6 = vcmask 1044480   ;;  %vm9215_vm7 = vmmov 0   ;;  %s9216_s27 = smov 6   ;;  %v9337_v56 = vld [vmem:[%s11586_s2] sm:$0xff]  ;;  %v9344_v58 = vld [vmem:[%s11586_s2 + $0x10] sm:$0xff] }
  0x10   :  { %v212_v50 = vsel %vm210_vm6, %v8873_v49, 0  ;;  %7708 = vmatprep.mubr.msk.bf16.mxu1 %vm9215_vm7, %v9214_v36  ;;  %v317_v57 = vsel %vm316_vm4, %v9337_v56, 0.0  ;;  %v323_v59 = vsel %vm316_vm4, %v9344_v58, 0.0  ;;  %v44_v62 = vld [vmem:[%s11587_s3] sm:$0xff]  ;;  %v47_v63 = vld [vmem:[%s11587_s3 + $0x18] sm:$0xff]  ;;  %v50_v5 = vld [vmem:[%s11587_s3 + $0x30] sm:$0xff] }
  0x11   :  { %7700 = vmatprep.subr.bf16.mxu0 %v128_v20  ;;  %7707 = vmatpush3.bf16.msra.mxu1 %v212_v50  ;;  %v371_v3 = vmul.f32 %v44_v62, %v44_v62  ;;  %v374_v4 = vmul.f32 %v47_v63, %v47_v63  ;;  %v51_v8 = vld [vmem:[%s11587_s3 + $0x38] sm:$0xff]  ;;  %v49_v15 = vld [vmem:[%s11587_s3 + $0x28] sm:$0xff]  ;;  %vm206_vm10 = vcmask 80896   ;;  %vm414_vm11 = vcmask 7168   ;;  %s9217_s12 = smov 24   ;;  %s9218_s13 = smov 20  }
  0x12   :  { %7701 = vmatpush3.bf16.msra.mxu0 %v128_v20  ;;  %7718 = vmatprep.subr.bf16.mxu1 %v9214_v36  ;;  %v52_v20 = vld [vmem:[%s11587_s3 + $0x40] sm:$0xff]  ;;  %s9219_s14 = smov 16   ;;  %vm737_vm12 = vcmask 130048   ;;  %vm11596_vm13 = vcmask 162816   ;;  %vm741_vm14 = vcmask 195584   ;;  %vm11595_vm15 = vcmask 1043456  }
  0x13   :  { %8485 = vmatprep.subr.msk.bf16.mxu0 %vm124_vm3, %v114_v32  ;;  %v377_v9 = vadd.f32 %v374_v4, %v371_v3  ;;  %v7140_v32 = vld [vmem:[%s11593_s9 + $0x1] ss:$0 sm:$0xff]  ;;  %s9220_s22 = smov 8   ;;  %s9221_s29 = smov 120  }
  0x14   :  { %s9222_s30 = smov 124   ;;  %s9224_s11 = smov 118  }
  0x15   :  { %s9225_s18 = smov 4   ;;  %s9226_s25 = smov 40  }
  0x16   :  { %s9227_s16 = smov 64  }
  0x98   :  { %v98_v13 = vpop.xlane.xlu0 %97 }
  0x99   :  { %v100_v14 = vmul.f32 0.33333334, %v98_v13  ;;  %v67_v21 = vpop.xlane.xlu1 %66  ;;  %v381_v13 = vmul.f32 %v51_v8, %v51_v8 }
  0x9a   :  { %v69_v22 = vmul.f32 0.16666667, %v67_v21 }
  0x9b   :  { %8934 = vrsqrt.f32 %v100_v14  ;;  %v46_v14 = vld [vmem:[%s11587_s3 + $0x10] sm:$0xff] }
  0x9c   :  { %v9305_v23 = vsub.f32 %v37_v11, %v69_v22  ;;  %v380_v11 = vmul.f32 %v50_v5, %v50_v5  ;;  %v373_v18 = vmul.f32 %v46_v14, %v46_v14 }
  0x9e   :  { %v71_v24 = vmul.f32 %v9305_v23, %v9305_v23  ;;  %v383_v16 = vadd.f32 %v380_v11, %v377_v9 }
  0xa0   :  { %v72_v25 = vsel %vm11600_vm1, %v71_v24, 0.0  ;;  %v386_v21 = vmax.f32 %v383_v16, 1e-08 }
  0xa1   :  { %73 = vadd.xlane.f32.xlu1 %v72_v25  ;;  %v382_v25 = vmul.f32 %v52_v20, %v52_v20 }
  0xa5   :  { %v8935_v19 = vpop.eup %8934 }
  0xa6   :  { %104 = vperm.xlu0 %8526, %v8935_v19   ;;  %v376_v19 = vmul.f32 %v49_v15, %v49_v15 }
  0xa8   :  { %v379_v24 = vadd.f32 %v376_v19, %v373_v18 }
  0xc5   :  { %321 = vadd.xlane.f32.xlu0 %v320_v35  ;;  %v431_v35 = vsel %vm11599_vm2, 65535, %v9212_v10 }
 0x125   :  { %v105_v26 = vpop.permute.xlu0 %104 }
 0x126   :  { %v109_v27 = vmul.f32 %v105_v26, %v40_v2  ;;  %v107_v28 = vmul.f32 %v105_v26, %v38_v0  ;;  %v108_v29 = vmul.f32 %v105_v26, %v39_v1  ;;  %v45_v0 = vld [vmem:[%s11587_s3 + $0x8] sm:$0xff]  ;;  %v48_v1 = vld [vmem:[%s11587_s3 + $0x20] sm:$0xff]  ;;  %s9223_s3 = smov 112  }
 0x127   :  { %v372_v6 = vmul.f32 %v45_v0, %v45_v0  ;;  %v375_v7 = vmul.f32 %v48_v1, %v48_v1 }
 0x128   :  { %v116_v30 = vpack.c.bf16 %v109_v27, %v109_v27  ;;  %v115_v31 = vpack.c.bf16 %v108_v29, %v107_v28  ;;  %v385_v28 = vadd.f32 %v382_v25, %v379_v24  ;;  %v7139_v29 = vld [vmem:[%s11593_s9] ss:$0 sm:$0xff] }
 0x129   :  { %v378_v12 = vadd.f32 %v375_v7, %v372_v6 }
 0x12a   :  { %7702 = vmatprep.mubr.msk.bf16.mxu0 %vm95_vm0, %v115_v31  ;;  %v388_v31 = vmax.f32 %v385_v28, 1e-08  ;;  %v8874_v28 = vld [vmem:[%s11588_s4] sm:$0xff]  }
 0x12b   :  { %7703 = vmatmul.mubr.msk.bf16.vlgmr.msra.gmra.mrb[0].mxu0 %vm95_vm0, %v116_v30  ;;  %v384_v17 = vadd.f32 %v381_v13, %v378_v12 }
 0x12c   :  { %7713 = vmatpush3.bf16.msra.mxu0 %v264_v33  ;;  %v404_v33 = vld [vmem:[%s11592_s8 + $0x18] sm:$0x1] }
 0x12d   :  { %v387_v22 = vmax.f32 %v384_v17, 1e-08 }
 0x12e   :  { %v74_v60 = vpop.xlane.xlu1 %73 }
 0x12f   :  { %v75_v61 = vmul.f32 0.16666667, %v74_v60 }
 0x131   :  { %v76_v2 = vadd.f32 1e-05, %v75_v61 }
 0x1fe   :  { %v7704_v37 = vpop.f32.mrb[0].mxu0 }
 0x1ff   :  { %v164_v38 = vpop.f32.mrb[1].mxu0  ;;  %v255_v44 = vpack.c.bf16 %v7704_v37, %v7704_v37  ;;  %v181_v45 = vmul.f32 %v7704_v37, %v7704_v37 }
 0x200   :  { %v7705_v39 = vpop.f32.mrb[2].mxu0  ;;  %v178_v41 = vmul.f32 %v164_v38, %v164_v38 }
 0x201   :  { %v167_v40 = vpop.f32.mrb[3].mxu0 }
 0x202   :  { %v179_v42 = vmul.f32 %v167_v40, %v167_v40  ;;  %v254_v43 = vpack.c.bf16 %v167_v40, %v164_v38  ;;  %v433_v40 = vand.u32 %v431_v35, %v404_v33  ;;  %v8875_v35 = vld [vmem:[%s11588_s4 + $0x8] sm:$0xff]  }
 0x204   :  { %v180_v46 = vadd.f32 %v179_v42, %v178_v41  ;;  %7714 = vmatprep.mubr.msk.bf16.mxu0 %vm256_vm5, %v254_v43 }
 0x205   :  { %7715 = vmatmul.mubr.msk.bf16.vlgmr.msra.gmra.mrb[4].mxu0 %vm256_vm5, %v255_v44 }
 0x206   :  { %v182_v47 = vadd.f32 %v181_v45, %v180_v46 }
 0x208   :  { %v183_v48 = vmax.f32 %v182_v47, 1e-08 }
 0x20a   :  { %8936 = vrsqrt.f32 %v183_v48  ;;  %vm186_vm8 = vcmp.eq.f32.partialorder %v183_v48, inf  ;;  %v189_v53 = vand.u32 2147483648, %v183_v48  ;;  %vm188_vm9 = vcmp.eq.f32.partialorder %v183_v48, 0.0 }
 0x20b   :  { %8938 = vrsqrt.f32 %v76_v2 }
 0x20c   :  { %8940 = vrsqrt.f32 %v386_v21 }
 0x20d   :  { %8942 = vrsqrt.f32 %v387_v22 }
 0x20e   :  { %8944 = vrsqrt.f32 %v388_v31 }
 0x214   :  { %v8937_v51 = vpop.eup %8936 }
 0x215   :  { %v185_v52 = vmul.f32 %v8937_v51, %v183_v48  ;;  %v8939_v26 = vpop.eup %8938 }
 0x216   :  { %v78_v27 = vmul.f32 %v8939_v26, %v9305_v23  ;;  %v8941_v37 = vpop.eup %8940 }
 0x217   :  { %v187_v54 = vsel %vm186_vm8, %v183_v48, %v185_v52  ;;  %v8943_v39 = vpop.eup %8942  ;;  %v395_v43 = vmul.f32 %v8941_v37, %v44_v62  ;;  %v398_v47 = vmul.f32 %v8941_v37, %v47_v63  ;;  %v401_v52 = vmul.f32 %v8941_v37, %v50_v5  ;;  %v322_v63 = vpop.xlane.xlu0 %321 }
 0x218   :  { %v190_v55 = vsel %vm188_vm9, %v189_v53, %v187_v54  ;;  %v83_v30 = vmul.f32 %v7139_v29, %v78_v27  ;;  %v396_v44 = vmul.f32 %v8943_v39, %v45_v0  ;;  %v8945_v45 = vpop.eup %8944  ;;  %v399_v49 = vmul.f32 %v8943_v39, %v48_v1 }
 0x219   :  { %192 = vrot.lane.b32.xlu1 %v190_v55, %s9216_s27  ;;  %v397_v46 = vmul.f32 %v8945_v45, %v46_v14  ;;  %v400_v50 = vmul.f32 %v8945_v45, %v49_v15  ;;  %v402_v53 = vmul.f32 %v8943_v39, %v51_v8  ;;  %v403_v55 = vmul.f32 %v8945_v45, %v52_v20  ;;  %v7143_v14 = vld [vmem:[%s11593_s9 + $0x2] ss:$0 sm:$0xff] }
 0x21a   :  { %v88_v23 = vadd.f32 %v7140_v32, %v83_v30  ;;  %v409_v10 = vpack.c.bf16 %v396_v44, %v395_v43  ;;  %v328_v0 = vmul.f32 0.125, %v322_v63  ;;  %v8876_v44 = vld [vmem:[%s11588_s4 + $0x10] sm:$0xff]  }
 0x21b   :  { %v410_v48 = vpack.c.bf16 %v398_v47, %v397_v46  ;;  %v411_v51 = vpack.c.bf16 %v400_v50, %v399_v49  ;;  %v412_v54 = vpack.c.bf16 %v402_v53, %v401_v52 }
 0x21c   :  { %v9420_v2 = vsub.f32 %v9320_v34, %v328_v0 }
 0x21e   :  { %v334_v5 = vmul.f32 %v9420_v2, %v9420_v2 }
 0x220   :  { %v339_v8 = vsel %vm316_vm4, %v334_v5, 0.0 }
 0x23d   :  { %318 = vadd.xlane.f32.xlu1 %v317_v57  ;;  %v413_v57 = vpack.c.bf16 %v403_v55, %v403_v55 }
 0x241   :  { %324 = vadd.xlane.f32.xlu1 %v323_v59 }
 0x28b   :  { %v193_v38 = vpop.permute.xlu1 %192 }
 0x28c   :  { %v195_v41 = vsel %vm11600_vm1, %v88_v23, %v193_v38 }
 0x28d   :  { %v196_v42 = vpack.c.bf16 %v195_v41, %v195_v41 }
 0x28f   :  { %7709 = vmatmul.mubr.msk.bf16.vlgmr.msra.gmra.mrb[0].mxu1 %vm206_vm10, %v196_v42 }
 0x290   :  { %7719 = vmatpush3.bf16.msra.mxu1 %v433_v40  ;;  %7720 = vmatprep.mubr.msk.bf16.mxu1 %vm9215_vm7, %v9214_v36 }
 0x291   :  { %7768 = vmatprep.subr.bf16.mxu1 %v9214_v36 }
 0x297   :  { %7721 = vmatmul.mubr.msk.bf16.vlgmr.msra.gmra.mrb[4].mxu1 %vm414_vm11, %v409_v10 }
 0x298   :  { %7724 = vmatprep.mubr.msk.bf16.mxu1 %vm9215_vm7, %v9214_v36 }
 0x29f   :  { %7725 = vmatmul.mubr.msk.bf16.gmra.mrb[8].mxu1 %vm414_vm11, %v410_v48 }
 0x2a0   :  { %7728 = vmatprep.mubr.msk.bf16.mxu1 %vm9215_vm7, %v9214_v36 }
 0x2a7   :  { %7729 = vmatmul.mubr.msk.bf16.gmra.mrb[12].mxu1 %vm414_vm11, %v411_v51 }
 0x2a8   :  { %7732 = vmatprep.mubr.msk.bf16.mxu1 %vm9215_vm7, %v9214_v36 }
 0x2af   :  { %7733 = vmatmul.mubr.msk.bf16.gmra.mrb[16].mxu1 %vm414_vm11, %v412_v54 }
 0x2b0   :  { %7736 = vmatprep.mubr.msk.bf16.mxu1 %vm9215_vm7, %v9214_v36 }
 0x2b7   :  { %7737 = vmatmul.mubr.msk.bf16.gmra.mrb[20].mxu1 %vm414_vm11, %v413_v57 }
 0x2b8   :  { %7770 = vmatprep.mubr.msk.bf16.mxu1 %vm9215_vm7, %v9214_v36 }
 0x2ca   :  { %v319_v1 = vpop.xlane.xlu1 %318 }
 0x2cb   :  { %v327_v3 = vmul.f32 0.125, %v319_v1 }
 0x2cd   :  { %v9425_v6 = vsub.f32 %v9337_v56, %v327_v3 }
 0x2ce   :  { %v325_v4 = vpop.xlane.xlu1 %324 }
 0x2cf   :  { %v329_v7 = vmul.f32 0.125, %v325_v4  ;;  %v333_v11 = vmul.f32 %v9425_v6, %v9425_v6 }
 0x2d1   :  { %v9429_v9 = vsub.f32 %v9344_v58, %v329_v7  ;;  %v336_v34 = vsel %vm316_vm4, %v333_v11, 0.0 }
 0x2d3   :  { %v335_v12 = vmul.f32 %v9429_v9, %v9429_v9 }
 0x2d5   :  { %v342_v13 = vsel %vm316_vm4, %v335_v12, 0.0 }
 0x2d8   :  { %v9407_v59 = vpop.f32.mrb[4].mxu0 }
 0x2d9   :  { %v9409_v60 = vpop.f32.mrb[5].mxu0  ;;  %734 = vrot.lane.b32.xlu1 %v9407_v59, %s9217_s12 }
 0x2da   :  { %v7717_v61 = vpop.f32.mrb[6].mxu0 }
 0x2db   :  { %v9413_v62 = vpop.f32.mrb[7].mxu0 }
 0x2dc   :  { %730 = vrot.lane.b32.xlu0 %v9413_v62, %s9218_s13 }
 0x2dd   :  { %726 = vrot.lane.b32.xlu1 %v9409_v60, %s9219_s14 }
 0x2fb   :  { %340 = vadd.xlane.f32.xlu0 %v339_v8 }
 0x301   :  { %337 = vadd.xlane.f32.xlu1 %v336_v34 }
 0x305   :  { %343 = vadd.xlane.f32.xlu1 %v342_v13 }
 0x34b   :  { %v735_v56 = vpop.permute.xlu1 %734 }
 0x34e   :  { %v731_v19 = vpop.permute.xlu0 %730 }
 0x34f   :  { %v727_v17 = vpop.permute.xlu1 %726 }
 0x362   :  { %v248_v58 = vpop.f32.mrb[0].mxu1 }
 0x363   :  { %v9440_v15 = vadd.f32 %v7143_v14, %v248_v58  ;;  %v7710_v16 = vpop.f32.mrb[1].mxu1  ;;  %v8877_v58 = vld [vmem:[%s11592_s8 + $0x20] sm:$0x1f]  }
 0x364   :  { %v251_v18 = vpop.f32.mrb[2].mxu1  ;;  %8486 = vmatprep.subr.msk.bf16.mxu0 %vm210_vm6, %v8877_v58 }
 0x365   :  { %v738_v20 = vsel %vm737_vm12, %v9440_v15, %v727_v17  ;;  %v7711_v21 = vpop.f32.mrb[3].mxu1  ;;  %v579_v17 = vsel %vm210_vm6, %v8877_v58, 0 }
 0x366   :  { %v740_v22 = vsel %vm11596_vm13, %v738_v20, %v731_v19  ;;  %7741 = vmatpush3.bf16.msra.mxu0 %v579_v17 }
 0x367   :  { %v742_v24 = vsel %vm741_vm14, %v740_v22, %v735_v56  ;;  %7746 = vmatprep.subr.bf16.mxu0 %v9214_v36 }
 0x368   :  { %v743_v25 = vpack.c.bf16 %v742_v24, %v742_v24 }
 0x36a   :  { %v9446_v26 = vpop.f32.mrb[4].mxu1  ;;  %v770_v27 = vsel %vm11595_vm15, %v743_v25, 0 }
 0x36b   :  { %v7722_v29 = vpop.f32.mrb[5].mxu1  ;;  %7769 = vmatpush3.bf16.msra.mxu1 %v770_v27  ;;  %v507_v38 = vmul.f32 %v9446_v26, %v9446_v26 }
 0x36c   :  { %v9452_v30 = vpop.f32.mrb[6].mxu1 }
 0x36d   :  { %v629_v31 = vpack.c.bf16 %v9452_v30, %v9446_v26  ;;  %v7723_v32 = vpop.f32.mrb[7].mxu1  ;;  %v508_v10 = vmul.f32 %v9452_v30, %v9452_v30 }
 0x36e   :  { %7771 = vmatmul.mubr.msk.bf16.vlgmr.msra.gmra.mrb[24].mxu1 %vm316_vm4, %v8874_v28 }
 0x36f   :  { %7774 = vmatprep.mubr.msk.bf16.mxu1 %vm9215_vm7, %v9214_v36 }
 0x372   :  { %v9459_v33 = vpop.f32.mrb[8].mxu1 }
 0x373   :  { %v7726_v23 = vpop.f32.mrb[9].mxu1  ;;  %v509_v48 = vmul.f32 %v9459_v33, %v9459_v33 }
 0x374   :  { %v9464_v37 = vpop.f32.mrb[10].mxu1 }
 0x375   :  { %v510_v39 = vmul.f32 %v9464_v37, %v9464_v37  ;;  %v630_v40 = vpack.c.bf16 %v9464_v37, %v9459_v33  ;;  %v7727_v41 = vpop.f32.mrb[11].mxu1 }
 0x376   :  { %7775 = vmatmul.mubr.msk.bf16.gmra.mrb[28].mxu1 %vm316_vm4, %v8875_v35 }
 0x377   :  { %v513_v42 = vadd.f32 %v510_v39, %v507_v38  ;;  %7778 = vmatprep.mubr.msk.bf16.mxu1 %vm9215_vm7, %v9214_v36 }
 0x37a   :  { %v9475_v43 = vpop.f32.mrb[12].mxu1 }
 0x37b   :  { %v511_v45 = vmul.f32 %v9475_v43, %v9475_v43  ;;  %v7730_v46 = vpop.f32.mrb[13].mxu1 }
 0x37c   :  { %v9484_v47 = vpop.f32.mrb[14].mxu1 }
 0x37d   :  { %v514_v49 = vadd.f32 %v511_v45, %v508_v10  ;;  %v512_v50 = vmul.f32 %v9484_v47, %v9484_v47  ;;  %v631_v51 = vpack.c.bf16 %v9484_v47, %v9475_v43  ;;  %v7731_v52 = vpop.f32.mrb[15].mxu1 }
 0x37e   :  { %7779 = vmatmul.mubr.msk.bf16.gmra.mrb[32].mxu1 %vm316_vm4, %v8876_v44 }
 0x37f   :  { %v515_v53 = vadd.f32 %v512_v50, %v509_v48 }
 0x382   :  { %v9493_v54 = vpop.f32.mrb[16].mxu1 }
 0x383   :  { %v516_v55 = vmul.f32 %v9493_v54, %v9493_v54  ;;  %v7734_v57 = vpop.f32.mrb[17].mxu1 }
 0x384   :  { %v9497_v61 = vpop.f32.mrb[18].mxu1 }
 0x385   :  { %v519_v63 = vadd.f32 %v516_v55, %v513_v42  ;;  %v517_v0 = vmul.f32 %v9497_v61, %v9497_v61  ;;  %v632_v1 = vpack.c.bf16 %v9497_v61, %v9493_v54  ;;  %v7735_v3 = vpop.f32.mrb[19].mxu1 }
 0x387   :  { %v522_v4 = vmax.f32 %v519_v63, 1e-08  ;;  %v520_v5 = vadd.f32 %v517_v0, %v514_v49  ;;  %v7148_v0 = vld [vmem:[%s11593_s9 + $0x3] ss:$0 sm:$0xff] }
 0x388   :  { %v341_v42 = vpop.xlane.xlu0 %340 }
 0x389   :  { %v523_v7 = vmax.f32 %v520_v5, 1e-08  ;;  %8946 = vrsqrt.f32 %v522_v4  ;;  %vm527_vm0 = vcmp.eq.f32.partialorder %v522_v4, inf  ;;  %v530_v22 = vand.u32 2147483648, %v522_v4 }
 0x38a   :  { %v9503_v8 = vpop.f32.mrb[20].mxu1  ;;  %vm529_vm9 = vcmp.eq.f32.partialorder %v522_v4, 0.0  ;;  %v346_v44 = vmul.f32 0.125, %v341_v42 }
 0x38b   :  { %v518_v11 = vmul.f32 %v9503_v8, %v9503_v8  ;;  %v7738_v34 = vpop.f32.mrb[21].mxu1  ;;  %8948 = vrsqrt.f32 %v523_v7  ;;  %vm534_vm8 = vcmp.eq.f32.partialorder %v523_v7, inf  ;;  %v537_v24 = vand.u32 2147483648, %v523_v7 }
 0x38c   :  { %v504_v12 = vpop.f32.mrb[22].mxu1  ;;  %vm536_vm11 = vcmp.eq.f32.partialorder %v523_v7, 0.0  ;;  %v349_v48 = vadd.f32 1e-05, %v346_v44  ;;  %v633_v26 = vpack.c.bf16 %v9503_v8, %v9503_v8 }
 0x38d   :  { %v521_v13 = vadd.f32 %v518_v11, %v515_v53  ;;  %v7739_v56 = vpop.f32.mrb[23].mxu1 }
 0x38e   :  { %v338_v41 = vpop.xlane.xlu1 %337 }
 0x38f   :  { %v524_v14 = vmax.f32 %v521_v13, 1e-08  ;;  %v345_v45 = vmul.f32 0.125, %v338_v41 }
 0x391   :  { %8950 = vrsqrt.f32 %v524_v14  ;;  %vm541_vm15 = vcmp.eq.f32.partialorder %v524_v14, inf  ;;  %v544_v23 = vand.u32 2147483648, %v524_v14  ;;  %vm543_vm13 = vcmp.eq.f32.partialorder %v524_v14, 0.0 }
 0x392   :  { %v344_v10 = vpop.xlane.xlu1 %343  ;;  %v348_v49 = vadd.f32 1e-05, %v345_v45  ;;  %8952 = vrsqrt.f32 %v349_v48 }
 0x393   :  { %v8947_v16 = vpop.eup %8946  ;;  %v347_v46 = vmul.f32 0.125, %v344_v10 }
 0x394   :  { %v526_v18 = vmul.f32 %v8947_v16, %v522_v4  ;;  %8954 = vrsqrt.f32 %v348_v49 }
 0x395   :  { %v8949_v19 = vpop.eup %8948  ;;  %v350_v50 = vadd.f32 1e-05, %v347_v46 }
 0x396   :  { %v528_v20 = vsel %vm527_vm0, %v522_v4, %v526_v18  ;;  %v533_v21 = vmul.f32 %v8949_v19, %v523_v7 }
 0x397   :  { %v531_v27 = vsel %vm529_vm9, %v530_v22, %v528_v20  ;;  %8956 = vrsqrt.f32 %v350_v50 }
 0x398   :  { %v535_v25 = vsel %vm534_vm8, %v523_v7, %v533_v21  ;;  %v7149_v7 = vld [vmem:[%s11593_s9 + $0x4] ss:$0 sm:$0xff] }
 0x399   :  { %v538_v28 = vsel %vm536_vm11, %v537_v24, %v535_v25 }
 0x39a   :  { %v8527_v29 = vpack.i.bf16 %v538_v28, %v531_v27 }
 0x39b   :  { %v8951_v32 = vpop.eup %8950 }
 0x39c   :  { %8528 = vrot.lane.b32.xlu1 %v8527_v29, %s9220_s22  ;;  %v540_v35 = vmul.f32 %v8951_v32, %v524_v14  ;;  %v8953_v52 = vpop.eup %8952  ;;  %v8878_v29 = vld [vmem:[%s11592_s8 + $0x30] sm:$0x1f]  }
 0x39d   :  { %v355_v57 = vmul.f32 %v8953_v52, %v9420_v2  ;;  %v995_v32 = vsel %vm210_vm6, %v8878_v29, 0 }
 0x39e   :  { %v542_v38 = vsel %vm541_vm15, %v524_v14, %v540_v35  ;;  %v8955_v53 = vpop.eup %8954 }
 0x39f   :  { %v545_v39 = vsel %vm543_vm13, %v544_v23, %v542_v38  ;;  %v354_v63 = vmul.f32 %v8955_v53, %v9425_v6  ;;  %v362_v5 = vmul.f32 %v7148_v0, %v355_v57  ;;  %vm634_vm13 = vcmask 15360   ;;  %v7155_v23 = vld [vmem:[%s11593_s9 + $0x5] ss:$0 sm:$0xff] }
 0x3a0   :  { %553 = vrot.lane.b32.xlu0 %v545_v39, %s9220_s22 }
 0x3a1   :  { %v8957_v55 = vpop.eup %8956  ;;  %v361_v4 = vmul.f32 %v7148_v0, %v354_v63  ;;  %v369_v13 = vadd.f32 %v7149_v7, %v362_v5 }
 0x3a2   :  { %v356_v3 = vmul.f32 %v8957_v55, %v9429_v9  ;;  %v408_v9 = vld [vmem:[%s11592_s8 + $0x28] sm:$0x1] }
 0x3a3   :  { %v368_v12 = vadd.f32 %v7149_v7, %v361_v4  ;;  %v651_v20 = vsel %vm11599_vm2, %v408_v9, 0 }
 0x3a4   :  { %v363_v11 = vmul.f32 %v7148_v0, %v356_v3 }
 0x3a6   :  { %v370_v58 = vadd.f32 %v7149_v7, %v363_v11 }
 0x40e   :  { %v8529_v34 = vpop.permute.xlu1 %8528 }
 0x40f   :  { %v8531_v56 = vunpack.i.h.bf16 %v8529_v34  ;;  %v8530_v2 = vunpack.i.l.bf16 %v8529_v34 }
 0x411   :  { %v559_v6 = vsel %vm316_vm4, %v369_v13, %v8531_v56  ;;  %v558_v14 = vsel %vm316_vm4, %v368_v12, %v8530_v2 }
 0x412   :  { %v554_v16 = vpop.permute.xlu0 %553  ;;  %v561_v17 = vpack.c.bf16 %v559_v6, %v558_v14 }
 0x413   :  { %v560_v18 = vsel %vm316_vm4, %v370_v58, %v554_v16 }
 0x414   :  { %v562_v19 = vpack.c.bf16 %v560_v18, %v560_v18  ;;  %7742 = vmatprep.mubr.msk.bf16.mxu0 %vm206_vm10, %v561_v17 }
 0x416   :  { %7743 = vmatmul.mubr.msk.bf16.vlgmr.msra.gmra.mrb[8].mxu0 %vm206_vm10, %v562_v19 }
 0x417   :  { %7747 = vmatpush3.bf16.msra.mxu0 %v651_v20  ;;  %7748 = vmatprep.mubr.msk.bf16.mxu0 %vm9215_vm7, %v9214_v36 }
 0x418   :  { %7782 = vmatprep.subr.bf16.mxu0 %v9214_v36 }
 0x41e   :  { %7749 = vmatmul.mubr.msk.bf16.vlgmr.msra.gmra.mrb[12].mxu0 %vm634_vm13, %v629_v31 }
 0x41f   :  { %7752 = vmatprep.mubr.msk.bf16.mxu0 %vm9215_vm7, %v9214_v36  ;;  %7783 = vmatpush3.bf16.msra.mxu0 %v995_v32 }
 0x420   :  { %7838 = vmatprep.subr.bf16.mxu0 %v9214_v36 }
 0x426   :  { %7753 = vmatmul.mubr.msk.bf16.gmra.mrb[16].mxu0 %vm634_vm13, %v630_v40 }
 0x427   :  { %7756 = vmatprep.mubr.msk.bf16.mxu0 %vm9215_vm7, %v9214_v36 }
 0x42e   :  { %7757 = vmatmul.mubr.msk.bf16.gmra.mrb[20].mxu0 %vm634_vm13, %v631_v51 }
 0x42f   :  { %7760 = vmatprep.mubr.msk.bf16.mxu0 %vm9215_vm7, %v9214_v36 }
 0x436   :  { %7761 = vmatmul.mubr.msk.bf16.gmra.mrb[24].mxu0 %vm634_vm13, %v632_v1 }
 0x437   :  { %7764 = vmatprep.mubr.msk.bf16.mxu0 %vm9215_vm7, %v9214_v36 }
 0x43e   :  { %7765 = vmatmul.mubr.msk.bf16.gmra.mrb[28].mxu0 %vm634_vm13, %v633_v26 }
 0x43f   :  { %7784 = vmatprep.mubr.msk.bf16.mxu0 %vm9215_vm7, %v9214_v36 }
 0x441   :  { %v9558_v30 = vpop.f32.mrb[24].mxu1 }
 0x442   :  { %v7772_v31 = vpop.f32.mrb[25].mxu1 }
 0x443   :  { %v9560_v33 = vpop.f32.mrb[26].mxu1 }
 0x444   :  { %v7773_v37 = vpop.f32.mrb[27].mxu1  ;;  %v8547_v40 = vpack.i.bf16 %v9560_v33, %v9558_v30 }
 0x446   :  { %8548 = vrot.lane.b32.xlu0 %v8547_v40, %s9221_s29 }
 0x449   :  { %v9565_v43 = vpop.f32.mrb[28].mxu1 }
 0x44a   :  { %v7776_v47 = vpop.f32.mrb[29].mxu1  ;;  %v8537_v51 = vpack.i.bf16 %v9565_v43, %v9560_v33 }
 0x44b   :  { %v817_v54 = vpop.f32.mrb[30].mxu1 }
 0x44c   :  { %v8532_v61 = vpack.i.bf16 %v817_v54, %v9558_v30  ;;  %v7777_v1 = vpop.f32.mrb[31].mxu1 }
 0x44e   :  { %8533 = vrot.lane.b32.xlu1 %v8532_v61, %s9222_s30 }
 0x451   :  { %v822_v8 = vpop.f32.mrb[32].mxu1 }
 0x452   :  { %8538 = vrot.lane.b32.xlu1 %v8537_v51, %s9222_s30  ;;  %v7780_v21 = vpop.f32.mrb[33].mxu1  ;;  %v9572_v22 = vpack.i.bf16 %v822_v8, %v817_v54 }
 0x453   :  { %v9574_v24 = vpop.f32.mrb[34].mxu1 }
 0x454   :  { %v8542_v25 = vpack.i.bf16 %v9574_v24, %v822_v8  ;;  %v8557_v27 = vpack.i.bf16 %v9574_v24, %v9565_v43  ;;  %v7781_v28 = vpop.f32.mrb[35].mxu1 }
 0x456   :  { %8543 = vrot.lane.b32.xlu1 %v8542_v25, %s9222_s30  ;;  %8558 = vrot.lane.b32.xlu0 %v8557_v27, %s9221_s29 }
 0x45a   :  { %8553 = vrot.lane.b32.xlu1 %v9572_v22, %s9221_s29 }
 0x45e   :  { %8563 = vrot.lane.b32.xlu1 %v8547_v40, %s9223_s3 }
 0x462   :  { %8573 = vrot.lane.b32.xlu1 %v9572_v22, %s9224_s11 }
 0x4b8   :  { %v8549_v12 = vpop.permute.xlu0 %8548 }
 0x4c0   :  { %v8534_v45 = vpop.permute.xlu1 %8533 }
 0x4c1   :  { %v8535_v50 = vunpack.i.l.bf16 %v8534_v45  ;;  %v8536_v57 = vunpack.i.h.bf16 %v8534_v45 }
 0x4c3   :  { %v8577_v63 = vpack.i.bf16 %v8535_v50, %v9565_v43  ;;  %v8587_v11 = vpack.i.bf16 %v8536_v57, %v9574_v24 }
 0x4c4   :  { %v8539_v55 = vpop.permute.xlu1 %8538 }
 0x4c8   :  { %v8544_v34 = vpop.permute.xlu1 %8543  ;;  %v8559_v20 = vpop.permute.xlu0 %8558 }
 0x4c9   :  { %v8560_v26 = vunpack.i.l.bf16 %v8559_v20  ;;  %v8561_v47 = vunpack.i.h.bf16 %v8559_v20 }
 0x4cc   :  { %v8554_v58 = vpop.permute.xlu1 %8553 }
 0x4d0   :  { %v8564_v61 = vpop.permute.xlu1 %8563 }
 0x4d1   :  { %v8566_v21 = vunpack.i.h.bf16 %v8564_v61  ;;  %v8565_v25 = vunpack.i.l.bf16 %v8564_v61 }
 0x4d4   :  { %v8574_v1 = vpop.permute.xlu1 %8573 }
 0x4d5   :  { %v8576_v29 = vunpack.i.h.bf16 %v8574_v1  ;;  %v8575_v32 = vunpack.i.l.bf16 %v8574_v1 }
 0x4e9   :  { %v7744_v35 = vpop.f32.mrb[8].mxu0 }
 0x4ea   :  { %v615_v38 = vpop.f32.mrb[9].mxu0  ;;  %v624_v54 = vadd.f32 %v7744_v35, %v7155_v23 }
 0x4eb   :  { %v7745_v39 = vpop.f32.mrb[10].mxu0  ;;  %v616_v42 = vadd.f32 %v7155_v23, %v615_v38 }
 0x4ec   :  { %v618_v41 = vpop.f32.mrb[11].mxu0 }
 0x4ed   :  { %v619_v44 = vadd.f32 %v7155_v23, %v618_v41 }
 0x4ef   :  { %v8622_v10 = vpack.i.bf16 %v619_v44, %v616_v42 }
 0x4f1   :  { %v687_v46 = vpop.f32.mrb[12].mxu0 }
 0x4f2   :  { %v7750_v48 = vpop.f32.mrb[13].mxu0 }
 0x4f3   :  { %v690_v49 = vpop.f32.mrb[14].mxu0 }
 0x4f4   :  { %v8567_v52 = vpack.i.bf16 %v690_v49, %v687_v46  ;;  %v7751_v53 = vpop.f32.mrb[15].mxu0 }
 0x4f6   :  { %8568 = vrot.lane.b32.xlu0 %v8567_v52, %s9225_s18 }
 0x4f9   :  { %v695_v0 = vpop.f32.mrb[16].mxu0 }
 0x4fa   :  { %8578 = vrot.lane.b32.xlu0 %v8577_v63, %s9223_s3  ;;  %v7754_v3 = vpop.f32.mrb[17].mxu0 }
 0x4fb   :  { %v698_v4 = vpop.f32.mrb[18].mxu0 }
 0x4fc   :  { %v8582_v5 = vpack.i.bf16 %v698_v4, %v695_v0  ;;  %v7755_v7 = vpop.f32.mrb[19].mxu0 }
 0x4fe   :  { %8588 = vrot.lane.b32.xlu0 %v8587_v11, %s9224_s11  ;;  %8583 = vrot.lane.b32.xlu1 %v8582_v5, %s9225_s18 }
 0x501   :  { %v703_v13 = vpop.f32.mrb[20].mxu0 }
 0x502   :  { %8593 = vrot.lane.b32.xlu1 %v8539_v55, %s9223_s3  ;;  %v7758_v56 = vpop.f32.mrb[21].mxu0 }
 0x503   :  { %v706_v2 = vpop.f32.mrb[22].mxu0 }
 0x504   :  { %v8597_v6 = vpack.i.bf16 %v706_v2, %v703_v13  ;;  %v7759_v14 = vpop.f32.mrb[23].mxu0 }
 0x506   :  { %8603 = vrot.lane.b32.xlu1 %v8544_v34, %s9224_s11  ;;  %8598 = vrot.lane.b32.xlu0 %v8597_v6, %s9225_s18 }
 0x509   :  { %v711_v9 = vpop.f32.mrb[24].mxu0 }
 0x50a   :  { %8608 = vrot.lane.b32.xlu0 %v8549_v12, %s9223_s3  ;;  %v7762_v16 = vpop.f32.mrb[25].mxu0 }
 0x50b   :  { %v714_v17 = vpop.f32.mrb[26].mxu0 }
 0x50c   :  { %v8612_v18 = vpack.i.bf16 %v714_v17, %v711_v9  ;;  %v7763_v19 = vpop.f32.mrb[27].mxu0 }
 0x50e   :  { %8618 = vrot.lane.b32.xlu0 %v8554_v58, %s9224_s11  ;;  %8613 = vrot.lane.b32.xlu1 %v8612_v18, %s9225_s18 }
 0x511   :  { %v719_v31 = vpop.f32.mrb[28].mxu0 }
 0x512   :  { %875 = vrot.lane.b32.xlu1 %v8560_v26, %s9223_s3  ;;  %911 = vrot.lane.b32.xlu0 %v719_v31, %s9225_s18  ;;  %v7766_v37 = vpop.f32.mrb[29].mxu0 }
 0x513   :  { %v722_v40 = vpop.f32.mrb[30].mxu0 }
 0x514   :  { %v7767_v51 = vpop.f32.mrb[31].mxu0 }
 0x516   :  { %938 = vrot.lane.b32.xlu1 %v8561_v47, %s9224_s11  ;;  %8623 = vrot.lane.b32.xlu0 %v8622_v10, %s9219_s14 }
 0x51a   :  { %1115 = vrot.lane.b32.xlu1 %v624_v54, %s9219_s14  ;;  %8628 = vrot.lane.b32.xlu0 %v9572_v22, %s9217_s12 }
 0x51e   :  { %1124 = vrot.lane.b32.xlu1 %v9574_v24, %s9217_s12 }
 0x568   :  { %v8569_v8 = vpop.permute.xlu0 %8568 }
 0x569   :  { %v9615_v27 = vunpack.i.h.bf16 %v8569_v8  ;;  %v9617_v28 = vunpack.i.l.bf16 %v8569_v8 }
 0x56b   :  { %v950_v35 = vsel %vm256_vm5, %v8566_v21, %v9615_v27  ;;  %v949_v22 = vsel %vm256_vm5, %v8565_v25, %v9617_v28 }
 0x56c   :  { %v959_v23 = vsel %vm11600_vm1, %v950_v35, %v8576_v29  ;;  %v958_v24 = vsel %vm11600_vm1, %v949_v22, %v8575_v32  ;;  %v8579_v38 = vpop.permute.xlu0 %8578  ;;  %v8879_v32 = vld [vmem:[%s11592_s8 + $0x38] sm:$0xff]   ;;  %v8880_v35 = vld [vmem:[%s11592_s8 + $0x40] sm:$0xff]   ;;  %v8881_v22 = vld [vmem:[%s11592_s8 + $0x48] sm:$0xff]  }
 0x56d   :  { %v967_v39 = vpack.c.bf16 %v959_v23, %v958_v24  ;;  %v8581_v41 = vunpack.i.h.bf16 %v8579_v38  ;;  %v8580_v42 = vunpack.i.l.bf16 %v8579_v38  ;;  %7804 = vmatprep.subr.bf16.mxu1 %v8879_v32 }
 0x56e   :  { %7805 = vmatpush3.bf16.msra.mxu1 %v8879_v32 }
 0x56f   :  { %7785 = vmatmul.mubr.msk.bf16.vlgmr.msra.gmra.mrb[32].mxu0 %vm206_vm10, %v967_v39  ;;  %7806 = vmatprep.subr.bf16.mxu1 %v8880_v35 }
 0x570   :  { %v8589_v44 = vpop.permute.xlu0 %8588  ;;  %v8584_v10 = vpop.permute.xlu1 %8583  ;;  %7788 = vmatprep.mubr.msk.bf16.mxu0 %vm9215_vm7, %v9214_v36 }
 0x571   :  { %v8591_v45 = vunpack.i.h.bf16 %v8589_v44  ;;  %v8590_v46 = vunpack.i.l.bf16 %v8589_v44  ;;  %v9628_v48 = vunpack.i.h.bf16 %v8584_v10  ;;  %v9630_v49 = vunpack.i.l.bf16 %v8584_v10 }
 0x572   :  { %7807 = vmatpush3.bf16.msra.mxu1 %v8880_v35 }
 0x573   :  { %v952_v50 = vsel %vm256_vm5, %v8581_v41, %v9628_v48  ;;  %v951_v52 = vsel %vm256_vm5, %v8580_v42, %v9630_v49  ;;  %7808 = vmatprep.subr.bf16.mxu1 %v8881_v22 }
 0x574   :  { %v8594_v53 = vpop.permute.xlu1 %8593  ;;  %v960_v55 = vsel %vm11600_vm1, %v951_v52, %v8590_v46  ;;  %v961_v57 = vsel %vm11600_vm1, %v952_v50, %v8591_v45 }
 0x575   :  { %v968_v63 = vpack.c.bf16 %v961_v57, %v960_v55  ;;  %v8596_v0 = vunpack.i.h.bf16 %v8594_v53  ;;  %v8595_v3 = vunpack.i.l.bf16 %v8594_v53 }
 0x576   :  { %7809 = vmatpush3.bf16.msra.mxu1 %v8881_v22 }
 0x577   :  { %7789 = vmatmul.mubr.msk.bf16.gmra.mrb[36].mxu0 %vm206_vm10, %v968_v63 }
 0x578   :  { %v8604_v4 = vpop.permute.xlu1 %8603  ;;  %v8599_v5 = vpop.permute.xlu0 %8598  ;;  %7792 = vmatprep.mubr.msk.bf16.mxu0 %vm9215_vm7, %v9214_v36 }
 0x579   :  { %v8606_v7 = vunpack.i.h.bf16 %v8604_v4  ;;  %v8605_v11 = vunpack.i.l.bf16 %v8604_v4  ;;  %v9641_v34 = vunpack.i.h.bf16 %v8599_v5  ;;  %v9643_v12 = vunpack.i.l.bf16 %v8599_v5 }
 0x57b   :  { %v954_v13 = vsel %vm256_vm5, %v8596_v0, %v9641_v34  ;;  %v953_v56 = vsel %vm256_vm5, %v8595_v3, %v9643_v12 }
 0x57c   :  { %v8609_v2 = vpop.permute.xlu0 %8608  ;;  %v962_v6 = vsel %vm11600_vm1, %v953_v56, %v8605_v11  ;;  %v963_v14 = vsel %vm11600_vm1, %v954_v13, %v8606_v7 }
 0x57d   :  { %v969_v58 = vpack.c.bf16 %v963_v14, %v962_v6  ;;  %v8611_v9 = vunpack.i.h.bf16 %v8609_v2  ;;  %v8610_v16 = vunpack.i.l.bf16 %v8609_v2 }
 0x57f   :  { %7793 = vmatmul.mubr.msk.bf16.gmra.mrb[40].mxu0 %vm206_vm10, %v969_v58 }
 0x580   :  { %v8619_v17 = vpop.permute.xlu0 %8618  ;;  %v8614_v18 = vpop.permute.xlu1 %8613  ;;  %7796 = vmatprep.mubr.msk.bf16.mxu0 %vm9215_vm7, %v9214_v36 }
 0x581   :  { %v8621_v19 = vunpack.i.h.bf16 %v8619_v17  ;;  %v8620_v20 = vunpack.i.l.bf16 %v8619_v17  ;;  %v9654_v26 = vunpack.i.h.bf16 %v8614_v18  ;;  %v9656_v31 = vunpack.i.l.bf16 %v8614_v18 }
 0x583   :  { %v956_v37 = vsel %vm256_vm5, %v8611_v9, %v9654_v26  ;;  %v955_v40 = vsel %vm256_vm5, %v8610_v16, %v9656_v31 }
 0x584   :  { %v876_v47 = vpop.permute.xlu1 %875  ;;  %v964_v51 = vsel %vm11600_vm1, %v955_v40, %v8620_v20  ;;  %v965_v54 = vsel %vm11600_vm1, %v956_v37, %v8621_v19  ;;  %v9664_v1 = vpop.permute.xlu0 %911 }
 0x585   :  { %v970_v61 = vpack.c.bf16 %v965_v54, %v964_v51  ;;  %v957_v21 = vsel %vm256_vm5, %v876_v47, %v9664_v1 }
 0x587   :  { %7797 = vmatmul.mubr.msk.bf16.gmra.mrb[44].mxu0 %vm206_vm10, %v970_v61 }
 0x588   :  { %v939_v8 = vpop.permute.xlu1 %938  ;;  %7800 = vmatprep.mubr.msk.bf16.mxu0 %vm9215_vm7, %v9214_v36 }
 0x589   :  { %v966_v25 = vsel %vm11600_vm1, %v957_v21, %v939_v8 }
 0x58a   :  { %v971_v29 = vpack.c.bf16 %v966_v25, %v966_v25  ;;  %v8882_v25 = vld [vmem:[%s11592_s8 + $0x50] ss:$0 sps:$4 sm:$0x11]  }
 0x58b   :  { %8487 = vmatprep.subr.msk.bf16.mxu1 %vm11599_vm2, %v8882_v25  ;;  %v1194_v32 = vsel %vm11599_vm2, %v8882_v25, 0 }
 0x58c   :  { %7811 = vmatpush3.bf16.msra.mxu1 %v1194_v32 }
 0x58d   :  { %7816 = vmatprep.subr.bf16.mxu1 %v9214_v36 }
 0x58f   :  { %7801 = vmatmul.mubr.msk.bf16.gmra.mrb[48].mxu0 %vm206_vm10, %v971_v29 }
 0x590   :  { %7840 = vmatprep.mubr.msk.bf16.mxu0 %vm9215_vm7, %v9214_v36 }
 0x642   :  { %v9684_v23 = vpop.f32.mrb[32].mxu0 }
 0x643   :  { %v7786_v24 = vpop.f32.mrb[33].mxu0  ;;  %v1069_v45 = vmul.f32 %v9684_v23, %v9684_v23 }
 0x644   :  { %v9686_v38 = vpop.f32.mrb[34].mxu0 }
 0x645   :  { %v1247_v39 = vpack.c.bf16 %v9686_v38, %v9684_v23  ;;  %v7787_v41 = vpop.f32.mrb[35].mxu0  ;;  %v1070_v57 = vmul.f32 %v9686_v38, %v9686_v38  ;;  %v1415_v23 = vld [vmem:[%s11592_s8 + $0x60] sm:$0x3] }
 0x646   :  { %v1442_v38 = vsel %vm124_vm3, %v1415_v23, 0 }
 0x647   :  { %7839 = vmatpush3.bf16.msra.mxu0 %v1442_v38 }
 0x648   :  { %7890 = vmatprep.subr.bf16.mxu0 %v9214_v36 }
 0x64a   :  { %v9690_v42 = vpop.f32.mrb[36].mxu0 }
 0x64b   :  { %v7790_v44 = vpop.f32.mrb[37].mxu0  ;;  %v1071_v5 = vmul.f32 %v9690_v42, %v9690_v42 }
 0x64c   :  { %v9692_v10 = vpop.f32.mrb[38].mxu0 }
 0x64d   :  { %v1072_v46 = vmul.f32 %v9692_v10, %v9692_v10  ;;  %v1248_v50 = vpack.c.bf16 %v9692_v10, %v9690_v42  ;;  %v7791_v52 = vpop.f32.mrb[39].mxu0 }
 0x64f   :  { %v1075_v53 = vadd.f32 %v1072_v46, %v1069_v45 }
 0x652   :  { %v9700_v55 = vpop.f32.mrb[40].mxu0 }
 0x653   :  { %v1073_v63 = vmul.f32 %v9700_v55, %v9700_v55  ;;  %v7794_v0 = vpop.f32.mrb[41].mxu0 }
 0x654   :  { %v9706_v3 = vpop.f32.mrb[42].mxu0 }
 0x655   :  { %v1076_v4 = vadd.f32 %v1073_v63, %v1070_v57  ;;  %v1074_v7 = vmul.f32 %v9706_v3, %v9706_v3  ;;  %v1249_v11 = vpack.c.bf16 %v9706_v3, %v9700_v55  ;;  %v7795_v13 = vpop.f32.mrb[43].mxu0 }
 0x656   :  { %v8624_v13 = vpop.permute.xlu0 %8623 }
 0x657   :  { %v1077_v56 = vadd.f32 %v1074_v7, %v1071_v5 }
 0x65a   :  { %v9714_v2 = vpop.f32.mrb[44].mxu0 }
 0x65b   :  { %v1078_v6 = vmul.f32 %v9714_v2, %v9714_v2  ;;  %v7798_v14 = vpop.f32.mrb[45].mxu0 }
 0x65c   :  { %v9718_v58 = vpop.f32.mrb[46].mxu0  ;;  %v9738_v14 = vunpack.i.h.bf16 %v8624_v13 }
 0x65d   :  { %v1081_v9 = vadd.f32 %v1078_v6, %v1075_v53  ;;  %v1079_v16 = vmul.f32 %v9718_v58, %v9718_v58  ;;  %v1250_v17 = vpack.c.bf16 %v9718_v58, %v9714_v2  ;;  %v7799_v18 = vpop.f32.mrb[47].mxu0  ;;  %v8629_v6 = vpop.permute.xlu0 %8628 }
 0x65e   :  { %v8630_v18 = vunpack.i.l.bf16 %v8629_v6 }
 0x65f   :  { %v1084_v19 = vmax.f32 %v1081_v9, 1e-08  ;;  %v1082_v20 = vadd.f32 %v1079_v16, %v1076_v4  ;;  %v9740_v9 = vunpack.i.l.bf16 %v8624_v13  ;;  %v8631_v16 = vunpack.i.h.bf16 %v8629_v6 }
 0x661   :  { %8958 = vrsqrt.f32 %v1084_v19  ;;  %v1085_v37 = vmax.f32 %v1082_v20, 1e-08  ;;  %vm1089_vm15 = vcmp.eq.f32.partialorder %v1084_v19, inf  ;;  %v1092_v44 = vand.u32 2147483648, %v1084_v19 }
 0x662   :  { %v9724_v40 = vpop.f32.mrb[48].mxu0  ;;  %vm1091_vm8 = vcmp.eq.f32.partialorder %v1084_v19, 0.0 }
 0x663   :  { %8960 = vrsqrt.f32 %v1085_v37  ;;  %v1080_v47 = vmul.f32 %v9724_v40, %v9724_v40  ;;  %v7802_v51 = vpop.f32.mrb[49].mxu0  ;;  %vm1096_vm0 = vcmp.eq.f32.partialorder %v1085_v37, inf  ;;  %v1099_v45 = vand.u32 2147483648, %v1085_v37 }
 0x664   :  { %v1066_v54 = vpop.f32.mrb[50].mxu0  ;;  %vm1098_vm9 = vcmp.eq.f32.partialorder %v1085_v37, 0.0 }
 0x665   :  { %v1083_v61 = vadd.f32 %v1080_v47, %v1077_v56  ;;  %v7803_v8 = vpop.f32.mrb[51].mxu0  ;;  %v9736_v56 = vpop.permute.xlu1 %1115  ;;  %v1141_v47 = vsel %vm737_vm12, %v9558_v30, %v9740_v9 }
 0x666   :  { %v1143_v25 = vsel %vm737_vm12, %v9565_v43, %v9736_v56  ;;  %v1251_v43 = vpack.c.bf16 %v9724_v40, %v9724_v40 }
 0x667   :  { %v1086_v21 = vmax.f32 %v1083_v61, 1e-08  ;;  %v1144_v61 = vsel %vm741_vm14, %v1141_v47, %v8630_v18 }
 0x669   :  { %8962 = vrsqrt.f32 %v1086_v21  ;;  %vm1103_vm11 = vcmp.eq.f32.partialorder %v1086_v21, inf  ;;  %v1106_v4 = vand.u32 2147483648, %v1086_v21  ;;  %vm1105_vm13 = vcmp.eq.f32.partialorder %v1086_v21, 0.0 }
 0x66b   :  { %v8959_v29 = vpop.eup %8958 }
 0x66c   :  { %v1088_v35 = vmul.f32 %v8959_v29, %v1084_v19 }
 0x66d   :  { %v8961_v22 = vpop.eup %8960 }
 0x66e   :  { %v1090_v24 = vsel %vm1089_vm15, %v1084_v19, %v1088_v35  ;;  %v1095_v41 = vmul.f32 %v8961_v22, %v1085_v37  ;;  %v1125_v19 = vpop.permute.xlu1 %1124  ;;  %vm11598_vm15 = vcmask 326656  }
 0x66f   :  { %v1093_v52 = vsel %vm1091_vm8, %v1092_v44, %v1090_v24  ;;  %v1146_v30 = vsel %vm741_vm14, %v1143_v25, %v1125_v19 }
 0x670   :  { %v1097_v46 = vsel %vm1096_vm0, %v1085_v37, %v1095_v41  ;;  %v1142_v37 = vsel %vm737_vm12, %v9560_v33, %v9738_v14  ;;  %vm11597_vm0 = vcmask 408576  }
 0x671   :  { %v1100_v53 = vsel %vm1098_vm9, %v1099_v45, %v1097_v46  ;;  %v1145_v8 = vsel %vm741_vm14, %v1142_v37, %v8631_v16 }
 0x672   :  { %v8632_v57 = vpack.i.bf16 %v1100_v53, %v1093_v52 }
 0x673   :  { %v8963_v63 = vpop.eup %8962 }
 0x674   :  { %8633 = vrot.lane.b32.xlu0 %v8632_v57, %s9226_s25  ;;  %v1102_v0 = vmul.f32 %v8963_v63, %v1086_v21 }
 0x676   :  { %v1104_v5 = vsel %vm1103_vm11, %v1086_v21, %v1102_v0  ;;  %v8883_v21 = vld [vmem:[%s11592_s8 + $0x58] sm:$0x1f]  }
 0x677   :  { %v1107_v7 = vsel %vm1105_vm13, %v1106_v4, %v1104_v5  ;;  %v1275_v41 = vsel %vm210_vm6, %v8883_v21, 0 }
 0x678   :  { %1136 = vrot.lane.b32.xlu1 %v1107_v7, %s9226_s25 }
 0x6e6   :  { %v8634_v20 = vpop.permute.xlu0 %8633 }
 0x6e7   :  { %v8636_v51 = vunpack.i.h.bf16 %v8634_v20  ;;  %v8635_v54 = vunpack.i.l.bf16 %v8634_v20 }
 0x6e9   :  { %v1148_v33 = vsel %vm11598_vm15, %v1144_v61, %v8635_v54  ;;  %v1149_v29 = vsel %vm11598_vm15, %v1145_v8, %v8636_v51 }
 0x6ea   :  { %v1137_v32 = vpop.permute.xlu1 %1136  ;;  %v1151_v35 = vpack.c.bf16 %v1149_v29, %v1148_v33 }
 0x6eb   :  { %v1150_v22 = vsel %vm11598_vm15, %v1146_v30, %v1137_v32 }
 0x6ec   :  { %v1152_v24 = vpack.c.bf16 %v1150_v22, %v1150_v22  ;;  %7812 = vmatprep.mubr.msk.bf16.mxu1 %vm11597_vm0, %v1151_v35 }
 0x6ee   :  { %7813 = vmatmul.mubr.msk.bf16.vlgmr.msra.gmra.mrb[36].mxu1 %vm11597_vm0, %v1152_v24 }
 0x6ef   :  { %7817 = vmatpush3.bf16.msra.mxu1 %v1275_v41  ;;  %7818 = vmatprep.mubr.msk.bf16.mxu1 %vm9215_vm7, %v9214_v36 }
 0x6f6   :  { %7819 = vmatmul.mubr.msk.bf16.vlgmr.msra.gmra.mrb[40].mxu1 %vm206_vm10, %v1247_v39 }
 0x6f7   :  { %7822 = vmatprep.mubr.msk.bf16.mxu1 %vm9215_vm7, %v9214_v36 }
 0x6fe   :  { %7823 = vmatmul.mubr.msk.bf16.gmra.mrb[44].mxu1 %vm206_vm10, %v1248_v50 }
 0x6ff   :  { %7826 = vmatprep.mubr.msk.bf16.mxu1 %vm9215_vm7, %v9214_v36 }
 0x706   :  { %7827 = vmatmul.mubr.msk.bf16.gmra.mrb[48].mxu1 %vm206_vm10, %v1249_v11 }
 0x707   :  { %7830 = vmatprep.mubr.msk.bf16.mxu1 %vm9215_vm7, %v9214_v36 }
 0x70e   :  { %7831 = vmatmul.mubr.msk.bf16.gmra.mrb[52].mxu1 %vm206_vm10, %v1250_v17 }
 0x70f   :  { %7834 = vmatprep.mubr.msk.bf16.mxu1 %vm9215_vm7, %v9214_v36 }
 0x716   :  { %7835 = vmatmul.mubr.msk.bf16.gmra.mrb[56].mxu1 %vm206_vm10, %v1251_v43 }
 0x7c1   :  { %v9797_v39 = vpop.f32.mrb[36].mxu1 }
 0x7c2   :  { %v9799_v42 = vpop.f32.mrb[37].mxu1 }
 0x7c3   :  { %v7815_v10 = vpop.f32.mrb[38].mxu1 }
 0x7c4   :  { %v9801_v50 = vpop.f32.mrb[39].mxu1 }
 0x7c9   :  { %v9803_v55 = vpop.f32.mrb[40].mxu1 }
 0x7ca   :  { %v7820_v3 = vpop.f32.mrb[41].mxu1  ;;  %v1349_v44 = vmul.f32 %v9803_v55, %v9803_v55 }
 0x7cb   :  { %v9805_v11 = vpop.f32.mrb[42].mxu1 }
 0x7cc   :  { %v7821_v2 = vpop.f32.mrb[43].mxu1  ;;  %v1350_v57 = vmul.f32 %v9805_v11, %v9805_v11 }
 0x7d1   :  { %v9807_v58 = vpop.f32.mrb[44].mxu1 }
 0x7d2   :  { %v7824_v17 = vpop.f32.mrb[45].mxu1  ;;  %v1351_v5 = vmul.f32 %v9807_v58, %v9807_v58 }
 0x7d3   :  { %v9809_v40 = vpop.f32.mrb[46].mxu1 }
 0x7d4   :  { %v1352_v45 = vmul.f32 %v9809_v40, %v9809_v40  ;;  %v7825_v46 = vpop.f32.mrb[47].mxu1 }
 0x7d6   :  { %v1355_v52 = vadd.f32 %v1352_v45, %v1349_v44 }
 0x7d9   :  { %v9815_v53 = vpop.f32.mrb[48].mxu1 }
 0x7da   :  { %v1353_v63 = vmul.f32 %v9815_v53, %v9815_v53  ;;  %v7828_v0 = vpop.f32.mrb[49].mxu1 }
 0x7db   :  { %v9821_v4 = vpop.f32.mrb[50].mxu1 }
 0x7dc   :  { %v1356_v7 = vadd.f32 %v1353_v63, %v1350_v57  ;;  %v1354_v13 = vmul.f32 %v9821_v4, %v9821_v4  ;;  %v7829_v6 = vpop.f32.mrb[51].mxu1 }
 0x7de   :  { %v1357_v16 = vadd.f32 %v1354_v13, %v1351_v5 }
 0x7e1   :  { %v1335_v18 = vpop.f32.mrb[52].mxu1 }
 0x7e2   :  { %v1358_v19 = vmul.f32 %v1335_v18, %v1335_v18  ;;  %v7832_v20 = vpop.f32.mrb[53].mxu1 }
 0x7e3   :  { %v1338_v37 = vpop.f32.mrb[54].mxu1 }
 0x7e4   :  { %v1361_v47 = vadd.f32 %v1358_v19, %v1355_v52  ;;  %v1359_v51 = vmul.f32 %v1338_v37, %v1338_v37  ;;  %v7833_v54 = vpop.f32.mrb[55].mxu1 }
 0x7e6   :  { %v1364_v61 = vmax.f32 %v1361_v47, 1e-08  ;;  %v1362_v8 = vadd.f32 %v1359_v51, %v1356_v7 }
 0x7e8   :  { %8964 = vrsqrt.f32 %v1364_v61  ;;  %v1365_v21 = vmax.f32 %v1362_v8, 1e-08  ;;  %vm1369_vm8 = vcmp.eq.f32.partialorder %v1364_v61, inf  ;;  %v1372_v43 = vand.u32 2147483648, %v1364_v61 }
 0x7e9   :  { %v1343_v25 = vpop.f32.mrb[56].mxu1  ;;  %vm1371_vm9 = vcmp.eq.f32.partialorder %v1364_v61, 0.0 }
 0x7ea   :  { %v1360_v33 = vmul.f32 %v1343_v25, %v1343_v25  ;;  %v7836_v29 = vpop.f32.mrb[57].mxu1  ;;  %8966 = vrsqrt.f32 %v1365_v21  ;;  %vm1376_vm11 = vcmp.eq.f32.partialorder %v1365_v21, inf  ;;  %v1379_v17 = vand.u32 2147483648, %v1365_v21 }
 0x7eb   :  { %v1346_v30 = vpop.f32.mrb[58].mxu1  ;;  %vm1378_vm13 = vcmp.eq.f32.partialorder %v1365_v21, 0.0 }
 0x7ec   :  { %v1363_v32 = vadd.f32 %v1360_v33, %v1357_v16  ;;  %v7837_v35 = vpop.f32.mrb[59].mxu1 }
 0x7ee   :  { %v1366_v22 = vmax.f32 %v1363_v32, 1e-08 }
 0x7f0   :  { %8968 = vrsqrt.f32 %v1366_v22  ;;  %vm1383_vm0 = vcmp.eq.f32.partialorder %v1366_v22, inf  ;;  %v1386_v63 = vand.u32 2147483648, %v1366_v22  ;;  %vm1385_vm15 = vcmp.eq.f32.partialorder %v1366_v22, 0.0 }
 0x7f2   :  { %v8965_v24 = vpop.eup %8964 }
 0x7f3   :  { %v1368_v41 = vmul.f32 %v8965_v24, %v1364_v61 }
 0x7f4   :  { %v8967_v23 = vpop.eup %8966 }
 0x7f5   :  { %v1370_v38 = vsel %vm1369_vm8, %v1364_v61, %v1368_v41  ;;  %v1375_v3 = vmul.f32 %v8967_v23, %v1365_v21 }
 0x7f6   :  { %v1373_v10 = vsel %vm1371_vm9, %v1372_v43, %v1370_v38 }
 0x7f7   :  { %v7189_v2 = vmul.f32 -1.442695, %v1373_v10  ;;  %v1377_v44 = vsel %vm1376_vm11, %v1365_v21, %v1375_v3 }
 0x7f8   :  { %v1380_v45 = vsel %vm1378_vm13, %v1379_v17, %v1377_v44 }
 0x7f9   :  { %8970 = vpow2.f32 %v7189_v2  ;;  %v7190_v52 = vmul.f32 -1.442695, %v1380_v45 }
 0x7fa   :  { %v8969_v46 = vpop.eup %8968 }
 0x7fb   :  { %v1382_v57 = vmul.f32 %v8969_v46, %v1366_v22  ;;  %8972 = vpow2.f32 %v7190_v52 }
 0x7fd   :  { %v1384_v0 = vsel %vm1383_vm0, %v1366_v22, %v1382_v57 }
 0x7fe   :  { %v1387_v5 = vsel %vm1385_vm15, %v1386_v63, %v1384_v0 }
 0x7ff   :  { %v7191_v7 = vmul.f32 -1.442695, %v1387_v5 }
 0x801   :  { %8974 = vpow2.f32 %v7191_v7 }
 0x803   :  { %v8971_v13 = vpop.eup %8970 }
 0x804   :  { %v1397_v6 = vadd.f32 1.0, %v8971_v13 }
 0x805   :  { %v8973_v16 = vpop.eup %8972 }
 0x806   :  { %8976 = vrcp.f32 %v1397_v6  ;;  %v1398_v19 = vadd.f32 1.0, %v8973_v16 }
 0x808   :  { %8978 = vrcp.f32 %v1398_v19 }
 0x80b   :  { %v8975_v20 = vpop.eup %8974 }
 0x80c   :  { %v1399_v47 = vadd.f32 1.0, %v8975_v20 }
 0x80e   :  { %8980 = vrcp.f32 %v1399_v47 }
 0x810   :  { %v8977_v51 = vpop.eup %8976 }
 0x811   :  { %v1412_v54 = vmul.f32 %v8977_v51, %v1335_v18  ;;  %v1406_v61 = vmul.f32 %v8977_v51, %v9803_v55  ;;  %v1409_v8 = vmul.f32 %v8977_v51, %v9809_v40 }
 0x812   :  { %v8979_v21 = vpop.eup %8978 }
 0x813   :  { %v1413_v33 = vmul.f32 %v8979_v21, %v1338_v37  ;;  %v1407_v29 = vmul.f32 %v8979_v21, %v9805_v11  ;;  %v1410_v30 = vmul.f32 %v8979_v21, %v9815_v53 }
 0x815   :  { %v1424_v32 = vpack.c.bf16 %v1413_v33, %v1412_v54  ;;  %v1421_v35 = vpack.c.bf16 %v1407_v29, %v1406_v61 }
 0x817   :  { %7841 = vmatmul.mubr.msk.bf16.vlgmr.msra.gmra.mrb[52].mxu0 %vm256_vm5, %v1421_v35 }
 0x818   :  { %v8981_v22 = vpop.eup %8980  ;;  %7844 = vmatprep.mubr.msk.bf16.mxu0 %vm9215_vm7, %v9214_v36 }
 0x819   :  { %v1414_v24 = vmul.f32 %v8981_v22, %v1343_v25  ;;  %v1408_v18 = vmul.f32 %v8981_v22, %v9807_v58  ;;  %v1411_v55 = vmul.f32 %v8981_v22, %v9821_v4  ;;  %v8884_v58 = vld [vmem:[%s11592_s8 + $0x68] sm:$0xff]  }
 0x81a   :  { %7860 = vmatprep.subr.bf16.mxu1 %v8884_v58 }
 0x81b   :  { %v1422_v40 = vpack.c.bf16 %v1409_v8, %v1408_v18  ;;  %v1423_v41 = vpack.c.bf16 %v1411_v55, %v1410_v30  ;;  %v1425_v11 = vpack.c.bf16 %v1414_v24, %v1414_v24  ;;  %7861 = vmatpush3.bf16.msra.mxu1 %v8884_v58 }
 0x81f   :  { %7845 = vmatmul.mubr.msk.bf16.gmra.mrb[56].mxu0 %vm256_vm5, %v1422_v40 }
 0x820   :  { %7848 = vmatprep.mubr.msk.bf16.mxu0 %vm9215_vm7, %v9214_v36 }
 0x827   :  { %7849 = vmatmul.mubr.msk.bf16.gmra.mrb[60].mxu0 %vm256_vm5, %v1423_v41 }
 0x828   :  { %7852 = vmatprep.mubr.msk.bf16.mxu0 %vm9215_vm7, %v9214_v36 }
 0x82f   :  { %7853 = vmatmul.mubr.msk.bf16.gmra.mrb[64].mxu0 %vm256_vm5, %v1424_v32 }
 0x830   :  { %7856 = vmatprep.mubr.msk.bf16.mxu0 %vm9215_vm7, %v9214_v36 }
 0x837   :  { %7857 = vmatmul.mubr.msk.bf16.gmra.mrb[68].mxu0 %vm256_vm5, %v1425_v11  ;;  %v8885_v11 = vld [vmem:[%s11592_s8 + $0x70] ss:$0 sps:$4 sm:$0x33]  }
 0x838   :  { %7892 = vmatprep.mubr.msk.bf16.mxu0 %vm9215_vm7, %v9214_v36  ;;  %8488 = vmatprep.subr.msk.bf16.mxu1 %vm124_vm3, %v8885_v11 }
 0x8ea   :  { %v9851_v53 = vpop.f32.mrb[52].mxu0 }
 0x8eb   :  { %v7842_v4 = vpop.f32.mrb[53].mxu0  ;;  %v1516_v3 = vmul.f32 %v9851_v53, %v9851_v53 }
 0x8ec   :  { %v9853_v37 = vpop.f32.mrb[54].mxu0  ;;  %v1592_v4 = vsel %vm124_vm3, %v8885_v11, 0 }
 0x8ed   :  { %v1645_v25 = vpack.c.bf16 %v9853_v37, %v9851_v53  ;;  %v7843_v43 = vpop.f32.mrb[55].mxu0  ;;  %v1517_v52 = vmul.f32 %v9853_v37, %v9853_v37  ;;  %7863 = vmatpush3.bf16.msra.mxu1 %v1592_v4  ;;  %v1806_v37 = vld [vmem:[%s11592_s8 + $0x80] sm:$0x3] }
 0x8ee   :  { %7868 = vmatprep.subr.bf16.mxu1 %v9214_v36 }
 0x8f2   :  { %v9857_v23 = vpop.f32.mrb[56].mxu0 }
 0x8f3   :  { %v7846_v38 = vpop.f32.mrb[57].mxu0  ;;  %v1518_v5 = vmul.f32 %v9857_v23, %v9857_v23 }
 0x8f4   :  { %v9859_v10 = vpop.f32.mrb[58].mxu0 }
 0x8f5   :  { %v1519_v2 = vmul.f32 %v9859_v10, %v9859_v10  ;;  %v1646_v17 = vpack.c.bf16 %v9859_v10, %v9857_v23  ;;  %v7847_v44 = vpop.f32.mrb[59].mxu0 }
 0x8f7   :  { %v1522_v45 = vadd.f32 %v1519_v2, %v1516_v3 }
 0x8fa   :  { %v9867_v46 = vpop.f32.mrb[60].mxu0 }
 0x8fb   :  { %v1520_v57 = vmul.f32 %v9867_v46, %v9867_v46  ;;  %v7850_v63 = vpop.f32.mrb[61].mxu0 }
 0x8fc   :  { %v9873_v0 = vpop.f32.mrb[62].mxu0 }
 0x8fd   :  { %v1523_v7 = vadd.f32 %v1520_v57, %v1517_v52  ;;  %v1521_v13 = vmul.f32 %v9873_v0, %v9873_v0  ;;  %v1647_v6 = vpack.c.bf16 %v9873_v0, %v9867_v46  ;;  %v7851_v16 = vpop.f32.mrb[63].mxu0 }
 0x8ff   :  { %v1524_v19 = vadd.f32 %v1521_v13, %v1518_v5 }
 0x902   :  { %v9881_v20 = vpop.f32.mrb[64].mxu0 }
 0x903   :  { %v1525_v47 = vmul.f32 %v9881_v20, %v9881_v20  ;;  %v7854_v51 = vpop.f32.mrb[65].mxu0 }
 0x904   :  { %v9885_v54 = vpop.f32.mrb[66].mxu0  ;;  %v7176_v51 = vld [vmem:[%s11593_s9 + $0x6] ss:$0 sm:$0xff] }
 0x905   :  { %v1528_v61 = vadd.f32 %v1525_v47, %v1522_v45  ;;  %v1526_v8 = vmul.f32 %v9885_v54, %v9885_v54  ;;  %v1648_v21 = vpack.c.bf16 %v9885_v54, %v9881_v20  ;;  %v7855_v33 = vpop.f32.mrb[67].mxu0 }
 0x906   :  { %v1239_v33 = vadd.f32 %v9797_v39, %v7176_v51 }
 0x907   :  { %v1531_v29 = vmax.f32 %v1528_v61, 1e-08  ;;  %v1529_v30 = vadd.f32 %v1526_v8, %v1523_v7  ;;  %v1231_v61 = vadd.f32 %v7176_v51, %v9799_v42  ;;  %v1234_v8 = vadd.f32 %v7176_v51, %v9801_v50 }
 0x909   :  { %8982 = vrsqrt.f32 %v1531_v29  ;;  %v1532_v32 = vmax.f32 %v1529_v30, 1e-08  ;;  %vm1536_vm15 = vcmp.eq.f32.partialorder %v1531_v29, inf  ;;  %v1539_v44 = vand.u32 2147483648, %v1531_v29 }
 0x90a   :  { %v9891_v35 = vpop.f32.mrb[68].mxu0  ;;  %vm1538_vm8 = vcmp.eq.f32.partialorder %v1531_v29, 0.0  ;;  %v1244_v30 = vmax.f32 %v1231_v61, 0.0 }
 0x90b   :  { %8984 = vrsqrt.f32 %v1532_v32  ;;  %v1527_v22 = vmul.f32 %v9891_v35, %v9891_v35  ;;  %v7858_v24 = vpop.f32.mrb[69].mxu0  ;;  %vm1543_vm0 = vcmp.eq.f32.partialorder %v1532_v32, inf  ;;  %v1546_v45 = vand.u32 2147483648, %v1532_v32 }
 0x90c   :  { %v1513_v18 = vpop.f32.mrb[70].mxu0  ;;  %vm1545_vm9 = vcmp.eq.f32.partialorder %v1532_v32, 0.0  ;;  %v1649_v53 = vpack.c.bf16 %v9891_v35, %v9891_v35 }
 0x90d   :  { %v1530_v55 = vadd.f32 %v1527_v22, %v1524_v19  ;;  %v7859_v40 = vpop.f32.mrb[71].mxu0  ;;  %v1246_v18 = vmax.f32 %v1239_v33, 0.0 }
 0x90f   :  { %v1533_v41 = vmax.f32 %v1530_v55, 1e-08 }
 0x911   :  { %8986 = vrsqrt.f32 %v1533_v41  ;;  %vm1550_vm11 = vcmp.eq.f32.partialorder %v1533_v41, inf  ;;  %v1553_v16 = vand.u32 2147483648, %v1533_v41  ;;  %vm1552_vm13 = vcmp.eq.f32.partialorder %v1533_v41, 0.0 }
 0x913   :  { %v8983_v58 = vpop.eup %8982 }
 0x914   :  { %v1535_v43 = vmul.f32 %v8983_v58, %v1531_v29 }
 0x915   :  { %v8985_v38 = vpop.eup %8984 }
 0x916   :  { %v1537_v3 = vsel %vm1536_vm15, %v1531_v29, %v1535_v43  ;;  %v1542_v2 = vmul.f32 %v8985_v38, %v1532_v32  ;;  %vm11601_vm15 = vcmask 162816  }
 0x917   :  { %v1540_v57 = vsel %vm1538_vm8, %v1539_v44, %v1537_v3 }
 0x918   :  { %v1544_v52 = vsel %vm1543_vm0, %v1532_v32, %v1542_v2  ;;  %v1245_v32 = vmax.f32 %v1234_v8, 0.0  ;;  %vm11602_vm0 = vmmov %vm11601_vm15 }
 0x919   :  { %v1547_v63 = vsel %vm1545_vm9, %v1546_v45, %v1544_v52 }
 0x91a   :  { %v8637_v5 = vpack.i.bf16 %v1547_v63, %v1540_v57 }
 0x91b   :  { %v8987_v7 = vpop.eup %8986 }
 0x91c   :  { %8638 = vrot.lane.b32.xlu0 %v8637_v5, %s9219_s14  ;;  %v1549_v13 = vmul.f32 %v8987_v7, %v1533_v41 }
 0x91e   :  { %v1551_v19 = vsel %vm1550_vm11, %v1533_v41, %v1549_v13  ;;  %v1420_v41 = vld [vmem:[%s11592_s8 + $0x78] sm:$0x3] }
 0x91f   :  { %v1554_v47 = vsel %vm1552_vm13, %v1553_v16, %v1551_v19  ;;  %v1666_v39 = vsel %vm124_vm3, %v1420_v41, 0 }
 0x920   :  { %1562 = vrot.lane.b32.xlu1 %v1554_v47, %s9219_s14 }
 0x98e   :  { %v8639_v29 = vpop.permute.xlu0 %8638 }
 0x98f   :  { %v8641_v22 = vunpack.i.h.bf16 %v8639_v29  ;;  %v8640_v24 = vunpack.i.l.bf16 %v8639_v29 }
 0x991   :  { %v1567_v55 = vsel %vm737_vm12, %v1244_v30, %v8640_v24  ;;  %v1568_v40 = vsel %vm737_vm12, %v1245_v32, %v8641_v22 }
 0x992   :  { %v1563_v11 = vpop.permute.xlu1 %1562  ;;  %v1570_v42 = vpack.c.bf16 %v1568_v40, %v1567_v55 }
 0x993   :  { %v1569_v50 = vsel %vm737_vm12, %v1246_v18, %v1563_v11 }
 0x994   :  { %v1571_v58 = vpack.c.bf16 %v1569_v50, %v1569_v50  ;;  %7864 = vmatprep.mubr.msk.bf16.mxu1 %vm11601_vm15, %v1570_v42 }
 0x996   :  { %7865 = vmatmul.mubr.msk.bf16.vlgmr.msra.gmra.mrb[60].mxu1 %vm11602_vm0, %v1571_v58 }
 0x997   :  { %7869 = vmatpush3.bf16.msra.mxu1 %v1666_v39  ;;  %7870 = vmatprep.mubr.msk.bf16.mxu1 %vm9215_vm7, %v9214_v36 }
 0x99e   :  { %7871 = vmatmul.mubr.msk.bf16.vlgmr.msra.gmra.mrb[64].mxu1 %vm256_vm5, %v1645_v25  ;;  %v1833_v25 = vsel %vm124_vm3, %v1806_v37, 0 }
 0x99f   :  { %7874 = vmatprep.mubr.msk.bf16.mxu1 %vm9215_vm7, %v9214_v36  ;;  %7891 = vmatpush3.bf16.msra.mxu0 %v1833_v25 }
 0x9a0   :  { %7942 = vmatprep.subr.bf16.mxu0 %v9214_v36 }
 0x9a6   :  { %7875 = vmatmul.mubr.msk.bf16.gmra.mrb[68].mxu1 %vm256_vm5, %v1646_v17 }
 0x9a7   :  { %7878 = vmatprep.mubr.msk.bf16.mxu1 %vm9215_vm7, %v9214_v36 }
 0x9ae   :  { %7879 = vmatmul.mubr.msk.bf16.gmra.mrb[72].mxu1 %vm256_vm5, %v1647_v6 }
 0x9af   :  { %7882 = vmatprep.mubr.msk.bf16.mxu1 %vm9215_vm7, %v9214_v36 }
 0x9b6   :  { %7883 = vmatmul.mubr.msk.bf16.gmra.mrb[76].mxu1 %vm256_vm5, %v1648_v21 }
 0x9b7   :  { %7886 = vmatprep.mubr.msk.bf16.mxu1 %vm9215_vm7, %v9214_v36 }
 0x9be   :  { %7887 = vmatmul.mubr.msk.bf16.gmra.mrb[80].mxu1 %vm256_vm5, %v1649_v53 }
 0xa69   :  { %v9952_v23 = vpop.f32.mrb[60].mxu1 }
 0xa6a   :  { %v9954_v10 = vpop.f32.mrb[61].mxu1 }
 0xa6b   :  { %v7867_v17 = vpop.f32.mrb[62].mxu1 }
 0xa6c   :  { %v9956_v46 = vpop.f32.mrb[63].mxu1 }
 0xa71   :  { %v9958_v0 = vpop.f32.mrb[64].mxu1 }
 0xa72   :  { %v7872_v6 = vpop.f32.mrb[65].mxu1  ;;  %v1740_v43 = vmul.f32 %v9958_v0, %v9958_v0 }
 0xa73   :  { %v9960_v20 = vpop.f32.mrb[66].mxu1 }
 0xa74   :  { %v7873_v54 = vpop.f32.mrb[67].mxu1  ;;  %v1741_v45 = vmul.f32 %v9960_v20, %v9960_v20 }
 0xa79   :  { %v9962_v21 = vpop.f32.mrb[68].mxu1 }
 0xa7a   :  { %v7876_v35 = vpop.f32.mrb[69].mxu1  ;;  %v1742_v5 = vmul.f32 %v9962_v21, %v9962_v21 }
 0xa7b   :  { %v9964_v4 = vpop.f32.mrb[70].mxu1 }
 0xa7c   :  { %v1743_v38 = vmul.f32 %v9964_v4, %v9964_v4  ;;  %v7877_v3 = vpop.f32.mrb[71].mxu1 }
 0xa7e   :  { %v1746_v2 = vadd.f32 %v1743_v38, %v1740_v43 }
 0xa81   :  { %v9970_v44 = vpop.f32.mrb[72].mxu1 }
 0xa82   :  { %v1744_v52 = vmul.f32 %v9970_v44, %v9970_v44  ;;  %v7880_v57 = vpop.f32.mrb[73].mxu1 }
 0xa83   :  { %v9976_v63 = vpop.f32.mrb[74].mxu1 }
 0xa84   :  { %v1747_v7 = vadd.f32 %v1744_v52, %v1741_v45  ;;  %v1745_v13 = vmul.f32 %v9976_v63, %v9976_v63  ;;  %v7881_v16 = vpop.f32.mrb[75].mxu1 }
 0xa86   :  { %v1748_v19 = vadd.f32 %v1745_v13, %v1742_v5 }
 0xa89   :  { %v1726_v47 = vpop.f32.mrb[76].mxu1 }
 0xa8a   :  { %v1749_v51 = vmul.f32 %v1726_v47, %v1726_v47  ;;  %v7884_v61 = vpop.f32.mrb[77].mxu1 }
 0xa8b   :  { %v1729_v8 = vpop.f32.mrb[78].mxu1 }
 0xa8c   :  { %v1752_v33 = vadd.f32 %v1749_v51, %v1746_v2  ;;  %v1750_v29 = vmul.f32 %v1729_v8, %v1729_v8  ;;  %v7885_v30 = vpop.f32.mrb[79].mxu1 }
 0xa8e   :  { %v1755_v32 = vmax.f32 %v1752_v33, 1e-08  ;;  %v1753_v22 = vadd.f32 %v1750_v29, %v1747_v7 }
 0xa90   :  { %8988 = vrsqrt.f32 %v1755_v32  ;;  %v1756_v24 = vmax.f32 %v1753_v22, 1e-08  ;;  %vm1760_vm8 = vcmp.eq.f32.partialorder %v1755_v32, inf  ;;  %v1763_v53 = vand.u32 2147483648, %v1755_v32 }
 0xa91   :  { %v1734_v18 = vpop.f32.mrb[80].mxu1  ;;  %vm1762_vm9 = vcmp.eq.f32.partialorder %v1755_v32, 0.0 }
 0xa92   :  { %v1751_v55 = vmul.f32 %v1734_v18, %v1734_v18  ;;  %v7888_v40 = vpop.f32.mrb[81].mxu1  ;;  %8990 = vrsqrt.f32 %v1756_v24  ;;  %vm1767_vm11 = vcmp.eq.f32.partialorder %v1756_v24, inf  ;;  %v1770_v35 = vand.u32 2147483648, %v1756_v24 }
 0xa93   :  { %v1737_v41 = vpop.f32.mrb[82].mxu1  ;;  %vm1769_vm13 = vcmp.eq.f32.partialorder %v1756_v24, 0.0 }
 0xa94   :  { %v1754_v11 = vadd.f32 %v1751_v55, %v1748_v19  ;;  %v7889_v42 = vpop.f32.mrb[83].mxu1 }
 0xa96   :  { %v1757_v50 = vmax.f32 %v1754_v11, 1e-08 }
 0xa98   :  { %8992 = vrsqrt.f32 %v1757_v50  ;;  %vm1774_vm15 = vcmp.eq.f32.partialorder %v1757_v50, inf  ;;  %v1777_v52 = vand.u32 2147483648, %v1757_v50  ;;  %vm1776_vm0 = vcmp.eq.f32.partialorder %v1757_v50, 0.0 }
 0xa9a   :  { %v8989_v58 = vpop.eup %8988 }
 0xa9b   :  { %v1759_v39 = vmul.f32 %v8989_v58, %v1755_v32 }
 0xa9c   :  { %v8991_v37 = vpop.eup %8990 }
 0xa9d   :  { %v1761_v25 = vsel %vm1760_vm8, %v1755_v32, %v1759_v39  ;;  %v1766_v6 = vmul.f32 %v8991_v37, %v1756_v24 }
 0xa9e   :  { %v1764_v17 = vsel %vm1762_vm9, %v1763_v53, %v1761_v25 }
 0xa9f   :  { %v7207_v54 = vmul.f32 -1.442695, %v1764_v17  ;;  %v1768_v43 = vsel %vm1767_vm11, %v1756_v24, %v1766_v6 }
 0xaa0   :  { %v1771_v38 = vsel %vm1769_vm13, %v1770_v35, %v1768_v43 }
 0xaa1   :  { %8994 = vpow2.f32 %v7207_v54  ;;  %v7208_v2 = vmul.f32 -1.442695, %v1771_v38 }
 0xaa2   :  { %v8993_v3 = vpop.eup %8992 }
 0xaa3   :  { %v1773_v45 = vmul.f32 %v8993_v3, %v1757_v50  ;;  %8996 = vpow2.f32 %v7208_v2 }
 0xaa5   :  { %v1775_v57 = vsel %vm1774_vm15, %v1757_v50, %v1773_v45 }
 0xaa6   :  { %v1778_v5 = vsel %vm1776_vm0, %v1777_v52, %v1775_v57 }
 0xaa7   :  { %v7209_v7 = vmul.f32 -1.442695, %v1778_v5 }
 0xaa9   :  { %8998 = vpow2.f32 %v7209_v7 }
 0xaab   :  { %v8995_v13 = vpop.eup %8994 }
 0xaac   :  { %v1788_v16 = vadd.f32 1.0, %v8995_v13 }
 0xaad   :  { %v8997_v19 = vpop.eup %8996 }
 0xaae   :  { %9000 = vrcp.f32 %v1788_v16  ;;  %v1789_v51 = vadd.f32 1.0, %v8997_v19 }
 0xab0   :  { %9002 = vrcp.f32 %v1789_v51 }
 0xab3   :  { %v8999_v61 = vpop.eup %8998 }
 0xab4   :  { %v1790_v33 = vadd.f32 1.0, %v8999_v61 }
 0xab6   :  { %9004 = vrcp.f32 %v1790_v33 }
 0xab8   :  { %v9001_v29 = vpop.eup %9000 }
 0xab9   :  { %v1803_v30 = vmul.f32 %v9001_v29, %v1726_v47  ;;  %v1797_v32 = vmul.f32 %v9001_v29, %v9958_v0  ;;  %v1800_v22 = vmul.f32 %v9001_v29, %v9964_v4 }
 0xaba   :  { %v9003_v24 = vpop.eup %9002 }
 0xabb   :  { %v1804_v55 = vmul.f32 %v9003_v24, %v1729_v8  ;;  %v1798_v40 = vmul.f32 %v9003_v24, %v9960_v20  ;;  %v1801_v41 = vmul.f32 %v9003_v24, %v9970_v44 }
 0xabd   :  { %v1815_v11 = vpack.c.bf16 %v1804_v55, %v1803_v30  ;;  %v1812_v42 = vpack.c.bf16 %v1798_v40, %v1797_v32 }
 0xabf   :  { %7893 = vmatmul.mubr.msk.bf16.vlgmr.msra.gmra.mrb[72].mxu0 %vm256_vm5, %v1812_v42 }
 0xac0   :  { %v9005_v50 = vpop.eup %9004  ;;  %7896 = vmatprep.mubr.msk.bf16.mxu0 %vm9215_vm7, %v9214_v36 }
 0xac1   :  { %v1805_v58 = vmul.f32 %v9005_v50, %v1734_v18  ;;  %v1799_v47 = vmul.f32 %v9005_v50, %v9962_v21  ;;  %v1802_v0 = vmul.f32 %v9005_v50, %v9976_v63  ;;  %v8886_v21 = vld [vmem:[%s11592_s8 + $0x88] sm:$0xff]  }
 0xac2   :  { %7912 = vmatprep.subr.bf16.mxu1 %v8886_v21 }
 0xac3   :  { %v1813_v4 = vpack.c.bf16 %v1800_v22, %v1799_v47  ;;  %v1814_v39 = vpack.c.bf16 %v1802_v0, %v1801_v41  ;;  %v1816_v20 = vpack.c.bf16 %v1805_v58, %v1805_v58  ;;  %7913 = vmatpush3.bf16.msra.mxu1 %v8886_v21 }
 0xac7   :  { %7897 = vmatmul.mubr.msk.bf16.gmra.mrb[76].mxu0 %vm256_vm5, %v1813_v4 }
 0xac8   :  { %7900 = vmatprep.mubr.msk.bf16.mxu0 %vm9215_vm7, %v9214_v36 }
 0xacf   :  { %7901 = vmatmul.mubr.msk.bf16.gmra.mrb[80].mxu0 %vm256_vm5, %v1814_v39 }
 0xad0   :  { %7904 = vmatprep.mubr.msk.bf16.mxu0 %vm9215_vm7, %v9214_v36 }
 0xad7   :  { %7905 = vmatmul.mubr.msk.bf16.gmra.mrb[84].mxu0 %vm256_vm5, %v1815_v11 }
 0xad8   :  { %7908 = vmatprep.mubr.msk.bf16.mxu0 %vm9215_vm7, %v9214_v36 }
 0xadf   :  { %7909 = vmatmul.mubr.msk.bf16.gmra.mrb[88].mxu0 %vm256_vm5, %v1816_v20  ;;  %v8887_v20 = vld [vmem:[%s11592_s8 + $0x90] ss:$0 sps:$4 sm:$0x33]  }
 0xae0   :  { %7946 = vmatprep.mubr.msk.bf16.mxu0 %vm9215_vm7, %v9214_v36  ;;  %8489 = vmatprep.subr.msk.bf16.mxu1 %vm124_vm3, %v8887_v20 }
 0xb92   :  { %v10006_v44 = vpop.f32.mrb[72].mxu0 }
 0xb93   :  { %v7894_v63 = vpop.f32.mrb[73].mxu0  ;;  %v1907_v6 = vmul.f32 %v10006_v44, %v10006_v44 }
 0xb94   :  { %v10008_v8 = vpop.f32.mrb[74].mxu0  ;;  %v1983_v63 = vsel %vm124_vm3, %v8887_v20, 0 }
 0xb95   :  { %v2033_v18 = vpack.c.bf16 %v10008_v8, %v10006_v44  ;;  %v7895_v53 = vpop.f32.mrb[75].mxu0  ;;  %v1908_v2 = vmul.f32 %v10008_v8, %v10008_v8  ;;  %7915 = vmatpush3.bf16.msra.mxu1 %v1983_v63 }
 0xb96   :  { %7920 = vmatprep.subr.bf16.mxu1 %v9214_v36 }
 0xb9a   :  { %v10012_v37 = vpop.f32.mrb[76].mxu0 }
 0xb9b   :  { %v7898_v25 = vpop.f32.mrb[77].mxu0  ;;  %v1909_v5 = vmul.f32 %v10012_v37, %v10012_v37 }
 0xb9c   :  { %v10014_v17 = vpop.f32.mrb[78].mxu0 }
 0xb9d   :  { %v1910_v54 = vmul.f32 %v10014_v17, %v10014_v17  ;;  %v2034_v35 = vpack.c.bf16 %v10014_v17, %v10012_v37  ;;  %v7899_v43 = vpop.f32.mrb[79].mxu0 }
 0xb9f   :  { %v1913_v38 = vadd.f32 %v1910_v54, %v1907_v6 }
 0xba2   :  { %v10022_v3 = vpop.f32.mrb[80].mxu0 }
 0xba3   :  { %v1911_v45 = vmul.f32 %v10022_v3, %v10022_v3  ;;  %v7902_v52 = vpop.f32.mrb[81].mxu0 }
 0xba4   :  { %v10028_v57 = vpop.f32.mrb[82].mxu0 }
 0xba5   :  { %v1914_v7 = vadd.f32 %v1911_v45, %v1908_v2  ;;  %v1912_v13 = vmul.f32 %v10028_v57, %v10028_v57  ;;  %v2035_v16 = vpack.c.bf16 %v10028_v57, %v10022_v3  ;;  %v7903_v19 = vpop.f32.mrb[83].mxu0 }
 0xba7   :  { %v1915_v51 = vadd.f32 %v1912_v13, %v1909_v5 }
 0xbaa   :  { %v10036_v61 = vpop.f32.mrb[84].mxu0 }
 0xbab   :  { %v1916_v33 = vmul.f32 %v10036_v61, %v10036_v61  ;;  %v7906_v29 = vpop.f32.mrb[85].mxu0 }
 0xbac   :  { %v10040_v30 = vpop.f32.mrb[86].mxu0  ;;  %v7197_v29 = vld [vmem:[%s11593_s9 + $0x7] ss:$0 sm:$0xff] }
 0xbad   :  { %v1919_v32 = vadd.f32 %v1916_v33, %v1913_v38  ;;  %v1917_v22 = vmul.f32 %v10040_v30, %v10040_v30  ;;  %v2036_v24 = vpack.c.bf16 %v10040_v30, %v10036_v61  ;;  %v7907_v55 = vpop.f32.mrb[87].mxu0 }
 0xbae   :  { %v1637_v55 = vadd.f32 %v9952_v23, %v7197_v29 }
 0xbaf   :  { %v1922_v40 = vmax.f32 %v1919_v32, 1e-08  ;;  %v1920_v41 = vadd.f32 %v1917_v22, %v1914_v7  ;;  %v1629_v32 = vadd.f32 %v7197_v29, %v9954_v10  ;;  %v1632_v22 = vadd.f32 %v7197_v29, %v9956_v46 }
 0xbb1   :  { %9006 = vrsqrt.f32 %v1922_v40  ;;  %v1923_v11 = vmax.f32 %v1920_v41, 1e-08  ;;  %vm1927_vm8 = vcmp.eq.f32.partialorder %v1922_v40, inf  ;;  %v1930_v43 = vand.u32 2147483648, %v1922_v40 }
 0xbb2   :  { %v10046_v42 = vpop.f32.mrb[88].mxu0  ;;  %vm1929_vm11 = vcmp.eq.f32.partialorder %v1922_v40, 0.0  ;;  %v1642_v41 = vmax.f32 %v1629_v32, 0.0 }
 0xbb3   :  { %9008 = vrsqrt.f32 %v1923_v11  ;;  %v1918_v50 = vmul.f32 %v10046_v42, %v10046_v42  ;;  %v7910_v58 = vpop.f32.mrb[89].mxu0  ;;  %vm1934_vm9 = vcmp.eq.f32.partialorder %v1923_v11, inf  ;;  %v1937_v38 = vand.u32 2147483648, %v1923_v11 }
 0xbb4   :  { %v1904_v47 = vpop.f32.mrb[90].mxu0  ;;  %vm1936_vm13 = vcmp.eq.f32.partialorder %v1923_v11, 0.0  ;;  %v2037_v44 = vpack.c.bf16 %v10046_v42, %v10046_v42 }
 0xbb5   :  { %v1921_v0 = vadd.f32 %v1918_v50, %v1915_v51  ;;  %v7911_v4 = vpop.f32.mrb[91].mxu0  ;;  %v1644_v47 = vmax.f32 %v1637_v55, 0.0  ;;  %v7215_v55 = vld [vmem:[%s11593_s9 + $0x8] ss:$0 sm:$0xff] }
 0xbb7   :  { %v1924_v39 = vmax.f32 %v1921_v0, 1e-08 }
 0xbb9   :  { %9010 = vrsqrt.f32 %v1924_v39  ;;  %vm1941_vm15 = vcmp.eq.f32.partialorder %v1924_v39, inf  ;;  %v1944_v19 = vand.u32 2147483648, %v1924_v39  ;;  %vm1943_vm0 = vcmp.eq.f32.partialorder %v1924_v39, 0.0 }
 0xbbb   :  { %v9007_v21 = vpop.eup %9006 }
 0xbbc   :  { %v1926_v53 = vmul.f32 %v9007_v21, %v1922_v40 }
 0xbbd   :  { %v9009_v25 = vpop.eup %9008 }
 0xbbe   :  { %v1928_v6 = vsel %vm1927_vm8, %v1922_v40, %v1926_v53  ;;  %v1933_v54 = vmul.f32 %v9009_v25, %v1923_v11  ;;  %vm11603_vm8 = vcmask 162816  }
 0xbbf   :  { %v1931_v45 = vsel %vm1929_vm11, %v1930_v43, %v1928_v6  ;;  %vm11605_vm11 = vmmov %vm11603_vm8 }
 0xbc0   :  { %v1935_v2 = vsel %vm1934_vm9, %v1923_v11, %v1933_v54  ;;  %v1643_v11 = vmax.f32 %v1632_v22, 0.0  ;;  %vm11604_vm9 = vmmov %vm11603_vm8 }
 0xbc1   :  { %v1938_v52 = vsel %vm1936_vm13, %v1937_v38, %v1935_v2  ;;  %vm11606_vm13 = vmmov %vm11603_vm8 }
 0xbc2   :  { %v8642_v5 = vpack.i.bf16 %v1938_v52, %v1931_v45 }
 0xbc3   :  { %v9011_v7 = vpop.eup %9010 }
 0xbc4   :  { %8643 = vrot.lane.b32.xlu0 %v8642_v5, %s9219_s14  ;;  %v1940_v13 = vmul.f32 %v9011_v7, %v1924_v39 }
 0xbc6   :  { %v1942_v51 = vsel %vm1941_vm15, %v1924_v39, %v1940_v13  ;;  %v1811_v39 = vld [vmem:[%s11592_s8 + $0x98] sm:$0x3]  ;;  %vm11607_vm15 = vmmov %vm11603_vm8 }
 0xbc7   :  { %v1945_v33 = vsel %vm1943_vm0, %v1944_v19, %v1942_v51  ;;  %v2054_v23 = vsel %vm124_vm3, %v1811_v39, 0  ;;  %v60_v51 = vld [vmem:[%s11590_s6] sm:$0xff]  ;;  %vm11608_vm0 = vcmask 1043456  }
 0xbc8   :  { %1953 = vrot.lane.b32.xlu1 %v1945_v33, %s9219_s14 }
 0xc36   :  { %v8644_v40 = vpop.permute.xlu0 %8643 }
 0xc37   :  { %v8646_v50 = vunpack.i.h.bf16 %v8644_v40  ;;  %v8645_v58 = vunpack.i.l.bf16 %v8644_v40 }
 0xc39   :  { %v1958_v0 = vsel %vm737_vm12, %v1642_v41, %v8645_v58  ;;  %v1959_v4 = vsel %vm737_vm12, %v1643_v11, %v8646_v50 }
 0xc3a   :  { %v1954_v20 = vpop.permute.xlu1 %1953  ;;  %v1961_v10 = vpack.c.bf16 %v1959_v4, %v1958_v0 }
 0xc3b   :  { %v1960_v46 = vsel %vm737_vm12, %v1644_v47, %v1954_v20 }
 0xc3c   :  { %v1962_v21 = vpack.c.bf16 %v1960_v46, %v1960_v46  ;;  %7916 = vmatprep.mubr.msk.bf16.mxu1 %vm11603_vm8, %v1961_v10  ;;  %vm11609_vm8 = vmmov %vm11608_vm0 }
 0xc3e   :  { %7917 = vmatmul.mubr.msk.bf16.vlgmr.msra.gmra.mrb[84].mxu1 %vm11604_vm9, %v1962_v21  ;;  %vm11610_vm9 = vmmov %vm11608_vm0 }
 0xc3f   :  { %7921 = vmatpush3.bf16.msra.mxu1 %v2054_v23  ;;  %7922 = vmatprep.mubr.msk.bf16.mxu1 %vm9215_vm7, %v9214_v36 }
 0xc40   :  { %7976 = vmatprep.subr.bf16.mxu1 %v9214_v36 }
 0xc46   :  { %7923 = vmatmul.mubr.msk.bf16.vlgmr.msra.gmra.mrb[88].mxu1 %vm256_vm5, %v2033_v18 }
 0xc47   :  { %7926 = vmatprep.mubr.msk.bf16.mxu1 %vm9215_vm7, %v9214_v36 }
 0xc4e   :  { %7927 = vmatmul.mubr.msk.bf16.gmra.mrb[92].mxu1 %vm256_vm5, %v2034_v35 }
 0xc4f   :  { %7930 = vmatprep.mubr.msk.bf16.mxu1 %vm9215_vm7, %v9214_v36 }
 0xc56   :  { %7931 = vmatmul.mubr.msk.bf16.gmra.mrb[96].mxu1 %vm256_vm5, %v2035_v16 }
 0xc57   :  { %7934 = vmatprep.mubr.msk.bf16.mxu1 %vm9215_vm7, %v9214_v36 }
 0xc5e   :  { %7935 = vmatmul.mubr.msk.bf16.gmra.mrb[100].mxu1 %vm256_vm5, %v2036_v24 }
 0xc5f   :  { %7938 = vmatprep.mubr.msk.bf16.mxu1 %vm9215_vm7, %v9214_v36 }
 0xc66   :  { %7939 = vmatmul.mubr.msk.bf16.gmra.mrb[104].mxu1 %vm256_vm5, %v2037_v44 }
 0xc67   :  { %7986 = vmatprep.mubr.msk.bf16.mxu1 %vm9215_vm7, %v9214_v36 }
 0xd11   :  { %v7918_v8 = vpop.f32.mrb[84].mxu1 }
 0xd12   :  { %v2019_v18 = vpop.f32.mrb[85].mxu1  ;;  %v2028_v46 = vadd.f32 %v7918_v8, %v7215_v55 }
 0xd13   :  { %v7919_v37 = vpop.f32.mrb[86].mxu1  ;;  %v2020_v58 = vadd.f32 %v7215_v55, %v2019_v18 }
 0xd14   :  { %v2022_v17 = vpop.f32.mrb[87].mxu1 }
 0xd15   :  { %v2023_v47 = vadd.f32 %v7215_v55, %v2022_v17 }
 0xd19   :  { %v2090_v35 = vpop.f32.mrb[88].mxu1 }
 0xd1a   :  { %v7924_v3 = vpop.f32.mrb[89].mxu1 }
 0xd1b   :  { %v2093_v57 = vpop.f32.mrb[90].mxu1 }
 0xd1c   :  { %v8647_v16 = vpack.i.bf16 %v2093_v57, %v2090_v35  ;;  %v7925_v61 = vpop.f32.mrb[91].mxu1 }
 0xd1e   :  { %8648 = vrot.lane.b32.xlu0 %v8647_v16, %s9219_s14 }
 0xd21   :  { %v2098_v30 = vpop.f32.mrb[92].mxu1 }
 0xd22   :  { %2135 = vrot.lane.b32.xlu1 %v2098_v30, %s9219_s14  ;;  %v7928_v24 = vpop.f32.mrb[93].mxu1  ;;  %v59_v30 = vld [vmem:[%s11589_s5] sm:$0xf] }
 0xd23   :  { %v2101_v42 = vpop.f32.mrb[94].mxu1 }
 0xd24   :  { %v7929_v63 = vpop.f32.mrb[95].mxu1 }
 0xd29   :  { %v2106_v53 = vpop.f32.mrb[96].mxu1 }
 0xd2a   :  { %v8652_v25 = vpack.i.bf16 %v2106_v53, %v2101_v42  ;;  %v7932_v6 = vpop.f32.mrb[97].mxu1 }
 0xd2b   :  { %v2109_v54 = vpop.f32.mrb[98].mxu1 }
 0xd2c   :  { %8653 = vrot.lane.b32.xlu1 %v8652_v25, %s9218_s13  ;;  %v7933_v43 = vpop.f32.mrb[99].mxu1 }
 0xd31   :  { %v2114_v38 = vpop.f32.mrb[100].mxu1 }
 0xd32   :  { %v7936_v2 = vpop.f32.mrb[101].mxu1 }
 0xd33   :  { %v2117_v45 = vpop.f32.mrb[102].mxu1 }
 0xd34   :  { %v8657_v52 = vpack.i.bf16 %v2117_v45, %v2114_v38  ;;  %v7937_v5 = vpop.f32.mrb[103].mxu1 }
 0xd36   :  { %8658 = vrot.lane.b32.xlu0 %v8657_v52, %s9217_s12 }
 0xd39   :  { %v2122_v7 = vpop.f32.mrb[104].mxu1 }
 0xd3a   :  { %2147 = vrot.lane.b32.xlu0 %v2109_v54, %s9218_s13  ;;  %2159 = vrot.lane.b32.xlu1 %v2122_v7, %s9217_s12  ;;  %v7940_v13 = vpop.f32.mrb[105].mxu1 }
 0xd3b   :  { %v2125_v19 = vpop.f32.mrb[106].mxu1 }
 0xd3c   :  { %v7941_v33 = vpop.f32.mrb[107].mxu1 }
 0xd3e   :  { %2223 = vperm.xlu0 %8526, %v60_v51  }
 0xd90   :  { %v8649_v32 = vpop.permute.xlu0 %8648 }
 0xd91   :  { %v8651_v40 = vunpack.i.h.bf16 %v8649_v32  ;;  %v8650_v41 = vunpack.i.l.bf16 %v8649_v32 }
 0xd93   :  { %v2164_v4 = vsel %vm737_vm12, %v2020_v58, %v8650_v41  ;;  %v2165_v39 = vsel %vm737_vm12, %v2023_v47, %v8651_v40 }
 0xd94   :  { %v2136_v29 = vpop.permute.xlu1 %2135 }
 0xd95   :  { %v2166_v35 = vsel %vm737_vm12, %v2028_v46, %v2136_v29 }
 0xd9e   :  { %v8654_v22 = vpop.permute.xlu1 %8653 }
 0xd9f   :  { %v8656_v11 = vunpack.i.h.bf16 %v8654_v22  ;;  %v8655_v50 = vunpack.i.l.bf16 %v8654_v22 }
 0xda1   :  { %v2167_v21 = vsel %vm11605_vm11, %v2164_v4, %v8655_v50  ;;  %v2168_v23 = vsel %vm11606_vm13, %v2165_v39, %v8656_v11 }
 0xda8   :  { %v8659_v0 = vpop.permute.xlu0 %8658 }
 0xda9   :  { %v8661_v20 = vunpack.i.h.bf16 %v8659_v0  ;;  %v8660_v10 = vunpack.i.l.bf16 %v8659_v0 }
 0xdab   :  { %v2170_v44 = vsel %vm741_vm14, %v2167_v21, %v8660_v10  ;;  %v2171_v37 = vsel %vm741_vm14, %v2168_v23, %v8661_v20  ;;  %v8888_v23 = vld [vmem:[%s11592_s8 + $0xa8] sm:$0xff]  }
 0xdac   :  { %v2148_v18 = vpop.permute.xlu0 %2147  ;;  %v2160_v17 = vpop.permute.xlu1 %2159  ;;  %v2173_v3 = vpack.c.bf16 %v2171_v37, %v2170_v44 }
 0xdad   :  { %v2169_v57 = vsel %vm11607_vm15, %v2166_v35, %v2148_v18  ;;  %vm11611_vm15 = vmmov %vm11608_vm0 }
 0xdae   :  { %v2172_v16 = vsel %vm741_vm14, %v2169_v57, %v2160_v17  ;;  %7943 = vmatpush3.bf16.msra.mxu0 %v2173_v3 }
 0xdaf   :  { %v2174_v61 = vpack.c.bf16 %v2172_v16, %v2172_v16  ;;  %7944 = vmatprep.subr.bf16.mxu0 %v9214_v36 }
 0xdb1   :  { %v2179_v8 = vsel %vm11608_vm0, %v2174_v61, 0 }
 0xdb2   :  { %7945 = vmatpush3.bf16.msra.mxu0 %v2179_v8 }
 0xdb5   :  { %7947 = vmatmul.mubr.msk.bf16.vlgmr.msra.gmra.mrb[92].mxu0 %vm741_vm14, %v59_v30 }
 0xdbd   :  { %v10132_v24 = vpop.permute.xlu0 %2223 }
 0xe88   :  { %v2215_v42 = vpop.f32.mrb[92].mxu0 }
 0xe89   :  { %v2226_v63 = vmul.f32 %v10132_v24, %v2215_v42  ;;  %v7948_v53 = vpop.f32.mrb[93].mxu0  ;;  %v8889_v42 = vld [vmem:[%s11592_s8 + $0xb0] ss:$0 sps:$4 sm:$0xff]  }
 0xe8a   :  { %v2218_v25 = vpop.f32.mrb[94].mxu0  ;;  %v2296_v53 = vld [vmem:[%s11592_s8 + $0xb8] sm:$0xf] }
 0xe8b   :  { %2230 = vrot.lane.b32.xlu0 %v2226_v63, %s9221_s29  ;;  %2228 = vrot.lane.b32.xlu1 %v2226_v63, %s9222_s30  ;;  %v7949_v6 = vpop.f32.mrb[95].mxu0 }
 0xe8f   :  { %2233 = vrot.lane.b32.xlu1 %v2226_v63, %s9223_s3 }
 0xefd   :  { %v2231_v54 = vpop.permute.xlu0 %2230  ;;  %v2229_v43 = vpop.permute.xlu1 %2228 }
 0xefe   :  { %2237 = vrot.lane.b32.xlu1 %v2231_v54, %s9223_s3  ;;  %2235 = vrot.lane.b32.xlu0 %v2229_v43, %s9223_s3 }
 0xf01   :  { %v2234_v38 = vpop.permute.xlu1 %2233 }
 0xf02   :  { %v2242_v2 = vadd.f32 %v2234_v38, %v9409_v60  ;;  %v2291_v60 = vld [vmem:[%s11592_s8 + $0xa0] sm:$0x3] }
 0xf03   :  { %8490 = vmatprep.subr.msk.bf16.mxu0 %vm124_vm3, %v2291_v60 }
 0xf04   :  { %v2271_v13 = vmul.f32 %v2242_v2, %v2242_v2 }
 0xf70   :  { %v2236_v45 = vpop.permute.xlu0 %2235  ;;  %v2238_v52 = vpop.permute.xlu1 %2237 }
 0xf71   :  { %v2243_v5 = vadd.f32 %v2236_v45, %v9413_v62  ;;  %v2244_v7 = vadd.f32 %v9407_v59, %v2238_v52  ;;  %v2306_v59 = vsel %vm124_vm3, %v2291_v60, 0  ;;  %v2232_v62 = vadd.f32 %v2226_v63, %v9440_v15 }
 0xf72   :  { %7951 = vmatpush3.bf16.msra.mxu0 %v2306_v59  ;;  %v2392_v63 = vsel %vm11609_vm8, %v8889_v42, 0  ;;  %vm11612_vm8 = vmmov %vm11608_vm0 }
 0xf73   :  { %v2272_v19 = vmul.f32 %v2243_v5, %v2243_v5  ;;  %v2274_v51 = vmul.f32 %v2244_v7, %v2244_v7  ;;  %7956 = vmatprep.subr.bf16.mxu0 %v9214_v36  ;;  %v2247_v11 = vsel %vm737_vm12, %v2232_v62, 0.0 }
 0xf75   :  { %v2273_v33 = vadd.f32 %v2272_v19, %v2271_v13  ;;  %v7226_v13 = vld [vmem:[%s11593_s9 + $0x9] ss:$0 sm:$0xff] }
 0xf77   :  { %v2275_v29 = vadd.f32 %v2274_v51, %v2273_v33  ;;  %v7227_v51 = vld [vmem:[%s11593_s9 + $0xa] ss:$0 sm:$0xff] }
 0xf79   :  { %v2276_v32 = vmax.f32 %v2275_v29, 1e-08 }
 0xf7b   :  { %v2277_v22 = vsel %vm256_vm5, %v2276_v32, 0.0 }
 0xf7c   :  { %2278 = vadd.xlane.f32.xlu0 %v2277_v22 }
0x1009   :  { %v2279_v55 = vpop.xlane.xlu0 %2278 }
0x100a   :  { %v2281_v40 = vmul.f32 0.25, %v2279_v55  ;;  %v2444_v55 = vsel %vm11611_vm15, %v2296_v53, 0  ;;  %vm11614_vm15 = vmmov %vm11608_vm0 }
0x100c   :  { %9012 = vrsqrt.f32 %v2281_v40 }
0x1016   :  { %v9013_v41 = vpop.eup %9012 }
0x1017   :  { %2285 = vperm.xlu1 %8662, %v9013_v41   ;;  %v2516_v41 = vld [vmem:[%s11592_s8 + $0xc0] sm:$0xf] }
0x1018   :  { %v2537_v60 = vsel %vm11612_vm8, %v2516_v41, 0 }
0x103b   :  { %2248 = vadd.xlane.f32.xlu1 %v2247_v11 }
0x1096   :  { %v2286_v50 = vpop.permute.xlu1 %2285 }
0x1097   :  { %v10152_v58 = vmul.f32 %v2286_v50, %v2242_v2  ;;  %v10154_v47 = vmul.f32 %v2286_v50, %v2243_v5  ;;  %v10156_v0 = vmul.f32 %v2286_v50, %v2244_v7 }
0x1099   :  { %v2298_v4 = vpack.c.bf16 %v10156_v0, %v10156_v0  ;;  %v2297_v39 = vpack.c.bf16 %v10154_v47, %v10152_v58 }
0x109b   :  { %7952 = vmatprep.mubr.msk.bf16.mxu0 %vm256_vm5, %v2297_v39 }
0x109c   :  { %7953 = vmatmul.mubr.msk.bf16.vlgmr.msra.gmra.mrb[96].mxu0 %vm256_vm5, %v2298_v4 }
0x109d   :  { %7960 = vmatprep.mubr.msk.bf16.mxu0 %vm9215_vm7, %v9214_v36  ;;  %7957 = vmatpush3.bf16.msra.mxu0 %v8888_v23 }
0x109e   :  { %7958 = vmatprep.subr.bf16.mxu0 %v9214_v36 }
0x10a1   :  { %7959 = vmatpush3.bf16.msra.mxu0 %v2392_v63 }
0x10a2   :  { %8491 = vmatprep.subr.msk.bf16.mxu0 %vm11610_vm9, %v2296_v53 }
0x10c8   :  { %v2249_v15 = vpop.xlane.xlu1 %2248 }
0x10c9   :  { %v2251_v20 = vmul.f32 0.0625, %v2249_v15 }
0x10cb   :  { %v2252_v10 = vsub.f32 %v2232_v62, %v2251_v20 }
0x10cd   :  { %v2253_v46 = vmul.f32 %v2252_v10, %v2252_v10 }
0x10cf   :  { %v2254_v21 = vsel %vm737_vm12, %v2253_v46, 0.0 }
0x10d0   :  { %2255 = vadd.xlane.f32.xlu0 %v2254_v21 }
0x115d   :  { %v2256_v2 = vpop.xlane.xlu0 %2255 }
0x115e   :  { %v2257_v45 = vmul.f32 0.0625, %v2256_v2  ;;  %v8891_v2 = vld [vmem:[%s11592_s8 + $0xd0] sm:$0xff]  }
0x1160   :  { %v2258_v52 = vadd.f32 1e-05, %v2257_v45  ;;  %v8892_v45 = vld [vmem:[%s11592_s8 + $0xd8] sm:$0xff]  }
0x116f   :  { %v7954_v44 = vpop.f32.mrb[96].mxu0 }
0x1170   :  { %v2342_v37 = vpop.f32.mrb[97].mxu0  ;;  %v2359_v16 = vmul.f32 %v7954_v44, %v7954_v44  ;;  %v2436_v40 = vpack.c.bf16 %v7954_v44, %v7954_v44 }
0x1171   :  { %v7955_v35 = vpop.f32.mrb[98].mxu0  ;;  %v2356_v17 = vmul.f32 %v2342_v37, %v2342_v37 }
0x1172   :  { %v2345_v18 = vpop.f32.mrb[99].mxu0 }
0x1173   :  { %v2357_v3 = vmul.f32 %v2345_v18, %v2345_v18  ;;  %v2435_v57 = vpack.c.bf16 %v2345_v18, %v2342_v37 }
0x1175   :  { %v2358_v61 = vadd.f32 %v2357_v3, %v2356_v17 }
0x1177   :  { %v2360_v8 = vadd.f32 %v2359_v16, %v2358_v61 }
0x1179   :  { %v2361_v30 = vmax.f32 %v2360_v8, 1e-08 }
0x117b   :  { %9014 = vrsqrt.f32 %v2361_v30  ;;  %vm2364_vm11 = vcmp.eq.f32.partialorder %v2361_v30, inf  ;;  %v2367_v54 = vand.u32 2147483648, %v2361_v30  ;;  %vm2366_vm13 = vcmp.eq.f32.partialorder %v2361_v30, 0.0 }
0x117c   :  { %9016 = vrsqrt.f32 %v2258_v52  ;;  %v8893_v52 = vld [vmem:[%s11592_s8 + $0xe0] sm:$0xff]  }
0x1185   :  { %v9015_v25 = vpop.eup %9014 }
0x1186   :  { %v2363_v6 = vmul.f32 %v9015_v25, %v2361_v30  ;;  %v9017_v5 = vpop.eup %9016 }
0x1187   :  { %v2260_v7 = vmul.f32 %v9017_v5, %v2252_v10 }
0x1188   :  { %v2365_v43 = vsel %vm2364_vm11, %v2361_v30, %v2363_v6 }
0x1189   :  { %v2368_v38 = vsel %vm2366_vm13, %v2367_v54, %v2365_v43  ;;  %v2265_v19 = vmul.f32 %v7226_v13, %v2260_v7  ;;  %v2527_v54 = vld [vmem:[%s11592_s8 + $0xf0] sm:$0xf]  ;;  %vm11613_vm13 = vmmov %vm11608_vm0 }
0x118a   :  { %2370 = vrot.lane.b32.xlu0 %v2368_v38, %s9219_s14  ;;  %v2694_v43 = vsel %vm11614_vm15, %v2527_v54, 0  ;;  %v8890_v38 = vld [vmem:[%s11592_s8 + $0xc8] sm:$0xff]   ;;  %vm11615_vm15 = vcmask 162816  }
0x118b   :  { %v10186_v33 = vadd.f32 %v7227_v51, %v2265_v19  ;;  %7977 = vmatpush3.bf16.msra.mxu1 %v8890_v38 }
0x118c   :  { %7978 = vmatprep.subr.bf16.mxu1 %v9214_v36 }
0x118f   :  { %7979 = vmatpush3.bf16.msra.mxu1 %v8891_v2 }
0x1190   :  { %7980 = vmatprep.subr.bf16.mxu1 %v9214_v36 }
0x1193   :  { %7981 = vmatpush3.bf16.msra.mxu1 %v8892_v45 }
0x1194   :  { %7982 = vmatprep.subr.bf16.mxu1 %v9214_v36 }
0x1197   :  { %7983 = vmatpush3.bf16.msra.mxu1 %v8893_v52 }
0x1198   :  { %7984 = vmatprep.subr.bf16.mxu1 %v9214_v36 }
0x11fc   :  { %v2371_v29 = vpop.permute.xlu0 %2370 }
0x11fd   :  { %v2373_v32 = vsel %vm737_vm12, %v10186_v33, %v2371_v29 }
0x11fe   :  { %v2374_v22 = vpack.c.bf16 %v2373_v32, %v2373_v32 }
0x1200   :  { %7961 = vmatmul.mubr.msk.bf16.vlgmr.msra.gmra.mrb[100].mxu0 %vm741_vm14, %v2374_v22 }
0x1201   :  { %7966 = vmatprep.mubr.msk.bf16.mxu0 %vm316_vm4, %v2435_v57  ;;  %7965 = vmatpush3.bf16.msra.mxu0 %v2444_v55 }
0x1202   :  { %8492 = vmatprep.subr.msk.bf16.mxu0 %vm11608_vm0, %v2516_v41 }
0x1208   :  { %7967 = vmatmul.mubr.msk.bf16.vlgmr.msra.gmra.mrb[104].mxu0 %vm316_vm4, %v2436_v40 }
0x1209   :  { %7971 = vmatpush3.bf16.msra.mxu0 %v2537_v60 }
0x120a   :  { %8493 = vmatprep.subr.msk.bf16.mxu0 %vm11613_vm13, %v2527_v54  ;;  %vm2638_vm13 = vcmask 588800  }
0x12d3   :  { %v10199_v59 = vpop.f32.mrb[100].mxu0 }
0x12d4   :  { %v7962_v62 = vpop.f32.mrb[101].mxu0 }
0x12d5   :  { %v2431_v11 = vpop.f32.mrb[102].mxu0  ;;  %v8894_v62 = vld [vmem:[%s11592_s8 + $0xe8] ss:$0 sps:$4 sm:$0xff]  }
0x12d6   :  { %v7963_v50 = vpop.f32.mrb[103].mxu0  ;;  %v2643_v11 = vsel %vm11608_vm0, %v8894_v62, 0 }
0x12d7   :  { %7985 = vmatpush3.bf16.msra.mxu1 %v2643_v11  ;;  %v7248_v11 = vld [vmem:[%s11593_s9 + $0xd] ss:$0 sm:$0xff] }
0x12d8   :  { %7996 = vmatprep.subr.bf16.mxu1 %v9214_v36 }
0x12db   :  { %v7968_v4 = vpop.f32.mrb[104].mxu0 }
0x12dc   :  { %v2480_v39 = vpop.f32.mrb[105].mxu0  ;;  %v2497_v21 = vmul.f32 %v7968_v4, %v7968_v4 }
0x12dd   :  { %v7969_v15 = vpop.f32.mrb[106].mxu0  ;;  %v2494_v10 = vmul.f32 %v2480_v39, %v2480_v39 }
0x12de   :  { %v2483_v20 = vpop.f32.mrb[107].mxu0 }
0x12df   :  { %v2495_v46 = vmul.f32 %v2483_v20, %v2483_v20 }
0x12e1   :  { %v2496_v23 = vadd.f32 %v2495_v46, %v2494_v10  ;;  %v7230_v10 = vld [vmem:[%s11593_s9 + $0xb] ss:$0 sm:$0xff] }
0x12e2   :  { %v2429_v46 = vadd.f32 %v7230_v10, %v10199_v59 }
0x12e3   :  { %v2498_v44 = vadd.f32 %v2497_v21, %v2496_v23 }
0x12e4   :  { %v2434_v21 = vmax.f32 %v2429_v46, 0.0 }
0x12e5   :  { %v2499_v37 = vmax.f32 %v2498_v44, 1e-08 }
0x12e7   :  { %9018 = vrsqrt.f32 %v2499_v37  ;;  %vm2502_vm9 = vcmp.eq.f32.partialorder %v2499_v37, inf  ;;  %v2505_v17 = vand.u32 2147483648, %v2499_v37  ;;  %vm2504_vm11 = vcmp.eq.f32.partialorder %v2499_v37, 0.0 }
0x12f1   :  { %v9019_v35 = vpop.eup %9018 }
0x12f2   :  { %v2501_v18 = vmul.f32 %v9019_v35, %v2499_v37 }
0x12f4   :  { %v2503_v3 = vsel %vm2502_vm9, %v2499_v37, %v2501_v18 }
0x12f5   :  { %v2506_v57 = vsel %vm2504_vm11, %v2505_v17, %v2503_v3  ;;  %vm2604_vm11 = vcmask 523264  }
0x12f6   :  { %v7236_v16 = vmul.f32 -1.442695, %v2506_v57 }
0x12f8   :  { %9020 = vpow2.f32 %v7236_v16 }
0x1302   :  { %v9021_v61 = vpop.eup %9020 }
0x1303   :  { %v2510_v8 = vadd.f32 1.0, %v9021_v61 }
0x1305   :  { %9022 = vrcp.f32 %v2510_v8 }
0x130f   :  { %v9023_v30 = vpop.eup %9022 }
0x1310   :  { %v2513_v42 = vmul.f32 %v9023_v30, %v2480_v39  ;;  %v2514_v63 = vmul.f32 %v9023_v30, %v2483_v20  ;;  %v2515_v53 = vmul.f32 %v9023_v30, %v7968_v4 }
0x1312   :  { %v2528_v25 = vpack.c.bf16 %v2514_v63, %v2513_v42  ;;  %v2529_v6 = vpack.c.bf16 %v2515_v53, %v2515_v53 }
0x1314   :  { %7972 = vmatprep.mubr.msk.bf16.mxu0 %vm316_vm4, %v2528_v25 }
0x1315   :  { %7973 = vmatmul.mubr.msk.bf16.vlgmr.msra.gmra.mrb[108].mxu0 %vm316_vm4, %v2529_v6  ;;  %v7239_v6 = vld [vmem:[%s11593_s9 + $0xc] ss:$0 sm:$0xff] }
0x1316   :  { %7991 = vmatpush3.bf16.msra.mxu0 %v2694_v43 }
0x1317   :  { %8010 = vmatprep.subr.bf16.mxu0 %v9214_v36 }
0x13e8   :  { %v7974_v5 = vpop.f32.mrb[108].mxu0 }
0x13e9   :  { %v2573_v7 = vpop.f32.mrb[109].mxu0  ;;  %v2686_v22 = vpack.c.bf16 %v7974_v5, %v7974_v5  ;;  %v2590_v55 = vmul.f32 %v7974_v5, %v7974_v5 }
0x13ea   :  { %v7975_v13 = vpop.f32.mrb[110].mxu0  ;;  %v2587_v51 = vmul.f32 %v2573_v7, %v2573_v7 }
0x13eb   :  { %v2576_v19 = vpop.f32.mrb[111].mxu0 }
0x13ec   :  { %v2588_v29 = vmul.f32 %v2576_v19, %v2576_v19  ;;  %v2685_v32 = vpack.c.bf16 %v2576_v19, %v2573_v7 }
0x13ee   :  { %v2589_v40 = vadd.f32 %v2588_v29, %v2587_v51  ;;  %7992 = vmatprep.mubr.msk.bf16.mxu0 %vm316_vm4, %v2685_v32 }
0x13ef   :  { %7993 = vmatmul.mubr.msk.bf16.vlgmr.msra.gmra.mrb[112].mxu0 %vm316_vm4, %v2686_v22 }
0x13f0   :  { %v2591_v41 = vadd.f32 %v2590_v55, %v2589_v40  ;;  %8012 = vmatprep.mubr.msk.bf16.mxu0 %vm9215_vm7, %v9214_v36 }
0x13f2   :  { %v2592_v60 = vmax.f32 %v2591_v41, 1e-08 }
0x13f4   :  { %9024 = vrsqrt.f32 %v2592_v60  ;;  %vm2595_vm8 = vcmp.eq.f32.partialorder %v2592_v60, inf  ;;  %v2598_v39 = vand.u32 2147483648, %v2592_v60  ;;  %vm2597_vm9 = vcmp.eq.f32.partialorder %v2592_v60, 0.0 }
0x13fe   :  { %v9025_v50 = vpop.eup %9024 }
0x13ff   :  { %v2594_v4 = vmul.f32 %v9025_v50, %v2592_v60 }
0x1401   :  { %v2596_v15 = vsel %vm2595_vm8, %v2592_v60, %v2594_v4 }
0x1402   :  { %v2599_v20 = vsel %vm2597_vm9, %v2598_v39, %v2596_v15  ;;  %v7249_v39 = vld [vmem:[%s11593_s9 + $0xe] ss:$0 sm:$0xff] }
0x1403   :  { %2601 = vrot.lane.b32.xlu1 %v2599_v20, %s9227_s16 }
0x1475   :  { %v2602_v23 = vpop.permute.xlu1 %2601 }
0x1476   :  { %v2605_v44 = vsel %vm2604_vm11, %v2434_v21, %v2602_v23 }
0x1477   :  { %v2606_v37 = vpack.c.bf16 %v2605_v44, %v2605_v44 }
0x1479   :  { %7987 = vmatmul.mubr.msk.bf16.vlgmr.msra.gmra.mrb[108].mxu1 %vm2638_vm13, %v2606_v37 }
0x147a   :  { %7998 = vmatprep.mubr.msk.bf16.mxu1 %vm9215_vm7, %v9214_v36 }
0x14c2   :  { %v7994_v35 = vpop.f32.mrb[112].mxu0 }
0x14c3   :  { %v2730_v18 = vpop.f32.mrb[113].mxu0  ;;  %v2747_v59 = vadd.f32 %v7994_v35, %v10156_v0 }
0x14c4   :  { %v2745_v17 = vadd.f32 %v2730_v18, %v10152_v58  ;;  %v7995_v3 = vpop.f32.mrb[114].mxu0  ;;  %v9180_v18 = vld [vmem:[%s11588_s4] sm:$0xff]  }
0x14c5   :  { %v2733_v57 = vpop.f32.mrb[115].mxu0  ;;  %v2776_v30 = vmul.f32 %v2747_v59, %v2747_v59  ;;  %v9182_v3 = vld [vmem:[%s11588_s4 + $0x10] sm:$0xff]  }
0x14c6   :  { %v2746_v16 = vadd.f32 %v2733_v57, %v10154_v47  ;;  %v2773_v61 = vmul.f32 %v2745_v17, %v2745_v17 }
0x14c8   :  { %v2774_v8 = vmul.f32 %v2746_v16, %v2746_v16 }
0x14ca   :  { %v2775_v42 = vadd.f32 %v2774_v8, %v2773_v61 }
0x14cc   :  { %v2777_v63 = vadd.f32 %v2776_v30, %v2775_v42 }
0x14ce   :  { %v2778_v53 = vmax.f32 %v2777_v63, 1e-08 }
0x14d0   :  { %v2779_v25 = vsel %vm256_vm5, %v2778_v53, 0.0 }
0x14d1   :  { %2780 = vadd.xlane.f32.xlu0 %v2779_v25 }
0x154c   :  { %v2679_v58 = vpop.f32.mrb[108].mxu1 }
0x154d   :  { %v2680_v54 = vadd.f32 %v7239_v6, %v2679_v58  ;;  %v7988_v43 = vpop.f32.mrb[109].mxu1 }
0x154e   :  { %v2682_v38 = vpop.f32.mrb[110].mxu1 }
0x154f   :  { %v7989_v0 = vpop.f32.mrb[111].mxu1  ;;  %v2744_v47 = vadd.f32 %v2680_v54, %v10186_v33  ;;  %v8895_v38 = vld [vmem:[%s11592_s8 + $0xf8] sm:$0x1f]  }
0x1551   :  { %v2750_v2 = vsel %vm737_vm12, %v2744_v47, 0.0 }
0x1552   :  { %2751 = vadd.xlane.f32.xlu1 %v2750_v2 }
0x155e   :  { %v2781_v45 = vpop.xlane.xlu0 %2780 }
0x155f   :  { %v2782_v52 = vmul.f32 0.25, %v2781_v45 }
0x1561   :  { %9026 = vrsqrt.f32 %v2782_v52  ;;  %v2998_v52 = vsel %vm210_vm6, %v8895_v38, 0 }
0x1562   :  { %8011 = vmatpush3.bf16.msra.mxu0 %v2998_v52 }
0x1563   :  { %8066 = vmatprep.subr.bf16.mxu0 %v9214_v36 }
0x156b   :  { %v9027_v5 = vpop.eup %9026 }
0x156c   :  { %2786 = vperm.xlu0 %8526, %v9027_v5  }
0x15df   :  { %v2752_v7 = vpop.xlane.xlu1 %2751 }
0x15e0   :  { %v2753_v13 = vmul.f32 0.0625, %v2752_v7 }
0x15e2   :  { %v2754_v19 = vsub.f32 %v2744_v47, %v2753_v13 }
0x15e4   :  { %v2755_v51 = vmul.f32 %v2754_v19, %v2754_v19 }
0x15e6   :  { %v2756_v29 = vsel %vm737_vm12, %v2755_v51, 0.0 }
0x15e7   :  { %2757 = vadd.xlane.f32.xlu1 %v2756_v29 }
0x15eb   :  { %v2787_v32 = vpop.permute.xlu0 %2786 }
0x15ec   :  { %v10253_v22 = vmul.f32 %v2787_v32, %v2746_v16  ;;  %v10257_v33 = vmul.f32 %v2787_v32, %v2747_v59  ;;  %v10261_v55 = vmul.f32 %v2787_v32, %v2745_v17  ;;  %v9181_v17 = vld [vmem:[%s11588_s4 + $0x8] sm:$0xff]  }
0x15ee   :  { %2797 = vrot.lane.b32.xlu0 %v10253_v22, %s9218_s13 }
0x15f2   :  { %2801 = vrot.lane.b32.xlu0 %v10257_v33, %s9217_s12 }
0x15f8   :  { %2793 = vrot.lane.b32.xlu1 %v10261_v55, %s9219_s14 }
0x1660   :  { %v2798_v4 = vpop.permute.xlu0 %2797 }
0x1664   :  { %v2802_v21 = vpop.permute.xlu0 %2801 }
0x1674   :  { %v2758_v40 = vpop.xlane.xlu1 %2757 }
0x1675   :  { %v2759_v41 = vmul.f32 0.0625, %v2758_v40 }
0x1677   :  { %v2760_v60 = vadd.f32 1e-05, %v2759_v41 }
0x1678   :  { %v2794_v10 = vpop.permute.xlu1 %2793 }
0x1679   :  { %9028 = vrsqrt.f32 %v2760_v60 }
0x1683   :  { %v9029_v62 = vpop.eup %9028 }
0x1684   :  { %v2762_v50 = vmul.f32 %v9029_v62, %v2754_v19 }
0x1686   :  { %v2767_v15 = vmul.f32 %v7248_v11, %v2762_v50 }
0x1688   :  { %v10271_v20 = vadd.f32 %v7249_v39, %v2767_v15 }
0x168a   :  { %v2804_v46 = vsel %vm737_vm12, %v10271_v20, %v2794_v10 }
0x168b   :  { %v2805_v23 = vsel %vm11615_vm15, %v2804_v46, %v2798_v4 }
0x168c   :  { %v2806_v44 = vsel %vm741_vm14, %v2805_v23, %v2802_v21 }
0x168d   :  { %v2807_v37 = vpack.c.bf16 %v2806_v44, %v2806_v44 }
0x168f   :  { %v2809_v35 = vsel %vm11608_vm0, %v2807_v37, 0 }
0x1690   :  { %7997 = vmatpush3.bf16.msra.mxu1 %v2809_v35 }
0x1693   :  { %7999 = vmatmul.mubr.msk.bf16.vlgmr.msra.gmra.mrb[112].mxu1 %vm316_vm4, %v9180_v18 }
0x1694   :  { %8002 = vmatprep.mubr.msk.bf16.mxu1 %vm9215_vm7, %v9214_v36 }
0x169b   :  { %8003 = vmatmul.mubr.msk.bf16.gmra.mrb[116].mxu1 %vm316_vm4, %v9181_v17 }
0x169c   :  { %8006 = vmatprep.mubr.msk.bf16.mxu1 %vm9215_vm7, %v9214_v36 }
0x16a3   :  { %8007 = vmatmul.mubr.msk.bf16.gmra.mrb[120].mxu1 %vm316_vm4, %v9182_v3 }
0x1766   :  { %v10294_v57 = vpop.f32.mrb[112].mxu1 }
0x1767   :  { %v8000_v59 = vpop.f32.mrb[113].mxu1 }
0x1768   :  { %v10296_v16 = vpop.f32.mrb[114].mxu1 }
0x1769   :  { %v8001_v61 = vpop.f32.mrb[115].mxu1  ;;  %v8678_v8 = vpack.i.bf16 %v10296_v16, %v10294_v57 }
0x176e   :  { %v10300_v30 = vpop.f32.mrb[116].mxu1 }
0x176f   :  { %v8004_v42 = vpop.f32.mrb[117].mxu1  ;;  %v8668_v63 = vpack.i.bf16 %v10300_v30, %v10296_v16 }
0x1770   :  { %v2856_v53 = vpop.f32.mrb[118].mxu1 }
0x1771   :  { %v8663_v25 = vpack.i.bf16 %v2856_v53, %v10294_v57  ;;  %v8005_v6 = vpop.f32.mrb[119].mxu1  ;;  %8669 = vrot.lane.b32.xlu0 %v8668_v63, %s9222_s30 }
0x1773   :  { %8664 = vrot.lane.b32.xlu1 %v8663_v25, %s9222_s30 }
0x1775   :  { %8679 = vrot.lane.b32.xlu0 %v8678_v8, %s9221_s29 }
0x1776   :  { %v2861_v58 = vpop.f32.mrb[120].mxu1 }
0x1777   :  { %v8008_v54 = vpop.f32.mrb[121].mxu1  ;;  %v8683_v43 = vpack.i.bf16 %v2861_v58, %v2856_v53 }
0x1778   :  { %v2864_v0 = vpop.f32.mrb[122].mxu1 }
0x1779   :  { %v8673_v47 = vpack.i.bf16 %v2864_v0, %v2861_v58  ;;  %v8688_v2 = vpack.i.bf16 %v2864_v0, %v10300_v30  ;;  %v8009_v45 = vpop.f32.mrb[123].mxu1 }
0x177b   :  { %8674 = vrot.lane.b32.xlu1 %v8673_v47, %s9222_s30  ;;  %8689 = vrot.lane.b32.xlu0 %v8688_v2, %s9221_s29 }
0x177f   :  { %8684 = vrot.lane.b32.xlu1 %v8683_v43, %s9221_s29  ;;  %8699 = vrot.lane.b32.xlu0 %v8683_v43, %s9224_s11 }
0x1783   :  { %8694 = vrot.lane.b32.xlu1 %v8678_v8, %s9223_s3 }
0x17e3   :  { %v8670_v5 = vpop.permute.xlu0 %8669 }
0x17e5   :  { %v8665_v7 = vpop.permute.xlu1 %8664 }
0x17e6   :  { %v8667_v13 = vunpack.i.h.bf16 %v8665_v7  ;;  %v8666_v19 = vunpack.i.l.bf16 %v8665_v7 }
0x17e7   :  { %v8680_v32 = vpop.permute.xlu0 %8679 }
0x17e8   :  { %v8708_v51 = vpack.i.bf16 %v8667_v13, %v2864_v0  ;;  %v8703_v29 = vpack.i.bf16 %v8666_v19, %v10300_v30 }
0x17ea   :  { %8709 = vrot.lane.b32.xlu0 %v8708_v51, %s9224_s11  ;;  %8704 = vrot.lane.b32.xlu1 %v8703_v29, %s9223_s3 }
0x17ed   :  { %v8675_v40 = vpop.permute.xlu1 %8674  ;;  %v8690_v41 = vpop.permute.xlu0 %8689 }
0x17ee   :  { %8714 = vrot.lane.b32.xlu1 %v8670_v5, %s9223_s3  ;;  %8719 = vrot.lane.b32.xlu0 %v8675_v40, %s9224_s11  ;;  %v8691_v62 = vunpack.i.l.bf16 %v8690_v41  ;;  %v8692_v46 = vunpack.i.h.bf16 %v8690_v41 }
0x17f1   :  { %v8685_v60 = vpop.permute.xlu1 %8684  ;;  %v8700_v11 = vpop.permute.xlu0 %8699 }
0x17f2   :  { %8724 = vrot.lane.b32.xlu1 %v8680_v32, %s9223_s3  ;;  %8729 = vrot.lane.b32.xlu0 %v8685_v60, %s9224_s11  ;;  %v8702_v15 = vunpack.i.h.bf16 %v8700_v11  ;;  %v8701_v10 = vunpack.i.l.bf16 %v8700_v11 }
0x17f5   :  { %v8695_v50 = vpop.permute.xlu1 %8694 }
0x17f6   :  { %v8697_v4 = vunpack.i.h.bf16 %v8695_v50  ;;  %v8696_v39 = vunpack.i.l.bf16 %v8695_v50  ;;  %2914 = vrot.lane.b32.xlu1 %v8691_v62, %s9223_s3  ;;  %2941 = vrot.lane.b32.xlu0 %v8692_v46, %s9224_s11 }
0x17f8   :  { %v2953_v21 = vsel %vm256_vm5, %v8697_v4, %v9615_v27  ;;  %v2952_v23 = vsel %vm256_vm5, %v8696_v39, %v9617_v28 }
0x17f9   :  { %v2961_v44 = vsel %vm11600_vm1, %v2952_v23, %v8701_v10  ;;  %v2962_v37 = vsel %vm11600_vm1, %v2953_v21, %v8702_v15 }
0x17fa   :  { %v2970_v35 = vpack.c.bf16 %v2962_v37, %v2961_v44  ;;  %8734 = vrot.lane.b32.xlu1 %v8683_v43, %s9217_s12  ;;  %3115 = vrot.lane.b32.xlu0 %v2864_v0, %s9217_s12 }
0x17fc   :  { %8013 = vmatmul.mubr.msk.bf16.vlgmr.msra.gmra.mrb[116].mxu0 %vm206_vm10, %v2970_v35 }
0x17fd   :  { %8016 = vmatprep.mubr.msk.bf16.mxu0 %vm9215_vm7, %v9214_v36 }
0x185c   :  { %v8710_v18 = vpop.permute.xlu0 %8709  ;;  %v8705_v17 = vpop.permute.xlu1 %8704 }
0x185d   :  { %v8712_v3 = vunpack.i.h.bf16 %v8710_v18  ;;  %v8711_v59 = vunpack.i.l.bf16 %v8710_v18  ;;  %v8707_v61 = vunpack.i.h.bf16 %v8705_v17  ;;  %v8706_v8 = vunpack.i.l.bf16 %v8705_v17  ;;  %v8896_v18 = vld [vmem:[%s11592_s8 + $0x100] sm:$0xff]   ;;  %v8897_v17 = vld [vmem:[%s11592_s8 + $0x108] sm:$0xff]  }
0x185e   :  { %8032 = vmatprep.subr.bf16.mxu1 %v8896_v18 }
0x185f   :  { %v2955_v42 = vsel %vm256_vm5, %v8707_v61, %v9628_v48  ;;  %v2954_v63 = vsel %vm256_vm5, %v8706_v8, %v9630_v49  ;;  %8033 = vmatpush3.bf16.msra.mxu1 %v8896_v18  ;;  %v8899_v18 = vld [vmem:[%s11592_s8 + $0x118] ss:$0 sps:$4 sm:$0x11]  }
0x1860   :  { %v8715_v53 = vpop.permute.xlu1 %8714  ;;  %v2963_v25 = vsel %vm11600_vm1, %v2954_v63, %v8711_v59  ;;  %v2964_v6 = vsel %vm11600_vm1, %v2955_v42, %v8712_v3  ;;  %v8720_v38 = vpop.permute.xlu0 %8719  ;;  %8034 = vmatprep.subr.bf16.mxu1 %v8897_v17  ;;  %v8898_v3 = vld [vmem:[%s11592_s8 + $0x110] sm:$0xff]  }
0x1861   :  { %v2971_v58 = vpack.c.bf16 %v2964_v6, %v2963_v25  ;;  %v8717_v54 = vunpack.i.h.bf16 %v8715_v53  ;;  %v8716_v43 = vunpack.i.l.bf16 %v8715_v53  ;;  %v8722_v0 = vunpack.i.h.bf16 %v8720_v38 }
0x1862   :  { %v8721_v47 = vunpack.i.l.bf16 %v8720_v38 }
0x1863   :  { %8017 = vmatmul.mubr.msk.bf16.gmra.mrb[120].mxu0 %vm206_vm10, %v2971_v58  ;;  %v2957_v2 = vsel %vm256_vm5, %v8717_v54, %v9641_v34  ;;  %v2956_v45 = vsel %vm256_vm5, %v8716_v43, %v9643_v12  ;;  %8035 = vmatpush3.bf16.msra.mxu1 %v8897_v17 }
0x1864   :  { %8020 = vmatprep.mubr.msk.bf16.mxu0 %vm9215_vm7, %v9214_v36  ;;  %v8725_v52 = vpop.permute.xlu1 %8724  ;;  %v2966_v5 = vsel %vm11600_vm1, %v2957_v2, %v8722_v0  ;;  %v2965_v7 = vsel %vm11600_vm1, %v2956_v45, %v8721_v47  ;;  %v8730_v19 = vpop.permute.xlu0 %8729  ;;  %8036 = vmatprep.subr.bf16.mxu1 %v8898_v3 }
0x1865   :  { %v2972_v13 = vpack.c.bf16 %v2966_v5, %v2965_v7  ;;  %v8727_v51 = vunpack.i.h.bf16 %v8725_v52  ;;  %v8726_v29 = vunpack.i.l.bf16 %v8725_v52  ;;  %v8732_v32 = vunpack.i.h.bf16 %v8730_v19 }
0x1866   :  { %v8731_v40 = vunpack.i.l.bf16 %v8730_v19 }
0x1867   :  { %v2959_v41 = vsel %vm256_vm5, %v8727_v51, %v9654_v26  ;;  %v2958_v60 = vsel %vm256_vm5, %v8726_v29, %v9656_v31  ;;  %8037 = vmatpush3.bf16.msra.mxu1 %v8898_v3  ;;  %v3183_v3 = vsel %vm11599_vm2, %v8899_v18, 0 }
0x1868   :  { %v2968_v62 = vsel %vm11600_vm1, %v2959_v41, %v8732_v32  ;;  %v2967_v11 = vsel %vm11600_vm1, %v2958_v60, %v8731_v40  ;;  %v2915_v4 = vpop.permute.xlu1 %2914  ;;  %v2942_v39 = vpop.permute.xlu0 %2941  ;;  %8494 = vmatprep.subr.msk.bf16.mxu1 %vm11599_vm2, %v8899_v18  ;;  %v3134_v18 = vsel %vm737_vm12, %v10300_v30, %v9736_v56 }
0x1869   :  { %v2973_v50 = vpack.c.bf16 %v2968_v62, %v2967_v11  ;;  %v2960_v15 = vsel %vm256_vm5, %v2915_v4, %v9664_v1 }
0x186a   :  { %v2969_v10 = vsel %vm11600_vm1, %v2960_v15, %v2942_v39 }
0x186b   :  { %8021 = vmatmul.mubr.msk.bf16.gmra.mrb[124].mxu0 %vm206_vm10, %v2972_v13  ;;  %v2974_v46 = vpack.c.bf16 %v2969_v10, %v2969_v10  ;;  %8039 = vmatpush3.bf16.msra.mxu1 %v3183_v3 }
0x186c   :  { %8024 = vmatprep.mubr.msk.bf16.mxu0 %vm9215_vm7, %v9214_v36  ;;  %8044 = vmatprep.subr.bf16.mxu1 %v9214_v36 }
0x1873   :  { %8025 = vmatmul.mubr.msk.bf16.gmra.mrb[128].mxu0 %vm206_vm10, %v2973_v50 }
0x1874   :  { %8028 = vmatprep.mubr.msk.bf16.mxu0 %vm9215_vm7, %v9214_v36 }
0x187b   :  { %8029 = vmatmul.mubr.msk.bf16.gmra.mrb[132].mxu0 %vm206_vm10, %v2974_v46 }
0x187c   :  { %8068 = vmatprep.mubr.msk.bf16.mxu0 %vm9215_vm7, %v9214_v36 }
0x18cf   :  { %v10372_v21 = vpop.f32.mrb[116].mxu0 }
0x18d0   :  { %v8014_v23 = vpop.f32.mrb[117].mxu0  ;;  %v3072_v42 = vmul.f32 %v10372_v21, %v10372_v21 }
0x18d1   :  { %v10374_v44 = vpop.f32.mrb[118].mxu0 }
0x18d2   :  { %v3236_v37 = vpack.c.bf16 %v10374_v44, %v10372_v21  ;;  %v8015_v35 = vpop.f32.mrb[119].mxu0  ;;  %v3073_v54 = vmul.f32 %v10374_v44, %v10374_v44  ;;  %v3404_v21 = vld [vmem:[%s11592_s8 + $0x128] sm:$0x3] }
0x18d3   :  { %v3431_v44 = vsel %vm124_vm3, %v3404_v21, 0 }
0x18d4   :  { %8067 = vmatpush3.bf16.msra.mxu0 %v3431_v44 }
0x18d5   :  { %8118 = vmatprep.subr.bf16.mxu0 %v9214_v36 }
0x1936   :  { %v10387_v59 = vpop.f32.mrb[120].mxu0 }
0x1937   :  { %v8018_v61 = vpop.f32.mrb[121].mxu0  ;;  %v3074_v47 = vmul.f32 %v10387_v59, %v10387_v59 }
0x1938   :  { %v10389_v8 = vpop.f32.mrb[122].mxu0 }
0x1939   :  { %v3075_v63 = vmul.f32 %v10389_v8, %v10389_v8  ;;  %v3237_v53 = vpack.c.bf16 %v10389_v8, %v10387_v59  ;;  %v8019_v25 = vpop.f32.mrb[123].mxu0 }
0x193b   :  { %v3078_v6 = vadd.f32 %v3075_v63, %v3072_v42 }
0x193e   :  { %v10397_v58 = vpop.f32.mrb[124].mxu0 }
0x193f   :  { %v3076_v43 = vmul.f32 %v10397_v58, %v10397_v58  ;;  %v8022_v38 = vpop.f32.mrb[125].mxu0 }
0x1940   :  { %v10403_v0 = vpop.f32.mrb[126].mxu0 }
0x1941   :  { %v3079_v2 = vadd.f32 %v3076_v43, %v3073_v54  ;;  %v3077_v45 = vmul.f32 %v10403_v0, %v10403_v0  ;;  %v3238_v52 = vpack.c.bf16 %v10403_v0, %v10397_v58  ;;  %v8023_v5 = vpop.f32.mrb[127].mxu0 }
0x1943   :  { %v3080_v7 = vadd.f32 %v3077_v45, %v3074_v47 }
0x1946   :  { %v10411_v13 = vpop.f32.mrb[128].mxu0 }
0x1947   :  { %v3081_v19 = vmul.f32 %v10411_v13, %v10411_v13  ;;  %v8026_v51 = vpop.f32.mrb[129].mxu0 }
0x1948   :  { %v10415_v29 = vpop.f32.mrb[130].mxu0 }
0x1949   :  { %v3084_v32 = vadd.f32 %v3081_v19, %v3078_v6  ;;  %v3082_v40 = vmul.f32 %v10415_v29, %v10415_v29  ;;  %v3239_v41 = vpack.c.bf16 %v10415_v29, %v10411_v13  ;;  %v8027_v60 = vpop.f32.mrb[131].mxu0 }
0x194b   :  { %v3087_v62 = vmax.f32 %v3084_v32, 1e-08  ;;  %v3085_v11 = vadd.f32 %v3082_v40, %v3079_v2  ;;  %v8735_v32 = vpop.permute.xlu1 %8734 }
0x194c   :  { %v8737_v40 = vunpack.i.h.bf16 %v8735_v32  ;;  %v8736_v60 = vunpack.i.l.bf16 %v8735_v32 }
0x194d   :  { %9030 = vrsqrt.f32 %v3087_v62  ;;  %v3088_v50 = vmax.f32 %v3085_v11, 1e-08  ;;  %vm3092_vm8 = vcmp.eq.f32.partialorder %v3087_v62, inf  ;;  %v3095_v6 = vand.u32 2147483648, %v3087_v62 }
0x194e   :  { %v10421_v4 = vpop.f32.mrb[132].mxu0  ;;  %vm3094_vm15 = vcmp.eq.f32.partialorder %v3087_v62, 0.0 }
0x194f   :  { %9032 = vrsqrt.f32 %v3088_v50  ;;  %v3083_v39 = vmul.f32 %v10421_v4, %v10421_v4  ;;  %v8030_v15 = vpop.f32.mrb[133].mxu0  ;;  %vm3099_vm9 = vcmp.eq.f32.partialorder %v3088_v50, inf  ;;  %v3102_v54 = vand.u32 2147483648, %v3088_v50 }
0x1950   :  { %v3069_v10 = vpop.f32.mrb[134].mxu0  ;;  %vm3101_vm0 = vcmp.eq.f32.partialorder %v3088_v50, 0.0  ;;  %v3240_v30 = vpack.c.bf16 %v10421_v4, %v10421_v4 }
0x1951   :  { %v3086_v46 = vadd.f32 %v3083_v39, %v3080_v7  ;;  %v8031_v23 = vpop.f32.mrb[135].mxu0  ;;  %v3133_v39 = vsel %vm737_vm12, %v10296_v16, %v9738_v14 }
0x1953   :  { %v3089_v35 = vmax.f32 %v3086_v46, 1e-08  ;;  %v3136_v46 = vsel %vm741_vm14, %v3133_v39, %v8737_v40 }
0x1955   :  { %9034 = vrsqrt.f32 %v3089_v35  ;;  %vm3106_vm2 = vcmp.eq.f32.partialorder %v3089_v35, inf  ;;  %v3109_v7 = vand.u32 2147483648, %v3089_v35  ;;  %vm3108_vm1 = vcmp.eq.f32.partialorder %v3089_v35, 0.0 }
0x1957   :  { %v9031_v17 = vpop.eup %9030 }
0x1958   :  { %v3091_v61 = vmul.f32 %v9031_v17, %v3087_v62 }
0x1959   :  { %v9033_v42 = vpop.eup %9032 }
0x195a   :  { %v3093_v63 = vsel %vm3092_vm8, %v3087_v62, %v3091_v61  ;;  %v3098_v25 = vmul.f32 %v9033_v42, %v3088_v50  ;;  %v3116_v62 = vpop.permute.xlu0 %3115 }
0x195b   :  { %v3096_v38 = vsel %vm3094_vm15, %v3095_v6, %v3093_v63  ;;  %v3137_v16 = vsel %vm741_vm14, %v3134_v18, %v3116_v62 }
0x195c   :  { %v3100_v43 = vsel %vm3099_vm9, %v3088_v50, %v3098_v25  ;;  %v3132_v50 = vsel %vm737_vm12, %v10294_v57, %v9740_v9  ;;  %vm11619_vm9 = vcmask 408576  }
0x195d   :  { %v3103_v47 = vsel %vm3101_vm0, %v3102_v54, %v3100_v43  ;;  %v3135_v23 = vsel %vm741_vm14, %v3132_v50, %v8736_v60  ;;  %vm11620_vm15 = vmmov %vm11619_vm9 }
0x195e   :  { %v8738_v2 = vpack.i.bf16 %v3103_v47, %v3096_v38 }
0x195f   :  { %v9035_v45 = vpop.eup %9034 }
0x1960   :  { %8739 = vrot.lane.b32.xlu1 %v8738_v2, %s9226_s25  ;;  %v3105_v5 = vmul.f32 %v9035_v45, %v3089_v35 }
0x1962   :  { %v3107_v19 = vsel %vm3106_vm2, %v3089_v35, %v3105_v5  ;;  %v8900_v35 = vld [vmem:[%s11592_s8 + $0x120] sm:$0x1f]  }
0x1963   :  { %v3110_v51 = vsel %vm3108_vm1, %v3109_v7, %v3107_v19  ;;  %vm11616_vm1 = vcmask 326656   ;;  %v3264_v25 = vsel %vm210_vm6, %v8900_v35, 0 }
0x1964   :  { %3127 = vrot.lane.b32.xlu0 %v3110_v51, %s9226_s25  ;;  %vm11617_vm2 = vmmov %vm11616_vm1 }
0x1965   :  { %vm11618_vm8 = vmmov %vm11616_vm1 }
0x19d2   :  { %v8740_v11 = vpop.permute.xlu1 %8739 }
0x19d3   :  { %v8742_v15 = vunpack.i.h.bf16 %v8740_v11  ;;  %v8741_v10 = vunpack.i.l.bf16 %v8740_v11 }
0x19d5   :  { %v3139_v57 = vsel %vm11616_vm1, %v3136_v46, %v8742_v15  ;;  %v3138_v17 = vsel %vm11617_vm2, %v3135_v23, %v8741_v10 }
0x19d6   :  { %v3141_v3 = vpack.c.bf16 %v3139_v57, %v3138_v17  ;;  %v3128_v61 = vpop.permute.xlu0 %3127 }
0x19d7   :  { %v3140_v42 = vsel %vm11618_vm8, %v3137_v16, %v3128_v61 }
0x19d8   :  { %v3142_v63 = vpack.c.bf16 %v3140_v42, %v3140_v42  ;;  %8040 = vmatprep.mubr.msk.bf16.mxu1 %vm11619_vm9, %v3141_v3 }
0x19da   :  { %8041 = vmatmul.mubr.msk.bf16.vlgmr.msra.gmra.mrb[124].mxu1 %vm11620_vm15, %v3142_v63 }
0x19db   :  { %8045 = vmatpush3.bf16.msra.mxu1 %v3264_v25  ;;  %8046 = vmatprep.mubr.msk.bf16.mxu1 %vm9215_vm7, %v9214_v36 }
0x19e2   :  { %8047 = vmatmul.mubr.msk.bf16.vlgmr.msra.gmra.mrb[128].mxu1 %vm206_vm10, %v3236_v37 }
0x19e3   :  { %8050 = vmatprep.mubr.msk.bf16.mxu1 %vm9215_vm7, %v9214_v36 }
0x19ea   :  { %8051 = vmatmul.mubr.msk.bf16.gmra.mrb[132].mxu1 %vm206_vm10, %v3237_v53 }
0x19eb   :  { %8054 = vmatprep.mubr.msk.bf16.mxu1 %vm9215_vm7, %v9214_v36 }
0x19f2   :  { %8055 = vmatmul.mubr.msk.bf16.gmra.mrb[136].mxu1 %vm206_vm10, %v3238_v52 }
0x19f3   :  { %8058 = vmatprep.mubr.msk.bf16.mxu1 %vm9215_vm7, %v9214_v36 }
0x19fa   :  { %8059 = vmatmul.mubr.msk.bf16.gmra.mrb[140].mxu1 %vm206_vm10, %v3239_v41 }
0x19fb   :  { %8062 = vmatprep.mubr.msk.bf16.mxu1 %vm9215_vm7, %v9214_v36 }
0x1a02   :  { %8063 = vmatmul.mubr.msk.bf16.gmra.mrb[144].mxu1 %vm206_vm10, %v3240_v30 }
0x1aad   :  { %v10488_v37 = vpop.f32.mrb[124].mxu1 }
0x1aae   :  { %v10490_v59 = vpop.f32.mrb[125].mxu1 }
0x1aaf   :  { %v8043_v8 = vpop.f32.mrb[126].mxu1 }
0x1ab0   :  { %v10492_v53 = vpop.f32.mrb[127].mxu1 }
0x1ab5   :  { %v10494_v58 = vpop.f32.mrb[128].mxu1 }
0x1ab6   :  { %v8048_v0 = vpop.f32.mrb[129].mxu1  ;;  %v3338_v6 = vmul.f32 %v10494_v58, %v10494_v58 }
0x1ab7   :  { %v10496_v52 = vpop.f32.mrb[130].mxu1 }
0x1ab8   :  { %v8049_v13 = vpop.f32.mrb[131].mxu1  ;;  %v3339_v2 = vmul.f32 %v10496_v52, %v10496_v52 }
0x1abd   :  { %v10498_v29 = vpop.f32.mrb[132].mxu1 }
0x1abe   :  { %v8052_v41 = vpop.f32.mrb[133].mxu1  ;;  %v3340_v19 = vmul.f32 %v10498_v29, %v10498_v29 }
0x1abf   :  { %v10500_v4 = vpop.f32.mrb[134].mxu1 }
0x1ac0   :  { %v3341_v54 = vmul.f32 %v10500_v4, %v10500_v4  ;;  %v8053_v43 = vpop.f32.mrb[135].mxu1 }
0x1ac2   :  { %v3344_v38 = vadd.f32 %v3341_v54, %v3338_v6 }
0x1ac5   :  { %v10506_v47 = vpop.f32.mrb[136].mxu1 }
0x1ac6   :  { %v3342_v45 = vmul.f32 %v10506_v47, %v10506_v47  ;;  %v8056_v5 = vpop.f32.mrb[137].mxu1 }
0x1ac7   :  { %v10512_v7 = vpop.f32.mrb[138].mxu1 }
0x1ac8   :  { %v3345_v51 = vadd.f32 %v3342_v45, %v3339_v2  ;;  %v3343_v32 = vmul.f32 %v10512_v7, %v10512_v7  ;;  %v8057_v40 = vpop.f32.mrb[139].mxu1 }
0x1aca   :  { %v3346_v60 = vadd.f32 %v3343_v32, %v3340_v19 }
0x1acd   :  { %v3324_v62 = vpop.f32.mrb[140].mxu1 }
0x1ace   :  { %v3347_v11 = vmul.f32 %v3324_v62, %v3324_v62  ;;  %v8060_v50 = vpop.f32.mrb[141].mxu1 }
0x1acf   :  { %v3327_v39 = vpop.f32.mrb[142].mxu1 }
0x1ad0   :  { %v3350_v15 = vadd.f32 %v3347_v11, %v3344_v38  ;;  %v3348_v10 = vmul.f32 %v3327_v39, %v3327_v39  ;;  %v8061_v46 = vpop.f32.mrb[143].mxu1 }
0x1ad2   :  { %v3353_v23 = vmax.f32 %v3350_v15, 1e-08  ;;  %v3351_v35 = vadd.f32 %v3348_v10, %v3345_v51 }
0x1ad4   :  { %9036 = vrsqrt.f32 %v3353_v23  ;;  %v3354_v18 = vmax.f32 %v3351_v35, 1e-08  ;;  %vm3358_vm0 = vcmp.eq.f32.partialorder %v3353_v23, inf  ;;  %v3361_v21 = vand.u32 2147483648, %v3353_v23 }
0x1ad5   :  { %v3332_v57 = vpop.f32.mrb[144].mxu1  ;;  %vm3360_vm1 = vcmp.eq.f32.partialorder %v3353_v23, 0.0 }
0x1ad6   :  { %v3349_v17 = vmul.f32 %v3332_v57, %v3332_v57  ;;  %v8064_v16 = vpop.f32.mrb[145].mxu1  ;;  %9038 = vrsqrt.f32 %v3354_v18  ;;  %vm3365_vm2 = vcmp.eq.f32.partialorder %v3354_v18, inf  ;;  %v3368_v6 = vand.u32 2147483648, %v3354_v18 }
0x1ad7   :  { %v3335_v3 = vpop.f32.mrb[146].mxu1  ;;  %vm3367_vm8 = vcmp.eq.f32.partialorder %v3354_v18, 0.0 }
0x1ad8   :  { %v3352_v61 = vadd.f32 %v3349_v17, %v3346_v60  ;;  %v8065_v42 = vpop.f32.mrb[147].mxu1 }
0x1ada   :  { %v3355_v63 = vmax.f32 %v3352_v61, 1e-08 }
0x1adc   :  { %9040 = vrsqrt.f32 %v3355_v63  ;;  %vm3372_vm9 = vcmp.eq.f32.partialorder %v3355_v63, inf  ;;  %v3375_v5 = vand.u32 2147483648, %v3355_v63  ;;  %vm3374_vm15 = vcmp.eq.f32.partialorder %v3355_v63, 0.0 }
0x1ade   :  { %v9037_v25 = vpop.eup %9036 }
0x1adf   :  { %v3357_v30 = vmul.f32 %v9037_v25, %v3353_v23 }
0x1ae0   :  { %v9039_v44 = vpop.eup %9038 }
0x1ae1   :  { %v3359_v8 = vsel %vm3358_vm0, %v3353_v23, %v3357_v30  ;;  %v3364_v13 = vmul.f32 %v9039_v44, %v3354_v18 }
0x1ae2   :  { %v3362_v0 = vsel %vm3360_vm1, %v3361_v21, %v3359_v8 }
0x1ae3   :  { %v7272_v41 = vmul.f32 -1.442695, %v3362_v0  ;;  %v3366_v54 = vsel %vm3365_vm2, %v3354_v18, %v3364_v13 }
0x1ae4   :  { %v3369_v43 = vsel %vm3367_vm8, %v3368_v6, %v3366_v54 }
0x1ae5   :  { %9042 = vpow2.f32 %v7272_v41  ;;  %v7273_v2 = vmul.f32 -1.442695, %v3369_v43 }
0x1ae6   :  { %v9041_v38 = vpop.eup %9040 }
0x1ae7   :  { %v3371_v45 = vmul.f32 %v9041_v38, %v3355_v63  ;;  %9044 = vpow2.f32 %v7273_v2 }
0x1ae9   :  { %v3373_v19 = vsel %vm3372_vm9, %v3355_v63, %v3371_v45 }
0x1aea   :  { %v3376_v51 = vsel %vm3374_vm15, %v3375_v5, %v3373_v19 }
0x1aeb   :  { %v7274_v32 = vmul.f32 -1.442695, %v3376_v51 }
0x1aed   :  { %9046 = vpow2.f32 %v7274_v32 }
0x1aef   :  { %v9043_v40 = vpop.eup %9042 }
0x1af0   :  { %v3386_v60 = vadd.f32 1.0, %v9043_v40 }
0x1af1   :  { %v9045_v11 = vpop.eup %9044 }
0x1af2   :  { %9048 = vrcp.f32 %v3386_v60  ;;  %v3387_v50 = vadd.f32 1.0, %v9045_v11 }
0x1af4   :  { %9050 = vrcp.f32 %v3387_v50 }
0x1af7   :  { %v9047_v15 = vpop.eup %9046 }
0x1af8   :  { %v3388_v10 = vadd.f32 1.0, %v9047_v15 }
0x1afa   :  { %9052 = vrcp.f32 %v3388_v10 }
0x1afc   :  { %v9049_v46 = vpop.eup %9048 }
0x1afd   :  { %v3401_v23 = vmul.f32 %v9049_v46, %v3324_v62  ;;  %v3395_v35 = vmul.f32 %v9049_v46, %v10494_v58  ;;  %v3398_v18 = vmul.f32 %v9049_v46, %v10500_v4 }
0x1afe   :  { %v9051_v17 = vpop.eup %9050 }
0x1aff   :  { %v3402_v16 = vmul.f32 %v9051_v17, %v3327_v39  ;;  %v3396_v3 = vmul.f32 %v9051_v17, %v10496_v52  ;;  %v3399_v61 = vmul.f32 %v9051_v17, %v10506_v47 }
0x1b01   :  { %v3413_v42 = vpack.c.bf16 %v3402_v16, %v3401_v23  ;;  %v3410_v63 = vpack.c.bf16 %v3396_v3, %v3395_v35 }
0x1b03   :  { %8069 = vmatmul.mubr.msk.bf16.vlgmr.msra.gmra.mrb[136].mxu0 %vm256_vm5, %v3410_v63 }
0x1b04   :  { %v9053_v25 = vpop.eup %9052  ;;  %8072 = vmatprep.mubr.msk.bf16.mxu0 %vm9215_vm7, %v9214_v36 }
0x1b05   :  { %v3403_v30 = vmul.f32 %v9053_v25, %v3332_v57  ;;  %v3397_v62 = vmul.f32 %v9053_v25, %v10498_v29  ;;  %v3400_v58 = vmul.f32 %v9053_v25, %v10512_v7  ;;  %v8901_v29 = vld [vmem:[%s11592_s8 + $0x130] sm:$0xff]  }
0x1b06   :  { %8088 = vmatprep.subr.bf16.mxu1 %v8901_v29 }
0x1b07   :  { %v3411_v4 = vpack.c.bf16 %v3398_v18, %v3397_v62  ;;  %v3412_v21 = vpack.c.bf16 %v3400_v58, %v3399_v61  ;;  %v3414_v52 = vpack.c.bf16 %v3403_v30, %v3403_v30  ;;  %8089 = vmatpush3.bf16.msra.mxu1 %v8901_v29  ;;  %v8902_v29 = vld [vmem:[%s11592_s8 + $0x138] ss:$0 sps:$4 sm:$0x33]  }
0x1b08   :  { %8495 = vmatprep.subr.msk.bf16.mxu1 %vm124_vm3, %v8902_v29 }
0x1b0b   :  { %8073 = vmatmul.mubr.msk.bf16.gmra.mrb[140].mxu0 %vm256_vm5, %v3411_v4 }
0x1b0c   :  { %8076 = vmatprep.mubr.msk.bf16.mxu0 %vm9215_vm7, %v9214_v36 }
0x1b13   :  { %8077 = vmatmul.mubr.msk.bf16.gmra.mrb[144].mxu0 %vm256_vm5, %v3412_v21 }
0x1b14   :  { %8080 = vmatprep.mubr.msk.bf16.mxu0 %vm9215_vm7, %v9214_v36 }
0x1b1b   :  { %8081 = vmatmul.mubr.msk.bf16.gmra.mrb[148].mxu0 %vm256_vm5, %v3413_v42 }
0x1b1c   :  { %8084 = vmatprep.mubr.msk.bf16.mxu0 %vm9215_vm7, %v9214_v36 }
0x1b23   :  { %8085 = vmatmul.mubr.msk.bf16.gmra.mrb[152].mxu0 %vm256_vm5, %v3414_v52 }
0x1b24   :  { %8120 = vmatprep.mubr.msk.bf16.mxu0 %vm9215_vm7, %v9214_v36 }
0x1bd6   :  { %v10542_v47 = vpop.f32.mrb[136].mxu0 }
0x1bd7   :  { %v8070_v7 = vpop.f32.mrb[137].mxu0  ;;  %v3505_v41 = vmul.f32 %v10542_v47, %v10542_v47 }
0x1bd8   :  { %v10544_v39 = vpop.f32.mrb[138].mxu0 }
0x1bd9   :  { %v3634_v57 = vpack.c.bf16 %v10544_v39, %v10542_v47  ;;  %v8071_v44 = vpop.f32.mrb[139].mxu0  ;;  %v3506_v45 = vmul.f32 %v10544_v39, %v10544_v39  ;;  %v3795_v39 = vld [vmem:[%s11592_s8 + $0x148] sm:$0x3] }
0x1bda   :  { %v3581_v44 = vsel %vm124_vm3, %v8902_v29, 0  ;;  %v3409_v29 = vld [vmem:[%s11592_s8 + $0x140] sm:$0x3] }
0x1bdb   :  { %8091 = vmatpush3.bf16.msra.mxu1 %v3581_v44 }
0x1bdc   :  { %8096 = vmatprep.subr.bf16.mxu1 %v9214_v36 }
0x1bde   :  { %v10548_v8 = vpop.f32.mrb[140].mxu0 }
0x1bdf   :  { %v8074_v0 = vpop.f32.mrb[141].mxu0  ;;  %v3507_v32 = vmul.f32 %v10548_v8, %v10548_v8 }
0x1be0   :  { %v10550_v13 = vpop.f32.mrb[142].mxu0 }
0x1be1   :  { %v3508_v6 = vmul.f32 %v10550_v13, %v10550_v13  ;;  %v3635_v54 = vpack.c.bf16 %v10550_v13, %v10548_v8  ;;  %v8075_v43 = vpop.f32.mrb[143].mxu0 }
0x1be3   :  { %v3511_v38 = vadd.f32 %v3508_v6, %v3505_v41 }
0x1be6   :  { %v10558_v2 = vpop.f32.mrb[144].mxu0 }
0x1be7   :  { %v3509_v5 = vmul.f32 %v10558_v2, %v10558_v2  ;;  %v8078_v19 = vpop.f32.mrb[145].mxu0 }
0x1be8   :  { %v10564_v51 = vpop.f32.mrb[146].mxu0 }
0x1be9   :  { %v3512_v40 = vadd.f32 %v3509_v5, %v3506_v45  ;;  %v3510_v60 = vmul.f32 %v10564_v51, %v10564_v51  ;;  %v3636_v11 = vpack.c.bf16 %v10564_v51, %v10558_v2  ;;  %v8079_v50 = vpop.f32.mrb[147].mxu0 }
0x1beb   :  { %v3513_v15 = vadd.f32 %v3510_v60, %v3507_v32 }
0x1bee   :  { %v10572_v10 = vpop.f32.mrb[148].mxu0 }
0x1bef   :  { %v3514_v46 = vmul.f32 %v10572_v10, %v10572_v10  ;;  %v8082_v23 = vpop.f32.mrb[149].mxu0 }
0x1bf0   :  { %v10576_v35 = vpop.f32.mrb[150].mxu0 }
0x1bf1   :  { %v3517_v18 = vadd.f32 %v3514_v46, %v3511_v38  ;;  %v3515_v17 = vmul.f32 %v10576_v35, %v10576_v35  ;;  %v3637_v16 = vpack.c.bf16 %v10576_v35, %v10572_v10  ;;  %v8083_v3 = vpop.f32.mrb[151].mxu0 }
0x1bf3   :  { %v3520_v61 = vmax.f32 %v3517_v18, 1e-08  ;;  %v3518_v42 = vadd.f32 %v3515_v17, %v3512_v40  ;;  %v7259_v18 = vld [vmem:[%s11593_s9 + $0xf] ss:$0 sm:$0xff] }
0x1bf4   :  { %v3220_v17 = vadd.f32 %v7259_v18, %v10490_v59  ;;  %v3223_v3 = vadd.f32 %v7259_v18, %v10492_v53 }
0x1bf5   :  { %9054 = vrsqrt.f32 %v3520_v61  ;;  %v3521_v63 = vmax.f32 %v3518_v42, 1e-08  ;;  %vm3525_vm0 = vcmp.eq.f32.partialorder %v3520_v61, inf  ;;  %v3528_v38 = vand.u32 2147483648, %v3520_v61 }
0x1bf6   :  { %v10582_v25 = vpop.f32.mrb[152].mxu0  ;;  %vm3527_vm2 = vcmp.eq.f32.partialorder %v3520_v61, 0.0 }
0x1bf7   :  { %9056 = vrsqrt.f32 %v3521_v63  ;;  %v3516_v30 = vmul.f32 %v10582_v25, %v10582_v25  ;;  %v8086_v62 = vpop.f32.mrb[153].mxu0  ;;  %vm3532_vm1 = vcmp.eq.f32.partialorder %v3521_v63, inf  ;;  %v3535_v45 = vand.u32 2147483648, %v3521_v63 }
0x1bf8   :  { %v3502_v58 = vpop.f32.mrb[154].mxu0  ;;  %vm3534_vm8 = vcmp.eq.f32.partialorder %v3521_v63, 0.0  ;;  %v3638_v47 = vpack.c.bf16 %v10582_v25, %v10582_v25 }
0x1bf9   :  { %v3519_v4 = vadd.f32 %v3516_v30, %v3513_v15  ;;  %v8087_v21 = vpop.f32.mrb[155].mxu0  ;;  %v3234_v30 = vmax.f32 %v3223_v3, 0.0 }
0x1bfb   :  { %v3522_v52 = vmax.f32 %v3519_v4, 1e-08 }
0x1bfd   :  { %9058 = vrsqrt.f32 %v3522_v52  ;;  %vm3539_vm9 = vcmp.eq.f32.partialorder %v3522_v52, inf  ;;  %v3542_v15 = vand.u32 2147483648, %v3522_v52  ;;  %vm3541_vm15 = vcmp.eq.f32.partialorder %v3522_v52, 0.0 }
0x1bff   :  { %v9055_v7 = vpop.eup %9054 }
0x1c00   :  { %v3524_v0 = vmul.f32 %v9055_v7, %v3520_v61 }
0x1c01   :  { %v9057_v41 = vpop.eup %9056 }
0x1c02   :  { %v3526_v6 = vsel %vm3525_vm0, %v3520_v61, %v3524_v0  ;;  %v3531_v43 = vmul.f32 %v9057_v41, %v3521_v63  ;;  %v3228_v61 = vadd.f32 %v10488_v37, %v7259_v18  ;;  %vm11621_vm0 = vcmask 162816  }
0x1c03   :  { %v3529_v19 = vsel %vm3527_vm2, %v3528_v38, %v3526_v6  ;;  %v3655_v37 = vsel %vm124_vm3, %v3409_v29, 0 }
0x1c04   :  { %v3533_v5 = vsel %vm3532_vm1, %v3521_v63, %v3531_v43  ;;  %v3233_v63 = vmax.f32 %v3220_v17, 0.0  ;;  %v3235_v4 = vmax.f32 %v3228_v61, 0.0  ;;  %vm11622_vm1 = vmmov %vm11621_vm0 }
0x1c05   :  { %v3536_v32 = vsel %vm3534_vm8, %v3535_v45, %v3533_v5 }
0x1c06   :  { %v8743_v40 = vpack.i.bf16 %v3536_v32, %v3529_v19 }
0x1c07   :  { %v9059_v60 = vpop.eup %9058 }
0x1c08   :  { %8744 = vrot.lane.b32.xlu1 %v8743_v40, %s9219_s14  ;;  %v3538_v50 = vmul.f32 %v9059_v60, %v3522_v52 }
0x1c0a   :  { %v3540_v46 = vsel %vm3539_vm9, %v3522_v52, %v3538_v50 }
0x1c0b   :  { %v3543_v23 = vsel %vm3541_vm15, %v3542_v15, %v3540_v46 }
0x1c0c   :  { %3551 = vrot.lane.b32.xlu0 %v3543_v23, %s9219_s14 }
0x1c7a   :  { %v8745_v42 = vpop.permute.xlu1 %8744 }
0x1c7b   :  { %v8747_v62 = vunpack.i.h.bf16 %v8745_v42  ;;  %v8746_v58 = vunpack.i.l.bf16 %v8745_v42 }
0x1c7d   :  { %v3556_v21 = vsel %vm737_vm12, %v3233_v63, %v8746_v58  ;;  %v3557_v52 = vsel %vm737_vm12, %v3234_v30, %v8747_v62 }
0x1c7e   :  { %v3559_v7 = vpack.c.bf16 %v3557_v52, %v3556_v21  ;;  %v3552_v59 = vpop.permute.xlu0 %3551 }
0x1c7f   :  { %v3558_v53 = vsel %vm737_vm12, %v3235_v4, %v3552_v59 }
0x1c80   :  { %v3560_v44 = vpack.c.bf16 %v3558_v53, %v3558_v53  ;;  %8092 = vmatprep.mubr.msk.bf16.mxu1 %vm11621_vm0, %v3559_v7 }
0x1c82   :  { %8093 = vmatmul.mubr.msk.bf16.vlgmr.msra.gmra.mrb[148].mxu1 %vm11622_vm1, %v3560_v44 }
0x1c83   :  { %8097 = vmatpush3.bf16.msra.mxu1 %v3655_v37  ;;  %8098 = vmatprep.mubr.msk.bf16.mxu1 %vm9215_vm7, %v9214_v36 }
0x1c8a   :  { %8099 = vmatmul.mubr.msk.bf16.vlgmr.msra.gmra.mrb[152].mxu1 %vm256_vm5, %v3634_v57  ;;  %v3822_v57 = vsel %vm124_vm3, %v3795_v39, 0 }
0x1c8b   :  { %8102 = vmatprep.mubr.msk.bf16.mxu1 %vm9215_vm7, %v9214_v36  ;;  %8119 = vmatpush3.bf16.msra.mxu0 %v3822_v57 }
0x1c8c   :  { %8148 = vmatprep.subr.bf16.mxu0 %v9214_v36 }
0x1c92   :  { %8103 = vmatmul.mubr.msk.bf16.gmra.mrb[156].mxu1 %vm256_vm5, %v3635_v54 }
0x1c93   :  { %8106 = vmatprep.mubr.msk.bf16.mxu1 %vm9215_vm7, %v9214_v36 }
0x1c9a   :  { %8107 = vmatmul.mubr.msk.bf16.gmra.mrb[160].mxu1 %vm256_vm5, %v3636_v11 }
0x1c9b   :  { %8110 = vmatprep.mubr.msk.bf16.mxu1 %vm9215_vm7, %v9214_v36 }
0x1ca2   :  { %8111 = vmatmul.mubr.msk.bf16.gmra.mrb[164].mxu1 %vm256_vm5, %v3637_v16 }
0x1ca3   :  { %8114 = vmatprep.mubr.msk.bf16.mxu1 %vm9215_vm7, %v9214_v36 }
0x1caa   :  { %8115 = vmatmul.mubr.msk.bf16.gmra.mrb[168].mxu1 %vm256_vm5, %v3638_v47 }
0x1d55   :  { %v10643_v8 = vpop.f32.mrb[148].mxu1 }
0x1d56   :  { %v10645_v13 = vpop.f32.mrb[149].mxu1 }
0x1d57   :  { %v8095_v54 = vpop.f32.mrb[150].mxu1 }
0x1d58   :  { %v10647_v2 = vpop.f32.mrb[151].mxu1 }
0x1d5d   :  { %v10649_v51 = vpop.f32.mrb[152].mxu1 }
0x1d5e   :  { %v8100_v11 = vpop.f32.mrb[153].mxu1  ;;  %v3729_v41 = vmul.f32 %v10649_v51, %v10649_v51 }
0x1d5f   :  { %v10651_v10 = vpop.f32.mrb[154].mxu1 }
0x1d60   :  { %v8101_v35 = vpop.f32.mrb[155].mxu1  ;;  %v3730_v5 = vmul.f32 %v10651_v10, %v10651_v10 }
0x1d65   :  { %v10653_v16 = vpop.f32.mrb[156].mxu1 }
0x1d66   :  { %v8104_v25 = vpop.f32.mrb[157].mxu1  ;;  %v3731_v60 = vmul.f32 %v10653_v16, %v10653_v16 }
0x1d67   :  { %v10655_v0 = vpop.f32.mrb[158].mxu1 }
0x1d68   :  { %v3732_v6 = vmul.f32 %v10655_v0, %v10655_v0  ;;  %v8105_v43 = vpop.f32.mrb[159].mxu1 }
0x1d6a   :  { %v3735_v38 = vadd.f32 %v3732_v6, %v3729_v41 }
0x1d6d   :  { %v10661_v45 = vpop.f32.mrb[160].mxu1 }
0x1d6e   :  { %v3733_v19 = vmul.f32 %v10661_v45, %v10661_v45  ;;  %v8108_v32 = vpop.f32.mrb[161].mxu1 }
0x1d6f   :  { %v10667_v40 = vpop.f32.mrb[162].mxu1 }
0x1d70   :  { %v3736_v50 = vadd.f32 %v3733_v19, %v3730_v5  ;;  %v3734_v15 = vmul.f32 %v10667_v40, %v10667_v40  ;;  %v8109_v46 = vpop.f32.mrb[163].mxu1 }
0x1d72   :  { %v3737_v23 = vadd.f32 %v3734_v15, %v3731_v60 }
0x1d75   :  { %v3715_v18 = vpop.f32.mrb[164].mxu1 }
0x1d76   :  { %v3738_v17 = vmul.f32 %v3715_v18, %v3715_v18  ;;  %v8112_v3 = vpop.f32.mrb[165].mxu1 }
0x1d77   :  { %v3718_v61 = vpop.f32.mrb[166].mxu1 }
0x1d78   :  { %v3741_v42 = vadd.f32 %v3738_v17, %v3735_v38  ;;  %v3739_v63 = vmul.f32 %v3718_v61, %v3718_v61  ;;  %v8113_v30 = vpop.f32.mrb[167].mxu1 }
0x1d7a   :  { %v3744_v62 = vmax.f32 %v3741_v42, 1e-08  ;;  %v3742_v58 = vadd.f32 %v3739_v63, %v3736_v50 }
0x1d7c   :  { %9060 = vrsqrt.f32 %v3744_v62  ;;  %v3745_v4 = vmax.f32 %v3742_v58, 1e-08  ;;  %vm3749_vm2 = vcmp.eq.f32.partialorder %v3744_v62, inf  ;;  %v3752_v39 = vand.u32 2147483648, %v3744_v62 }
0x1d7d   :  { %v3723_v21 = vpop.f32.mrb[168].mxu1  ;;  %vm3751_vm8 = vcmp.eq.f32.partialorder %v3744_v62, 0.0 }
0x1d7e   :  { %v3740_v52 = vmul.f32 %v3723_v21, %v3723_v21  ;;  %v8116_v29 = vpop.f32.mrb[169].mxu1  ;;  %9062 = vrsqrt.f32 %v3745_v4  ;;  %vm3756_vm9 = vcmp.eq.f32.partialorder %v3745_v4, inf  ;;  %v3759_v41 = vand.u32 2147483648, %v3745_v4 }
0x1d7f   :  { %v3726_v7 = vpop.f32.mrb[170].mxu1  ;;  %vm3758_vm15 = vcmp.eq.f32.partialorder %v3745_v4, 0.0 }
0x1d80   :  { %v3743_v59 = vadd.f32 %v3740_v52, %v3737_v23  ;;  %v8117_v53 = vpop.f32.mrb[171].mxu1 }
0x1d82   :  { %v3746_v44 = vmax.f32 %v3743_v59, 1e-08 }
0x1d84   :  { %9064 = vrsqrt.f32 %v3746_v44  ;;  %vm3763_vm0 = vcmp.eq.f32.partialorder %v3746_v44, inf  ;;  %v3766_v32 = vand.u32 2147483648, %v3746_v44  ;;  %vm3765_vm1 = vcmp.eq.f32.partialorder %v3746_v44, 0.0 }
0x1d86   :  { %v9061_v37 = vpop.eup %9060 }
0x1d87   :  { %v3748_v47 = vmul.f32 %v9061_v37, %v3744_v62 }
0x1d88   :  { %v9063_v57 = vpop.eup %9062 }
0x1d89   :  { %v3750_v54 = vsel %vm3749_vm2, %v3744_v62, %v3748_v47  ;;  %v3755_v35 = vmul.f32 %v9063_v57, %v3745_v4 }
0x1d8a   :  { %v3753_v11 = vsel %vm3751_vm8, %v3752_v39, %v3750_v54 }
0x1d8b   :  { %v7290_v25 = vmul.f32 -1.442695, %v3753_v11  ;;  %v3757_v6 = vsel %vm3756_vm9, %v3745_v4, %v3755_v35 }
0x1d8c   :  { %v3760_v43 = vsel %vm3758_vm15, %v3759_v41, %v3757_v6 }
0x1d8d   :  { %9066 = vpow2.f32 %v7290_v25  ;;  %v7291_v5 = vmul.f32 -1.442695, %v3760_v43 }
0x1d8e   :  { %v9065_v38 = vpop.eup %9064 }
0x1d8f   :  { %v3762_v19 = vmul.f32 %v9065_v38, %v3746_v44  ;;  %9068 = vpow2.f32 %v7291_v5 }
0x1d91   :  { %v3764_v60 = vsel %vm3763_vm0, %v3746_v44, %v3762_v19 }
0x1d92   :  { %v3767_v50 = vsel %vm3765_vm1, %v3766_v32, %v3764_v60 }
0x1d93   :  { %v7292_v15 = vmul.f32 -1.442695, %v3767_v50 }
0x1d95   :  { %9070 = vpow2.f32 %v7292_v15 }
0x1d97   :  { %v9067_v46 = vpop.eup %9066 }
0x1d98   :  { %v3777_v23 = vadd.f32 1.0, %v9067_v46 }
0x1d99   :  { %v9069_v17 = vpop.eup %9068 }
0x1d9a   :  { %9072 = vrcp.f32 %v3777_v23  ;;  %v3778_v3 = vadd.f32 1.0, %v9069_v17 }
0x1d9c   :  { %9074 = vrcp.f32 %v3778_v3 }
0x1d9f   :  { %v9071_v42 = vpop.eup %9070 }
0x1da0   :  { %v3779_v63 = vadd.f32 1.0, %v9071_v42 }
0x1da2   :  { %9076 = vrcp.f32 %v3779_v63 }
0x1da4   :  { %v9073_v30 = vpop.eup %9072 }
0x1da5   :  { %v3792_v62 = vmul.f32 %v9073_v30, %v3715_v18  ;;  %v3786_v58 = vmul.f32 %v9073_v30, %v10649_v51  ;;  %v3789_v4 = vmul.f32 %v9073_v30, %v10655_v0 }
0x1da6   :  { %v9075_v52 = vpop.eup %9074 }
0x1da7   :  { %v3793_v29 = vmul.f32 %v9075_v52, %v3718_v61  ;;  %v3787_v7 = vmul.f32 %v9075_v52, %v10651_v10  ;;  %v3790_v59 = vmul.f32 %v9075_v52, %v10661_v45 }
0x1da9   :  { %v3804_v53 = vpack.c.bf16 %v3793_v29, %v3792_v62  ;;  %v3801_v44 = vpack.c.bf16 %v3787_v7, %v3786_v58 }
0x1dab   :  { %8121 = vmatmul.mubr.msk.bf16.vlgmr.msra.gmra.mrb[156].mxu0 %vm256_vm5, %v3801_v44 }
0x1dac   :  { %v9077_v37 = vpop.eup %9076  ;;  %8124 = vmatprep.mubr.msk.bf16.mxu0 %vm9215_vm7, %v9214_v36 }
0x1dad   :  { %v3794_v47 = vmul.f32 %v9077_v37, %v3723_v21  ;;  %v3788_v18 = vmul.f32 %v9077_v37, %v10653_v16  ;;  %v3791_v51 = vmul.f32 %v9077_v37, %v10667_v40  ;;  %v3800_v16 = vld [vmem:[%s11592_s8 + $0x160] sm:$0x3]  ;;  %v8903_v40 = vld [vmem:[%s11592_s8 + $0x150] sm:$0xff]  }
0x1dae   :  { %v4043_v45 = vsel %vm124_vm3, %v3800_v16, 0  ;;  %8140 = vmatprep.subr.bf16.mxu1 %v8903_v40 }
0x1daf   :  { %v3802_v0 = vpack.c.bf16 %v3789_v4, %v3788_v18  ;;  %v3803_v39 = vpack.c.bf16 %v3791_v51, %v3790_v59  ;;  %v3805_v10 = vpack.c.bf16 %v3794_v47, %v3794_v47  ;;  %8149 = vmatpush3.bf16.msra.mxu0 %v4043_v45  ;;  %8141 = vmatpush3.bf16.msra.mxu1 %v8903_v40 }
0x1db0   :  { %8204 = vmatprep.subr.bf16.mxu0 %v9214_v36 }
0x1db3   :  { %8125 = vmatmul.mubr.msk.bf16.gmra.mrb[160].mxu0 %vm256_vm5, %v3802_v0 }
0x1db4   :  { %8128 = vmatprep.mubr.msk.bf16.mxu0 %vm9215_vm7, %v9214_v36 }
0x1dbb   :  { %8129 = vmatmul.mubr.msk.bf16.gmra.mrb[164].mxu0 %vm256_vm5, %v3803_v39 }
0x1dbc   :  { %8132 = vmatprep.mubr.msk.bf16.mxu0 %vm9215_vm7, %v9214_v36 }
0x1dc3   :  { %8133 = vmatmul.mubr.msk.bf16.gmra.mrb[168].mxu0 %vm256_vm5, %v3804_v53 }
0x1dc4   :  { %8136 = vmatprep.mubr.msk.bf16.mxu0 %vm9215_vm7, %v9214_v36 }
0x1dcb   :  { %8137 = vmatmul.mubr.msk.bf16.gmra.mrb[172].mxu0 %vm256_vm5, %v3805_v10 }
0x1dcc   :  { %8150 = vmatprep.mubr.msk.bf16.mxu0 %vm9215_vm7, %v9214_v36 }
0x1e7e   :  { %v3858_v61 = vpop.f32.mrb[156].mxu0 }
0x1e7f   :  { %v8122_v21 = vpop.f32.mrb[157].mxu0  ;;  %v3896_v6 = vmul.f32 %v3858_v61, %v3858_v61 }
0x1e80   :  { %v3861_v57 = vpop.f32.mrb[158].mxu0 }
0x1e81   :  { %v4022_v54 = vpack.c.bf16 %v3861_v57, %v3858_v61  ;;  %v8123_v11 = vpop.f32.mrb[159].mxu0  ;;  %v3897_v60 = vmul.f32 %v3861_v57, %v3861_v57  ;;  %v8904_v61 = vld [vmem:[%s11592_s8 + $0x158] ss:$0 sps:$4 sm:$0x33]  }
0x1e82   :  { %8496 = vmatprep.subr.msk.bf16.mxu1 %vm124_vm3, %v8904_v61  ;;  %v3972_v57 = vsel %vm124_vm3, %v8904_v61, 0 }
0x1e83   :  { %8151 = vmatmul.mubr.msk.bf16.vlgmr.msra.gmra.mrb[176].mxu0 %vm256_vm5, %v4022_v54  ;;  %8143 = vmatpush3.bf16.msra.mxu1 %v3972_v57 }
0x1e84   :  { %8154 = vmatprep.mubr.msk.bf16.mxu0 %vm9215_vm7, %v9214_v36  ;;  %8170 = vmatprep.subr.bf16.mxu1 %v9214_v36 }
0x1e86   :  { %v3866_v35 = vpop.f32.mrb[160].mxu0 }
0x1e87   :  { %v8126_v25 = vpop.f32.mrb[161].mxu0  ;;  %v3898_v23 = vmul.f32 %v3866_v35, %v3866_v35 }
0x1e88   :  { %v3869_v41 = vpop.f32.mrb[162].mxu0 }
0x1e89   :  { %v3899_v43 = vmul.f32 %v3869_v41, %v3869_v41  ;;  %v4023_v38 = vpack.c.bf16 %v3869_v41, %v3866_v35  ;;  %v8127_v5 = vpop.f32.mrb[163].mxu0 }
0x1e8b   :  { %v3902_v19 = vadd.f32 %v3899_v43, %v3896_v6  ;;  %8155 = vmatmul.mubr.msk.bf16.gmra.mrb[180].mxu0 %vm256_vm5, %v4023_v38 }
0x1e8c   :  { %8158 = vmatprep.mubr.msk.bf16.mxu0 %vm9215_vm7, %v9214_v36 }
0x1e8e   :  { %v3874_v32 = vpop.f32.mrb[164].mxu0 }
0x1e8f   :  { %v3900_v50 = vmul.f32 %v3874_v32, %v3874_v32  ;;  %v8130_v15 = vpop.f32.mrb[165].mxu0 }
0x1e90   :  { %v3877_v46 = vpop.f32.mrb[166].mxu0 }
0x1e91   :  { %v3903_v17 = vadd.f32 %v3900_v50, %v3897_v60  ;;  %v3901_v3 = vmul.f32 %v3877_v46, %v3877_v46  ;;  %v4024_v42 = vpack.c.bf16 %v3877_v46, %v3874_v32  ;;  %v8131_v63 = vpop.f32.mrb[167].mxu0 }
0x1e93   :  { %v3904_v30 = vadd.f32 %v3901_v3, %v3898_v23  ;;  %8159 = vmatmul.mubr.msk.bf16.gmra.mrb[184].mxu0 %vm256_vm5, %v4024_v42  ;;  %v7280_v23 = vld [vmem:[%s11593_s9 + $0x10] ss:$0 sm:$0xff] }
0x1e94   :  { %8162 = vmatprep.mubr.msk.bf16.mxu0 %vm9215_vm7, %v9214_v36  ;;  %v3621_v3 = vadd.f32 %v7280_v23, %v10647_v2  ;;  %v3626_v42 = vadd.f32 %v10643_v8, %v7280_v23 }
0x1e96   :  { %v3882_v62 = vpop.f32.mrb[168].mxu0 }
0x1e97   :  { %v3905_v58 = vmul.f32 %v3882_v62, %v3882_v62  ;;  %v8134_v4 = vpop.f32.mrb[169].mxu0 }
0x1e98   :  { %v3885_v52 = vpop.f32.mrb[170].mxu0 }
0x1e99   :  { %v3908_v29 = vadd.f32 %v3905_v58, %v3902_v19  ;;  %v3906_v7 = vmul.f32 %v3885_v52, %v3885_v52  ;;  %v4025_v59 = vpack.c.bf16 %v3885_v52, %v3882_v62  ;;  %v8135_v53 = vpop.f32.mrb[171].mxu0  ;;  %v3632_v62 = vmax.f32 %v3621_v3, 0.0 }
0x1e9a   :  { %v3633_v52 = vmax.f32 %v3626_v42, 0.0 }
0x1e9b   :  { %v3911_v44 = vmax.f32 %v3908_v29, 1e-08  ;;  %v3909_v37 = vadd.f32 %v3906_v7, %v3903_v17  ;;  %8163 = vmatmul.mubr.msk.bf16.gmra.mrb[188].mxu0 %vm256_vm5, %v4025_v59  ;;  %v3618_v17 = vadd.f32 %v7280_v23, %v10645_v13 }
0x1e9c   :  { %8166 = vmatprep.mubr.msk.bf16.mxu0 %vm9215_vm7, %v9214_v36 }
0x1e9d   :  { %9078 = vrsqrt.f32 %v3911_v44  ;;  %v3912_v47 = vmax.f32 %v3909_v37, 1e-08  ;;  %vm3916_vm2 = vcmp.eq.f32.partialorder %v3911_v44, inf  ;;  %v3919_v41 = vand.u32 2147483648, %v3911_v44 }
0x1e9e   :  { %v3890_v18 = vpop.f32.mrb[172].mxu0  ;;  %vm3918_vm9 = vcmp.eq.f32.partialorder %v3911_v44, 0.0 }
0x1e9f   :  { %9080 = vrsqrt.f32 %v3912_v47  ;;  %v3907_v51 = vmul.f32 %v3890_v18, %v3890_v18  ;;  %v8138_v0 = vpop.f32.mrb[173].mxu0  ;;  %v4026_v16 = vpack.c.bf16 %v3890_v18, %v3890_v18  ;;  %vm3923_vm8 = vcmp.eq.f32.partialorder %v3912_v47, inf }
0x1ea0   :  { %v3893_v39 = vpop.f32.mrb[174].mxu0  ;;  %v3926_v6 = vand.u32 2147483648, %v3912_v47  ;;  %vm3925_vm15 = vcmp.eq.f32.partialorder %v3912_v47, 0.0 }
0x1ea1   :  { %v3910_v10 = vadd.f32 %v3907_v51, %v3904_v30  ;;  %v8139_v45 = vpop.f32.mrb[175].mxu0  ;;  %v3631_v30 = vmax.f32 %v3618_v17, 0.0 }
0x1ea3   :  { %v3913_v40 = vmax.f32 %v3910_v10, 1e-08  ;;  %8167 = vmatmul.mubr.msk.bf16.gmra.mrb[192].mxu0 %vm256_vm5, %v4026_v16 }
0x1ea4   :  { %8214 = vmatprep.mubr.msk.bf16.mxu0 %vm9215_vm7, %v9214_v36 }
0x1ea5   :  { %9082 = vrsqrt.f32 %v3913_v40  ;;  %vm3930_vm0 = vcmp.eq.f32.partialorder %v3913_v40, inf  ;;  %v3933_v50 = vand.u32 2147483648, %v3913_v40  ;;  %vm3932_vm1 = vcmp.eq.f32.partialorder %v3913_v40, 0.0 }
0x1ea7   :  { %v9079_v21 = vpop.eup %9078 }
0x1ea8   :  { %v3915_v54 = vmul.f32 %v9079_v21, %v3911_v44 }
0x1ea9   :  { %v9081_v11 = vpop.eup %9080 }
0x1eaa   :  { %v3917_v35 = vsel %vm3916_vm2, %v3911_v44, %v3915_v54  ;;  %v3922_v25 = vmul.f32 %v9081_v11, %v3912_v47  ;;  %vm11623_vm2 = vcmask 162816  }
0x1eab   :  { %v3920_v38 = vsel %vm3918_vm9, %v3919_v41, %v3917_v35  ;;  %vm11625_vm9 = vmmov %vm11623_vm2 }
0x1eac   :  { %v3924_v43 = vsel %vm3923_vm8, %v3912_v47, %v3922_v25  ;;  %vm11624_vm8 = vmmov %vm11623_vm2 }
0x1ead   :  { %v3927_v5 = vsel %vm3925_vm15, %v3926_v6, %v3924_v43  ;;  %vm11626_vm15 = vmmov %vm11623_vm2 }
0x1eae   :  { %v8748_v19 = vpack.i.bf16 %v3927_v5, %v3920_v38 }
0x1eaf   :  { %v9083_v32 = vpop.eup %9082 }
0x1eb0   :  { %8749 = vrot.lane.b32.xlu1 %v8748_v19, %s9219_s14  ;;  %v3929_v60 = vmul.f32 %v9083_v32, %v3913_v40 }
0x1eb2   :  { %v3931_v15 = vsel %vm3930_vm0, %v3913_v40, %v3929_v60  ;;  %v7298_v60 = vld [vmem:[%s11593_s9 + $0x11] ss:$0 sm:$0xff]  ;;  %vm11627_vm0 = vmmov %vm11623_vm2 }
0x1eb3   :  { %v3934_v46 = vsel %vm3932_vm1, %v3933_v50, %v3931_v15  ;;  %vm11628_vm1 = vcmask 1043456  }
0x1eb4   :  { %3942 = vrot.lane.b32.xlu0 %v3934_v46, %s9219_s14 }
0x1f22   :  { %v8750_v63 = vpop.permute.xlu1 %8749 }
0x1f23   :  { %v8752_v58 = vunpack.i.h.bf16 %v8750_v63  ;;  %v8751_v4 = vunpack.i.l.bf16 %v8750_v63 }
0x1f25   :  { %v3947_v29 = vsel %vm737_vm12, %v3631_v30, %v8751_v4  ;;  %v3948_v7 = vsel %vm737_vm12, %v3632_v62, %v8752_v58 }
0x1f26   :  { %v3950_v59 = vpack.c.bf16 %v3948_v7, %v3947_v29  ;;  %v3943_v53 = vpop.permute.xlu0 %3942 }
0x1f27   :  { %v3949_v44 = vsel %vm737_vm12, %v3633_v52, %v3943_v53 }
0x1f28   :  { %v3951_v37 = vpack.c.bf16 %v3949_v44, %v3949_v44  ;;  %8144 = vmatprep.mubr.msk.bf16.mxu1 %vm11623_vm2, %v3950_v59  ;;  %vm11629_vm2 = vmmov %vm11628_vm1 }
0x1f2a   :  { %8145 = vmatmul.mubr.msk.bf16.vlgmr.msra.gmra.mrb[172].mxu1 %vm11624_vm8, %v3951_v37  ;;  %vm11630_vm8 = vmmov %vm11628_vm1 }
0x1f2b   :  { %8174 = vmatprep.mubr.msk.bf16.mxu1 %vm9215_vm7, %v9214_v36 }
0x1f56   :  { %v4079_v8 = vpop.f32.mrb[176].mxu0 }
0x1f57   :  { %v8152_v13 = vpop.f32.mrb[177].mxu0 }
0x1f58   :  { %v4082_v2 = vpop.f32.mrb[178].mxu0 }
0x1f59   :  { %v8753_v47 = vpack.i.bf16 %v4082_v2, %v4079_v8  ;;  %v8153_v18 = vpop.f32.mrb[179].mxu0 }
0x1f5b   :  { %8754 = vrot.lane.b32.xlu1 %v8753_v47, %s9219_s14 }
0x1f5e   :  { %v4087_v51 = vpop.f32.mrb[180].mxu0 }
0x1f5f   :  { %4124 = vrot.lane.b32.xlu0 %v4087_v51, %s9219_s14  ;;  %v8156_v0 = vpop.f32.mrb[181].mxu0 }
0x1f60   :  { %v4090_v39 = vpop.f32.mrb[182].mxu0 }
0x1f61   :  { %v8157_v10 = vpop.f32.mrb[183].mxu0 }
0x1f66   :  { %v4095_v16 = vpop.f32.mrb[184].mxu0 }
0x1f67   :  { %v8758_v45 = vpack.i.bf16 %v4095_v16, %v4090_v39  ;;  %v8160_v40 = vpop.f32.mrb[185].mxu0  ;;  %v9183_v16 = vld [vmem:[%s11589_s5] sm:$0xf] }
0x1f68   :  { %v4098_v61 = vpop.f32.mrb[186].mxu0 }
0x1f69   :  { %8759 = vrot.lane.b32.xlu0 %v8758_v45, %s9218_s13  ;;  %v8161_v21 = vpop.f32.mrb[187].mxu0 }
0x1f6e   :  { %v4103_v57 = vpop.f32.mrb[188].mxu0 }
0x1f6f   :  { %v8164_v54 = vpop.f32.mrb[189].mxu0 }
0x1f70   :  { %v4106_v11 = vpop.f32.mrb[190].mxu0 }
0x1f71   :  { %v8763_v35 = vpack.i.bf16 %v4106_v11, %v4103_v57  ;;  %v8165_v25 = vpop.f32.mrb[191].mxu0 }
0x1f73   :  { %8764 = vrot.lane.b32.xlu1 %v8763_v35, %s9217_s12 }
0x1f76   :  { %v4111_v41 = vpop.f32.mrb[192].mxu0 }
0x1f77   :  { %4136 = vrot.lane.b32.xlu1 %v4098_v61, %s9218_s13  ;;  %4148 = vrot.lane.b32.xlu0 %v4111_v41, %s9217_s12  ;;  %v8168_v6 = vpop.f32.mrb[193].mxu0 }
0x1f78   :  { %v4114_v43 = vpop.f32.mrb[194].mxu0 }
0x1f79   :  { %v8169_v38 = vpop.f32.mrb[195].mxu0 }
0x1fcd   :  { %v8755_v5 = vpop.permute.xlu1 %8754 }
0x1fce   :  { %v8756_v17 = vunpack.i.l.bf16 %v8755_v5  ;;  %v8757_v4 = vunpack.i.h.bf16 %v8755_v5 }
0x1fd1   :  { %v4125_v19 = vpop.permute.xlu0 %4124 }
0x1fdb   :  { %v8760_v50 = vpop.permute.xlu0 %8759 }
0x1fdc   :  { %v8761_v63 = vunpack.i.l.bf16 %v8760_v50  ;;  %v8762_v59 = vunpack.i.h.bf16 %v8760_v50 }
0x1fe5   :  { %v8765_v32 = vpop.permute.xlu1 %8764 }
0x1fe6   :  { %v8767_v44 = vunpack.i.h.bf16 %v8765_v32  ;;  %v8766_v37 = vunpack.i.l.bf16 %v8765_v32 }
0x1fe9   :  { %v4137_v30 = vpop.permute.xlu1 %4136  ;;  %v4149_v8 = vpop.permute.xlu0 %4148 }
0x1ffd   :  { %v8146_v15 = vpop.f32.mrb[172].mxu1 }
0x1ffe   :  { %v4017_v46 = vadd.f32 %v8146_v15, %v7298_v60  ;;  %v4008_v23 = vpop.f32.mrb[173].mxu1 }
0x1fff   :  { %v4009_v3 = vadd.f32 %v7298_v60, %v4008_v23  ;;  %v8147_v42 = vpop.f32.mrb[174].mxu1 }
0x2000   :  { %v4155_v62 = vsel %vm737_vm12, %v4017_v46, %v4125_v19  ;;  %v4011_v58 = vpop.f32.mrb[175].mxu1 }
0x2001   :  { %v4158_v52 = vsel %vm11625_vm9, %v4155_v62, %v4137_v30  ;;  %v4153_v29 = vsel %vm737_vm12, %v4009_v3, %v8756_v17  ;;  %v4012_v7 = vadd.f32 %v7298_v60, %v4011_v58 }
0x2002   :  { %v4156_v53 = vsel %vm11626_vm15, %v4153_v29, %v8761_v63  ;;  %v4161_v47 = vsel %vm741_vm14, %v4158_v52, %v4149_v8 }
0x2003   :  { %v4154_v13 = vsel %vm737_vm12, %v4012_v7, %v8757_v4  ;;  %v4159_v18 = vsel %vm741_vm14, %v4156_v53, %v8766_v37  ;;  %v4163_v39 = vpack.c.bf16 %v4161_v47, %v4161_v47 }
0x2004   :  { %v4157_v2 = vsel %vm11627_vm0, %v4154_v13, %v8762_v59  ;;  %vm11631_vm0 = vmmov %vm11628_vm1 }
0x2005   :  { %v4160_v51 = vsel %vm741_vm14, %v4157_v2, %v8767_v44  ;;  %v4165_v10 = vsel %vm11628_vm1, %v4163_v39, 0  ;;  %v8905_v44 = vld [vmem:[%s11592_s8 + $0x170] sm:$0xff]   ;;  %vm11632_vm1 = vmmov %vm11631_vm0 }
0x2006   :  { %v4162_v0 = vpack.c.bf16 %v4160_v51, %v4159_v18 }
0x2008   :  { %8171 = vmatpush3.bf16.msra.mxu1 %v4162_v0 }
0x2009   :  { %8172 = vmatprep.subr.bf16.mxu1 %v9214_v36 }
0x200c   :  { %8173 = vmatpush3.bf16.msra.mxu1 %v4165_v10 }
0x200f   :  { %8175 = vmatmul.mubr.msk.bf16.vlgmr.msra.gmra.mrb[176].mxu1 %vm741_vm14, %v9183_v16 }
0x20e2   :  { %v4201_v45 = vpop.f32.mrb[176].mxu1 }
0x20e3   :  { %v4207_v40 = vmul.f32 %v4201_v45, %v10132_v24  ;;  %v8176_v61 = vpop.f32.mrb[177].mxu1  ;;  %v8906_v45 = vld [vmem:[%s11592_s8 + $0x178] ss:$0 sps:$4 sm:$0xff]  }
0x20e4   :  { %v4204_v21 = vpop.f32.mrb[178].mxu1  ;;  %v4275_v61 = vld [vmem:[%s11592_s8 + $0x180] sm:$0xf] }
0x20e5   :  { %4211 = vrot.lane.b32.xlu0 %v4207_v40, %s9221_s29  ;;  %4209 = vrot.lane.b32.xlu1 %v4207_v40, %s9222_s30  ;;  %v8177_v57 = vpop.f32.mrb[179].mxu1 }
0x20e9   :  { %4214 = vrot.lane.b32.xlu1 %v4207_v40, %s9223_s3 }
0x2157   :  { %v4212_v54 = vpop.permute.xlu0 %4211  ;;  %v4210_v11 = vpop.permute.xlu1 %4209 }
0x2158   :  { %4218 = vrot.lane.b32.xlu1 %v4212_v54, %s9223_s3  ;;  %4216 = vrot.lane.b32.xlu0 %v4210_v11, %s9223_s3 }
0x215b   :  { %v4215_v35 = vpop.permute.xlu1 %4214 }
0x215c   :  { %v4223_v25 = vadd.f32 %v4215_v35, %v10261_v55  ;;  %v4213_v55 = vadd.f32 %v4207_v40, %v10271_v20  ;;  %v4371_v40 = vsel %vm11629_vm2, %v8906_v45, 0  ;;  %vm11633_vm2 = vmmov %vm11631_vm0 }
0x215e   :  { %v4251_v5 = vmul.f32 %v4223_v25, %v4223_v25  ;;  %v4228_v42 = vsel %vm737_vm12, %v4213_v55, 0.0 }
0x21ca   :  { %v4217_v41 = vpop.permute.xlu0 %4216  ;;  %v4219_v6 = vpop.permute.xlu1 %4218 }
0x21cb   :  { %v4224_v43 = vadd.f32 %v4217_v41, %v10253_v22  ;;  %v4225_v38 = vadd.f32 %v4219_v6, %v10257_v33  ;;  %v4270_v22 = vld [vmem:[%s11592_s8 + $0x168] sm:$0x3] }
0x21cc   :  { %8497 = vmatprep.subr.msk.bf16.mxu1 %vm124_vm3, %v4270_v22  ;;  %v4285_v33 = vsel %vm124_vm3, %v4270_v22, 0 }
0x21cd   :  { %v4252_v19 = vmul.f32 %v4224_v43, %v4224_v43  ;;  %v4254_v60 = vmul.f32 %v4225_v38, %v4225_v38  ;;  %8179 = vmatpush3.bf16.msra.mxu1 %v4285_v33 }
0x21ce   :  { %8184 = vmatprep.subr.bf16.mxu1 %v9214_v36 }
0x21cf   :  { %v4253_v32 = vadd.f32 %v4252_v19, %v4251_v5  ;;  %v7309_v5 = vld [vmem:[%s11593_s9 + $0x12] ss:$0 sm:$0xff] }
0x21d1   :  { %v4255_v50 = vadd.f32 %v4254_v60, %v4253_v32  ;;  %v7310_v32 = vld [vmem:[%s11593_s9 + $0x13] ss:$0 sm:$0xff] }
0x21d3   :  { %v4256_v15 = vmax.f32 %v4255_v50, 1e-08 }
0x21d5   :  { %v4257_v46 = vsel %vm256_vm5, %v4256_v15, 0.0 }
0x21d6   :  { %4258 = vadd.xlane.f32.xlu0 %v4257_v46 }
0x2263   :  { %v4259_v23 = vpop.xlane.xlu0 %4258 }
0x2264   :  { %v4260_v17 = vmul.f32 0.25, %v4259_v23  ;;  %v4423_v23 = vsel %vm11631_vm0, %v4275_v61, 0 }
0x2266   :  { %9084 = vrsqrt.f32 %v4260_v17 }
0x2270   :  { %v9085_v3 = vpop.eup %9084 }
0x2271   :  { %4264 = vperm.xlu1 %8662, %v9085_v3   ;;  %v4495_v3 = vld [vmem:[%s11592_s8 + $0x188] sm:$0xf] }
0x2272   :  { %v4516_v22 = vsel %vm11633_vm2, %v4495_v3, 0 }
0x2295   :  { %4229 = vadd.xlane.f32.xlu1 %v4228_v42 }
0x22f0   :  { %v4265_v63 = vpop.permute.xlu1 %4264 }
0x22f1   :  { %v10780_v30 = vmul.f32 %v4265_v63, %v4223_v25  ;;  %v10782_v62 = vmul.f32 %v4265_v63, %v4224_v43  ;;  %v10784_v58 = vmul.f32 %v4265_v63, %v4225_v38 }
0x22f3   :  { %v4276_v4 = vpack.c.bf16 %v10782_v62, %v10780_v30  ;;  %v4277_v52 = vpack.c.bf16 %v10784_v58, %v10784_v58 }
0x22f5   :  { %8180 = vmatprep.mubr.msk.bf16.mxu1 %vm256_vm5, %v4276_v4 }
0x22f6   :  { %8181 = vmatmul.mubr.msk.bf16.vlgmr.msra.gmra.mrb[180].mxu1 %vm256_vm5, %v4277_v52 }
0x22f7   :  { %8188 = vmatprep.mubr.msk.bf16.mxu1 %vm9215_vm7, %v9214_v36  ;;  %8185 = vmatpush3.bf16.msra.mxu1 %v8905_v44 }
0x22f8   :  { %8186 = vmatprep.subr.bf16.mxu1 %v9214_v36 }
0x22fb   :  { %8187 = vmatpush3.bf16.msra.mxu1 %v4371_v40 }
0x22fc   :  { %8498 = vmatprep.subr.msk.bf16.mxu1 %vm11630_vm8, %v4275_v61 }
0x2322   :  { %v4230_v20 = vpop.xlane.xlu1 %4229 }
0x2323   :  { %v4231_v29 = vmul.f32 0.0625, %v4230_v20 }
0x2325   :  { %v4232_v7 = vsub.f32 %v4213_v55, %v4231_v29 }
0x2327   :  { %v4233_v59 = vmul.f32 %v4232_v7, %v4232_v7 }
0x2329   :  { %v4234_v53 = vsel %vm737_vm12, %v4233_v59, 0.0 }
0x232a   :  { %4235 = vadd.xlane.f32.xlu0 %v4234_v53 }
0x23b7   :  { %v4236_v25 = vpop.xlane.xlu0 %4235 }
0x23b8   :  { %v4237_v41 = vmul.f32 0.0625, %v4236_v25  ;;  %v8908_v25 = vld [vmem:[%s11592_s8 + $0x198] sm:$0xff]  }
0x23ba   :  { %v4238_v6 = vadd.f32 1e-05, %v4237_v41  ;;  %v8909_v41 = vld [vmem:[%s11592_s8 + $0x1a0] sm:$0xff]  }
0x23c9   :  { %v8182_v37 = vpop.f32.mrb[180].mxu1 }
0x23ca   :  { %v4321_v8 = vpop.f32.mrb[181].mxu1  ;;  %v4338_v0 = vmul.f32 %v8182_v37, %v8182_v37  ;;  %v4415_v17 = vpack.c.bf16 %v8182_v37, %v8182_v37 }
0x23cb   :  { %v8183_v13 = vpop.f32.mrb[182].mxu1  ;;  %v4335_v47 = vmul.f32 %v4321_v8, %v4321_v8 }
0x23cc   :  { %v4324_v2 = vpop.f32.mrb[183].mxu1 }
0x23cd   :  { %v4336_v18 = vmul.f32 %v4324_v2, %v4324_v2  ;;  %v4414_v51 = vpack.c.bf16 %v4324_v2, %v4321_v8 }
0x23cf   :  { %v4337_v39 = vadd.f32 %v4336_v18, %v4335_v47 }
0x23d1   :  { %v4339_v10 = vadd.f32 %v4338_v0, %v4337_v39 }
0x23d3   :  { %v4340_v16 = vmax.f32 %v4339_v10, 1e-08 }
0x23d5   :  { %9086 = vrsqrt.f32 %v4340_v16  ;;  %vm4343_vm9 = vcmp.eq.f32.partialorder %v4340_v16, inf  ;;  %v4346_v54 = vand.u32 2147483648, %v4340_v16  ;;  %vm4345_vm15 = vcmp.eq.f32.partialorder %v4340_v16, 0.0 }
0x23d6   :  { %9088 = vrsqrt.f32 %v4238_v6  ;;  %v8910_v6 = vld [vmem:[%s11592_s8 + $0x1a8] sm:$0xff]  }
0x23df   :  { %v9087_v21 = vpop.eup %9086 }
0x23e0   :  { %v4342_v57 = vmul.f32 %v9087_v21, %v4340_v16  ;;  %v9089_v43 = vpop.eup %9088 }
0x23e1   :  { %v4240_v38 = vmul.f32 %v9089_v43, %v4232_v7 }
0x23e2   :  { %v4344_v11 = vsel %vm4343_vm9, %v4340_v16, %v4342_v57 }
0x23e3   :  { %v4347_v35 = vsel %vm4345_vm15, %v4346_v54, %v4344_v11  ;;  %v4245_v19 = vmul.f32 %v7309_v5, %v4240_v38  ;;  %v4506_v54 = vld [vmem:[%s11592_s8 + $0x1b8] sm:$0xf]  ;;  %vm11634_vm15 = vmmov %vm11631_vm0 }
0x23e4   :  { %4349 = vrot.lane.b32.xlu0 %v4347_v35, %s9219_s14  ;;  %v4671_v11 = vsel %vm11631_vm0, %v4506_v54, 0  ;;  %v8907_v35 = vld [vmem:[%s11592_s8 + $0x190] sm:$0xff]  }
0x23e5   :  { %v10814_v60 = vadd.f32 %v7310_v32, %v4245_v19  ;;  %8205 = vmatpush3.bf16.msra.mxu0 %v8907_v35 }
0x23e6   :  { %8206 = vmatprep.subr.bf16.mxu0 %v9214_v36 }
0x23e9   :  { %8207 = vmatpush3.bf16.msra.mxu0 %v8908_v25 }
0x23ea   :  { %8208 = vmatprep.subr.bf16.mxu0 %v9214_v36 }
0x23ed   :  { %8209 = vmatpush3.bf16.msra.mxu0 %v8909_v41 }
0x23ee   :  { %8210 = vmatprep.subr.bf16.mxu0 %v9214_v36 }
0x23f1   :  { %8211 = vmatpush3.bf16.msra.mxu0 %v8910_v6 }
0x23f2   :  { %8212 = vmatprep.subr.bf16.mxu0 %v9214_v36 }
0x2456   :  { %v4350_v50 = vpop.permute.xlu0 %4349 }
0x2457   :  { %v4352_v15 = vsel %vm737_vm12, %v10814_v60, %v4350_v50 }
0x2458   :  { %v4353_v46 = vpack.c.bf16 %v4352_v15, %v4352_v15 }
0x245a   :  { %8189 = vmatmul.mubr.msk.bf16.vlgmr.msra.gmra.mrb[184].mxu1 %vm741_vm14, %v4353_v46 }
0x245b   :  { %8194 = vmatprep.mubr.msk.bf16.mxu1 %vm316_vm4, %v4414_v51  ;;  %8193 = vmatpush3.bf16.msra.mxu1 %v4423_v23 }
0x245c   :  { %8499 = vmatprep.subr.msk.bf16.mxu1 %vm11632_vm1, %v4495_v3  ;;  %vm11635_vm1 = vmmov %vm11631_vm0 }
0x2462   :  { %8195 = vmatmul.mubr.msk.bf16.vlgmr.msra.gmra.mrb[188].mxu1 %vm316_vm4, %v4415_v17 }
0x2463   :  { %8199 = vmatpush3.bf16.msra.mxu1 %v4516_v22 }
0x2464   :  { %8500 = vmatprep.subr.msk.bf16.mxu1 %vm11634_vm15, %v4506_v54  ;;  %vm11637_vm15 = vmmov %vm11631_vm0  ;;  %vm11638_vm0 = vcmask 48128  }
0x252d   :  { %v10827_v33 = vpop.f32.mrb[184].mxu1 }
0x252e   :  { %v8190_v55 = vpop.f32.mrb[185].mxu1 }
0x252f   :  { %v4410_v42 = vpop.f32.mrb[186].mxu1  ;;  %v8911_v55 = vld [vmem:[%s11592_s8 + $0x1b0] ss:$0 sps:$4 sm:$0xff]  }
0x2530   :  { %v8191_v63 = vpop.f32.mrb[187].mxu1  ;;  %v4620_v42 = vsel %vm11635_vm1, %v8911_v55, 0  ;;  %vm11639_vm1 = vmmov %vm11638_vm0 }
0x2531   :  { %8213 = vmatpush3.bf16.msra.mxu0 %v4620_v42  ;;  %v7331_v42 = vld [vmem:[%s11593_s9 + $0x16] ss:$0 sm:$0xff] }
0x2532   :  { %8224 = vmatprep.subr.bf16.mxu0 %v9214_v36 }
0x2535   :  { %v8196_v4 = vpop.f32.mrb[188].mxu1 }
0x2536   :  { %v4459_v52 = vpop.f32.mrb[189].mxu1  ;;  %v4476_v53 = vmul.f32 %v8196_v4, %v8196_v4 }
0x2537   :  { %v8197_v20 = vpop.f32.mrb[190].mxu1  ;;  %v4473_v7 = vmul.f32 %v4459_v52, %v4459_v52 }
0x2538   :  { %v4462_v29 = vpop.f32.mrb[191].mxu1 }
0x2539   :  { %v4474_v59 = vmul.f32 %v4462_v29, %v4462_v29 }
0x253b   :  { %v4475_v44 = vadd.f32 %v4474_v59, %v4473_v7  ;;  %v7313_v7 = vld [vmem:[%s11593_s9 + $0x14] ss:$0 sm:$0xff] }
0x253c   :  { %v4408_v59 = vadd.f32 %v7313_v7, %v10827_v33 }
0x253d   :  { %v4477_v37 = vadd.f32 %v4476_v53, %v4475_v44 }
0x253e   :  { %v4413_v53 = vmax.f32 %v4408_v59, 0.0 }
0x253f   :  { %v4478_v8 = vmax.f32 %v4477_v37, 1e-08 }
0x2541   :  { %9090 = vrsqrt.f32 %v4478_v8  ;;  %vm4481_vm8 = vcmp.eq.f32.partialorder %v4478_v8, inf  ;;  %v4484_v47 = vand.u32 2147483648, %v4478_v8  ;;  %vm4483_vm9 = vcmp.eq.f32.partialorder %v4478_v8, 0.0 }
0x254b   :  { %v9091_v13 = vpop.eup %9090 }
0x254c   :  { %v4480_v2 = vmul.f32 %v9091_v13, %v4478_v8 }
0x254e   :  { %v4482_v18 = vsel %vm4481_vm8, %v4478_v8, %v4480_v2 }
0x254f   :  { %v4485_v51 = vsel %vm4483_vm9, %v4484_v47, %v4482_v18  ;;  %vm11636_vm9 = vcmask 162816  }
0x2550   :  { %v7319_v0 = vmul.f32 -1.442695, %v4485_v51 }
0x2552   :  { %9092 = vpow2.f32 %v7319_v0 }
0x255c   :  { %v9093_v39 = vpop.eup %9092 }
0x255d   :  { %v4489_v10 = vadd.f32 1.0, %v9093_v39 }
0x255f   :  { %9094 = vrcp.f32 %v4489_v10 }
0x2569   :  { %v9095_v16 = vpop.eup %9094 }
0x256a   :  { %v4492_v45 = vmul.f32 %v9095_v16, %v4459_v52  ;;  %v4493_v40 = vmul.f32 %v9095_v16, %v4462_v29  ;;  %v4494_v61 = vmul.f32 %v9095_v16, %v8196_v4 }
0x256c   :  { %v4507_v21 = vpack.c.bf16 %v4493_v40, %v4492_v45  ;;  %v4508_v57 = vpack.c.bf16 %v4494_v61, %v4494_v61 }
0x256e   :  { %8200 = vmatprep.mubr.msk.bf16.mxu1 %vm316_vm4, %v4507_v21 }
0x256f   :  { %8201 = vmatmul.mubr.msk.bf16.vlgmr.msra.gmra.mrb[192].mxu1 %vm316_vm4, %v4508_v57  ;;  %v7322_v57 = vld [vmem:[%s11593_s9 + $0x15] ss:$0 sm:$0xff] }
0x2570   :  { %8219 = vmatpush3.bf16.msra.mxu1 %v4671_v11 }
0x2571   :  { %8238 = vmatprep.subr.bf16.mxu1 %v9214_v36 }
0x2642   :  { %v8202_v43 = vpop.f32.mrb[192].mxu1 }
0x2643   :  { %v4552_v38 = vpop.f32.mrb[193].mxu1  ;;  %v4663_v46 = vpack.c.bf16 %v8202_v43, %v8202_v43  ;;  %v4569_v23 = vmul.f32 %v8202_v43, %v8202_v43 }
0x2644   :  { %v8203_v5 = vpop.f32.mrb[194].mxu1  ;;  %v4566_v32 = vmul.f32 %v4552_v38, %v4552_v38 }
0x2645   :  { %v4555_v19 = vpop.f32.mrb[195].mxu1 }
0x2646   :  { %v4567_v50 = vmul.f32 %v4555_v19, %v4555_v19  ;;  %v4662_v15 = vpack.c.bf16 %v4555_v19, %v4552_v38 }
0x2648   :  { %v4568_v17 = vadd.f32 %v4567_v50, %v4566_v32  ;;  %8220 = vmatprep.mubr.msk.bf16.mxu1 %vm316_vm4, %v4662_v15 }
0x2649   :  { %8221 = vmatmul.mubr.msk.bf16.vlgmr.msra.gmra.mrb[196].mxu1 %vm316_vm4, %v4663_v46 }
0x264a   :  { %v4570_v3 = vadd.f32 %v4569_v23, %v4568_v17  ;;  %8240 = vmatprep.mubr.msk.bf16.mxu1 %vm9215_vm7, %v9214_v36 }
0x264c   :  { %v4571_v22 = vmax.f32 %v4570_v3, 1e-08 }
0x264e   :  { %9096 = vrsqrt.f32 %v4571_v22  ;;  %vm4574_vm2 = vcmp.eq.f32.partialorder %v4571_v22, inf  ;;  %v4577_v52 = vand.u32 2147483648, %v4571_v22  ;;  %vm4576_vm8 = vcmp.eq.f32.partialorder %v4571_v22, 0.0 }
0x2658   :  { %v9097_v63 = vpop.eup %9096 }
0x2659   :  { %v4573_v4 = vmul.f32 %v9097_v63, %v4571_v22 }
0x265b   :  { %v4575_v20 = vsel %vm4574_vm2, %v4571_v22, %v4573_v4  ;;  %vm11640_vm2 = vmmov %vm11638_vm0 }
0x265c   :  { %v4578_v29 = vsel %vm4576_vm8, %v4577_v52, %v4575_v20  ;;  %v7332_v52 = vld [vmem:[%s11593_s9 + $0x17] ss:$0 sm:$0xff]  ;;  %vm11641_vm8 = vmmov %vm11638_vm0 }
0x265d   :  { %4580 = vrot.lane.b32.xlu1 %v4578_v29, %s9227_s16 }
0x26cf   :  { %v4581_v44 = vpop.permute.xlu1 %4580 }
0x26d0   :  { %v4583_v37 = vsel %vm2604_vm11, %v4413_v53, %v4581_v44 }
0x26d1   :  { %v4584_v8 = vpack.c.bf16 %v4583_v37, %v4583_v37 }
0x26d3   :  { %8215 = vmatmul.mubr.msk.bf16.vlgmr.msra.gmra.mrb[196].mxu0 %vm2638_vm13, %v4584_v8 }
0x26d4   :  { %8226 = vmatprep.mubr.msk.bf16.mxu0 %vm9215_vm7, %v9214_v36 }
0x271c   :  { %v8222_v13 = vpop.f32.mrb[196].mxu1 }
0x271d   :  { %v4707_v2 = vpop.f32.mrb[197].mxu1  ;;  %v4724_v0 = vadd.f32 %v8222_v13, %v10784_v58 }
0x271e   :  { %v4722_v47 = vadd.f32 %v4707_v2, %v10780_v30  ;;  %v8223_v18 = vpop.f32.mrb[198].mxu1  ;;  %v9184_v2 = vld [vmem:[%s11588_s4] sm:$0xff]  }
0x271f   :  { %v4710_v51 = vpop.f32.mrb[199].mxu1  ;;  %v4753_v16 = vmul.f32 %v4724_v0, %v4724_v0  ;;  %v9186_v18 = vld [vmem:[%s11588_s4 + $0x10] sm:$0xff]  }
0x2720   :  { %v4723_v33 = vadd.f32 %v4710_v51, %v10782_v62  ;;  %v4750_v39 = vmul.f32 %v4722_v47, %v4722_v47 }
0x2722   :  { %v4751_v10 = vmul.f32 %v4723_v33, %v4723_v33 }
0x2724   :  { %v4752_v45 = vadd.f32 %v4751_v10, %v4750_v39 }
0x2726   :  { %v4754_v40 = vadd.f32 %v4753_v16, %v4752_v45 }
0x2728   :  { %v4755_v61 = vmax.f32 %v4754_v40, 1e-08 }
0x272a   :  { %v4756_v21 = vsel %vm256_vm5, %v4755_v61, 0.0 }
0x272b   :  { %4757 = vadd.xlane.f32.xlu0 %v4756_v21 }
0x27a6   :  { %v4656_v30 = vpop.f32.mrb[196].mxu0 }
0x27a7   :  { %v4657_v54 = vadd.f32 %v7322_v57, %v4656_v30  ;;  %v8216_v11 = vpop.f32.mrb[197].mxu0 }
0x27a8   :  { %v4659_v35 = vpop.f32.mrb[198].mxu0 }
0x27a9   :  { %v4721_v58 = vadd.f32 %v4657_v54, %v10814_v60  ;;  %v8217_v62 = vpop.f32.mrb[199].mxu0  ;;  %v8912_v35 = vld [vmem:[%s11592_s8 + $0x1c0] sm:$0x1f]  }
0x27ab   :  { %v4727_v25 = vsel %vm737_vm12, %v4721_v58, 0.0 }
0x27ac   :  { %4728 = vadd.xlane.f32.xlu1 %v4727_v25 }
0x27b8   :  { %v4758_v41 = vpop.xlane.xlu0 %4757 }
0x27b9   :  { %v4759_v6 = vmul.f32 0.25, %v4758_v41 }
0x27bb   :  { %9098 = vrsqrt.f32 %v4759_v6  ;;  %v4975_v6 = vsel %vm210_vm6, %v8912_v35, 0 }
0x27bc   :  { %8239 = vmatpush3.bf16.msra.mxu1 %v4975_v6 }
0x27bd   :  { %8294 = vmatprep.subr.bf16.mxu1 %v9214_v36 }
0x27c5   :  { %v9099_v43 = vpop.eup %9098 }
0x27c6   :  { %4763 = vperm.xlu0 %8526, %v9099_v43  }
0x2839   :  { %v4729_v38 = vpop.xlane.xlu1 %4728 }
0x283a   :  { %v4730_v5 = vmul.f32 0.0625, %v4729_v38 }
0x283c   :  { %v4731_v19 = vsub.f32 %v4721_v58, %v4730_v5 }
0x283e   :  { %v4732_v32 = vmul.f32 %v4731_v19, %v4731_v19 }
0x2840   :  { %v4733_v50 = vsel %vm737_vm12, %v4732_v32, 0.0 }
0x2841   :  { %4734 = vadd.xlane.f32.xlu1 %v4733_v50 }
0x2845   :  { %v4764_v15 = vpop.permute.xlu0 %4763 }
0x2846   :  { %v10881_v46 = vmul.f32 %v4764_v15, %v4723_v33  ;;  %v10885_v60 = vmul.f32 %v4764_v15, %v4724_v0  ;;  %v10889_v23 = vmul.f32 %v4764_v15, %v4722_v47  ;;  %v9185_v47 = vld [vmem:[%s11588_s4 + $0x8] sm:$0xff]  }
0x2848   :  { %4774 = vrot.lane.b32.xlu0 %v10881_v46, %s9218_s13 }
0x284c   :  { %4778 = vrot.lane.b32.xlu0 %v10885_v60, %s9217_s12 }
0x2852   :  { %4770 = vrot.lane.b32.xlu1 %v10889_v23, %s9219_s14 }
0x28ba   :  { %v4775_v4 = vpop.permute.xlu0 %4774 }
0x28be   :  { %v4779_v53 = vpop.permute.xlu0 %4778 }
0x28ce   :  { %v4735_v17 = vpop.xlane.xlu1 %4734 }
0x28cf   :  { %v4736_v3 = vmul.f32 0.0625, %v4735_v17 }
0x28d1   :  { %v4737_v22 = vadd.f32 1e-05, %v4736_v3 }
0x28d2   :  { %v4771_v7 = vpop.permute.xlu1 %4770 }
0x28d3   :  { %9100 = vrsqrt.f32 %v4737_v22 }
0x28dd   :  { %v9101_v55 = vpop.eup %9100 }
0x28de   :  { %v4739_v63 = vmul.f32 %v9101_v55, %v4731_v19 }
0x28e0   :  { %v4744_v20 = vmul.f32 %v7331_v42, %v4739_v63 }
0x28e2   :  { %v10899_v29 = vadd.f32 %v7332_v52, %v4744_v20 }
0x28e4   :  { %v4781_v59 = vsel %vm737_vm12, %v10899_v29, %v4771_v7 }
0x28e5   :  { %v4782_v44 = vsel %vm11636_vm9, %v4781_v59, %v4775_v4  ;;  %vm11642_vm9 = vmmov %vm11638_vm0 }
0x28e6   :  { %v4783_v37 = vsel %vm741_vm14, %v4782_v44, %v4779_v53 }
0x28e7   :  { %v4784_v8 = vpack.c.bf16 %v4783_v37, %v4783_v37 }
0x28e9   :  { %v4786_v13 = vsel %vm11637_vm15, %v4784_v8, 0  ;;  %vm11643_vm15 = vmmov %vm11638_vm0 }
0x28ea   :  { %8225 = vmatpush3.bf16.msra.mxu0 %v4786_v13 }
0x28ed   :  { %8227 = vmatmul.mubr.msk.bf16.vlgmr.msra.gmra.mrb[200].mxu0 %vm316_vm4, %v9184_v2 }
0x28ee   :  { %8230 = vmatprep.mubr.msk.bf16.mxu0 %vm9215_vm7, %v9214_v36 }
0x28f5   :  { %8231 = vmatmul.mubr.msk.bf16.gmra.mrb[204].mxu0 %vm316_vm4, %v9185_v47 }
0x28f6   :  { %8234 = vmatprep.mubr.msk.bf16.mxu0 %vm9215_vm7, %v9214_v36 }
0x28fd   :  { %8235 = vmatmul.mubr.msk.bf16.gmra.mrb[208].mxu0 %vm316_vm4, %v9186_v18 }
0x29c0   :  { %v10922_v51 = vpop.f32.mrb[200].mxu0 }
0x29c1   :  { %v8228_v0 = vpop.f32.mrb[201].mxu0 }
0x29c2   :  { %v10924_v33 = vpop.f32.mrb[202].mxu0 }
0x29c3   :  { %v8798_v39 = vpack.i.bf16 %v10924_v33, %v10922_v51  ;;  %v8229_v10 = vpop.f32.mrb[203].mxu0 }
0x29c8   :  { %v10928_v16 = vpop.f32.mrb[204].mxu0 }
0x29c9   :  { %v8773_v45 = vpack.i.bf16 %v10928_v16, %v10924_v33  ;;  %v8232_v40 = vpop.f32.mrb[205].mxu0 }
0x29ca   :  { %v4833_v61 = vpop.f32.mrb[206].mxu0 }
0x29cb   :  { %v8768_v21 = vpack.i.bf16 %v4833_v61, %v10922_v51  ;;  %v8233_v57 = vpop.f32.mrb[207].mxu0  ;;  %8774 = vrot.lane.b32.xlu0 %v8773_v45, %s9222_s30 }
0x29cd   :  { %8769 = vrot.lane.b32.xlu1 %v8768_v21, %s9222_s30 }
0x29cf   :  { %8784 = vrot.lane.b32.xlu0 %v8798_v39, %s9221_s29 }
0x29d0   :  { %v4838_v30 = vpop.f32.mrb[208].mxu0 }
0x29d1   :  { %v8838_v54 = vpack.i.bf16 %v4838_v30, %v4833_v61  ;;  %v8236_v11 = vpop.f32.mrb[209].mxu0 }
0x29d2   :  { %v4841_v58 = vpop.f32.mrb[210].mxu0 }
0x29d3   :  { %v8793_v62 = vpack.i.bf16 %v4841_v58, %v10928_v16  ;;  %v8778_v25 = vpack.i.bf16 %v4841_v58, %v4838_v30  ;;  %v8237_v41 = vpop.f32.mrb[211].mxu0 }
0x29d5   :  { %8779 = vrot.lane.b32.xlu1 %v8778_v25, %s9222_s30  ;;  %8794 = vrot.lane.b32.xlu0 %v8793_v62, %s9221_s29 }
0x29d9   :  { %8789 = vrot.lane.b32.xlu1 %v8838_v54, %s9221_s29  ;;  %8804 = vrot.lane.b32.xlu0 %v8838_v54, %s9224_s11 }
0x29dd   :  { %8799 = vrot.lane.b32.xlu1 %v8798_v39, %s9223_s3 }
0x2a3d   :  { %v8775_v43 = vpop.permute.xlu0 %8774 }
0x2a3f   :  { %v8770_v38 = vpop.permute.xlu1 %8769 }
0x2a40   :  { %v8772_v5 = vunpack.i.h.bf16 %v8770_v38  ;;  %v8771_v19 = vunpack.i.l.bf16 %v8770_v38 }
0x2a41   :  { %v8785_v15 = vpop.permute.xlu0 %8784 }
0x2a42   :  { %v8808_v32 = vpack.i.bf16 %v8771_v19, %v10928_v16  ;;  %v8813_v50 = vpack.i.bf16 %v8772_v5, %v4841_v58 }
0x2a44   :  { %8814 = vrot.lane.b32.xlu0 %v8813_v50, %s9224_s11  ;;  %8809 = vrot.lane.b32.xlu1 %v8808_v32, %s9223_s3 }
0x2a47   :  { %v8780_v17 = vpop.permute.xlu1 %8779  ;;  %v8795_v3 = vpop.permute.xlu0 %8794 }
0x2a48   :  { %8819 = vrot.lane.b32.xlu1 %v8775_v43, %s9223_s3  ;;  %8824 = vrot.lane.b32.xlu0 %v8780_v17, %s9224_s11  ;;  %v8796_v55 = vunpack.i.l.bf16 %v8795_v3  ;;  %v8797_v59 = vunpack.i.h.bf16 %v8795_v3 }
0x2a4b   :  { %v8790_v22 = vpop.permute.xlu1 %8789  ;;  %v8805_v42 = vpop.permute.xlu0 %8804 }
0x2a4c   :  { %8829 = vrot.lane.b32.xlu1 %v8785_v15, %s9223_s3  ;;  %8834 = vrot.lane.b32.xlu0 %v8790_v22, %s9224_s11  ;;  %v8807_v20 = vunpack.i.h.bf16 %v8805_v42  ;;  %v8806_v7 = vunpack.i.l.bf16 %v8805_v42 }
0x2a4f   :  { %v8800_v63 = vpop.permute.xlu1 %8799 }
0x2a50   :  { %v8802_v4 = vunpack.i.h.bf16 %v8800_v63  ;;  %v8801_v52 = vunpack.i.l.bf16 %v8800_v63  ;;  %4891 = vrot.lane.b32.xlu1 %v8796_v55, %s9223_s3  ;;  %4918 = vrot.lane.b32.xlu0 %v8797_v59, %s9224_s11 }
0x2a52   :  { %v4930_v53 = vsel %vm256_vm5, %v8802_v4, %v9615_v27  ;;  %v4929_v44 = vsel %vm256_vm5, %v8801_v52, %v9617_v28 }
0x2a53   :  { %v4938_v37 = vsel %vm11638_vm0, %v4929_v44, %v8806_v7  ;;  %v4939_v8 = vsel %vm11639_vm1, %v4930_v53, %v8807_v20  ;;  %vm11644_vm1 = vmmov %vm11638_vm0  ;;  %v8914_v20 = vld [vmem:[%s11592_s8 + $0x1d0] sm:$0xff]   ;;  %v8915_v7 = vld [vmem:[%s11592_s8 + $0x1d8] sm:$0xff]  }
0x2a54   :  { %v4947_v13 = vpack.c.bf16 %v4939_v8, %v4938_v37  ;;  %8839 = vrot.lane.b32.xlu1 %v8838_v54, %s9217_s12  ;;  %5092 = vrot.lane.b32.xlu0 %v4841_v58, %s9217_s12 }
0x2a56   :  { %8241 = vmatmul.mubr.msk.bf16.vlgmr.msra.gmra.mrb[200].mxu1 %vm206_vm10, %v4947_v13 }
0x2a57   :  { %8244 = vmatprep.mubr.msk.bf16.mxu1 %vm9215_vm7, %v9214_v36 }
0x2ab6   :  { %v8815_v27 = vpop.permute.xlu0 %8814  ;;  %v8810_v2 = vpop.permute.xlu1 %8809 }
0x2ab7   :  { %v8817_v47 = vunpack.i.h.bf16 %v8815_v27  ;;  %v8816_v28 = vunpack.i.l.bf16 %v8815_v27  ;;  %v8812_v18 = vunpack.i.h.bf16 %v8810_v2  ;;  %v8811_v0 = vunpack.i.l.bf16 %v8810_v2 }
0x2ab9   :  { %v4932_v39 = vsel %vm256_vm5, %v8812_v18, %v9628_v48  ;;  %v4931_v10 = vsel %vm256_vm5, %v8811_v0, %v9630_v49 }
0x2aba   :  { %v8820_v45 = vpop.permute.xlu1 %8819  ;;  %v4940_v40 = vsel %vm11640_vm2, %v4931_v10, %v8816_v28  ;;  %v4941_v61 = vsel %vm11641_vm8, %v4932_v39, %v8817_v47  ;;  %v8825_v54 = vpop.permute.xlu0 %8824  ;;  %vm11645_vm2 = vmmov %vm11638_vm0  ;;  %vm11646_vm8 = vcmask 1040384  }
0x2abb   :  { %v4948_v21 = vpack.c.bf16 %v4941_v61, %v4940_v40  ;;  %v8822_v57 = vunpack.i.h.bf16 %v8820_v45  ;;  %v8821_v30 = vunpack.i.l.bf16 %v8820_v45  ;;  %v8827_v11 = vunpack.i.h.bf16 %v8825_v54 }
0x2abc   :  { %v8826_v35 = vunpack.i.l.bf16 %v8825_v54 }
0x2abd   :  { %8245 = vmatmul.mubr.msk.bf16.gmra.mrb[204].mxu1 %vm206_vm10, %v4948_v21  ;;  %v4934_v48 = vsel %vm256_vm5, %v8822_v57, %v9641_v34  ;;  %v4933_v49 = vsel %vm256_vm5, %v8821_v30, %v9643_v12 }
0x2abe   :  { %8248 = vmatprep.mubr.msk.bf16.mxu1 %vm9215_vm7, %v9214_v36  ;;  %v8830_v58 = vpop.permute.xlu1 %8829  ;;  %v4943_v62 = vsel %vm11642_vm9, %v4934_v48, %v8827_v11  ;;  %v4942_v25 = vsel %vm11643_vm15, %v4933_v49, %v8826_v35  ;;  %v8835_v6 = vpop.permute.xlu0 %8834  ;;  %vm11647_vm9 = vmmov %vm11646_vm8 }
0x2abf   :  { %v4949_v41 = vpack.c.bf16 %v4943_v62, %v4942_v25  ;;  %v8832_v43 = vunpack.i.h.bf16 %v8830_v58  ;;  %v8831_v38 = vunpack.i.l.bf16 %v8830_v58  ;;  %v8837_v5 = vunpack.i.h.bf16 %v8835_v6 }
0x2ac0   :  { %v8836_v19 = vunpack.i.l.bf16 %v8835_v6 }
0x2ac1   :  { %v4936_v34 = vsel %vm256_vm5, %v8832_v43, %v9654_v26  ;;  %v4935_v12 = vsel %vm256_vm5, %v8831_v38, %v9656_v31 }
0x2ac2   :  { %v4945_v32 = vsel %vm11638_vm0, %v4936_v34, %v8837_v5  ;;  %v4944_v50 = vsel %vm11644_vm1, %v4935_v12, %v8836_v19  ;;  %v4892_v17 = vpop.permute.xlu1 %4891  ;;  %v4919_v3 = vpop.permute.xlu0 %4918 }
0x2ac3   :  { %v4950_v15 = vpack.c.bf16 %v4945_v32, %v4944_v50  ;;  %v4937_v22 = vsel %vm256_vm5, %v4892_v17, %v9664_v1  ;;  %v8913_v1 = vld [vmem:[%s11592_s8 + $0x1c8] sm:$0xff]   ;;  %v8916_v50 = vld [vmem:[%s11592_s8 + $0x1e0] ss:$0 sps:$4 sm:$0x11]  }
0x2ac4   :  { %v4946_v26 = vsel %vm11645_vm2, %v4937_v22, %v4919_v3  ;;  %8260 = vmatprep.subr.bf16.mxu0 %v8913_v1  ;;  %v5160_v17 = vsel %vm11647_vm9, %v8916_v50, 0 }
0x2ac5   :  { %8249 = vmatmul.mubr.msk.bf16.gmra.mrb[208].mxu1 %vm206_vm10, %v4949_v41  ;;  %v4951_v55 = vpack.c.bf16 %v4946_v26, %v4946_v26  ;;  %8261 = vmatpush3.bf16.msra.mxu0 %v8913_v1 }
0x2ac6   :  { %8252 = vmatprep.mubr.msk.bf16.mxu1 %vm9215_vm7, %v9214_v36  ;;  %8262 = vmatprep.subr.bf16.mxu0 %v8914_v20 }
0x2ac9   :  { %8263 = vmatpush3.bf16.msra.mxu0 %v8914_v20 }
0x2aca   :  { %8264 = vmatprep.subr.bf16.mxu0 %v8915_v7 }
0x2acd   :  { %8253 = vmatmul.mubr.msk.bf16.gmra.mrb[212].mxu1 %vm206_vm10, %v4950_v15  ;;  %8265 = vmatpush3.bf16.msra.mxu0 %v8915_v7 }
0x2ace   :  { %8256 = vmatprep.mubr.msk.bf16.mxu1 %vm9215_vm7, %v9214_v36  ;;  %8501 = vmatprep.subr.msk.bf16.mxu0 %vm11646_vm8, %v8916_v50 }
0x2ad1   :  { %8267 = vmatpush3.bf16.msra.mxu0 %v5160_v17 }
0x2ad2   :  { %8272 = vmatprep.subr.bf16.mxu0 %v9214_v36 }
0x2ad5   :  { %8257 = vmatmul.mubr.msk.bf16.gmra.mrb[216].mxu1 %vm206_vm10, %v4951_v55 }
0x2ad6   :  { %8296 = vmatprep.mubr.msk.bf16.mxu1 %vm9215_vm7, %v9214_v36 }
0x2b29   :  { %v11000_v31 = vpop.f32.mrb[200].mxu1 }
0x2b2a   :  { %v8242_v42 = vpop.f32.mrb[201].mxu1  ;;  %v5049_v37 = vmul.f32 %v11000_v31, %v11000_v31 }
0x2b2b   :  { %v11002_v63 = vpop.f32.mrb[202].mxu1 }
0x2b2c   :  { %v5213_v4 = vpack.c.bf16 %v11002_v63, %v11000_v31  ;;  %v8243_v52 = vpop.f32.mrb[203].mxu1  ;;  %v5050_v28 = vmul.f32 %v11002_v63, %v11002_v63 }
0x2b90   :  { %v11015_v59 = vpop.f32.mrb[204].mxu1 }
0x2b91   :  { %v8246_v53 = vpop.f32.mrb[205].mxu1  ;;  %v5051_v10 = vmul.f32 %v11015_v59, %v11015_v59 }
0x2b92   :  { %v11017_v44 = vpop.f32.mrb[206].mxu1 }
0x2b93   :  { %v5052_v8 = vmul.f32 %v11017_v44, %v11017_v44  ;;  %v5214_v13 = vpack.c.bf16 %v11017_v44, %v11015_v59  ;;  %v8247_v27 = vpop.f32.mrb[207].mxu1 }
0x2b95   :  { %v5055_v2 = vadd.f32 %v5052_v8, %v5049_v37 }
0x2b98   :  { %v11025_v47 = vpop.f32.mrb[208].mxu1 }
0x2b99   :  { %v5053_v18 = vmul.f32 %v11025_v47, %v11025_v47  ;;  %v8250_v0 = vpop.f32.mrb[209].mxu1 }
0x2b9a   :  { %v11031_v39 = vpop.f32.mrb[210].mxu1 }
0x2b9b   :  { %v5056_v45 = vadd.f32 %v5053_v18, %v5050_v28  ;;  %v5054_v40 = vmul.f32 %v11031_v39, %v11031_v39  ;;  %v5215_v61 = vpack.c.bf16 %v11031_v39, %v11025_v47  ;;  %v8251_v21 = vpop.f32.mrb[211].mxu1  ;;  %v8840_v18 = vpop.permute.xlu1 %8839 }
0x2b9c   :  { %v8842_v0 = vunpack.i.h.bf16 %v8840_v18  ;;  %v5109_v21 = vsel %vm737_vm12, %v10922_v51, %v9740_v9 }
0x2b9d   :  { %v5057_v57 = vadd.f32 %v5054_v40, %v5051_v10  ;;  %v8841_v10 = vunpack.i.l.bf16 %v8840_v18 }
0x2ba0   :  { %v11039_v30 = vpop.f32.mrb[212].mxu1 }
0x2ba1   :  { %v5058_v54 = vmul.f32 %v11039_v30, %v11039_v30  ;;  %v8254_v11 = vpop.f32.mrb[213].mxu1 }
0x2ba2   :  { %v11043_v35 = vpop.f32.mrb[214].mxu1 }
0x2ba3   :  { %v5061_v48 = vadd.f32 %v5058_v54, %v5055_v2  ;;  %v5059_v49 = vmul.f32 %v11043_v35, %v11043_v35  ;;  %v5216_v58 = vpack.c.bf16 %v11043_v35, %v11039_v30  ;;  %v8255_v62 = vpop.f32.mrb[215].mxu1 }
0x2ba4   :  { %v8917_v62 = vld [vmem:[%s11592_s8 + $0x1e8] sm:$0x1f]  }
0x2ba5   :  { %v5064_v25 = vmax.f32 %v5061_v48, 1e-08  ;;  %v5062_v41 = vadd.f32 %v5059_v49, %v5056_v45  ;;  %v5093_v45 = vpop.permute.xlu0 %5092  ;;  %v5112_v49 = vsel %vm741_vm14, %v5109_v21, %v8841_v10 }
0x2ba7   :  { %9102 = vrsqrt.f32 %v5064_v25  ;;  %v5065_v6 = vmax.f32 %v5062_v41, 1e-08  ;;  %vm5069_vm15 = vcmp.eq.f32.partialorder %v5064_v25, inf  ;;  %v5072_v42 = vand.u32 2147483648, %v5064_v25 }
0x2ba8   :  { %v11049_v43 = vpop.f32.mrb[216].mxu1  ;;  %vm5071_vm1 = vcmp.eq.f32.partialorder %v5064_v25, 0.0 }
0x2ba9   :  { %9104 = vrsqrt.f32 %v5065_v6  ;;  %v5060_v38 = vmul.f32 %v11049_v43, %v11049_v43  ;;  %v8258_v5 = vpop.f32.mrb[217].mxu1  ;;  %vm5076_vm0 = vcmp.eq.f32.partialorder %v5065_v6, inf  ;;  %v5079_v52 = vand.u32 2147483648, %v5065_v6 }
0x2baa   :  { %v5046_v19 = vpop.f32.mrb[218].mxu1  ;;  %vm5078_vm2 = vcmp.eq.f32.partialorder %v5065_v6, 0.0  ;;  %v5241_v5 = vsel %vm210_vm6, %v8917_v62, 0 }
0x2bab   :  { %v5063_v34 = vadd.f32 %v5060_v38, %v5057_v57  ;;  %v8259_v12 = vpop.f32.mrb[219].mxu1  ;;  %v5110_v57 = vsel %vm737_vm12, %v10924_v33, %v9738_v14 }
0x2bac   :  { %v5113_v48 = vsel %vm741_vm14, %v5110_v57, %v8842_v0 }
0x2bad   :  { %v5066_v32 = vmax.f32 %v5063_v34, 1e-08 }
0x2baf   :  { %9106 = vrsqrt.f32 %v5066_v32  ;;  %vm5083_vm8 = vcmp.eq.f32.partialorder %v5066_v32, inf  ;;  %v5086_v27 = vand.u32 2147483648, %v5066_v32  ;;  %vm5085_vm9 = vcmp.eq.f32.partialorder %v5066_v32, 0.0 }
0x2bb1   :  { %v9103_v15 = vpop.eup %9102 }
0x2bb2   :  { %v5068_v3 = vmul.f32 %v9103_v15, %v5064_v25 }
0x2bb3   :  { %v9105_v22 = vpop.eup %9104 }
0x2bb4   :  { %v5070_v26 = vsel %vm5069_vm15, %v5064_v25, %v5068_v3  ;;  %v5075_v55 = vmul.f32 %v9105_v22, %v5065_v6  ;;  %v5111_v25 = vsel %vm737_vm12, %v10928_v16, %v9736_v56  ;;  %vm11648_vm15 = vcmask 326656   ;;  %v5381_v16 = vld [vmem:[%s11592_s8 + $0x1f0] sm:$0x3] }
0x2bb5   :  { %v5073_v20 = vsel %vm5071_vm1, %v5072_v42, %v5070_v26  ;;  %v5114_v14 = vsel %vm741_vm14, %v5111_v25, %v5093_v45  ;;  %v5217_v56 = vpack.c.bf16 %v11049_v43, %v11049_v43  ;;  %v5408_v31 = vsel %vm124_vm3, %v5381_v16, 0 }
0x2bb6   :  { %v5077_v1 = vsel %vm5076_vm0, %v5065_v6, %v5075_v55  ;;  %vm11649_vm0 = vmmov %vm11648_vm15  ;;  %8295 = vmatpush3.bf16.msra.mxu1 %v5408_v31 }
0x2bb7   :  { %v5080_v7 = vsel %vm5078_vm2, %v5079_v52, %v5077_v1  ;;  %vm11650_vm1 = vmmov %vm11649_vm0  ;;  %vm11651_vm2 = vcmask 408576   ;;  %8346 = vmatprep.subr.bf16.mxu1 %v9214_v36 }
0x2bb8   :  { %v8843_v53 = vpack.i.bf16 %v5080_v7, %v5073_v20 }
0x2bb9   :  { %v9107_v37 = vpop.eup %9106 }
0x2bba   :  { %8844 = vrot.lane.b32.xlu1 %v8843_v53, %s9226_s25  ;;  %v5082_v8 = vmul.f32 %v9107_v37, %v5066_v32 }
0x2bbc   :  { %v5084_v2 = vsel %vm5083_vm8, %v5066_v32, %v5082_v8  ;;  %vm11652_vm8 = vmmov %vm11651_vm2 }
0x2bbd   :  { %v5087_v28 = vsel %vm5085_vm9, %v5086_v27, %v5084_v2 }
0x2bbe   :  { %5104 = vrot.lane.b32.xlu0 %v5087_v28, %s9226_s25 }
0x2c2c   :  { %v8845_v40 = vpop.permute.xlu1 %8844 }
0x2c2d   :  { %v8847_v54 = vunpack.i.h.bf16 %v8845_v40  ;;  %v8846_v11 = vunpack.i.l.bf16 %v8845_v40 }
0x2c2f   :  { %v5116_v9 = vsel %vm11648_vm15, %v5113_v48, %v8847_v54  ;;  %v5115_v51 = vsel %vm11649_vm0, %v5112_v49, %v8846_v11 }
0x2c30   :  { %v5118_v33 = vpack.c.bf16 %v5116_v9, %v5115_v51  ;;  %v5105_v41 = vpop.permute.xlu0 %5104 }
0x2c31   :  { %v5117_v6 = vsel %vm11650_vm1, %v5114_v14, %v5105_v41 }
0x2c32   :  { %v5119_v38 = vpack.c.bf16 %v5117_v6, %v5117_v6  ;;  %8268 = vmatprep.mubr.msk.bf16.mxu0 %vm11651_vm2, %v5118_v33 }
0x2c34   :  { %8269 = vmatmul.mubr.msk.bf16.vlgmr.msra.gmra.mrb[212].mxu0 %vm11652_vm8, %v5119_v38 }
0x2c35   :  { %8273 = vmatpush3.bf16.msra.mxu0 %v5241_v5  ;;  %8274 = vmatprep.mubr.msk.bf16.mxu0 %vm9215_vm7, %v9214_v36 }
0x2c3c   :  { %8275 = vmatmul.mubr.msk.bf16.vlgmr.msra.gmra.mrb[216].mxu0 %vm206_vm10, %v5213_v4 }
0x2c3d   :  { %8278 = vmatprep.mubr.msk.bf16.mxu0 %vm9215_vm7, %v9214_v36 }
0x2c44   :  { %8279 = vmatmul.mubr.msk.bf16.gmra.mrb[220].mxu0 %vm206_vm10, %v5214_v13 }
0x2c45   :  { %8282 = vmatprep.mubr.msk.bf16.mxu0 %vm9215_vm7, %v9214_v36 }
0x2c4c   :  { %8283 = vmatmul.mubr.msk.bf16.gmra.mrb[224].mxu0 %vm206_vm10, %v5215_v61 }
0x2c4d   :  { %8286 = vmatprep.mubr.msk.bf16.mxu0 %vm9215_vm7, %v9214_v36 }
0x2c54   :  { %8287 = vmatmul.mubr.msk.bf16.gmra.mrb[228].mxu0 %vm206_vm10, %v5216_v58 }
0x2c55   :  { %8290 = vmatprep.mubr.msk.bf16.mxu0 %vm9215_vm7, %v9214_v36 }
0x2c5c   :  { %8291 = vmatmul.mubr.msk.bf16.gmra.mrb[232].mxu0 %vm206_vm10, %v5217_v56 }
0x2d07   :  { %v11116_v63 = vpop.f32.mrb[212].mxu0 }
0x2d08   :  { %v11118_v4 = vpop.f32.mrb[213].mxu0 }
0x2d09   :  { %v8271_v59 = vpop.f32.mrb[214].mxu0 }
0x2d0a   :  { %v11120_v44 = vpop.f32.mrb[215].mxu0 }
0x2d0f   :  { %v11122_v13 = vpop.f32.mrb[216].mxu0 }
0x2d10   :  { %v8276_v47 = vpop.f32.mrb[217].mxu0  ;;  %v5315_v43 = vmul.f32 %v11122_v13, %v11122_v13 }
0x2d11   :  { %v11124_v39 = vpop.f32.mrb[218].mxu0 }
0x2d12   :  { %v8277_v61 = vpop.f32.mrb[219].mxu0  ;;  %v5316_v50 = vmul.f32 %v11124_v39, %v11124_v39 }
0x2d17   :  { %v11126_v30 = vpop.f32.mrb[220].mxu0 }
0x2d18   :  { %v8280_v35 = vpop.f32.mrb[221].mxu0  ;;  %v5317_v22 = vmul.f32 %v11126_v30, %v11126_v30 }
0x2d19   :  { %v11128_v58 = vpop.f32.mrb[222].mxu0 }
0x2d1a   :  { %v5318_v19 = vmul.f32 %v11128_v58, %v11128_v58  ;;  %v8281_v34 = vpop.f32.mrb[223].mxu0 }
0x2d1c   :  { %v5321_v12 = vadd.f32 %v5318_v19, %v5315_v43 }
0x2d1f   :  { %v11134_v32 = vpop.f32.mrb[224].mxu0 }
0x2d20   :  { %v5319_v15 = vmul.f32 %v11134_v32, %v11134_v32  ;;  %v8284_v17 = vpop.f32.mrb[225].mxu0 }
0x2d21   :  { %v11140_v3 = vpop.f32.mrb[226].mxu0 }
0x2d22   :  { %v5322_v26 = vadd.f32 %v5319_v15, %v5316_v50  ;;  %v5320_v55 = vmul.f32 %v11140_v3, %v11140_v3  ;;  %v8285_v42 = vpop.f32.mrb[227].mxu0 }
0x2d24   :  { %v5323_v52 = vadd.f32 %v5320_v55, %v5317_v22 }
0x2d27   :  { %v5301_v1 = vpop.f32.mrb[228].mxu0 }
0x2d28   :  { %v5324_v20 = vmul.f32 %v5301_v1, %v5301_v1  ;;  %v8288_v7 = vpop.f32.mrb[229].mxu0 }
0x2d29   :  { %v5304_v53 = vpop.f32.mrb[230].mxu0 }
0x2d2a   :  { %v5327_v37 = vadd.f32 %v5324_v20, %v5321_v12  ;;  %v5325_v8 = vmul.f32 %v5304_v53, %v5304_v53  ;;  %v8289_v27 = vpop.f32.mrb[231].mxu0 }
0x2d2c   :  { %v5330_v2 = vmax.f32 %v5327_v37, 1e-08  ;;  %v5328_v28 = vadd.f32 %v5325_v8, %v5322_v26 }
0x2d2e   :  { %9108 = vrsqrt.f32 %v5330_v2  ;;  %v5331_v18 = vmax.f32 %v5328_v28, 1e-08  ;;  %vm5335_vm6 = vcmp.eq.f32.partialorder %v5330_v2, inf  ;;  %v5338_v49 = vand.u32 2147483648, %v5330_v2 }
0x2d2f   :  { %v5309_v0 = vpop.f32.mrb[232].mxu0  ;;  %vm5337_vm10 = vcmp.eq.f32.partialorder %v5330_v2, 0.0 }
0x2d30   :  { %v5326_v10 = vmul.f32 %v5309_v0, %v5309_v0  ;;  %v8292_v45 = vpop.f32.mrb[233].mxu0  ;;  %9110 = vrsqrt.f32 %v5331_v18  ;;  %vm5342_vm9 = vcmp.eq.f32.partialorder %v5331_v18, inf  ;;  %v5345_v33 = vand.u32 2147483648, %v5331_v18 }
0x2d31   :  { %v5312_v40 = vpop.f32.mrb[234].mxu0  ;;  %vm5344_vm15 = vcmp.eq.f32.partialorder %v5331_v18, 0.0 }
0x2d32   :  { %v5329_v21 = vadd.f32 %v5326_v10, %v5323_v52  ;;  %v8293_v57 = vpop.f32.mrb[235].mxu0 }
0x2d34   :  { %v5332_v54 = vmax.f32 %v5329_v21, 1e-08 }
0x2d36   :  { %9112 = vrsqrt.f32 %v5332_v54  ;;  %vm5349_vm0 = vcmp.eq.f32.partialorder %v5332_v54, inf  ;;  %v5352_v16 = vand.u32 2147483648, %v5332_v54  ;;  %vm5351_vm1 = vcmp.eq.f32.partialorder %v5332_v54, 0.0 }
0x2d38   :  { %v9109_v11 = vpop.eup %9108 }
0x2d39   :  { %v5334_v48 = vmul.f32 %v9109_v11, %v5330_v2 }
0x2d3a   :  { %v9111_v62 = vpop.eup %9110 }
0x2d3b   :  { %v5336_v25 = vsel %vm5335_vm6, %v5330_v2, %v5334_v48  ;;  %v5341_v51 = vmul.f32 %v9111_v62, %v5331_v18 }
0x2d3c   :  { %v5339_v9 = vsel %vm5337_vm10, %v5338_v49, %v5336_v25 }
0x2d3d   :  { %v7355_v14 = vmul.f32 -1.442695, %v5339_v9  ;;  %v5343_v41 = vsel %vm5342_vm9, %v5331_v18, %v5341_v51 }
0x2d3e   :  { %v5346_v6 = vsel %vm5344_vm15, %v5345_v33, %v5343_v41 }
0x2d3f   :  { %9114 = vpow2.f32 %v7355_v14  ;;  %v7356_v5 = vmul.f32 -1.442695, %v5346_v6 }
0x2d40   :  { %v9113_v38 = vpop.eup %9112 }
0x2d41   :  { %v5348_v56 = vmul.f32 %v9113_v38, %v5332_v54  ;;  %9116 = vpow2.f32 %v7356_v5 }
0x2d43   :  { %v5350_v31 = vsel %vm5349_vm0, %v5332_v54, %v5348_v56  ;;  %vm11653_vm0 = vcmask 162816  }
0x2d44   :  { %v5353_v59 = vsel %vm5351_vm1, %v5352_v16, %v5350_v31  ;;  %vm11654_vm1 = vmmov %vm11653_vm0 }
0x2d45   :  { %v7357_v47 = vmul.f32 -1.442695, %v5353_v59 }
0x2d47   :  { %9118 = vpow2.f32 %v7357_v47 }
0x2d49   :  { %v9115_v61 = vpop.eup %9114 }
0x2d4a   :  { %v5363_v35 = vadd.f32 1.0, %v9115_v61 }
0x2d4b   :  { %v9117_v43 = vpop.eup %9116 }
0x2d4c   :  { %9120 = vrcp.f32 %v5363_v35  ;;  %v5364_v19 = vadd.f32 1.0, %v9117_v43 }
0x2d4e   :  { %9122 = vrcp.f32 %v5364_v19 }
0x2d51   :  { %v9119_v34 = vpop.eup %9118 }
0x2d52   :  { %v5365_v12 = vadd.f32 1.0, %v9119_v34 }
0x2d54   :  { %9124 = vrcp.f32 %v5365_v12 }
0x2d56   :  { %v9121_v50 = vpop.eup %9120 }
0x2d57   :  { %v5378_v15 = vmul.f32 %v9121_v50, %v5301_v1  ;;  %v5372_v17 = vmul.f32 %v9121_v50, %v11122_v13  ;;  %v5375_v22 = vmul.f32 %v9121_v50, %v11128_v58 }
0x2d58   :  { %v9123_v26 = vpop.eup %9122 }
0x2d59   :  { %v5379_v55 = vmul.f32 %v9123_v26, %v5304_v53  ;;  %v5373_v42 = vmul.f32 %v9123_v26, %v11124_v39  ;;  %v5376_v52 = vmul.f32 %v9123_v26, %v11134_v32 }
0x2d5b   :  { %v5390_v20 = vpack.c.bf16 %v5379_v55, %v5378_v15  ;;  %v5387_v7 = vpack.c.bf16 %v5373_v42, %v5372_v17  ;;  %v8919_v55 = vld [vmem:[%s11592_s8 + $0x200] ss:$0 sps:$4 sm:$0x33]  }
0x2d5d   :  { %8297 = vmatmul.mubr.msk.bf16.vlgmr.msra.gmra.mrb[220].mxu1 %vm256_vm5, %v5387_v7 }
0x2d5e   :  { %v9125_v37 = vpop.eup %9124  ;;  %8300 = vmatprep.mubr.msk.bf16.mxu1 %vm9215_vm7, %v9214_v36 }
0x2d5f   :  { %v5380_v8 = vmul.f32 %v9125_v37, %v5309_v0  ;;  %v5374_v1 = vmul.f32 %v9125_v37, %v11126_v30  ;;  %v5377_v13 = vmul.f32 %v9125_v37, %v11140_v3  ;;  %v8918_v30 = vld [vmem:[%s11592_s8 + $0x1f8] sm:$0xff]  }
0x2d60   :  { %8316 = vmatprep.subr.bf16.mxu0 %v8918_v30 }
0x2d61   :  { %v5388_v58 = vpack.c.bf16 %v5375_v22, %v5374_v1  ;;  %v5389_v27 = vpack.c.bf16 %v5377_v13, %v5376_v52  ;;  %v5391_v39 = vpack.c.bf16 %v5380_v8, %v5380_v8  ;;  %8317 = vmatpush3.bf16.msra.mxu0 %v8918_v30  ;;  %v5558_v52 = vsel %vm124_vm3, %v8919_v55, 0 }
0x2d62   :  { %8502 = vmatprep.subr.msk.bf16.mxu0 %vm124_vm3, %v8919_v55 }
0x2d65   :  { %8301 = vmatmul.mubr.msk.bf16.gmra.mrb[224].mxu1 %vm256_vm5, %v5388_v58  ;;  %8319 = vmatpush3.bf16.msra.mxu0 %v5558_v52 }
0x2d66   :  { %8304 = vmatprep.mubr.msk.bf16.mxu1 %vm9215_vm7, %v9214_v36  ;;  %8324 = vmatprep.subr.bf16.mxu0 %v9214_v36 }
0x2d6d   :  { %8305 = vmatmul.mubr.msk.bf16.gmra.mrb[228].mxu1 %vm256_vm5, %v5389_v27 }
0x2d6e   :  { %8308 = vmatprep.mubr.msk.bf16.mxu1 %vm9215_vm7, %v9214_v36 }
0x2d75   :  { %8309 = vmatmul.mubr.msk.bf16.gmra.mrb[232].mxu1 %vm256_vm5, %v5390_v20 }
0x2d76   :  { %8312 = vmatprep.mubr.msk.bf16.mxu1 %vm9215_vm7, %v9214_v36 }
0x2d7d   :  { %8313 = vmatmul.mubr.msk.bf16.gmra.mrb[236].mxu1 %vm256_vm5, %v5391_v39 }
0x2d7e   :  { %8348 = vmatprep.mubr.msk.bf16.mxu1 %vm9215_vm7, %v9214_v36 }
0x2e30   :  { %v11170_v32 = vpop.f32.mrb[220].mxu1 }
0x2e31   :  { %v8298_v3 = vpop.f32.mrb[221].mxu1  ;;  %v5482_v45 = vmul.f32 %v11170_v32, %v11170_v32 }
0x2e32   :  { %v11172_v53 = vpop.f32.mrb[222].mxu1 }
0x2e33   :  { %v5611_v2 = vpack.c.bf16 %v11172_v53, %v11170_v32  ;;  %v8299_v28 = vpop.f32.mrb[223].mxu1  ;;  %v5483_v48 = vmul.f32 %v11172_v53, %v11172_v53  ;;  %v5772_v53 = vld [vmem:[%s11592_s8 + $0x210] sm:$0x3] }
0x2e38   :  { %v11176_v18 = vpop.f32.mrb[224].mxu1 }
0x2e39   :  { %v8302_v0 = vpop.f32.mrb[225].mxu1  ;;  %v5484_v9 = vmul.f32 %v11176_v18, %v11176_v18 }
0x2e3a   :  { %v11178_v10 = vpop.f32.mrb[226].mxu1 }
0x2e3b   :  { %v5485_v40 = vmul.f32 %v11178_v10, %v11178_v10  ;;  %v5612_v21 = vpack.c.bf16 %v11178_v10, %v11176_v18  ;;  %v8303_v57 = vpop.f32.mrb[227].mxu1 }
0x2e3c   :  { %v7342_v57 = vld [vmem:[%s11593_s9 + $0x18] ss:$0 sm:$0xff] }
0x2e3d   :  { %v5488_v54 = vadd.f32 %v5485_v40, %v5482_v45 }
0x2e40   :  { %v11186_v11 = vpop.f32.mrb[228].mxu1 }
0x2e41   :  { %v5486_v49 = vmul.f32 %v11186_v11, %v11186_v11  ;;  %v8306_v62 = vpop.f32.mrb[229].mxu1 }
0x2e42   :  { %v11192_v25 = vpop.f32.mrb[230].mxu1 }
0x2e43   :  { %v5489_v51 = vadd.f32 %v5486_v49, %v5483_v48  ;;  %v5487_v14 = vmul.f32 %v11192_v25, %v11192_v25  ;;  %v5613_v33 = vpack.c.bf16 %v11192_v25, %v11186_v11  ;;  %v8307_v41 = vpop.f32.mrb[231].mxu1  ;;  %v5200_v48 = vadd.f32 %v7342_v57, %v11120_v44 }
0x2e44   :  { %v5205_v49 = vadd.f32 %v11116_v63, %v7342_v57 }
0x2e45   :  { %v5490_v6 = vadd.f32 %v5487_v14, %v5484_v9 }
0x2e48   :  { %v11200_v38 = vpop.f32.mrb[232].mxu1 }
0x2e49   :  { %v5491_v5 = vmul.f32 %v11200_v38, %v11200_v38  ;;  %v8310_v56 = vpop.f32.mrb[233].mxu1 }
0x2e4a   :  { %v11204_v16 = vpop.f32.mrb[234].mxu1 }
0x2e4b   :  { %v5494_v31 = vadd.f32 %v5491_v5, %v5488_v54  ;;  %v5492_v59 = vmul.f32 %v11204_v16, %v11204_v16  ;;  %v5614_v47 = vpack.c.bf16 %v11204_v16, %v11200_v38  ;;  %v8311_v61 = vpop.f32.mrb[235].mxu1  ;;  %v5197_v54 = vadd.f32 %v7342_v57, %v11118_v4 }
0x2e4d   :  { %v5497_v35 = vmax.f32 %v5494_v31, 1e-08  ;;  %v5495_v43 = vadd.f32 %v5492_v59, %v5489_v51  ;;  %v5210_v9 = vmax.f32 %v5197_v54, 0.0  ;;  %v5211_v51 = vmax.f32 %v5200_v48, 0.0  ;;  %v5386_v31 = vld [vmem:[%s11592_s8 + $0x208] sm:$0x3] }
0x2e4e   :  { %v5632_v63 = vsel %vm124_vm3, %v5386_v31, 0 }
0x2e4f   :  { %9126 = vrsqrt.f32 %v5497_v35  ;;  %v5498_v19 = vmax.f32 %v5495_v43, 1e-08  ;;  %vm5502_vm2 = vcmp.eq.f32.partialorder %v5497_v35, inf  ;;  %v5505_v1 = vand.u32 2147483648, %v5497_v35 }
0x2e50   :  { %v11210_v34 = vpop.f32.mrb[236].mxu1  ;;  %vm5504_vm6 = vcmp.eq.f32.partialorder %v5497_v35, 0.0 }
0x2e51   :  { %9128 = vrsqrt.f32 %v5498_v19  ;;  %v5493_v12 = vmul.f32 %v11210_v34, %v11210_v34  ;;  %v8314_v50 = vpop.f32.mrb[237].mxu1  ;;  %vm5509_vm8 = vcmp.eq.f32.partialorder %v5498_v19, inf  ;;  %v5512_v13 = vand.u32 2147483648, %v5498_v19 }
0x2e52   :  { %v5479_v15 = vpop.f32.mrb[238].mxu1  ;;  %vm5511_vm10 = vcmp.eq.f32.partialorder %v5498_v19, 0.0  ;;  %v5615_v32 = vpack.c.bf16 %v11210_v34, %v11210_v34 }
0x2e53   :  { %v5496_v17 = vadd.f32 %v5493_v12, %v5490_v6  ;;  %v8315_v22 = vpop.f32.mrb[239].mxu1  ;;  %v5212_v6 = vmax.f32 %v5205_v49, 0.0 }
0x2e55   :  { %v5499_v26 = vmax.f32 %v5496_v17, 1e-08 }
0x2e57   :  { %9130 = vrsqrt.f32 %v5499_v26  ;;  %vm5516_vm9 = vcmp.eq.f32.partialorder %v5499_v26, inf  ;;  %v5519_v0 = vand.u32 2147483648, %v5499_v26  ;;  %vm5518_vm15 = vcmp.eq.f32.partialorder %v5499_v26, 0.0 }
0x2e59   :  { %v9127_v42 = vpop.eup %9126 }
0x2e5a   :  { %v5501_v20 = vmul.f32 %v9127_v42, %v5497_v35 }
0x2e5b   :  { %v9129_v7 = vpop.eup %9128 }
0x2e5c   :  { %v5503_v37 = vsel %vm5502_vm2, %v5497_v35, %v5501_v20  ;;  %v5508_v8 = vmul.f32 %v9129_v7, %v5498_v19 }
0x2e5d   :  { %v5506_v27 = vsel %vm5504_vm6, %v5505_v1, %v5503_v37 }
0x2e5e   :  { %v5510_v58 = vsel %vm5509_vm8, %v5498_v19, %v5508_v8 }
0x2e5f   :  { %v5513_v39 = vsel %vm5511_vm10, %v5512_v13, %v5510_v58 }
0x2e60   :  { %v8848_v30 = vpack.i.bf16 %v5513_v39, %v5506_v27 }
0x2e61   :  { %v9131_v3 = vpop.eup %9130 }
0x2e62   :  { %8849 = vrot.lane.b32.xlu1 %v8848_v30, %s9219_s14  ;;  %v5515_v28 = vmul.f32 %v9131_v3, %v5499_v26 }
0x2e64   :  { %v5517_v45 = vsel %vm5516_vm9, %v5499_v26, %v5515_v28 }
0x2e65   :  { %v5520_v40 = vsel %vm5518_vm15, %v5519_v0, %v5517_v45 }
0x2e66   :  { %5528 = vrot.lane.b32.xlu0 %v5520_v40, %s9219_s14 }
0x2ed4   :  { %v8850_v62 = vpop.permute.xlu1 %8849 }
0x2ed5   :  { %v8852_v14 = vunpack.i.h.bf16 %v8850_v62  ;;  %v8851_v41 = vunpack.i.l.bf16 %v8850_v62 }
0x2ed7   :  { %v5533_v5 = vsel %vm737_vm12, %v5210_v9, %v8851_v41  ;;  %v5534_v56 = vsel %vm737_vm12, %v5211_v51, %v8852_v14 }
0x2ed8   :  { %v5536_v59 = vpack.c.bf16 %v5534_v56, %v5533_v5  ;;  %v5529_v4 = vpop.permute.xlu0 %5528 }
0x2ed9   :  { %v5535_v44 = vsel %vm737_vm12, %v5212_v6, %v5529_v4 }
0x2eda   :  { %v5537_v61 = vpack.c.bf16 %v5535_v44, %v5535_v44  ;;  %8320 = vmatprep.mubr.msk.bf16.mxu0 %vm11653_vm0, %v5536_v59 }
0x2edc   :  { %8321 = vmatmul.mubr.msk.bf16.vlgmr.msra.gmra.mrb[236].mxu0 %vm11654_vm1, %v5537_v61 }
0x2edd   :  { %8325 = vmatpush3.bf16.msra.mxu0 %v5632_v63  ;;  %8326 = vmatprep.mubr.msk.bf16.mxu0 %vm9215_vm7, %v9214_v36 }
0x2ee4   :  { %8327 = vmatmul.mubr.msk.bf16.vlgmr.msra.gmra.mrb[240].mxu0 %vm256_vm5, %v5611_v2  ;;  %v5799_v2 = vsel %vm124_vm3, %v5772_v53, 0 }
0x2ee5   :  { %8330 = vmatprep.mubr.msk.bf16.mxu0 %vm9215_vm7, %v9214_v36  ;;  %8347 = vmatpush3.bf16.msra.mxu1 %v5799_v2 }
0x2ee6   :  { %8376 = vmatprep.subr.bf16.mxu1 %v9214_v36 }
0x2eec   :  { %8331 = vmatmul.mubr.msk.bf16.gmra.mrb[244].mxu0 %vm256_vm5, %v5612_v21 }
0x2eed   :  { %8334 = vmatprep.mubr.msk.bf16.mxu0 %vm9215_vm7, %v9214_v36 }
0x2ef4   :  { %8335 = vmatmul.mubr.msk.bf16.gmra.mrb[248].mxu0 %vm256_vm5, %v5613_v33 }
0x2ef5   :  { %8338 = vmatprep.mubr.msk.bf16.mxu0 %vm9215_vm7, %v9214_v36 }
0x2efc   :  { %8339 = vmatmul.mubr.msk.bf16.gmra.mrb[252].mxu0 %vm256_vm5, %v5614_v47 }
0x2efd   :  { %8342 = vmatprep.mubr.msk.bf16.mxu0 %vm9215_vm7, %v9214_v36 }
0x2f04   :  { %8343 = vmatmul.mubr.msk.bf16.gmra.mrb[0].mxu0 %vm256_vm5, %v5615_v32 }
0x2faf   :  { %v11271_v18 = vpop.f32.mrb[236].mxu0 }
0x2fb0   :  { %v11273_v10 = vpop.f32.mrb[237].mxu0 }
0x2fb1   :  { %v8323_v21 = vpop.f32.mrb[238].mxu0 }
0x2fb2   :  { %v11275_v11 = vpop.f32.mrb[239].mxu0 }
0x2fb7   :  { %v11277_v25 = vpop.f32.mrb[240].mxu0 }
0x2fb8   :  { %v8328_v33 = vpop.f32.mrb[241].mxu0  ;;  %v5706_v19 = vmul.f32 %v11277_v25, %v11277_v25 }
0x2fb9   :  { %v11279_v38 = vpop.f32.mrb[242].mxu0 }
0x2fba   :  { %v8329_v16 = vpop.f32.mrb[243].mxu0  ;;  %v5707_v17 = vmul.f32 %v11279_v38, %v11279_v38 }
0x2fbf   :  { %v11281_v47 = vpop.f32.mrb[244].mxu0 }
0x2fc0   :  { %v8332_v35 = vpop.f32.mrb[245].mxu0  ;;  %v5708_v42 = vmul.f32 %v11281_v47, %v11281_v47 }
0x2fc1   :  { %v11283_v43 = vpop.f32.mrb[246].mxu0 }
0x2fc2   :  { %v5709_v34 = vmul.f32 %v11283_v43, %v11283_v43  ;;  %v8333_v12 = vpop.f32.mrb[247].mxu0 }
0x2fc4   :  { %v5712_v50 = vadd.f32 %v5709_v34, %v5706_v19 }
0x2fc7   :  { %v11289_v15 = vpop.f32.mrb[248].mxu0 }
0x2fc8   :  { %v5710_v22 = vmul.f32 %v11289_v15, %v11289_v15  ;;  %v8336_v26 = vpop.f32.mrb[249].mxu0 }
0x2fc9   :  { %v11295_v55 = vpop.f32.mrb[250].mxu0 }
0x2fca   :  { %v5713_v52 = vadd.f32 %v5710_v22, %v5707_v17  ;;  %v5711_v20 = vmul.f32 %v11295_v55, %v11295_v55  ;;  %v8337_v7 = vpop.f32.mrb[251].mxu0 }
0x2fcc   :  { %v5714_v37 = vadd.f32 %v5711_v20, %v5708_v42 }
0x2fcf   :  { %v5692_v8 = vpop.f32.mrb[252].mxu0 }
0x2fd0   :  { %v5715_v1 = vmul.f32 %v5692_v8, %v5692_v8  ;;  %v8340_v13 = vpop.f32.mrb[253].mxu0 }
0x2fd1   :  { %v5695_v58 = vpop.f32.mrb[254].mxu0 }
0x2fd2   :  { %v5718_v27 = vadd.f32 %v5715_v1, %v5712_v50  ;;  %v5716_v39 = vmul.f32 %v5695_v58, %v5695_v58  ;;  %v8341_v30 = vpop.f32.mrb[255].mxu0 }
0x2fd4   :  { %v5721_v3 = vmax.f32 %v5718_v27, 1e-08  ;;  %v5719_v28 = vadd.f32 %v5716_v39, %v5713_v52 }
0x2fd6   :  { %9132 = vrsqrt.f32 %v5721_v3  ;;  %v5722_v0 = vmax.f32 %v5719_v28, 1e-08  ;;  %vm5726_vm2 = vcmp.eq.f32.partialorder %v5721_v3, inf  ;;  %v5729_v14 = vand.u32 2147483648, %v5721_v3 }
0x2fd7   :  { %v5700_v45 = vpop.f32.mrb[0].mxu0  ;;  %vm5728_vm8 = vcmp.eq.f32.partialorder %v5721_v3, 0.0 }
0x2fd8   :  { %v5717_v40 = vmul.f32 %v5700_v45, %v5700_v45  ;;  %v8344_v57 = vpop.f32.mrb[1].mxu0  ;;  %9134 = vrsqrt.f32 %v5722_v0  ;;  %vm5733_vm6 = vcmp.eq.f32.partialorder %v5722_v0, inf  ;;  %v5736_v59 = vand.u32 2147483648, %v5722_v0 }
0x2fd9   :  { %v5703_v54 = vpop.f32.mrb[2].mxu0  ;;  %vm5735_vm10 = vcmp.eq.f32.partialorder %v5722_v0, 0.0 }
0x2fda   :  { %v5720_v48 = vadd.f32 %v5717_v40, %v5714_v37  ;;  %v8345_v49 = vpop.f32.mrb[3].mxu0 }
0x2fdc   :  { %v5723_v62 = vmax.f32 %v5720_v48, 1e-08 }
0x2fde   :  { %9136 = vrsqrt.f32 %v5723_v62  ;;  %vm5740_vm9 = vcmp.eq.f32.partialorder %v5723_v62, inf  ;;  %v5743_v53 = vand.u32 2147483648, %v5723_v62  ;;  %vm5742_vm15 = vcmp.eq.f32.partialorder %v5723_v62, 0.0 }
0x2fe0   :  { %v9133_v9 = vpop.eup %9132 }
0x2fe1   :  { %v5725_v51 = vmul.f32 %v9133_v9, %v5721_v3 }
0x2fe2   :  { %v9135_v41 = vpop.eup %9134 }
0x2fe3   :  { %v5727_v6 = vsel %vm5726_vm2, %v5721_v3, %v5725_v51  ;;  %v5732_v56 = vmul.f32 %v9135_v41, %v5722_v0 }
0x2fe4   :  { %v5730_v5 = vsel %vm5728_vm8, %v5729_v14, %v5727_v6 }
0x2fe5   :  { %v7373_v31 = vmul.f32 -1.442695, %v5730_v5  ;;  %v5734_v4 = vsel %vm5733_vm6, %v5722_v0, %v5732_v56 }
0x2fe6   :  { %v5737_v44 = vsel %vm5735_vm10, %v5736_v59, %v5734_v4 }
0x2fe7   :  { %9138 = vpow2.f32 %v7373_v31  ;;  %v7374_v63 = vmul.f32 -1.442695, %v5737_v44 }
0x2fe8   :  { %v9137_v61 = vpop.eup %9136 }
0x2fe9   :  { %v5739_v32 = vmul.f32 %v9137_v61, %v5723_v62  ;;  %9140 = vpow2.f32 %v7374_v63 }
0x2feb   :  { %v5741_v2 = vsel %vm5740_vm9, %v5723_v62, %v5739_v32  ;;  %vm11655_vm9 = vcmask 162816  }
0x2fec   :  { %v5744_v21 = vsel %vm5742_vm15, %v5743_v53, %v5741_v2  ;;  %vm11656_vm15 = vmmov %vm11655_vm9 }
0x2fed   :  { %v7375_v33 = vmul.f32 -1.442695, %v5744_v21 }
0x2fef   :  { %9142 = vpow2.f32 %v7375_v33 }
0x2ff1   :  { %v9139_v16 = vpop.eup %9138 }
0x2ff2   :  { %v5754_v35 = vadd.f32 1.0, %v9139_v16 }
0x2ff3   :  { %v9141_v19 = vpop.eup %9140 }
0x2ff4   :  { %9144 = vrcp.f32 %v5754_v35  ;;  %v5755_v34 = vadd.f32 1.0, %v9141_v19 }
0x2ff6   :  { %9146 = vrcp.f32 %v5755_v34 }
0x2ff9   :  { %v9143_v12 = vpop.eup %9142 }
0x2ffa   :  { %v5756_v50 = vadd.f32 1.0, %v9143_v12 }
0x2ffc   :  { %9148 = vrcp.f32 %v5756_v50 }
0x2ffe   :  { %v9145_v17 = vpop.eup %9144 }
0x2fff   :  { %v5769_v22 = vmul.f32 %v9145_v17, %v5692_v8  ;;  %v5763_v26 = vmul.f32 %v9145_v17, %v11277_v25  ;;  %v5766_v42 = vmul.f32 %v9145_v17, %v11283_v43 }
0x3000   :  { %v9147_v52 = vpop.eup %9146 }
0x3001   :  { %v5770_v20 = vmul.f32 %v9147_v52, %v5695_v58  ;;  %v5764_v7 = vmul.f32 %v9147_v52, %v11279_v38  ;;  %v5767_v37 = vmul.f32 %v9147_v52, %v11289_v15 }
0x3003   :  { %v5781_v1 = vpack.c.bf16 %v5770_v20, %v5769_v22  ;;  %v5778_v13 = vpack.c.bf16 %v5764_v7, %v5763_v26 }
0x3005   :  { %8349 = vmatmul.mubr.msk.bf16.vlgmr.msra.gmra.mrb[240].mxu1 %vm256_vm5, %v5778_v13 }
0x3006   :  { %v9149_v27 = vpop.eup %9148  ;;  %8352 = vmatprep.mubr.msk.bf16.mxu1 %vm9215_vm7, %v9214_v36 }
0x3007   :  { %v5771_v39 = vmul.f32 %v9149_v27, %v5700_v45  ;;  %v5765_v8 = vmul.f32 %v9149_v27, %v11281_v47  ;;  %v5768_v25 = vmul.f32 %v9149_v27, %v11295_v55  ;;  %v5777_v47 = vld [vmem:[%s11592_s8 + $0x228] sm:$0x3]  ;;  %v8920_v55 = vld [vmem:[%s11592_s8 + $0x218] sm:$0xff]  }
0x3008   :  { %v6020_v15 = vsel %vm124_vm3, %v5777_v47, 0  ;;  %8368 = vmatprep.subr.bf16.mxu0 %v8920_v55 }
0x3009   :  { %v5779_v43 = vpack.c.bf16 %v5766_v42, %v5765_v8  ;;  %v5780_v30 = vpack.c.bf16 %v5768_v25, %v5767_v37  ;;  %v5782_v38 = vpack.c.bf16 %v5771_v39, %v5771_v39  ;;  %8377 = vmatpush3.bf16.msra.mxu1 %v6020_v15  ;;  %8369 = vmatpush3.bf16.msra.mxu0 %v8920_v55 }
0x300a   :  { %8432 = vmatprep.subr.bf16.mxu1 %v9214_v36 }
0x300d   :  { %8353 = vmatmul.mubr.msk.bf16.gmra.mrb[244].mxu1 %vm256_vm5, %v5779_v43 }
0x300e   :  { %8356 = vmatprep.mubr.msk.bf16.mxu1 %vm9215_vm7, %v9214_v36 }
0x3015   :  { %8357 = vmatmul.mubr.msk.bf16.gmra.mrb[248].mxu1 %vm256_vm5, %v5780_v30 }
0x3016   :  { %8360 = vmatprep.mubr.msk.bf16.mxu1 %vm9215_vm7, %v9214_v36 }
0x301d   :  { %8361 = vmatmul.mubr.msk.bf16.gmra.mrb[252].mxu1 %vm256_vm5, %v5781_v1  ;;  %v8921_v1 = vld [vmem:[%s11592_s8 + $0x220] ss:$0 sps:$4 sm:$0x33]  }
0x301e   :  { %8364 = vmatprep.mubr.msk.bf16.mxu1 %vm9215_vm7, %v9214_v36  ;;  %8503 = vmatprep.subr.msk.bf16.mxu0 %vm124_vm3, %v8921_v1  ;;  %v5949_v27 = vsel %vm124_vm3, %v8921_v1, 0 }
0x301f   :  { %8371 = vmatpush3.bf16.msra.mxu0 %v5949_v27  ;;  %v7381_v27 = vld [vmem:[%s11593_s9 + $0x1a] ss:$0 sm:$0xff] }
0x3020   :  { %8398 = vmatprep.subr.bf16.mxu0 %v9214_v36 }
0x3025   :  { %8365 = vmatmul.mubr.msk.bf16.gmra.mrb[0].mxu1 %vm256_vm5, %v5782_v38 }
0x3026   :  { %8378 = vmatprep.mubr.msk.bf16.mxu1 %vm9215_vm7, %v9214_v36 }
0x30d8   :  { %v5835_v58 = vpop.f32.mrb[240].mxu1 }
0x30d9   :  { %v8350_v3 = vpop.f32.mrb[241].mxu1  ;;  %v5873_v48 = vmul.f32 %v5835_v58, %v5835_v58 }
0x30da   :  { %v5838_v28 = vpop.f32.mrb[242].mxu1 }
0x30db   :  { %v5999_v0 = vpack.c.bf16 %v5838_v28, %v5835_v58  ;;  %v8351_v45 = vpop.f32.mrb[243].mxu1  ;;  %v5874_v41 = vmul.f32 %v5838_v28, %v5838_v28 }
0x30dd   :  { %8379 = vmatmul.mubr.msk.bf16.vlgmr.msra.gmra.mrb[4].mxu1 %vm256_vm5, %v5999_v0 }
0x30de   :  { %8382 = vmatprep.mubr.msk.bf16.mxu1 %vm9215_vm7, %v9214_v36 }
0x30e0   :  { %v5843_v40 = vpop.f32.mrb[244].mxu1 }
0x30e1   :  { %v8354_v57 = vpop.f32.mrb[245].mxu1  ;;  %v5875_v31 = vmul.f32 %v5843_v40, %v5843_v40 }
0x30e2   :  { %v5846_v54 = vpop.f32.mrb[246].mxu1  ;;  %v7363_v57 = vld [vmem:[%s11593_s9 + $0x19] ss:$0 sm:$0xff] }
0x30e3   :  { %v5876_v49 = vmul.f32 %v5846_v54, %v5846_v54  ;;  %v6000_v62 = vpack.c.bf16 %v5846_v54, %v5843_v40  ;;  %v8355_v9 = vpop.f32.mrb[247].mxu1  ;;  %v5595_v54 = vadd.f32 %v7363_v57, %v11273_v10 }
0x30e5   :  { %v5879_v51 = vadd.f32 %v5876_v49, %v5873_v48  ;;  %8383 = vmatmul.mubr.msk.bf16.gmra.mrb[8].mxu1 %vm256_vm5, %v6000_v62  ;;  %v5598_v48 = vadd.f32 %v7363_v57, %v11275_v11  ;;  %v5603_v49 = vadd.f32 %v11271_v18, %v7363_v57  ;;  %v5608_v9 = vmax.f32 %v5595_v54, 0.0 }
0x30e6   :  { %8386 = vmatprep.mubr.msk.bf16.mxu1 %vm9215_vm7, %v9214_v36 }
0x30e8   :  { %v5851_v14 = vpop.f32.mrb[248].mxu1 }
0x30e9   :  { %v5877_v6 = vmul.f32 %v5851_v14, %v5851_v14  ;;  %v8358_v5 = vpop.f32.mrb[249].mxu1 }
0x30ea   :  { %v5854_v56 = vpop.f32.mrb[250].mxu1 }
0x30eb   :  { %v5880_v59 = vadd.f32 %v5877_v6, %v5874_v41  ;;  %v5878_v4 = vmul.f32 %v5854_v56, %v5854_v56  ;;  %v6001_v44 = vpack.c.bf16 %v5854_v56, %v5851_v14  ;;  %v8359_v61 = vpop.f32.mrb[251].mxu1  ;;  %v5610_v6 = vmax.f32 %v5603_v49, 0.0 }
0x30ed   :  { %v5881_v63 = vadd.f32 %v5878_v4, %v5875_v31  ;;  %8387 = vmatmul.mubr.msk.bf16.gmra.mrb[12].mxu1 %vm256_vm5, %v6001_v44 }
0x30ee   :  { %8390 = vmatprep.mubr.msk.bf16.mxu1 %vm9215_vm7, %v9214_v36 }
0x30f0   :  { %v5859_v32 = vpop.f32.mrb[252].mxu1 }
0x30f1   :  { %v5882_v53 = vmul.f32 %v5859_v32, %v5859_v32  ;;  %v8362_v2 = vpop.f32.mrb[253].mxu1 }
0x30f2   :  { %v5862_v21 = vpop.f32.mrb[254].mxu1 }
0x30f3   :  { %v5885_v33 = vadd.f32 %v5882_v53, %v5879_v51  ;;  %v5883_v16 = vmul.f32 %v5862_v21, %v5862_v21  ;;  %v6002_v35 = vpack.c.bf16 %v5862_v21, %v5859_v32  ;;  %v8363_v19 = vpop.f32.mrb[255].mxu1  ;;  %v5609_v51 = vmax.f32 %v5598_v48, 0.0 }
0x30f5   :  { %v5888_v34 = vmax.f32 %v5885_v33, 1e-08  ;;  %v5886_v12 = vadd.f32 %v5883_v16, %v5880_v59  ;;  %8391 = vmatmul.mubr.msk.bf16.gmra.mrb[16].mxu1 %vm256_vm5, %v6002_v35 }
0x30f6   :  { %8394 = vmatprep.mubr.msk.bf16.mxu1 %vm9215_vm7, %v9214_v36 }
0x30f7   :  { %9150 = vrsqrt.f32 %v5888_v34  ;;  %v5889_v50 = vmax.f32 %v5886_v12, 1e-08  ;;  %vm5893_vm0 = vcmp.eq.f32.partialorder %v5888_v34, inf  ;;  %v5896_v30 = vand.u32 2147483648, %v5888_v34 }
0x30f8   :  { %v5867_v17 = vpop.f32.mrb[0].mxu1  ;;  %vm5895_vm2 = vcmp.eq.f32.partialorder %v5888_v34, 0.0 }
0x30f9   :  { %9152 = vrsqrt.f32 %v5889_v50  ;;  %v5884_v22 = vmul.f32 %v5867_v17, %v5867_v17  ;;  %v8366_v26 = vpop.f32.mrb[1].mxu1  ;;  %v6003_v20 = vpack.c.bf16 %v5867_v17, %v5867_v17  ;;  %vm5900_vm1 = vcmp.eq.f32.partialorder %v5889_v50, inf }
0x30fa   :  { %v5870_v42 = vpop.f32.mrb[2].mxu1  ;;  %v5903_v38 = vand.u32 2147483648, %v5889_v50  ;;  %vm5902_vm8 = vcmp.eq.f32.partialorder %v5889_v50, 0.0 }
0x30fb   :  { %v5887_v52 = vadd.f32 %v5884_v22, %v5881_v63  ;;  %v8367_v7 = vpop.f32.mrb[3].mxu1 }
0x30fd   :  { %v5890_v37 = vmax.f32 %v5887_v52, 1e-08  ;;  %8395 = vmatmul.mubr.msk.bf16.gmra.mrb[20].mxu1 %vm256_vm5, %v6003_v20 }
0x30fe   :  { %8442 = vmatprep.mubr.msk.bf16.mxu1 %vm9215_vm7, %v9214_v36 }
0x30ff   :  { %9154 = vrsqrt.f32 %v5890_v37  ;;  %vm5907_vm6 = vcmp.eq.f32.partialorder %v5890_v37, inf  ;;  %v5910_v0 = vand.u32 2147483648, %v5890_v37  ;;  %vm5909_vm10 = vcmp.eq.f32.partialorder %v5890_v37, 0.0 }
0x3101   :  { %v9151_v13 = vpop.eup %9150 }
0x3102   :  { %v5892_v39 = vmul.f32 %v9151_v13, %v5888_v34 }
0x3103   :  { %v9153_v8 = vpop.eup %9152 }
0x3104   :  { %v5894_v25 = vsel %vm5893_vm0, %v5888_v34, %v5892_v39  ;;  %v5899_v43 = vmul.f32 %v9153_v8, %v5889_v50  ;;  %vm11657_vm0 = vmmov %vm11655_vm9 }
0x3105   :  { %v5897_v15 = vsel %vm5895_vm2, %v5896_v30, %v5894_v25  ;;  %vm11659_vm2 = vmmov %vm11657_vm0 }
0x3106   :  { %v5901_v47 = vsel %vm5900_vm1, %v5889_v50, %v5899_v43  ;;  %vm11658_vm1 = vmmov %vm11657_vm0 }
0x3107   :  { %v5904_v55 = vsel %vm5902_vm8, %v5903_v38, %v5901_v47  ;;  %vm11660_vm8 = vcmask 1043456  }
0x3108   :  { %v8853_v58 = vpack.i.bf16 %v5904_v55, %v5897_v15 }
0x3109   :  { %v9155_v3 = vpop.eup %9154 }
0x310a   :  { %8854 = vrot.lane.b32.xlu1 %v8853_v58, %s9219_s14  ;;  %v5906_v28 = vmul.f32 %v9155_v3, %v5890_v37 }
0x310c   :  { %v5908_v45 = vsel %vm5907_vm6, %v5890_v37, %v5906_v28  ;;  %vm11661_vm6 = vmmov %vm11660_vm8 }
0x310d   :  { %v5911_v40 = vsel %vm5909_vm10, %v5910_v0, %v5908_v45  ;;  %vm11662_vm10 = vmmov %vm11661_vm6 }
0x310e   :  { %5919 = vrot.lane.b32.xlu0 %v5911_v40, %s9219_s14 }
0x317c   :  { %v8855_v62 = vpop.permute.xlu1 %8854 }
0x317d   :  { %v8857_v14 = vunpack.i.h.bf16 %v8855_v62  ;;  %v8856_v41 = vunpack.i.l.bf16 %v8855_v62 }
0x317f   :  { %v5924_v5 = vsel %vm737_vm12, %v5608_v9, %v8856_v41  ;;  %v5925_v56 = vsel %vm737_vm12, %v5609_v51, %v8857_v14 }
0x3180   :  { %v5927_v31 = vpack.c.bf16 %v5925_v56, %v5924_v5  ;;  %v5920_v59 = vpop.permute.xlu0 %5919 }
0x3181   :  { %v5926_v4 = vsel %vm737_vm12, %v5610_v6, %v5920_v59  ;;  %v9187_v59 = vld [vmem:[%s11589_s5] sm:$0xf] }
0x3182   :  { %v5928_v44 = vpack.c.bf16 %v5926_v4, %v5926_v4  ;;  %8372 = vmatprep.mubr.msk.bf16.mxu0 %vm11655_vm9, %v5927_v31 }
0x3184   :  { %8373 = vmatmul.mubr.msk.bf16.vlgmr.msra.gmra.mrb[4].mxu0 %vm11656_vm15, %v5928_v44 }
0x3185   :  { %8402 = vmatprep.mubr.msk.bf16.mxu0 %vm9215_vm7, %v9214_v36 }
0x31b0   :  { %v6056_v18 = vpop.f32.mrb[4].mxu1 }
0x31b1   :  { %v8380_v10 = vpop.f32.mrb[5].mxu1 }
0x31b2   :  { %v6059_v11 = vpop.f32.mrb[6].mxu1 }
0x31b3   :  { %v8858_v61 = vpack.i.bf16 %v6059_v11, %v6056_v18  ;;  %v8381_v63 = vpop.f32.mrb[7].mxu1 }
0x31b5   :  { %8859 = vrot.lane.b32.xlu1 %v8858_v61, %s9219_s14 }
0x31b8   :  { %v6064_v32 = vpop.f32.mrb[8].mxu1 }
0x31b9   :  { %6101 = vrot.lane.b32.xlu0 %v6064_v32, %s9219_s14  ;;  %v8384_v53 = vpop.f32.mrb[9].mxu1 }
0x31ba   :  { %v6067_v2 = vpop.f32.mrb[10].mxu1 }
0x31bb   :  { %v8385_v21 = vpop.f32.mrb[11].mxu1 }
0x31c0   :  { %v6072_v33 = vpop.f32.mrb[12].mxu1 }
0x31c1   :  { %v8863_v16 = vpack.i.bf16 %v6072_v33, %v6067_v2  ;;  %v8388_v35 = vpop.f32.mrb[13].mxu1 }
0x31c2   :  { %v6075_v19 = vpop.f32.mrb[14].mxu1 }
0x31c3   :  { %8864 = vrot.lane.b32.xlu0 %v8863_v16, %s9218_s13  ;;  %v8389_v34 = vpop.f32.mrb[15].mxu1 }
0x31c8   :  { %v6080_v12 = vpop.f32.mrb[16].mxu1 }
0x31c9   :  { %v8392_v50 = vpop.f32.mrb[17].mxu1 }
0x31ca   :  { %v6083_v17 = vpop.f32.mrb[18].mxu1 }
0x31cb   :  { %v8868_v22 = vpack.i.bf16 %v6083_v17, %v6080_v12  ;;  %v8393_v26 = vpop.f32.mrb[19].mxu1 }
0x31cd   :  { %8869 = vrot.lane.b32.xlu1 %v8868_v22, %s9217_s12 }
0x31d0   :  { %v6088_v42 = vpop.f32.mrb[20].mxu1 }
0x31d1   :  { %6113 = vrot.lane.b32.xlu1 %v6075_v19, %s9218_s13  ;;  %6125 = vrot.lane.b32.xlu0 %v6088_v42, %s9217_s12  ;;  %v8396_v52 = vpop.f32.mrb[21].mxu1 }
0x31d2   :  { %v6091_v20 = vpop.f32.mrb[22].mxu1 }
0x31d3   :  { %v8397_v7 = vpop.f32.mrb[23].mxu1 }
0x3227   :  { %v8860_v37 = vpop.permute.xlu1 %8859 }
0x3228   :  { %v8861_v30 = vunpack.i.l.bf16 %v8860_v37  ;;  %v8862_v28 = vunpack.i.h.bf16 %v8860_v37 }
0x322b   :  { %v6102_v1 = vpop.permute.xlu0 %6101 }
0x3235   :  { %v8865_v39 = vpop.permute.xlu0 %8864 }
0x3236   :  { %v8866_v15 = vunpack.i.l.bf16 %v8865_v39  ;;  %v8867_v57 = vunpack.i.h.bf16 %v8865_v39 }
0x323f   :  { %v8870_v13 = vpop.permute.xlu1 %8869 }
0x3240   :  { %v8872_v48 = vunpack.i.h.bf16 %v8870_v13  ;;  %v8871_v49 = vunpack.i.l.bf16 %v8870_v13 }
0x3243   :  { %v6114_v55 = vpop.permute.xlu1 %6113  ;;  %v6126_v62 = vpop.permute.xlu0 %6125 }
0x3257   :  { %v8374_v8 = vpop.f32.mrb[4].mxu0 }
0x3258   :  { %v5994_v25 = vadd.f32 %v8374_v8, %v7381_v27  ;;  %v5985_v43 = vpop.f32.mrb[5].mxu0 }
0x3259   :  { %v5986_v38 = vadd.f32 %v7381_v27, %v5985_v43  ;;  %v8375_v47 = vpop.f32.mrb[6].mxu0 }
0x325a   :  { %v6132_v58 = vsel %vm737_vm12, %v5994_v25, %v6102_v1  ;;  %v5988_v3 = vpop.f32.mrb[7].mxu0 }
0x325b   :  { %v6135_v0 = vsel %vm11657_vm0, %v6132_v58, %v6114_v55  ;;  %v6130_v45 = vsel %vm737_vm12, %v5986_v38, %v8861_v30  ;;  %v5989_v40 = vadd.f32 %v7381_v27, %v5988_v3  ;;  %v8922_v30 = vld [vmem:[%s11592_s8 + $0x238] sm:$0xff]   ;;  %vm11663_vm0 = vmmov %vm11661_vm6 }
0x325c   :  { %v6133_v54 = vsel %vm11658_vm1, %v6130_v45, %v8866_v15  ;;  %v6138_v14 = vsel %vm741_vm14, %v6135_v0, %v6126_v62  ;;  %vm11664_vm1 = vmmov %vm11663_vm0 }
0x325d   :  { %v6131_v9 = vsel %vm737_vm12, %v5989_v40, %v8862_v28  ;;  %v6136_v41 = vsel %vm741_vm14, %v6133_v54, %v8871_v49  ;;  %v6140_v56 = vpack.c.bf16 %v6138_v14, %v6138_v14  ;;  %v8923_v54 = vld [vmem:[%s11592_s8 + $0x240] ss:$0 sps:$4 sm:$0xff]   ;;  %v6252_v49 = vld [vmem:[%s11592_s8 + $0x248] sm:$0xf] }
0x325e   :  { %v6134_v51 = vsel %vm11659_vm2, %v6131_v9, %v8867_v57  ;;  %vm11665_vm2 = vmmov %vm11663_vm0 }
0x325f   :  { %v6137_v6 = vsel %vm741_vm14, %v6134_v51, %v8872_v48  ;;  %v6142_v31 = vsel %vm11660_vm8, %v6140_v56, 0  ;;  %v6348_v48 = vsel %vm11661_vm6, %v8923_v54, 0  ;;  %vm11666_vm6 = vmmov %vm11663_vm0 }
0x3260   :  { %v6139_v5 = vpack.c.bf16 %v6137_v6, %v6136_v41 }
0x3262   :  { %8399 = vmatpush3.bf16.msra.mxu0 %v6139_v5 }
0x3263   :  { %8400 = vmatprep.subr.bf16.mxu0 %v9214_v36 }
0x3266   :  { %8401 = vmatpush3.bf16.msra.mxu0 %v6142_v31 }
0x3269   :  { %8403 = vmatmul.mubr.msk.bf16.vlgmr.msra.gmra.mrb[8].mxu0 %vm741_vm14, %v9187_v59 }
0x333c   :  { %v6178_v4 = vpop.f32.mrb[8].mxu0 }
0x333d   :  { %v6184_v44 = vmul.f32 %v6178_v4, %v10132_v24  ;;  %v8404_v18 = vpop.f32.mrb[9].mxu0  ;;  %v7392_v4 = vld [vmem:[%s11593_s9 + $0x1b] ss:$0 sm:$0xff] }
0x333e   :  { %v6181_v10 = vpop.f32.mrb[10].mxu0  ;;  %v7393_v18 = vld [vmem:[%s11593_s9 + $0x1c] ss:$0 sm:$0xff] }
0x333f   :  { %6188 = vrot.lane.b32.xlu0 %v6184_v44, %s9221_s29  ;;  %6186 = vrot.lane.b32.xlu1 %v6184_v44, %s9222_s30  ;;  %v8405_v11 = vpop.f32.mrb[11].mxu0 }
0x3343   :  { %6191 = vrot.lane.b32.xlu1 %v6184_v44, %s9223_s3 }
0x33b1   :  { %v6189_v61 = vpop.permute.xlu0 %6188  ;;  %v6187_v63 = vpop.permute.xlu1 %6186 }
0x33b2   :  { %6195 = vrot.lane.b32.xlu1 %v6189_v61, %s9223_s3  ;;  %6193 = vrot.lane.b32.xlu0 %v6187_v63, %s9223_s3 }
0x33b5   :  { %v6192_v32 = vpop.permute.xlu1 %6191 }
0x33b6   :  { %v6200_v53 = vadd.f32 %v6192_v32, %v10889_v23  ;;  %v6190_v23 = vadd.f32 %v6184_v44, %v10899_v29  ;;  %v6400_v32 = vsel %vm11663_vm0, %v6252_v49, 0 }
0x33b8   :  { %v6228_v16 = vmul.f32 %v6200_v53, %v6200_v53  ;;  %v6205_v52 = vsel %vm737_vm12, %v6190_v23, 0.0 }
0x3424   :  { %v6194_v2 = vpop.permute.xlu0 %6193  ;;  %v6196_v24 = vpop.permute.xlu1 %6195 }
0x3425   :  { %v6201_v21 = vadd.f32 %v6194_v2, %v10881_v46  ;;  %v6202_v33 = vadd.f32 %v6196_v24, %v10885_v60  ;;  %v6247_v46 = vld [vmem:[%s11592_s8 + $0x230] sm:$0x3] }
0x3426   :  { %8504 = vmatprep.subr.msk.bf16.mxu0 %vm124_vm3, %v6247_v46  ;;  %v6262_v60 = vsel %vm124_vm3, %v6247_v46, 0  ;;  %v6472_v2 = vld [vmem:[%s11592_s8 + $0x250] sm:$0xf] }
0x3427   :  { %v6229_v35 = vmul.f32 %v6201_v21, %v6201_v21  ;;  %v6231_v34 = vmul.f32 %v6202_v33, %v6202_v33  ;;  %8407 = vmatpush3.bf16.msra.mxu0 %v6262_v60  ;;  %v6493_v24 = vsel %vm11665_vm2, %v6472_v2, 0 }
0x3428   :  { %8412 = vmatprep.subr.bf16.mxu0 %v9214_v36 }
0x3429   :  { %v6230_v19 = vadd.f32 %v6229_v35, %v6228_v16 }
0x342b   :  { %v6232_v12 = vadd.f32 %v6231_v34, %v6230_v19 }
0x342d   :  { %v6233_v50 = vmax.f32 %v6232_v12, 1e-08 }
0x342f   :  { %v6234_v17 = vsel %vm256_vm5, %v6233_v50, 0.0 }
0x3430   :  { %6235 = vadd.xlane.f32.xlu0 %v6234_v17 }
0x34bd   :  { %v6236_v22 = vpop.xlane.xlu0 %6235 }
0x34be   :  { %v6237_v26 = vmul.f32 0.25, %v6236_v22 }
0x34c0   :  { %9156 = vrsqrt.f32 %v6237_v26 }
0x34ca   :  { %v9157_v42 = vpop.eup %9156 }
0x34cb   :  { %6241 = vperm.xlu1 %8662, %v9157_v42  }
0x34ef   :  { %6206 = vadd.xlane.f32.xlu1 %v6205_v52 }
0x354a   :  { %v6242_v20 = vpop.permute.xlu1 %6241 }
0x354b   :  { %v11408_v7 = vmul.f32 %v6242_v20, %v6200_v53  ;;  %v11410_v37 = vmul.f32 %v6242_v20, %v6201_v21  ;;  %v11412_v1 = vmul.f32 %v6242_v20, %v6202_v33 }
0x354d   :  { %v6253_v13 = vpack.c.bf16 %v11410_v37, %v11408_v7  ;;  %v6254_v27 = vpack.c.bf16 %v11412_v1, %v11412_v1 }
0x354f   :  { %8408 = vmatprep.mubr.msk.bf16.mxu0 %vm256_vm5, %v6253_v13 }
0x3550   :  { %8409 = vmatmul.mubr.msk.bf16.vlgmr.msra.gmra.mrb[12].mxu0 %vm256_vm5, %v6254_v27 }
0x3551   :  { %8416 = vmatprep.mubr.msk.bf16.mxu0 %vm9215_vm7, %v9214_v36  ;;  %8413 = vmatpush3.bf16.msra.mxu0 %v8922_v30 }
0x3552   :  { %8414 = vmatprep.subr.bf16.mxu0 %v9214_v36 }
0x3555   :  { %8415 = vmatpush3.bf16.msra.mxu0 %v6348_v48 }
0x3556   :  { %8505 = vmatprep.subr.msk.bf16.mxu0 %vm11662_vm10, %v6252_v49  ;;  %vm11667_vm10 = vmmov %vm11663_vm0 }
0x357c   :  { %v6207_v29 = vpop.xlane.xlu1 %6206 }
0x357d   :  { %v6208_v39 = vmul.f32 0.0625, %v6207_v29 }
0x357f   :  { %v6209_v8 = vsub.f32 %v6190_v23, %v6208_v39 }
0x3581   :  { %v6210_v25 = vmul.f32 %v6209_v8, %v6209_v8 }
0x3583   :  { %v6211_v43 = vsel %vm737_vm12, %v6210_v25, 0.0 }
0x3584   :  { %6212 = vadd.xlane.f32.xlu0 %v6211_v43 }
0x3611   :  { %v6213_v6 = vpop.xlane.xlu0 %6212 }
0x3612   :  { %v6214_v5 = vmul.f32 0.0625, %v6213_v6 }
0x3614   :  { %v6215_v56 = vadd.f32 1e-05, %v6214_v5 }
0x3623   :  { %v8410_v38 = vpop.f32.mrb[12].mxu0 }
0x3624   :  { %v6298_v47 = vpop.f32.mrb[13].mxu0  ;;  %v6315_v0 = vmul.f32 %v8410_v38, %v8410_v38  ;;  %v6392_v53 = vpack.c.bf16 %v8410_v38, %v8410_v38 }
0x3625   :  { %v8411_v15 = vpop.f32.mrb[14].mxu0  ;;  %v6312_v58 = vmul.f32 %v6298_v47, %v6298_v47 }
0x3626   :  { %v6301_v55 = vpop.f32.mrb[15].mxu0 }
0x3627   :  { %v6313_v3 = vmul.f32 %v6301_v55, %v6301_v55  ;;  %v6391_v28 = vpack.c.bf16 %v6301_v55, %v6298_v47  ;;  %v6483_v55 = vld [vmem:[%s11592_s8 + $0x280] sm:$0xf] }
0x3629   :  { %v6314_v45 = vadd.f32 %v6313_v3, %v6312_v58  ;;  %v6648_v58 = vsel %vm11667_vm10, %v6483_v55, 0  ;;  %v8924_v3 = vld [vmem:[%s11592_s8 + $0x258] sm:$0xff]  }
0x362a   :  { %8433 = vmatpush3.bf16.msra.mxu1 %v8924_v3 }
0x362b   :  { %v6316_v40 = vadd.f32 %v6315_v0, %v6314_v45  ;;  %8434 = vmatprep.subr.bf16.mxu1 %v9214_v36  ;;  %v8926_v0 = vld [vmem:[%s11592_s8 + $0x268] sm:$0xff]   ;;  %v8927_v45 = vld [vmem:[%s11592_s8 + $0x270] sm:$0xff]  }
0x362d   :  { %v6317_v57 = vmax.f32 %v6316_v40, 1e-08 }
0x362f   :  { %9158 = vrsqrt.f32 %v6317_v57  ;;  %vm6320_vm9 = vcmp.eq.f32.partialorder %v6317_v57, inf  ;;  %v6323_v51 = vand.u32 2147483648, %v6317_v57  ;;  %vm6322_vm15 = vcmp.eq.f32.partialorder %v6317_v57, 0.0 }
0x3630   :  { %9160 = vrsqrt.f32 %v6215_v56  ;;  %v8928_v56 = vld [vmem:[%s11592_s8 + $0x278] ss:$0 sps:$4 sm:$0xff]  }
0x3639   :  { %v9159_v62 = vpop.eup %9158 }
0x363a   :  { %v6319_v9 = vmul.f32 %v9159_v62, %v6317_v57  ;;  %v9161_v31 = vpop.eup %9160 }
0x363b   :  { %v6217_v59 = vmul.f32 %v9161_v31, %v6209_v8 }
0x363c   :  { %v6321_v14 = vsel %vm6320_vm9, %v6317_v57, %v6319_v9  ;;  %vm11668_vm9 = vmmov %vm11663_vm0 }
0x363d   :  { %v6324_v41 = vsel %vm6322_vm15, %v6323_v51, %v6321_v14  ;;  %v6222_v44 = vmul.f32 %v7392_v4, %v6217_v59  ;;  %v6597_v31 = vsel %vm11668_vm9, %v8928_v56, 0 }
0x363e   :  { %6326 = vrot.lane.b32.xlu0 %v6324_v41, %s9219_s14 }
0x363f   :  { %v11442_v10 = vadd.f32 %v7393_v18, %v6222_v44 }
0x36b0   :  { %v6327_v11 = vpop.permute.xlu0 %6326 }
0x36b1   :  { %v6329_v61 = vsel %vm737_vm12, %v11442_v10, %v6327_v11 }
0x36b2   :  { %v6330_v63 = vpack.c.bf16 %v6329_v61, %v6329_v61  ;;  %v7396_v61 = vld [vmem:[%s11593_s9 + $0x1d] ss:$0 sm:$0xff] }
0x36b4   :  { %8417 = vmatmul.mubr.msk.bf16.vlgmr.msra.gmra.mrb[16].mxu0 %vm741_vm14, %v6330_v63 }
0x36b5   :  { %8422 = vmatprep.mubr.msk.bf16.mxu0 %vm316_vm4, %v6391_v28  ;;  %8421 = vmatpush3.bf16.msra.mxu0 %v6400_v32  ;;  %v8925_v28 = vld [vmem:[%s11592_s8 + $0x260] sm:$0xff]  }
0x36b6   :  { %8506 = vmatprep.subr.msk.bf16.mxu0 %vm11664_vm1, %v6472_v2  ;;  %8435 = vmatpush3.bf16.msra.mxu1 %v8925_v28 }
0x36b7   :  { %8436 = vmatprep.subr.bf16.mxu1 %v9214_v36 }
0x36ba   :  { %8437 = vmatpush3.bf16.msra.mxu1 %v8926_v0 }
0x36bb   :  { %8438 = vmatprep.subr.bf16.mxu1 %v9214_v36 }
0x36bc   :  { %8423 = vmatmul.mubr.msk.bf16.vlgmr.msra.gmra.mrb[20].mxu0 %vm316_vm4, %v6392_v53 }
0x36bd   :  { %8427 = vmatpush3.bf16.msra.mxu0 %v6493_v24 }
0x36be   :  { %8507 = vmatprep.subr.msk.bf16.mxu0 %vm11666_vm6, %v6483_v55  ;;  %8439 = vmatpush3.bf16.msra.mxu1 %v8927_v45 }
0x36bf   :  { %8440 = vmatprep.subr.bf16.mxu1 %v9214_v36 }
0x36c2   :  { %8441 = vmatpush3.bf16.msra.mxu1 %v6597_v31 }
0x3787   :  { %v11455_v21 = vpop.f32.mrb[16].mxu0 }
0x3788   :  { %v8418_v33 = vpop.f32.mrb[17].mxu0  ;;  %v6385_v63 = vadd.f32 %v7396_v61, %v11455_v21 }
0x3789   :  { %v6387_v16 = vpop.f32.mrb[18].mxu0 }
0x378a   :  { %v8419_v35 = vpop.f32.mrb[19].mxu0  ;;  %v6390_v32 = vmax.f32 %v6385_v63, 0.0  ;;  %v7415_v63 = vld [vmem:[%s11593_s9 + $0x20] ss:$0 sm:$0xff] }
0x378f   :  { %v8424_v19 = vpop.f32.mrb[20].mxu0 }
0x3790   :  { %v6436_v34 = vpop.f32.mrb[21].mxu0  ;;  %v6453_v26 = vmul.f32 %v8424_v19, %v8424_v19 }
0x3791   :  { %v8425_v12 = vpop.f32.mrb[22].mxu0  ;;  %v6450_v17 = vmul.f32 %v6436_v34, %v6436_v34 }
0x3792   :  { %v6439_v50 = vpop.f32.mrb[23].mxu0 }
0x3793   :  { %v6451_v22 = vmul.f32 %v6439_v50, %v6439_v50 }
0x3795   :  { %v6452_v42 = vadd.f32 %v6451_v22, %v6450_v17 }
0x3797   :  { %v6454_v46 = vadd.f32 %v6453_v26, %v6452_v42 }
0x3799   :  { %v6455_v60 = vmax.f32 %v6454_v46, 1e-08 }
0x379b   :  { %9162 = vrsqrt.f32 %v6455_v60  ;;  %vm6458_vm14 = vcmp.eq.f32.partialorder %v6455_v60, inf  ;;  %v6461_v20 = vand.u32 2147483648, %v6455_v60  ;;  %vm6460_vm8 = vcmp.eq.f32.partialorder %v6455_v60, 0.0 }
0x37a5   :  { %v9163_v23 = vpop.eup %9162 }
0x37a6   :  { %v6457_v52 = vmul.f32 %v9163_v23, %v6455_v60 }
0x37a8   :  { %v6459_v13 = vsel %vm6458_vm14, %v6455_v60, %v6457_v52 }
0x37a9   :  { %v6462_v27 = vsel %vm6460_vm8, %v6461_v20, %v6459_v13 }
0x37aa   :  { %v7402_v29 = vmul.f32 -1.442695, %v6462_v27 }
0x37ac   :  { %9164 = vpow2.f32 %v7402_v29 }
0x37b6   :  { %v9165_v39 = vpop.eup %9164 }
0x37b7   :  { %v6466_v8 = vadd.f32 1.0, %v9165_v39 }
0x37b9   :  { %9166 = vrcp.f32 %v6466_v8 }
0x37c3   :  { %v9167_v25 = vpop.eup %9166 }
0x37c4   :  { %v6469_v43 = vmul.f32 %v9167_v25, %v6436_v34  ;;  %v6470_v30 = vmul.f32 %v9167_v25, %v6439_v50  ;;  %v6471_v38 = vmul.f32 %v9167_v25, %v8424_v19 }
0x37c6   :  { %v6484_v47 = vpack.c.bf16 %v6470_v30, %v6469_v43  ;;  %v6485_v15 = vpack.c.bf16 %v6471_v38, %v6471_v38  ;;  %v7405_v30 = vld [vmem:[%s11593_s9 + $0x1e] ss:$0 sm:$0xff] }
0x37c8   :  { %8428 = vmatprep.mubr.msk.bf16.mxu0 %vm316_vm4, %v6484_v47 }
0x37c9   :  { %8429 = vmatmul.mubr.msk.bf16.vlgmr.msra.gmra.mrb[24].mxu0 %vm316_vm4, %v6485_v15 }
0x37ca   :  { %8447 = vmatpush3.bf16.msra.mxu0 %v6648_v58 }
0x37cb   :  { %8458 = vmatprep.subr.bf16.mxu0 %v9214_v36 }
0x389c   :  { %v8430_v40 = vpop.f32.mrb[24].mxu0 }
0x389d   :  { %v6529_v57 = vpop.f32.mrb[25].mxu0  ;;  %v6640_v51 = vpack.c.bf16 %v8430_v40, %v8430_v40  ;;  %v6546_v14 = vmul.f32 %v8430_v40, %v8430_v40 }
0x389e   :  { %v8431_v54 = vpop.f32.mrb[26].mxu0  ;;  %v6543_v49 = vmul.f32 %v6529_v57, %v6529_v57 }
0x389f   :  { %v6532_v48 = vpop.f32.mrb[27].mxu0 }
0x38a0   :  { %v6544_v62 = vmul.f32 %v6532_v48, %v6532_v48  ;;  %v6639_v9 = vpack.c.bf16 %v6532_v48, %v6529_v57 }
0x38a2   :  { %v6545_v41 = vadd.f32 %v6544_v62, %v6543_v49  ;;  %8448 = vmatprep.mubr.msk.bf16.mxu0 %vm316_vm4, %v6639_v9 }
0x38a3   :  { %8449 = vmatmul.mubr.msk.bf16.vlgmr.msra.gmra.mrb[28].mxu0 %vm316_vm4, %v6640_v51 }
0x38a4   :  { %v6547_v6 = vadd.f32 %v6546_v14, %v6545_v41  ;;  %8462 = vmatprep.mubr.msk.bf16.mxu0 %vm9215_vm7, %v9214_v36 }
0x38a6   :  { %v6548_v5 = vmax.f32 %v6547_v6, 1e-08 }
0x38a8   :  { %9168 = vrsqrt.f32 %v6548_v5  ;;  %vm6551_vm15 = vcmp.eq.f32.partialorder %v6548_v5, inf  ;;  %v6554_v44 = vand.u32 2147483648, %v6548_v5  ;;  %vm6553_vm0 = vcmp.eq.f32.partialorder %v6548_v5, 0.0 }
0x38b2   :  { %v9169_v59 = vpop.eup %9168 }
0x38b3   :  { %v6550_v4 = vmul.f32 %v9169_v59, %v6548_v5 }
0x38b5   :  { %v6552_v18 = vsel %vm6551_vm15, %v6548_v5, %v6550_v4 }
0x38b6   :  { %v6555_v11 = vsel %vm6553_vm0, %v6554_v44, %v6552_v18 }
0x38b7   :  { %6557 = vrot.lane.b32.xlu1 %v6555_v11, %s9227_s16  ;;  %v7414_v11 = vld [vmem:[%s11593_s9 + $0x1f] ss:$0 sm:$0xff] }
0x3929   :  { %v6558_v53 = vpop.permute.xlu1 %6557 }
0x392a   :  { %v6560_v2 = vsel %vm2604_vm11, %v6390_v32, %v6558_v53 }
0x392b   :  { %v6561_v24 = vpack.c.bf16 %v6560_v2, %v6560_v2 }
0x392d   :  { %8443 = vmatmul.mubr.msk.bf16.vlgmr.msra.gmra.mrb[24].mxu1 %vm2638_vm13, %v6561_v24 }
0x3976   :  { %v8450_v33 = vpop.f32.mrb[28].mxu0 }
0x3977   :  { %v6684_v16 = vpop.f32.mrb[29].mxu0  ;;  %v6701_v12 = vadd.f32 %v8450_v33, %v11412_v1 }
0x3978   :  { %v6699_v35 = vadd.f32 %v6684_v16, %v11408_v7  ;;  %v8451_v19 = vpop.f32.mrb[30].mxu0 }
0x3979   :  { %v6687_v34 = vpop.f32.mrb[31].mxu0  ;;  %v6730_v21 = vmul.f32 %v6701_v12, %v6701_v12 }
0x397a   :  { %v6700_v50 = vadd.f32 %v6687_v34, %v11410_v37  ;;  %v6727_v17 = vmul.f32 %v6699_v35, %v6699_v35  ;;  %v8929_v34 = vld [vmem:[%s11592_s8 + $0x290] sm:$0xff]  }
0x397b   :  { %8459 = vmatpush3.bf16.msra.mxu0 %v8929_v34 }
0x397c   :  { %v6728_v22 = vmul.f32 %v6700_v50, %v6700_v50  ;;  %8460 = vmatprep.subr.bf16.mxu0 %v9214_v36 }
0x397e   :  { %v6729_v26 = vadd.f32 %v6728_v22, %v6727_v17 }
0x3980   :  { %v6731_v42 = vadd.f32 %v6730_v21, %v6729_v26 }
0x3982   :  { %v6732_v46 = vmax.f32 %v6731_v42, 1e-08 }
0x3984   :  { %v6733_v60 = vsel %vm256_vm5, %v6732_v46, 0.0 }
0x3985   :  { %6734 = vadd.xlane.f32.xlu0 %v6733_v60 }
0x3a00   :  { %v6633_v23 = vpop.f32.mrb[24].mxu1 }
0x3a01   :  { %v8444_v52 = vpop.f32.mrb[25].mxu1  ;;  %v6634_v15 = vadd.f32 %v7405_v30, %v6633_v23  ;;  %v7416_v30 = vld [vmem:[%s11593_s9 + $0x21] ss:$0 sm:$0xff] }
0x3a02   :  { %v6636_v20 = vpop.f32.mrb[26].mxu1  ;;  %v8930_v52 = vld [vmem:[%s11592_s8 + $0x298] ss:$0 sps:$4 sm:$0x33]  }
0x3a03   :  { %v8445_v13 = vpop.f32.mrb[27].mxu1  ;;  %v6698_v3 = vadd.f32 %v6634_v15, %v11442_v10  ;;  %v6790_v10 = vld [vmem:[%s11592_s8 + $0x288] sm:$0x3]  ;;  %v6890_v20 = vsel %vm124_vm3, %v8930_v52, 0 }
0x3a04   :  { %8508 = vmatprep.subr.msk.bf16.mxu1 %vm124_vm3, %v6790_v10  ;;  %v6804_v51 = vsel %vm124_vm3, %v6790_v10, 0  ;;  %8461 = vmatpush3.bf16.msra.mxu0 %v6890_v20  ;;  %vm11669_vm3 = vcmask 162816  }
0x3a05   :  { %v6704_v0 = vsel %vm737_vm12, %v6698_v3, 0.0  ;;  %8453 = vmatpush3.bf16.msra.mxu1 %v6804_v51  ;;  %8477 = vmatprep.subr.bf16.mxu0 %v9214_v36 }
0x3a06   :  { %8466 = vmatprep.subr.mxu1 %v9214_v36 }
0x3a12   :  { %v6735_v7 = vpop.xlane.xlu0 %6734 }
0x3a13   :  { %v6736_v27 = vmul.f32 0.25, %v6735_v7 }
0x3a15   :  { %9170 = vrsqrt.f32 %v6736_v27 }
0x3a1f   :  { %v9171_v29 = vpop.eup %9170 }
0x3a20   :  { %6740 = vperm.xlu1 %8662, %v9171_v29  }
0x3a9f   :  { %v6741_v1 = vpop.permute.xlu1 %6740 }
0x3aa0   :  { %v6743_v37 = vmul.f32 %v6741_v1, %v6699_v35  ;;  %v6744_v39 = vmul.f32 %v6741_v1, %v6700_v50  ;;  %v6745_v8 = vmul.f32 %v6741_v1, %v6701_v12 }
0x3aa2   :  { %v6771_v25 = vmul.f32 %v6743_v37, %v6743_v37  ;;  %v6772_v43 = vmul.f32 %v6744_v39, %v6744_v39  ;;  %v6774_v38 = vmul.f32 %v6745_v8, %v6745_v8 }
0x3aa4   :  { %v6773_v47 = vadd.f32 %v6772_v43, %v6771_v25 }
0x3aa6   :  { %v6775_v55 = vadd.f32 %v6774_v38, %v6773_v47  ;;  %v7417_v47 = vld [vmem:[%s11593_s9 + $0x22] ss:$0 sm:$0xff] }
0x3aa8   :  { %v6776_v58 = vmax.f32 %v6775_v55, 1e-08 }
0x3aaa   :  { %v6777_v28 = vsel %vm256_vm5, %v6776_v58, 0.0 }
0x3aab   :  { %6778 = vadd.xlane.f32.xlu1 %v6777_v28  ;;  %v7420_v28 = vld [vmem:[%s11593_s9 + $0x23] ss:$0 sm:$0xff] }
0x3aaf   :  { %6705 = vadd.xlane.f32.xlu1 %v6704_v0 }
0x3b38   :  { %v6779_v45 = vpop.xlane.xlu1 %6778 }
0x3b39   :  { %v6780_v40 = vmul.f32 0.25, %v6779_v45 }
0x3b3b   :  { %9172 = vrsqrt.f32 %v6780_v40 }
0x3b3c   :  { %v6706_v57 = vpop.xlane.xlu1 %6705 }
0x3b3d   :  { %v6707_v54 = vmul.f32 0.0625, %v6706_v57 }
0x3b3f   :  { %v6708_v48 = vsub.f32 %v6698_v3, %v6707_v54 }
0x3b41   :  { %v6709_v49 = vmul.f32 %v6708_v48, %v6708_v48 }
0x3b43   :  { %v6710_v62 = vsel %vm737_vm12, %v6709_v49, 0.0  ;;  %v61_v49 = vld [vmem:[%s11591_s7] sm:$0x1] }
0x3b44   :  { %6711 = vadd.xlane.f32.xlu1 %v6710_v62  ;;  %v8931_v62 = vld [vmem:[%s11592_s8 + $0x2a0] sm:$0xff]  }
0x3b45   :  { %v9173_v9 = vpop.eup %9172 }
0x3b46   :  { %6784 = vperm.xlu0 %8526, %v9173_v9  }
0x3bc5   :  { %v6785_v14 = vpop.permute.xlu0 %6784 }
0x3bc6   :  { %v6787_v41 = vmul.f32 %v6785_v14, %v6743_v37  ;;  %v6788_v6 = vmul.f32 %v6785_v14, %v6744_v39  ;;  %v6789_v5 = vmul.f32 %v6785_v14, %v6745_v8  ;;  %v8932_v14 = vld [vmem:[%s11592_s8 + $0x2a8] sm:$0xff]  }
0x3bc8   :  { %v6795_v56 = vpack.c.bf16 %v6788_v6, %v6787_v41  ;;  %v6796_v31 = vpack.c.bf16 %v6789_v5, %v6789_v5  ;;  %v8933_v41 = vld [vmem:[%s11592_s8 + $0x2b0] sm:$0xff]   ;;  %v7009_v6 = vld [vmem:[%s11593_s9 + $0x24] sm:$0x1]  ;;  %s9228_s8 = smov [#allocation2]  }
0x3bc9   :  { %s7131_s1 = sshll.u32 %s9228_s8, 4  ;;  %s7132_s1 = int_to_ptr.vmem [resolvable:$true] %s7131_s1 }
0x3bca   :  { %8454 = vmatprep.mubr.msk.bf16.mxu1 %vm256_vm5, %v6795_v56  ;;  %s9188_s21 = scalar_lea.vmem %s7132_s1, 16  ;;  %s9192_s0 = scalar_lea.vmem %s7132_s1, 32 }
0x3bcb   :  { %8455 = vmatmul.mubr.msk.bf16.vlgmr.msra.gmra.mrb[28].mxu1 %vm256_vm5, %v6796_v31  ;;  %p9189_p0 = scmp.ne.s32.totalorder %s7132_s1, %s9188_s21  ;;  %p9193_p1 = scmp.lt.s32.totalorder %s7132_s1, %s7132_s1 }
0x3bcc   :  { %8468 = vmatprep.mubr.msk.f32.mxu1 %vm9215_vm7, %v9214_v36  ;;  %p9194_p2 = scmp.lt.s32.totalorder %s9192_s0, %s9188_s21 }
0x3bce   :  { %p9195_p3 = por %p9194_p2, %p9193_p1 }
0x3bd0   :  { %p9196_p4 = pnand %p9195_p3, %p9189_p0 }
0x3bd1   :  { %v6712_v59 = vpop.xlane.xlu1 %6711 }
0x3bd2   :  { %v6713_v4 = vmul.f32 0.0625, %v6712_v59 }
0x3bd4   :  { %v6714_v44 = vadd.f32 1e-05, %v6713_v4 }
0x3bd6   :  { %9174 = vrsqrt.f32 %v6714_v44 }
0x3be0   :  { %v9175_v18 = vpop.eup %9174 }
0x3be1   :  { %v6716_v61 = vmul.f32 %v9175_v18, %v6708_v48 }
0x3be3   :  { %v6721_v32 = vmul.f32 %v7414_v11, %v6716_v61 }
0x3be5   :  { %v6726_v53 = vadd.f32 %v7415_v63, %v6721_v32 }
0x3be7   :  { %v6748_v2 = vsel %vm737_vm12, %v6726_v53, 0.0 }
0x3be8   :  { %6749 = vadd.xlane.f32.xlu1 %v6748_v2 }
0x3c75   :  { %v6750_v24 = vpop.xlane.xlu1 %6749 }
0x3c76   :  { %v6751_v33 = vmul.f32 0.0625, %v6750_v24 }
0x3c78   :  { %v6752_v16 = vsub.f32 %v6726_v53, %v6751_v33 }
0x3c7a   :  { %v6753_v35 = vmul.f32 %v6752_v16, %v6752_v16 }
0x3c7c   :  { %v6754_v19 = vsel %vm737_vm12, %v6753_v35, 0.0 }
0x3c7d   :  { %6755 = vadd.xlane.f32.xlu0 %v6754_v19 }
0x3c9e   :  { %v8456_v12 = vpop.f32.mrb[28].mxu1 }
0x3c9f   :  { %v6840_v50 = vpop.f32.mrb[29].mxu1  ;;  %v6857_v42 = vmul.f32 %v8456_v12, %v8456_v12 }
0x3ca0   :  { %v8457_v17 = vpop.f32.mrb[30].mxu1  ;;  %v6854_v21 = vmul.f32 %v6840_v50, %v6840_v50 }
0x3ca1   :  { %v6843_v22 = vpop.f32.mrb[31].mxu1 }
0x3ca2   :  { %v6855_v26 = vmul.f32 %v6843_v22, %v6843_v22 }
0x3ca4   :  { %v6856_v46 = vadd.f32 %v6855_v26, %v6854_v21 }
0x3ca6   :  { %v6858_v60 = vadd.f32 %v6857_v42, %v6856_v46 }
0x3ca8   :  { %v6859_v23 = vmax.f32 %v6858_v60, 1e-08 }
0x3caa   :  { %9176 = vrsqrt.f32 %v6859_v23  ;;  %vm6862_vm5 = vcmp.eq.f32.partialorder %v6859_v23, inf  ;;  %v6865_v27 = vand.u32 2147483648, %v6859_v23  ;;  %vm6864_vm11 = vcmp.eq.f32.partialorder %v6859_v23, 0.0 }
0x3cb4   :  { %v9177_v13 = vpop.eup %9176 }
0x3cb5   :  { %v6861_v7 = vmul.f32 %v9177_v13, %v6859_v23 }
0x3cb7   :  { %v6863_v29 = vsel %vm6862_vm5, %v6859_v23, %v6861_v7 }
0x3cb8   :  { %v6866_v1 = vsel %vm6864_vm11, %v6865_v27, %v6863_v29 }
0x3cb9   :  { %6868 = vrot.lane.b32.xlu1 %v6866_v1, %s9219_s14 }
0x3d0a   :  { %v6756_v37 = vpop.xlane.xlu0 %6755 }
0x3d0b   :  { %v6757_v39 = vmul.f32 0.0625, %v6756_v37 }
0x3d0d   :  { %v6758_v8 = vadd.f32 1e-05, %v6757_v39 }
0x3d0f   :  { %9178 = vrsqrt.f32 %v6758_v8 }
0x3d19   :  { %v9179_v25 = vpop.eup %9178 }
0x3d1a   :  { %v6760_v43 = vmul.f32 %v9179_v25, %v6752_v16 }
0x3d1c   :  { %v6765_v38 = vmul.f32 %v7416_v30, %v6760_v43 }
0x3d1e   :  { %v6770_v15 = vadd.f32 %v7417_v47, %v6765_v38 }
0x3d2b   :  { %v6869_v55 = vpop.permute.xlu1 %6868 }
0x3d2c   :  { %v6871_v58 = vsel %vm737_vm12, %v6770_v15, %v6869_v55 }
0x3d2d   :  { %v6872_v3 = vpack.c.bf16 %v6871_v58, %v6871_v58 }
0x3d2f   :  { %8463 = vmatmul.mubr.msk.bf16.vlgmr.msra.gmra.mrb[32].mxu0 %vm11669_vm3, %v6872_v3 }
0x3d30   :  { %8481 = vmatprep.mubr.msk.bf16.mxu0 %vm9215_vm7, %v9214_v36  ;;  %8478 = vmatpush3.bf16.msra.mxu0 %v8932_v14 }
0x3d31   :  { %8479 = vmatprep.subr.bf16.mxu0 %v9214_v36 }
0x3d34   :  { %8480 = vmatpush3.bf16.msra.mxu0 %v8933_v41 }
0x3e02   :  { %v6926_v0 = vpop.f32.mrb[32].mxu0 }
0x3e03   :  { %v6927_v45 = vadd.f32 %v7420_v28, %v6926_v0  ;;  %v8464_v40 = vpop.f32.mrb[33].mxu0 }
0x3e04   :  { %v6929_v57 = vpop.f32.mrb[34].mxu0 }
0x3e05   :  { %v6932_v54 = vmax.f32 %v6927_v45, 0.0  ;;  %v8465_v48 = vpop.f32.mrb[35].mxu0 }
0x3e07   :  { %8467 = vmatpush3.msra.mxu1 %v6932_v54 }
0x3e08   :  { %8469 = vmatmul.mubr.msk.f32.vlgmr.msra.gmra.mrb[32].mxu1 %vm316_vm4, %v61_v49  ;;  %8471 = vmatprep.subr.bf16.mxu1 %v9214_v36  ;;  %vm7078_vm4 = vcmask 261120  }
0x3e09   :  { %8473 = vmatprep.mubr.msk.bf16.mxu1 %vm9215_vm7, %v9214_v36  ;;  %8472 = vmatpush3.bf16.msra.mxu1 %v8931_v62  ;;  %v7065_v36 = vld [vmem:[%s11593_s9 + $0x25] sm:$0x1]  ;;  %vm7123_vm7 = vcmask 0  }
0x3edb   :  { %v7002_v9 = vpop.f32.mrb[32].mxu1 }
0x3edc   :  { %v7006_v10 = vpack.c.bf16 %v7002_v9, %v7002_v9  ;;  %v8470_v51 = vpop.f32.mrb[33].mxu1 }
0x3ede   :  { %8474 = vmatmul.mubr.msk.bf16.vlgmr.msra.gmra.mrb[36].mxu1 %vm737_vm12, %v7006_v10 }
0x3fb1   :  { %v7053_v5 = vpop.f32.mrb[36].mxu1 }
0x3fb2   :  { %v7054_v56 = vadd.f32 %v7053_v5, %v7009_v6  ;;  %v8475_v31 = vpop.f32.mrb[37].mxu1 }
0x3fb3   :  { %v7056_v59 = vpop.f32.mrb[38].mxu1 }
0x3fb4   :  { %v7059_v4 = vmax.f32 %v7054_v56, 0.0  ;;  %v8476_v44 = vpop.f32.mrb[39].mxu1 }
0x3fb6   :  { %v7060_v18 = vpack.c.bf16 %v7059_v4, %v7059_v4 }
0x3fb8   :  { %8482 = vmatmul.mubr.msk.bf16.vlgmr.msra.gmra.mrb[36].mxu0 %vm7078_vm4, %v7060_v18 }
0x408b   :  { %v7116_v11 = vpop.f32.mrb[36].mxu0 }
0x408c   :  { %v7117_v61 = vadd.f32 %v7116_v11, %v7065_v36  ;;  %v8483_v63 = vpop.f32.mrb[37].mxu0 }
0x408d   :  { %v7119_v32 = vpop.f32.mrb[38].mxu0 }
0x408e   :  { %v7122_v53 = vadd.f32 0.5, %v7117_v61  ;;  %v8484_v2 = vpop.f32.mrb[39].mxu0 }
0x4090   :  { %7124 = vst.msk [vmem:[#allocation2] sm:$0x1] %vm7123_vm7, %v7122_v53 }
0x4091   :  { %9199 = shalt.err (!%p9196_p4)
}
0x4092   :  { %s9200_s4 = scalar_lea.hbm %s11594_s10, 16 }
0x4093   :  { %p9201_p5 = scmp.ne.s32.totalorder %s11594_s10, %s9200_s4  ;;  %p9204_p6 = scmp.lt.u32.totalorder %s9200_s4, %s11594_s10 }
0x4095   :  { %p9206_p7 = pnand %p9204_p6, %p9201_p5 }
0x4097   :  { %9209 = shalt.err (!%p9206_p7)
}
0x4098   :  { %7134 = dma.vmem_to_hbm [thread:$0]  %s7132_s1, 16, %s11594_s10, [#allocation3]  }
0x4099   :  { %9210 = dma.done.wait [#allocation3], 16  }
0x409a   :  { %9211 = vsyncadd [#allocation3], 4294967280 }
0x409b   :  { %7138 = vsyncpa [#allocation3], 1 }

</bundles_post_ra>
